<compile_context>
chip_gen: v6e
topology: v6e:2x2x1
jax: 0.10.0
libtpu: 0.0.40
codegen_flags: <defaults>
</compile_context>

<pallas_src>
import jax
import jax.numpy as jnp
from jax.experimental import pallas as pl
from jax.experimental.pallas import tpu as pltpu

# ----------------------------- configuration --------------------------------
GS_DIM = 11          # utils.gs_dim      (input gaussian-splat attribute dim)
GS_EMBED_DIM = 128   # utils.gs_embed_dim
EMBED_DIM = 128      # mllm.embedding_dim
NSAMPLE1, NSAMPLE2, NSAMPLE3 = 64, 32, 16

LANE = 128
XYZ_BLOCK = 128      # lanes reserved for the xyz block in the inter-level layout
VMEM_SPEC = pl.BlockSpec(memory_space=pltpu.MemorySpace.VMEM)


def _round_up(c, m=LANE):
    return ((c + m - 1) // m) * m


def _pad_lanes(x, mult=LANE):
    """Zero-pad the channel (lane) dim to a multiple of 128 so MXU passes are full."""
    pad = _round_up(x.shape[-1], mult) - x.shape[-1]
    if pad == 0:
        return x
    return jnp.pad(x, [(0, 0)] * (x.ndim - 1) + [(0, pad)])


def _subsample_points(x, n_out):
    """Deterministic stride subsample along axis 1 (FPS stand-in). One XLA slice."""
    stride = max(x.shape[1] // n_out, 1)
    return x[:, ::stride, :][:, :n_out, :]


# ----------------------------- Pallas kernels --------------------------------
def _make_level_kernel(B, ns, emit_next):
    """Fused per-level path on batch-folded rows [B*ns, cin_p]:
    set-abstraction MLP (Lin-ReLU-Lin) -> projection MLP (Lin-ReLU-Lin) ->
    MMFM residual text injection.  Optionally also emits the next level's input
    in the lane-aligned [xyz(128) | feat(k*128)] bf16 layout (no JAX-side concat/pad)."""
    rows = B * ns

    def kernel(x_ref, txt_ref, ew1_ref, eb1_ref, ew2_ref, eb2_ref,
               pw1_ref, pb1_ref, pw2_ref, pb2_ref, fused_ref, *maybe_nxt):
        x = x_ref[...]                                                    # [rows, cin_p] bf16
        # encoder MLP: bf16 operands, f32 MXU accumulation
        h = jnp.dot(x, ew1_ref[...], preferred_element_type=jnp.float32)
        h = jnp.maximum(h + eb1_ref[...].astype(jnp.float32), 0.0).astype(jnp.bfloat16)
        f = jnp.dot(h, ew2_ref[...], preferred_element_type=jnp.float32)
        f = f + eb2_ref[...].astype(jnp.float32)                          # [rows, enc_o_p] f32
        fb = f.astype(jnp.bfloat16)

        if emit_next:
            # Next level's input, emitted directly with 128-lane-aligned stores:
            # lanes [0:128) = xyz (real at 0..2), lanes [128:) = encoder features.
            nxt_ref, = maybe_nxt
            lane = jax.lax.broadcasted_iota(jnp.int32, (rows, XYZ_BLOCK), 1)
            xyz_blk = jnp.where(lane < 3, x[:, :XYZ_BLOCK], 0.0).astype(jnp.bfloat16)
            nxt_ref[:, :XYZ_BLOCK] = xyz_blk
            nxt_ref[:, XYZ_BLOCK:] = fb

        # projection MLP (mlp_i in the reference module)
        h2 = jnp.dot(fb, pw1_ref[...], preferred_element_type=jnp.float32)
        h2 = jnp.maximum(h2 + pb1_ref[...].astype(jnp.float32), 0.0).astype(jnp.bfloat16)
        p = jnp.dot(h2, pw2_ref[...], preferred_element_type=jnp.float32)
        p = p + pb2_ref[...].astype(jnp.float32)                          # [rows, 128] f32

        # MMFM (simplified to residual text injection): broadcast the hoisted
        # per-batch text projection across each batch's row block.
        txt = txt_ref[...]                                                # [B, 128] f32
        fused = p.reshape(B, ns, GS_EMBED_DIM) + txt[:, None, :]
        fused_ref[...] = fused.astype(fused_ref.dtype)                    # [B, ns, 128]

    return kernel


def fused_level_call(x_flat, txt, lvl_params, B, ns, next_width=None):
    """x_flat: [B*ns, cin_p] bf16 (already row-subsampled).  txt: [B, 128] f32."""
    emit_next = next_width is not None
    rows = B * ns
    kernel = _make_level_kernel(B, ns, emit_next)
    fused_shape = jax.ShapeDtypeStruct((B, ns, GS_EMBED_DIM), jnp.float32)
    n_in = 2 + len(lvl_params)
    if emit_next:
        fused, nxt = pl.pallas_call(
            kernel,
            out_shape=[fused_shape,
                       jax.ShapeDtypeStruct((rows, next_width), jnp.bfloat16)],
            in_specs=[VMEM_SPEC] * n_in,
            out_specs=[VMEM_SPEC, VMEM_SPEC],
        )(x_flat, txt, *lvl_params)
        return fused, nxt
    fused = pl.pallas_call(
        kernel,
        out_shape=fused_shape,
        in_specs=[VMEM_SPEC] * n_in,
        out_specs=VMEM_SPEC,
    )(x_flat, txt, *lvl_params)
    return fused, None


def _decoder_affmap_kernel(q_ref, kv_ref, w_ref, b_ref, up_ref, m_ref,
                           dyn_ref, map_ref):
    """Fused: single-query cross attention -> lin_after_decode -> F.normalize(dim=1)
    -> per-point dot with the dynamic kernel -> sigmoid -> mask.  One launch for all B,
    lane-dense [B, N] output (no transpose / HBM round-trip for dyn)."""
    q = q_ref[...]                                                   # [B, C] f32
    kv = kv_ref[...]                                                 # [B, n, C] f32
    scale = 1.0 / jnp.sqrt(jnp.float32(q.shape[-1]))
    s = jnp.sum(q[:, None, :] * kv, axis=-1) * scale                 # [B, n]
    s = s - jnp.max(s, axis=-1, keepdims=True)
    p = jnp.exp(s)
    p = p / jnp.sum(p, axis=-1, keepdims=True)                       # exact softmax
    attn = jnp.sum(p[:, :, None] * kv, axis=1)                       # [B, C]
    dyn = (jnp.dot(attn.astype(jnp.bfloat16), w_ref[...],
                   preferred_element_type=jnp.float32)
           + b_ref[...].astype(jnp.float32))                         # [B, C]
    dyn_ref[...] = dyn

    # Matches F.normalize(upsampled, p=2, dim=1): per-channel L2 norm over all N points.
    up = up_ref[...]                                                 # [B, N, C] f32
    nrm = jnp.sqrt(jnp.sum(up * up, axis=1, keepdims=True))          # [B, 1, C]
    xn = up / jnp.maximum(nrm, 1e-12)
    logits = jnp.sum(xn * dyn[:, None, :], axis=-1)                  # [B, N]
    map_ref[...] = jax.nn.sigmoid(logits) * m_ref[...]


def pallas_decoder_affmap(aff_hidden, fused_feature, dec_w, dec_b, upsampled, masks):
    B, _, C = fused_feature.shape
    N = upsampled.shape[1]
    dyn, amap = pl.pallas_call(
        _decoder_affmap_kernel,
        out_shape=[jax.ShapeDtypeStruct((B, C), jnp.float32),
                   jax.ShapeDtypeStruct((B, N), jnp.float32)],
        in_specs=[VMEM_SPEC] * 6,
        out_specs=[VMEM_SPEC, VMEM_SPEC],
    )(aff_hidden.astype(jnp.float32), fused_feature.astype(jnp.float32),
      dec_w, dec_b, upsampled.astype(jnp.float32), masks.astype(jnp.float32))
    return dyn, amap


# --------------------------- submodule stand-ins ------------------------------
def mllm_stub(question, answer, batch, embed_dim):
    # TODO(synk): the MLLM text encoder / LM loss has no Pallas equivalent; deterministic stub.
    seed = sum(sum(ord(c) for c in q) for q in question) % (2 ** 31 - 1)
    key = jax.random.PRNGKey(seed)
    aff_hidden = 0.1 * jax.random.normal(key, (batch, embed_dim), jnp.float32)
    return {"aff_hidden_states": aff_hidden,
            "text_loss": jnp.float32(0.0),
            "predicted_text": list(answer)}


def three_nn_interpolate(query_xyz, ref_xyz, ref_feat):
    """3-NN inverse-distance-weighted feature interpolation (PointNet++ style)."""
    d2 = jnp.sum((query_xyz[:, :, None, :] - ref_xyz[:, None, :, :]) ** 2, axis=-1)  # [B,Q,R]
    neg_d2, idx = jax.lax.top_k(-d2, 3)
    w = 1.0 / (-neg_d2 + 1e-8)
    w = w / jnp.sum(w, axis=-1, keepdims=True)
    gathered = jax.vmap(lambda f, i: f[i])(ref_feat.astype(jnp.float32), idx)        # [B,Q,3,C]
    return jnp.sum(gathered * w[..., None], axis=2)


def gam(params, fused_list, centroids_list):
    # TODO(synk): GAM graph attention simplified to multi-scale 3-NN upsampling + learned
    # softmax scale weights.
    f3, f2, f1 = fused_list
    c3, c2, c1 = centroids_list
    f3_up = three_nn_interpolate(c1, c3, f3)
    f2_up = three_nn_interpolate(c1, c2, f2)
    w = jax.nn.softmax(params["gam_w"])
    fused = w[0] * f3_up + w[1] * f2_up + w[2] * f1
    return fused, w


def optimized_upsample(padded_gs_xyz, centroids_xyz, skip, fused_feature, masks):
    # TODO(synk): Optimized_Upsample skip/mask handling reduced to 3-NN IDW interpolation.
    del skip, masks
    return three_nn_interpolate(padded_gs_xyz, centroids_xyz, fused_feature)


# ------------------------------- parameters ----------------------------------
def _slab_linear(key, row_blocks, cin_p, cout, scale=0.05):
    """Linear weights embedded in a zero-padded [cin_p, cout_p] slab.  Real weight
    rows live at the given (offset, size) blocks (matching the lane-aligned
    inter-level layout) so every matmul is exact and padded lanes stay exactly zero."""
    cout_p = _round_up(cout)
    ks = jax.random.split(key, len(row_blocks) + 1)
    w = jnp.zeros((cin_p, cout_p), jnp.float32)
    for kk, (off, sz) in zip(ks[:-1], row_blocks):
        w = w.at[off:off + sz, :cout].set(scale * jax.random.normal(kk, (sz, cout), jnp.float32))
    b = jnp.zeros((1, cout_p), jnp.float32)
    b = b.at[:, :cout].set(scale * jax.random.normal(ks[-1], (1, cout), jnp.float32))
    return w.astype(jnp.bfloat16), b.astype(jnp.bfloat16)


def _level_params(key, in_blocks, cin_p, enc_hid, enc_out, proj_hid):
    k1, k2, k3, k4 = jax.random.split(key, 4)
    ew1, eb1 = _slab_linear(k1, in_blocks, cin_p, enc_hid)
    ew2, eb2 = _slab_linear(k2, [(0, enc_hid)], _round_up(enc_hid), enc_out)
    pw1, pb1 = _slab_linear(k3, [(0, enc_out)], _round_up(enc_out), proj_hid)
    pw2, pb2 = _slab_linear(k4, [(0, proj_hid)], _round_up(proj_hid), GS_EMBED_DIM)
    return (ew1, eb1, ew2, eb2, pw1, pb1, pw2, pb2)


def init_params(key):
    ks = jax.random.split(key, 7)
    p = {}
    # level 1: input = 11-d gaussian attrs in a 128-lane slab
    p["lvl1"] = _level_params(ks[0], [(0, GS_DIM)], 128, 160, 160, 160)
    # level 2: input = [xyz(3) @ lanes 0..2 | feat1(160) @ lanes 128..287] in a 384-lane slab
    p["lvl2"] = _level_params(ks[1], [(0, 3), (XYZ_BLOCK, 160)], XYZ_BLOCK + 256, 320, 320, 320)
    # level 3: input = [xyz(3) @ lanes 0..2 | feat2(320) @ lanes 128..447] in a 512-lane slab
    p["lvl3"] = _level_params(ks[2], [(0, 3), (XYZ_BLOCK, 320)], XYZ_BLOCK + 384, 640, 640, 640)
    # MMFM text projection (hoisted, applied once per forward in f32 on the wrapper side)
    p["mmfm_w"] = 0.05 * jax.random.normal(ks[3], (EMBED_DIM, GS_EMBED_DIM), jnp.float32)
    p["mmfm_b"] = 0.05 * jax.random.normal(ks[4], (1, GS_EMBED_DIM), jnp.float32)
    p["gam_w"] = 0.1 * jax.random.normal(ks[5], (3,), jnp.float32)
    p["dec_w"], p["dec_b"] = _slab_linear(ks[6], [(0, GS_EMBED_DIM)], GS_EMBED_DIM, GS_EMBED_DIM)
    return p


# ------------------------------- forward --------------------------------------
@jax.jit
def _forward_core(params, gs_features, padded_gs_datas, masks, aff_hidden):
    B, N, _ = gs_features.shape
    padded_gs_xyz = padded_gs_datas[:, :, :3].astype(jnp.float32)

    # Hoisted MMFM text projection: computed once, shared by all three levels.
    txt = aff_hidden.astype(jnp.float32) @ params["mmfm_w"] + params["mmfm_b"]     # [B, 128]

    # Centroids: deterministic stride subsample (FPS stand-in), kept in f32.
    # TODO(synk): PointNet++ FPS/ball-query grouping + transformer encoder replaced by
    # stride subsampling + a shared pointwise MLP (fused Pallas kernel per level).
    c1 = _subsample_points(gs_features, NSAMPLE1)[:, :, :3].astype(jnp.float32)
    c2 = _subsample_points(c1, NSAMPLE2)
    c3 = _subsample_points(c2, NSAMPLE3)

    # Level-1 input: lane-pad the 11-d attrs to 128 and fold batch into MXU rows.
    x0 = _pad_lanes(gs_features).astype(jnp.bfloat16)                              # [B, N, 128]
    x1 = _subsample_points(x0, NSAMPLE1).reshape(B * NSAMPLE1, LANE)

    fused1, nxt1 = fused_level_call(x1, txt, params["lvl1"], B, NSAMPLE1,
                                    next_width=XYZ_BLOCK + 256)
    x2 = _subsample_points(nxt1.reshape(B, NSAMPLE1, -1), NSAMPLE2).reshape(B * NSAMPLE2, -1)
    fused2, nxt2 = fused_level_call(x2, txt, params["lvl2"], B, NSAMPLE2,
                                    next_width=XYZ_BLOCK + 384)
    x3 = _subsample_points(nxt2.reshape(B, NSAMPLE2, -1), NSAMPLE3).reshape(B * NSAMPLE3, -1)
    fused3, _ = fused_level_call(x3, txt, params["lvl3"], B, NSAMPLE3, next_width=None)

    fused_feature, _w = gam(params, [fused3, fused2, fused1], [c3, c2, c1])        # [B, 64, 128]
    upsampled = optimized_upsample(padded_gs_xyz, c1, None, fused_feature, masks)  # [B, N, 128]

    # Fused decoder attention + lin_after_decode + normalize + bmm + sigmoid*mask.
    dyn, amap = pallas_decoder_affmap(aff_hidden, fused_feature,
                                      params["dec_w"], params["dec_b"], upsampled, masks)
    dynamic_kernels = dyn[:, :, None]                                              # [B, 128, 1]
    gs_aff_map = amap[:, :, None]                                                  # [B, N, 1]
    return dynamic_kernels, gs_aff_map


def affordsplat_forward(params, gs_features, padded_gs_datas, masks,
                        pc_xyz_all, pc_aff_map_all, question, answer, use_csa=False):
    del pc_xyz_all, pc_aff_map_all
    if use_csa:
        # TODO(synk): CSA (threshold grouping + cross kNN structure alignment) not implemented.
        raise NotImplementedError("CSA branch not implemented in the Pallas port")
    text = mllm_stub(question, answer, gs_features.shape[0], EMBED_DIM)
    dynamic_kernels, gs_aff_map = _forward_core(
        params, gs_features, padded_gs_datas, masks, text["aff_hidden_states"])
    return dynamic_kernels, gs_aff_map, text["text_loss"], text["predicted_text"]


# --------------------------------- main ---------------------------------------
if __name__ == "__main__":
    key = jax.random.PRNGKey(0)
    B, N = 2, 256
    kx, kd, km, kpc, kpa, kp = jax.random.split(key, 6)

    gs_features = jax.random.normal(kx, (B, N, GS_DIM), jnp.float32)
    padded_gs_datas = jax.random.normal(kd, (B, N, GS_DIM), jnp.float32)
    masks = (jax.random.uniform(km, (B, N)) > 0.1).astype(jnp.float32)
    pc_xyz_all = jax.random.normal(kpc, (B, 128, 3), jnp.float32)
    pc_aff_map_all = jax.random.uniform(kpa, (B, 128, 1), jnp.float32)
    question = ["what part to grasp?", "where to hold it?"]
    answer = ["the handle", "the grip"]

    params = init_params(kp)

    dynamic_kernels, gs_aff_map, text_loss, predicted_text = affordsplat_forward(
        params, gs_features, padded_gs_datas, masks,
        pc_xyz_all, pc_aff_map_all, question, answer, use_csa=False)

    jax.block_until_ready((dynamic_kernels, gs_aff_map, text_loss))
    assert dynamic_kernels.shape == (B, GS_EMBED_DIM, 1)
    assert gs_aff_map.shape == (B, N, 1)
    assert bool(jnp.all(jnp.isfinite(gs_aff_map)))
    assert bool(jnp.all(jnp.isfinite(dynamic_kernels)))
    print("KERNEL_OK")
</pallas_src>

<mosaic_0001>
module attributes {stable_mosaic.version = 11 : i64} {
  func.func @kernel(%arg0: memref<128x128xbf16, #tpu.memory_space<vmem>>, %arg1: memref<2x128xf32, #tpu.memory_space<vmem>>, %arg2: memref<128x256xbf16, #tpu.memory_space<vmem>>, %arg3: memref<1x256xbf16, #tpu.memory_space<vmem>>, %arg4: memref<256x256xbf16, #tpu.memory_space<vmem>>, %arg5: memref<1x256xbf16, #tpu.memory_space<vmem>>, %arg6: memref<256x256xbf16, #tpu.memory_space<vmem>>, %arg7: memref<1x256xbf16, #tpu.memory_space<vmem>>, %arg8: memref<256x128xbf16, #tpu.memory_space<vmem>>, %arg9: memref<1x128xbf16, #tpu.memory_space<vmem>>, %arg10: memref<2x64x128xf32, #tpu.memory_space<vmem>>, %arg11: memref<128x384xbf16, #tpu.memory_space<vmem>>) attributes {dimension_semantics = [], scalar_prefetch = 0 : i64, scratch_operands = 0 : i64, tpu.core_type = #tpu.core_type<tc>} {
    %c0 = arith.constant 0 : index
    %c0_0 = arith.constant 0 : index
    %0 = vector.load %arg0[%c0, %c0_0] : memref<128x128xbf16, #tpu.memory_space<vmem>>, vector<128x128xbf16>
    %c0_1 = arith.constant 0 : index
    %c0_2 = arith.constant 0 : index
    %1 = vector.load %arg2[%c0_1, %c0_2] : memref<128x256xbf16, #tpu.memory_space<vmem>>, vector<128x256xbf16>
    %cst = arith.constant dense<0.000000e+00> : vector<128x256xf32>
    %2 = tpu.matmul %0, %1, %cst {dimension_numbers = #tpu.dot_dimension_numbers<[1], [0], [0], [1], [0, 0, 1, 1], [], []>} : vector<128x128xbf16>, vector<128x256xbf16>, vector<128x256xf32> -> vector<128x256xf32>
    %c0_3 = arith.constant 0 : index
    %c0_4 = arith.constant 0 : index
    %3 = vector.load %arg3[%c0_3, %c0_4] : memref<1x256xbf16, #tpu.memory_space<vmem>>, vector<1x256xbf16>
    %4 = arith.extf %3 : vector<1x256xbf16> to vector<1x256xf32>
    %5 = vector.broadcast %4 : vector<1x256xf32> to vector<128x256xf32>
    %6 = arith.addf %2, %5 : vector<128x256xf32>
    %cst_5 = arith.constant 0.000000e+00 : f32
    %7 = vector.broadcast %cst_5 : f32 to vector<128x256xf32>
    %8 = arith.maximumf %6, %7 : vector<128x256xf32>
    %9 = arith.truncf %8 : vector<128x256xf32> to vector<128x256xbf16>
    %c0_6 = arith.constant 0 : index
    %c0_7 = arith.constant 0 : index
    %10 = vector.load %arg4[%c0_6, %c0_7] : memref<256x256xbf16, #tpu.memory_space<vmem>>, vector<256x256xbf16>
    %cst_8 = arith.constant dense<0.000000e+00> : vector<128x256xf32>
    %11 = tpu.matmul %9, %10, %cst_8 {dimension_numbers = #tpu.dot_dimension_numbers<[1], [0], [0], [1], [0, 0, 1, 1], [], []>} : vector<128x256xbf16>, vector<256x256xbf16>, vector<128x256xf32> -> vector<128x256xf32>
    %c0_9 = arith.constant 0 : index
    %c0_10 = arith.constant 0 : index
    %12 = vector.load %arg5[%c0_9, %c0_10] : memref<1x256xbf16, #tpu.memory_space<vmem>>, vector<1x256xbf16>
    %13 = arith.extf %12 : vector<1x256xbf16> to vector<1x256xf32>
    %14 = vector.broadcast %13 : vector<1x256xf32> to vector<128x256xf32>
    %15 = arith.addf %11, %14 : vector<128x256xf32>
    %16 = arith.truncf %15 : vector<128x256xf32> to vector<128x256xbf16>
    %17 = tpu.iota {dimensions = array<i32: 1>} : vector<128x128xi32>
    %c3_i32 = arith.constant 3 : i32
    %18 = vector.broadcast %c3_i32 : i32 to vector<128x128xi32>
    %19 = arith.cmpi slt, %17, %18 : vector<128x128xi32>
    %cst_11 = arith.constant 0.000000e+00 : f32
    %20 = arith.truncf %cst_11 : f32 to bf16
    %21 = vector.broadcast %20 : bf16 to vector<128x128xbf16>
    %22 = arith.select %19, %0, %21 : vector<128x128xi1>, vector<128x128xbf16>
    %c0_12 = arith.constant 0 : index
    %c0_13 = arith.constant 0 : index
    %23 = vector.load %arg11[%c0_12, %c0_13] : memref<128x384xbf16, #tpu.memory_space<vmem>>, vector<128x128xbf16>
    tpu.vector_store %arg11[%c0_12, %c0_13], %22 {strides = array<i32>} : memref<128x384xbf16, #tpu.memory_space<vmem>>, vector<128x128xbf16>,
    %c0_14 = arith.constant 0 : index
    %c128 = arith.constant 128 : index
    %24 = vector.load %arg11[%c0_14, %c128] : memref<128x384xbf16, #tpu.memory_space<vmem>>, vector<128x256xbf16>
    tpu.vector_store %arg11[%c0_14, %c128], %16 {strides = array<i32>} : memref<128x384xbf16, #tpu.memory_space<vmem>>, vector<128x256xbf16>,
    %c0_15 = arith.constant 0 : index
    %c0_16 = arith.constant 0 : index
    %25 = vector.load %arg6[%c0_15, %c0_16] : memref<256x256xbf16, #tpu.memory_space<vmem>>, vector<256x256xbf16>
    %cst_17 = arith.constant dense<0.000000e+00> : vector<128x256xf32>
    %26 = tpu.matmul %16, %25, %cst_17 {dimension_numbers = #tpu.dot_dimension_numbers<[1], [0], [0], [1], [0, 0, 1, 1], [], []>} : vector<128x256xbf16>, vector<256x256xbf16>, vector<128x256xf32> -> vector<128x256xf32>
    %c0_18 = arith.constant 0 : index
    %c0_19 = arith.constant 0 : index
    %27 = vector.load %arg7[%c0_18, %c0_19] : memref<1x256xbf16, #tpu.memory_space<vmem>>, vector<1x256xbf16>
    %28 = arith.extf %27 : vector<1x256xbf16> to vector<1x256xf32>
    %29 = vector.broadcast %28 : vector<1x256xf32> to vector<128x256xf32>
    %30 = arith.addf %26, %29 : vector<128x256xf32>
    %cst_20 = arith.constant 0.000000e+00 : f32
    %31 = vector.broadcast %cst_20 : f32 to vector<128x256xf32>
    %32 = arith.maximumf %30, %31 : vector<128x256xf32>
    %33 = arith.truncf %32 : vector<128x256xf32> to vector<128x256xbf16>
    %c0_21 = arith.constant 0 : index
    %c0_22 = arith.constant 0 : index
    %34 = vector.load %arg8[%c0_21, %c0_22] : memref<256x128xbf16, #tpu.memory_space<vmem>>, vector<256x128xbf16>
    %cst_23 = arith.constant dense<0.000000e+00> : vector<128x128xf32>
    %35 = tpu.matmul %33, %34, %cst_23 {dimension_numbers = #tpu.dot_dimension_numbers<[1], [0], [0], [1], [0, 0, 1, 1], [], []>} : vector<128x256xbf16>, vector<256x128xbf16>, vector<128x128xf32> -> vector<128x128xf32>
    %c0_24 = arith.constant 0 : index
    %c0_25 = arith.constant 0 : index
    %36 = vector.load %arg9[%c0_24, %c0_25] : memref<1x128xbf16, #tpu.memory_space<vmem>>, vector<1x128xbf16>
    %37 = arith.extf %36 : vector<1x128xbf16> to vector<1x128xf32>
    %38 = vector.broadcast %37 : vector<1x128xf32> to vector<128x128xf32>
    %39 = arith.addf %35, %38 : vector<128x128xf32>
    %c0_26 = arith.constant 0 : index
    %c0_27 = arith.constant 0 : index
    %40 = vector.load %arg1[%c0_26, %c0_27] : memref<2x128xf32, #tpu.memory_space<vmem>>, vector<2x128xf32>
    %41 = vector.shape_cast %39 : vector<128x128xf32> to vector<2x64x128xf32>
    %42 = vector.shape_cast %40 : vector<2x128xf32> to vector<2x1x128xf32>
    %43 = vector.broadcast %42 : vector<2x1x128xf32> to vector<2x64x128xf32>
    %44 = arith.addf %41, %43 : vector<2x64x128xf32>
    %c0_28 = arith.constant 0 : index
    %c0_29 = arith.constant 0 : index
    %c0_30 = arith.constant 0 : index
    %45 = vector.load %arg10[%c0_28, %c0_29, %c0_30] : memref<2x64x128xf32, #tpu.memory_space<vmem>>, vector<2x64x128xf32>
    tpu.vector_store %arg10[%c0_28, %c0_29, %c0_30], %44 {strides = array<i32>} : memref<2x64x128xf32, #tpu.memory_space<vmem>>, vector<2x64x128xf32>,
    return
  }
}

module attributes {stable_mosaic.version = 11 : i64} {
  func.func @kernel(%arg0: memref<64x384xbf16, #tpu.memory_space<vmem>>, %arg1: memref<2x128xf32, #tpu.memory_space<vmem>>, %arg2: memref<384x384xbf16, #tpu.memory_space<vmem>>, %arg3: memref<1x384xbf16, #tpu.memory_space<vmem>>, %arg4: memref<384x384xbf16, #tpu.memory_space<vmem>>, %arg5: memref<1x384xbf16, #tpu.memory_space<vmem>>, %arg6: memref<384x384xbf16, #tpu.memory_space<vmem>>, %arg7: memref<1x384xbf16, #tpu.memory_space<vmem>>, %arg8: memref<384x128xbf16, #tpu.memory_space<vmem>>, %arg9: memref<1x128xbf16, #tpu.memory_space<vmem>>, %arg10: memref<2x32x128xf32, #tpu.memory_space<vmem>>, %arg11: memref<64x512xbf16, #tpu.memory_space<vmem>>) attributes {dimension_semantics = [], scalar_prefetch = 0 : i64, scratch_operands = 0 : i64, tpu.core_type = #tpu.core_type<tc>} {
    %c0 = arith.constant 0 : index
    %c0_0 = arith.constant 0 : index
    %0 = vector.load %arg0[%c0, %c0_0] : memref<64x384xbf16, #tpu.memory_space<vmem>>, vector<64x384xbf16>
    %c0_1 = arith.constant 0 : index
    %c0_2 = arith.constant 0 : index
    %1 = vector.load %arg2[%c0_1, %c0_2] : memref<384x384xbf16, #tpu.memory_space<vmem>>, vector<384x384xbf16>
    %cst = arith.constant dense<0.000000e+00> : vector<64x384xf32>
    %2 = tpu.matmul %0, %1, %cst {dimension_numbers = #tpu.dot_dimension_numbers<[1], [0], [0], [1], [0, 0, 1, 1], [], []>} : vector<64x384xbf16>, vector<384x384xbf16>, vector<64x384xf32> -> vector<64x384xf32>
    %c0_3 = arith.constant 0 : index
    %c0_4 = arith.constant 0 : index
    %3 = vector.load %arg3[%c0_3, %c0_4] : memref<1x384xbf16, #tpu.memory_space<vmem>>, vector<1x384xbf16>
    %4 = arith.extf %3 : vector<1x384xbf16> to vector<1x384xf32>
    %5 = vector.broadcast %4 : vector<1x384xf32> to vector<64x384xf32>
    %6 = arith.addf %2, %5 : vector<64x384xf32>
    %cst_5 = arith.constant 0.000000e+00 : f32
    %7 = vector.broadcast %cst_5 : f32 to vector<64x384xf32>
    %8 = arith.maximumf %6, %7 : vector<64x384xf32>
    %9 = arith.truncf %8 : vector<64x384xf32> to vector<64x384xbf16>
    %c0_6 = arith.constant 0 : index
    %c0_7 = arith.constant 0 : index
    %10 = vector.load %arg4[%c0_6, %c0_7] : memref<384x384xbf16, #tpu.memory_space<vmem>>, vector<384x384xbf16>
    %cst_8 = arith.constant dense<0.000000e+00> : vector<64x384xf32>
    %11 = tpu.matmul %9, %10, %cst_8 {dimension_numbers = #tpu.dot_dimension_numbers<[1], [0], [0], [1], [0, 0, 1, 1], [], []>} : vector<64x384xbf16>, vector<384x384xbf16>, vector<64x384xf32> -> vector<64x384xf32>
    %c0_9 = arith.constant 0 : index
    %c0_10 = arith.constant 0 : index
    %12 = vector.load %arg5[%c0_9, %c0_10] : memref<1x384xbf16, #tpu.memory_space<vmem>>, vector<1x384xbf16>
    %13 = arith.extf %12 : vector<1x384xbf16> to vector<1x384xf32>
    %14 = vector.broadcast %13 : vector<1x384xf32> to vector<64x384xf32>
    %15 = arith.addf %11, %14 : vector<64x384xf32>
    %16 = arith.truncf %15 : vector<64x384xf32> to vector<64x384xbf16>
    %17 = tpu.iota {dimensions = array<i32: 1>} : vector<64x128xi32>
    %c3_i32 = arith.constant 3 : i32
    %18 = vector.broadcast %c3_i32 : i32 to vector<64x128xi32>
    %19 = arith.cmpi slt, %17, %18 : vector<64x128xi32>
    %20 = vector.extract_strided_slice %0 {offsets = [0, 0], sizes = [64, 128], strides = [1, 1]} : vector<64x384xbf16> to vector<64x128xbf16>
    %cst_11 = arith.constant 0.000000e+00 : f32
    %21 = arith.truncf %cst_11 : f32 to bf16
    %22 = vector.broadcast %21 : bf16 to vector<64x128xbf16>
    %23 = arith.select %19, %20, %22 : vector<64x128xi1>, vector<64x128xbf16>
    %c0_12 = arith.constant 0 : index
    %c0_13 = arith.constant 0 : index
    %24 = vector.load %arg11[%c0_12, %c0_13] : memref<64x512xbf16, #tpu.memory_space<vmem>>, vector<64x128xbf16>
    tpu.vector_store %arg11[%c0_12, %c0_13], %23 {strides = array<i32>} : memref<64x512xbf16, #tpu.memory_space<vmem>>, vector<64x128xbf16>,
    %c0_14 = arith.constant 0 : index
    %c128 = arith.constant 128 : index
    %25 = vector.load %arg11[%c0_14, %c128] : memref<64x512xbf16, #tpu.memory_space<vmem>>, vector<64x384xbf16>
    tpu.vector_store %arg11[%c0_14, %c128], %16 {strides = array<i32>} : memref<64x512xbf16, #tpu.memory_space<vmem>>, vector<64x384xbf16>,
    %c0_15 = arith.constant 0 : index
    %c0_16 = arith.constant 0 : index
    %26 = vector.load %arg6[%c0_15, %c0_16] : memref<384x384xbf16, #tpu.memory_space<vmem>>, vector<384x384xbf16>
    %cst_17 = arith.constant dense<0.000000e+00> : vector<64x384xf32>
    %27 = tpu.matmul %16, %26, %cst_17 {dimension_numbers = #tpu.dot_dimension_numbers<[1], [0], [0], [1], [0, 0, 1, 1], [], []>} : vector<64x384xbf16>, vector<384x384xbf16>, vector<64x384xf32> -> vector<64x384xf32>
    %c0_18 = arith.constant 0 : index
    %c0_19 = arith.constant 0 : index
    %28 = vector.load %arg7[%c0_18, %c0_19] : memref<1x384xbf16, #tpu.memory_space<vmem>>, vector<1x384xbf16>
    %29 = arith.extf %28 : vector<1x384xbf16> to vector<1x384xf32>
    %30 = vector.broadcast %29 : vector<1x384xf32> to vector<64x384xf32>
    %31 = arith.addf %27, %30 : vector<64x384xf32>
    %cst_20 = arith.constant 0.000000e+00 : f32
    %32 = vector.broadcast %cst_20 : f32 to vector<64x384xf32>
    %33 = arith.maximumf %31, %32 : vector<64x384xf32>
    %34 = arith.truncf %33 : vector<64x384xf32> to vector<64x384xbf16>
    %c0_21 = arith.constant 0 : index
    %c0_22 = arith.constant 0 : index
    %35 = vector.load %arg8[%c0_21, %c0_22] : memref<384x128xbf16, #tpu.memory_space<vmem>>, vector<384x128xbf16>
    %cst_23 = arith.constant dense<0.000000e+00> : vector<64x128xf32>
    %36 = tpu.matmul %34, %35, %cst_23 {dimension_numbers = #tpu.dot_dimension_numbers<[1], [0], [0], [1], [0, 0, 1, 1], [], []>} : vector<64x384xbf16>, vector<384x128xbf16>, vector<64x128xf32> -> vector<64x128xf32>
    %c0_24 = arith.constant 0 : index
    %c0_25 = arith.constant 0 : index
    %37 = vector.load %arg9[%c0_24, %c0_25] : memref<1x128xbf16, #tpu.memory_space<vmem>>, vector<1x128xbf16>
    %38 = arith.extf %37 : vector<1x128xbf16> to vector<1x128xf32>
    %39 = vector.broadcast %38 : vector<1x128xf32> to vector<64x128xf32>
    %40 = arith.addf %36, %39 : vector<64x128xf32>
    %c0_26 = arith.constant 0 : index
    %c0_27 = arith.constant 0 : index
    %41 = vector.load %arg1[%c0_26, %c0_27] : memref<2x128xf32, #tpu.memory_space<vmem>>, vector<2x128xf32>
    %42 = vector.shape_cast %40 : vector<64x128xf32> to vector<2x32x128xf32>
    %43 = vector.shape_cast %41 : vector<2x128xf32> to vector<2x1x128xf32>
    %44 = vector.broadcast %43 : vector<2x1x128xf32> to vector<2x32x128xf32>
    %45 = arith.addf %42, %44 : vector<2x32x128xf32>
    %c0_28 = arith.constant 0 : index
    %c0_29 = arith.constant 0 : index
    %c0_30 = arith.constant 0 : index
    %46 = vector.load %arg10[%c0_28, %c0_29, %c0_30] : memref<2x32x128xf32, #tpu.memory_space<vmem>>, vector<2x32x128xf32>
    tpu.vector_store %arg10[%c0_28, %c0_29, %c0_30], %45 {strides = array<i32>} : memref<2x32x128xf32, #tpu.memory_space<vmem>>, vector<2x32x128xf32>,
    return
  }
}

module attributes {stable_mosaic.version = 11 : i64} {
  func.func @kernel(%arg0: memref<32x512xbf16, #tpu.memory_space<vmem>>, %arg1: memref<2x128xf32, #tpu.memory_space<vmem>>, %arg2: memref<512x640xbf16, #tpu.memory_space<vmem>>, %arg3: memref<1x640xbf16, #tpu.memory_space<vmem>>, %arg4: memref<640x640xbf16, #tpu.memory_space<vmem>>, %arg5: memref<1x640xbf16, #tpu.memory_space<vmem>>, %arg6: memref<640x640xbf16, #tpu.memory_space<vmem>>, %arg7: memref<1x640xbf16, #tpu.memory_space<vmem>>, %arg8: memref<640x128xbf16, #tpu.memory_space<vmem>>, %arg9: memref<1x128xbf16, #tpu.memory_space<vmem>>, %arg10: memref<2x16x128xf32, #tpu.memory_space<vmem>>) attributes {dimension_semantics = [], scalar_prefetch = 0 : i64, scratch_operands = 0 : i64, tpu.core_type = #tpu.core_type<tc>} {
    %c0 = arith.constant 0 : index
    %c0_0 = arith.constant 0 : index
    %0 = vector.load %arg0[%c0, %c0_0] : memref<32x512xbf16, #tpu.memory_space<vmem>>, vector<32x512xbf16>
    %c0_1 = arith.constant 0 : index
    %c0_2 = arith.constant 0 : index
    %1 = vector.load %arg2[%c0_1, %c0_2] : memref<512x640xbf16, #tpu.memory_space<vmem>>, vector<512x640xbf16>
    %cst = arith.constant dense<0.000000e+00> : vector<32x640xf32>
    %2 = tpu.matmul %0, %1, %cst {dimension_numbers = #tpu.dot_dimension_numbers<[1], [0], [0], [1], [0, 0, 1, 1], [], []>} : vector<32x512xbf16>, vector<512x640xbf16>, vector<32x640xf32> -> vector<32x640xf32>
    %c0_3 = arith.constant 0 : index
    %c0_4 = arith.constant 0 : index
    %3 = vector.load %arg3[%c0_3, %c0_4] : memref<1x640xbf16, #tpu.memory_space<vmem>>, vector<1x640xbf16>
    %4 = arith.extf %3 : vector<1x640xbf16> to vector<1x640xf32>
    %5 = vector.broadcast %4 : vector<1x640xf32> to vector<32x640xf32>
    %6 = arith.addf %2, %5 : vector<32x640xf32>
    %cst_5 = arith.constant 0.000000e+00 : f32
    %7 = vector.broadcast %cst_5 : f32 to vector<32x640xf32>
    %8 = arith.maximumf %6, %7 : vector<32x640xf32>
    %9 = arith.truncf %8 : vector<32x640xf32> to vector<32x640xbf16>
    %c0_6 = arith.constant 0 : index
    %c0_7 = arith.constant 0 : index
    %10 = vector.load %arg4[%c0_6, %c0_7] : memref<640x640xbf16, #tpu.memory_space<vmem>>, vector<640x640xbf16>
    %cst_8 = arith.constant dense<0.000000e+00> : vector<32x640xf32>
    %11 = tpu.matmul %9, %10, %cst_8 {dimension_numbers = #tpu.dot_dimension_numbers<[1], [0], [0], [1], [0, 0, 1, 1], [], []>} : vector<32x640xbf16>, vector<640x640xbf16>, vector<32x640xf32> -> vector<32x640xf32>
    %c0_9 = arith.constant 0 : index
    %c0_10 = arith.constant 0 : index
    %12 = vector.load %arg5[%c0_9, %c0_10] : memref<1x640xbf16, #tpu.memory_space<vmem>>, vector<1x640xbf16>
    %13 = arith.extf %12 : vector<1x640xbf16> to vector<1x640xf32>
    %14 = vector.broadcast %13 : vector<1x640xf32> to vector<32x640xf32>
    %15 = arith.addf %11, %14 : vector<32x640xf32>
    %16 = arith.truncf %15 : vector<32x640xf32> to vector<32x640xbf16>
    %c0_11 = arith.constant 0 : index
    %c0_12 = arith.constant 0 : index
    %17 = vector.load %arg6[%c0_11, %c0_12] : memref<640x640xbf16, #tpu.memory_space<vmem>>, vector<640x640xbf16>
    %cst_13 = arith.constant dense<0.000000e+00> : vector<32x640xf32>
    %18 = tpu.matmul %16, %17, %cst_13 {dimension_numbers = #tpu.dot_dimension_numbers<[1], [0], [0], [1], [0, 0, 1, 1], [], []>} : vector<32x640xbf16>, vector<640x640xbf16>, vector<32x640xf32> -> vector<32x640xf32>
    %c0_14 = arith.constant 0 : index
    %c0_15 = arith.constant 0 : index
    %19 = vector.load %arg7[%c0_14, %c0_15] : memref<1x640xbf16, #tpu.memory_space<vmem>>, vector<1x640xbf16>
    %20 = arith.extf %19 : vector<1x640xbf16> to vector<1x640xf32>
    %21 = vector.broadcast %20 : vector<1x640xf32> to vector<32x640xf32>
    %22 = arith.addf %18, %21 : vector<32x640xf32>
    %cst_16 = arith.constant 0.000000e+00 : f32
    %23 = vector.broadcast %cst_16 : f32 to vector<32x640xf32>
    %24 = arith.maximumf %22, %23 : vector<32x640xf32>
    %25 = arith.truncf %24 : vector<32x640xf32> to vector<32x640xbf16>
    %c0_17 = arith.constant 0 : index
    %c0_18 = arith.constant 0 : index
    %26 = vector.load %arg8[%c0_17, %c0_18] : memref<640x128xbf16, #tpu.memory_space<vmem>>, vector<640x128xbf16>
    %cst_19 = arith.constant dense<0.000000e+00> : vector<32x128xf32>
    %27 = tpu.matmul %25, %26, %cst_19 {dimension_numbers = #tpu.dot_dimension_numbers<[1], [0], [0], [1], [0, 0, 1, 1], [], []>} : vector<32x640xbf16>, vector<640x128xbf16>, vector<32x128xf32> -> vector<32x128xf32>
    %c0_20 = arith.constant 0 : index
    %c0_21 = arith.constant 0 : index
    %28 = vector.load %arg9[%c0_20, %c0_21] : memref<1x128xbf16, #tpu.memory_space<vmem>>, vector<1x128xbf16>
    %29 = arith.extf %28 : vector<1x128xbf16> to vector<1x128xf32>
    %30 = vector.broadcast %29 : vector<1x128xf32> to vector<32x128xf32>
    %31 = arith.addf %27, %30 : vector<32x128xf32>
    %c0_22 = arith.constant 0 : index
    %c0_23 = arith.constant 0 : index
    %32 = vector.load %arg1[%c0_22, %c0_23] : memref<2x128xf32, #tpu.memory_space<vmem>>, vector<2x128xf32>
    %33 = vector.shape_cast %31 : vector<32x128xf32> to vector<2x16x128xf32>
    %34 = vector.shape_cast %32 : vector<2x128xf32> to vector<2x1x128xf32>
    %35 = vector.broadcast %34 : vector<2x1x128xf32> to vector<2x16x128xf32>
    %36 = arith.addf %33, %35 : vector<2x16x128xf32>
    %c0_24 = arith.constant 0 : index
    %c0_25 = arith.constant 0 : index
    %c0_26 = arith.constant 0 : index
    %37 = vector.load %arg10[%c0_24, %c0_25, %c0_26] : memref<2x16x128xf32, #tpu.memory_space<vmem>>, vector<2x16x128xf32>
    tpu.vector_store %arg10[%c0_24, %c0_25, %c0_26], %36 {strides = array<i32>} : memref<2x16x128xf32, #tpu.memory_space<vmem>>, vector<2x16x128xf32>,
    return
  }
}

module attributes {stable_mosaic.version = 11 : i64} {
  func.func @_decoder_affmap_kernel(%arg0: memref<2x128xf32, #tpu.memory_space<vmem>>, %arg1: memref<2x64x128xf32, #tpu.memory_space<vmem>>, %arg2: memref<128x128xbf16, #tpu.memory_space<vmem>>, %arg3: memref<1x128xbf16, #tpu.memory_space<vmem>>, %arg4: memref<2x256x128xf32, #tpu.memory_space<vmem>>, %arg5: memref<2x256xf32, #tpu.memory_space<vmem>>, %arg6: memref<2x128xf32, #tpu.memory_space<vmem>>, %arg7: memref<2x256xf32, #tpu.memory_space<vmem>>) attributes {dimension_semantics = [], scalar_prefetch = 0 : i64, scratch_operands = 0 : i64, tpu.core_type = #tpu.core_type<tc>} {
    %c0 = arith.constant 0 : index
    %c0_0 = arith.constant 0 : index
    %0 = vector.load %arg0[%c0, %c0_0] : memref<2x128xf32, #tpu.memory_space<vmem>>, vector<2x128xf32>
    %c0_1 = arith.constant 0 : index
    %c0_2 = arith.constant 0 : index
    %c0_3 = arith.constant 0 : index
    %1 = vector.load %arg1[%c0_1, %c0_2, %c0_3] : memref<2x64x128xf32, #tpu.memory_space<vmem>>, vector<2x64x128xf32>
    %cst = arith.constant 1.280000e+02 : f32
    %2 = math.sqrt %cst : f32
    %cst_4 = arith.constant 1.000000e+00 : f32
    %3 = arith.divf %cst_4, %2 : f32
    %4 = vector.shape_cast %0 : vector<2x128xf32> to vector<2x1x128xf32>
    %5 = vector.broadcast %4 : vector<2x1x128xf32> to vector<2x64x128xf32>
    %6 = arith.mulf %5, %1 : vector<2x64x128xf32>
    %cst_5 = arith.constant dense<0.000000e+00> : vector<2x64xf32>
    %7 = vector.multi_reduction <add>, %6, %cst_5 [2] : vector<2x64x128xf32> to vector<2x64xf32>
    %8 = vector.broadcast %3 : f32 to vector<2x64xf32>
    %9 = arith.mulf %7, %8 : vector<2x64xf32>
    %cst_6 = arith.constant dense<0xFF800000> : vector<2xf32>
    %10 = vector.multi_reduction <maximumf>, %9, %cst_6 [1] : vector<2x64xf32> to vector<2xf32>
    %11 = vector.shape_cast %10 : vector<2xf32> to vector<2x1xf32>
    %12 = vector.broadcast %11 : vector<2x1xf32> to vector<2x64xf32>
    %13 = arith.subf %9, %12 : vector<2x64xf32>
    %14 = math.exp %13 : vector<2x64xf32>
    %cst_7 = arith.constant dense<0.000000e+00> : vector<2xf32>
    %15 = vector.multi_reduction <add>, %14, %cst_7 [1] : vector<2x64xf32> to vector<2xf32>
    %16 = vector.shape_cast %15 : vector<2xf32> to vector<2x1xf32>
    %17 = vector.broadcast %16 : vector<2x1xf32> to vector<2x64xf32>
    %18 = arith.divf %14, %17 : vector<2x64xf32>
    %19 = vector.shape_cast %18 : vector<2x64xf32> to vector<2x64x1xf32>
    %20 = vector.broadcast %19 : vector<2x64x1xf32> to vector<2x64x128xf32>
    %21 = arith.mulf %20, %1 : vector<2x64x128xf32>
    %cst_8 = arith.constant dense<0.000000e+00> : vector<2x128xf32>
    %22 = vector.multi_reduction <add>, %21, %cst_8 [1] : vector<2x64x128xf32> to vector<2x128xf32>
    %23 = arith.truncf %22 : vector<2x128xf32> to vector<2x128xbf16>
    %c0_9 = arith.constant 0 : index
    %c0_10 = arith.constant 0 : index
    %24 = vector.load %arg2[%c0_9, %c0_10] : memref<128x128xbf16, #tpu.memory_space<vmem>>, vector<128x128xbf16>
    %cst_11 = arith.constant dense<0.000000e+00> : vector<2x128xf32>
    %25 = tpu.matmul %23, %24, %cst_11 {dimension_numbers = #tpu.dot_dimension_numbers<[1], [0], [0], [1], [0, 0, 1, 1], [], []>} : vector<2x128xbf16>, vector<128x128xbf16>, vector<2x128xf32> -> vector<2x128xf32>
    %c0_12 = arith.constant 0 : index
    %c0_13 = arith.constant 0 : index
    %26 = vector.load %arg3[%c0_12, %c0_13] : memref<1x128xbf16, #tpu.memory_space<vmem>>, vector<1x128xbf16>
    %27 = arith.extf %26 : vector<1x128xbf16> to vector<1x128xf32>
    %28 = vector.broadcast %27 : vector<1x128xf32> to vector<2x128xf32>
    %29 = arith.addf %25, %28 : vector<2x128xf32>
    %c0_14 = arith.constant 0 : index
    %c0_15 = arith.constant 0 : index
    %30 = vector.load %arg6[%c0_14, %c0_15] : memref<2x128xf32, #tpu.memory_space<vmem>>, vector<2x128xf32>
    tpu.vector_store %arg6[%c0_14, %c0_15], %29 {strides = array<i32>} : memref<2x128xf32, #tpu.memory_space<vmem>>, vector<2x128xf32>,
    %c0_16 = arith.constant 0 : index
    %c0_17 = arith.constant 0 : index
    %c0_18 = arith.constant 0 : index
    %31 = vector.load %arg4[%c0_16, %c0_17, %c0_18] : memref<2x256x128xf32, #tpu.memory_space<vmem>>, vector<2x256x128xf32>
    %32 = arith.mulf %31, %31 : vector<2x256x128xf32>
    %cst_19 = arith.constant dense<0.000000e+00> : vector<2x128xf32>
    %33 = vector.multi_reduction <add>, %32, %cst_19 [1] : vector<2x256x128xf32> to vector<2x128xf32>
    %34 = vector.shape_cast %33 : vector<2x128xf32> to vector<2x1x128xf32>
    %35 = math.sqrt %34 : vector<2x1x128xf32>
    %cst_20 = arith.constant 9.99999996E-13 : f32
    %36 = vector.broadcast %cst_20 : f32 to vector<2x1x128xf32>
    %37 = arith.maximumf %35, %36 : vector<2x1x128xf32>
    %38 = vector.broadcast %37 : vector<2x1x128xf32> to vector<2x256x128xf32>
    %39 = arith.divf %31, %38 : vector<2x256x128xf32>
    %40 = vector.shape_cast %29 : vector<2x128xf32> to vector<2x1x128xf32>
    %41 = vector.broadcast %40 : vector<2x1x128xf32> to vector<2x256x128xf32>
    %42 = arith.mulf %39, %41 : vector<2x256x128xf32>
    %cst_21 = arith.constant dense<0.000000e+00> : vector<2x256xf32>
    %43 = vector.multi_reduction <add>, %42, %cst_21 [2] : vector<2x256x128xf32> to vector<2x256xf32>
    %44 = arith.negf %43 : vector<2x256xf32>
    %45 = math.exp %44 : vector<2x256xf32>
    %cst_22 = arith.constant 1.000000e+00 : f32
    %46 = vector.broadcast %cst_22 : f32 to vector<2x256xf32>
    %47 = arith.addf %46, %45 : vector<2x256xf32>
    %48 = arith.divf %46, %47 : vector<2x256xf32>
    %c0_23 = arith.constant 0 : index
    %c0_24 = arith.constant 0 : index
    %49 = vector.load %arg5[%c0_23, %c0_24] : memref<2x256xf32, #tpu.memory_space<vmem>>, vector<2x256xf32>
    %50 = arith.mulf %48, %49 : vector<2x256xf32>
    %c0_25 = arith.constant 0 : index
    %c0_26 = arith.constant 0 : index
    %51 = vector.load %arg7[%c0_25, %c0_26] : memref<2x256xf32, #tpu.memory_space<vmem>>, vector<2x256xf32>
    tpu.vector_store %arg7[%c0_25, %c0_26], %50 {strides = array<i32>} : memref<2x256xf32, #tpu.memory_space<vmem>>, vector<2x256xf32>,
    return
  }
}

</mosaic_0001>

<bundles_post_ra>
// kernel: _forward_core.4
= control target key start
LH: loop header
LB: loop body
LE: loop exit
PB: predicated region body
PF: predicated region fallthrough
CT: control target
= control target key end

     0   :  { %17 = vsyncpa [#allocation3], 0  ;;  %s2612_s0 = inlined_call_operand.vmem [shape: bf16[128,128], index: 0, kind: input, shape index: {}]   ;;  %s2613_s1 = inlined_call_operand.vmem [shape: f32[2,128], index: 1, kind: input, shape index: {}]   ;;  %s2614_s2 = inlined_call_operand.hbm [shape: bf16[128,256], index: 2, kind: input, shape index: {}]   ;;  %s2615_s3 = inlined_call_operand.vmem [shape: bf16[1,256], index: 3, kind: input, shape index: {}]   ;;  %s2616_s4 = inlined_call_operand.hbm [shape: bf16[256,256], index: 4, kind: input, shape index: {}]   ;;  %s2617_s5 = inlined_call_operand.vmem [shape: bf16[1,256], index: 5, kind: input, shape index: {}]   ;;  %s2618_s6 = inlined_call_operand.hbm [shape: bf16[256,256], index: 6, kind: input, shape index: {}]   ;;  %s2619_s7 = inlined_call_operand.vmem [shape: bf16[1,256], index: 7, kind: input, shape index: {}]   ;;  %s2620_s8 = inlined_call_operand.hbm [shape: bf16[256,128], index: 8, kind: input, shape index: {}]   ;;  %s2621_s9 = inlined_call_operand.vmem [shape: bf16[1,128], index: 9, kind: input, shape index: {}]   ;;  %s2622_s10 = inlined_call_operand.vmem [shape: f32[2,64,128], index: 10, kind: output, shape index: {0}]   ;;  %s2623_s11 = inlined_call_operand.vmem [shape: bf16[128,384], index: 11, kind: output, shape index: {1}]  }
   0x1   :  { %18 = vsyncpa [#allocation5], 0 }
   0x2   :  { %19 = vsyncpa [#allocation8], 0  ;;  %s2048_s17 = smov [#allocation4]   ;;  %s2049_s19 = smov [#allocation2]  }
   0x3   :  { %s43_s18 = sshll.u32 %s2048_s17, 4  ;;  %s29_s20 = sshll.u32 %s2049_s19, 4  ;;  %s44_s18 = int_to_ptr.vmem [resolvable:$true] %s43_s18  ;;  %s30_s20 = int_to_ptr.vmem [resolvable:$true] %s29_s20 }
   0x4   :  { %s1970_s21 = scalar_lea.vmem %s44_s18, 4096  ;;  %p1975_p1 = scmp.lt.s32.totalorder %s44_s18, %s44_s18 }
   0x5   :  { %p1971_p0 = scmp.ne.s32.totalorder %s44_s18, %s1970_s21  ;;  %p1976_p2 = scmp.lt.s32.totalorder %s1970_s21, %s1970_s21 }
   0x7   :  { %p1977_p3 = por %p1976_p2, %p1975_p1 }
   0x9   :  { %p1978_p4 = pnand %p1977_p3, %p1971_p0 }
   0xb   :  { %1981 = shalt.err (!%p1978_p4)
}
   0xc   :  { %s2050_s22 = smov 128   ;;  %s2051_s23 = smov 8  }
   0xd   :  { %49 = dma.hbm_to_vmem [thread:$0]  %s2616_s4, 4096, %s44_s18, [#allocation5], %s2050_s22, %s2050_s22, %s2051_s23  }
   0xe   :  { %s1990_s26 = scalar_lea.vmem %s30_s20, 2048  ;;  %p1995_p6 = scmp.lt.s32.totalorder %s30_s20, %s30_s20 }
   0xf   :  { %p1991_p5 = scmp.ne.s32.totalorder %s30_s20, %s1990_s26  ;;  %p1996_p7 = scmp.lt.s32.totalorder %s1990_s26, %s1990_s26 }
  0x11   :  { %p1997_p8 = por %p1996_p7, %p1995_p6 }
  0x13   :  { %p1998_p9 = pnand %p1997_p8, %p1991_p5 }
  0x15   :  { %2001 = shalt.err (!%p1998_p9)
}
  0x16   :  { %35 = dma.hbm_to_vmem [thread:$0]  %s2614_s2, 2048, %s30_s20, [#allocation3], %s2050_s22, %s2050_s22, %s2051_s23  }
  0x17   :  { %s2052_s29 = smov [#allocation6]   ;;  %s2053_s12 = smov [#allocation7]  }
  0x18   :  { %s57_s30 = sshll.u32 %s2052_s29, 4  ;;  %s71_s13 = sshll.u32 %s2053_s12, 4  ;;  %s58_s30 = int_to_ptr.vmem [resolvable:$true] %s57_s30  ;;  %s72_s13 = int_to_ptr.vmem [resolvable:$true] %s71_s13 }
  0x19   :  { %s2010_s14 = scalar_lea.vmem %s58_s30, 4096  ;;  %p2015_p11 = scmp.lt.s32.totalorder %s58_s30, %s58_s30 }
  0x1a   :  { %p2011_p10 = scmp.ne.s32.totalorder %s58_s30, %s2010_s14  ;;  %p2016_p12 = scmp.lt.s32.totalorder %s2010_s14, %s2010_s14 }
  0x1c   :  { %p2017_p13 = por %p2016_p12, %p2015_p11 }
  0x1e   :  { %p2018_p0 = pnand %p2017_p13, %p2011_p10 }
  0x20   :  { %2021 = shalt.err (!%p2018_p0)
}
  0x21   :  { %63 = dma.hbm_to_vmem [thread:$0]  %s2618_s6, 4096, %s58_s30, [#allocation5], %s2050_s22, %s2050_s22, %s2051_s23  }
  0x22   :  { %s2030_s16 = scalar_lea.vmem %s72_s13, 2048  ;;  %p2035_p2 = scmp.lt.s32.totalorder %s72_s13, %s72_s13 }
  0x23   :  { %p2031_p1 = scmp.ne.s32.totalorder %s72_s13, %s2030_s16  ;;  %p2036_p3 = scmp.lt.s32.totalorder %s2030_s16, %s2030_s16 }
  0x25   :  { %p2037_p4 = por %p2036_p3, %p2035_p2 }
  0x27   :  { %p2038_p5 = pnand %p2037_p4, %p2031_p1 }
  0x29   :  { %2041 = shalt.err (!%p2038_p5)
}
  0x2a   :  { %s2054_s2 = smov 64   ;;  %s2055_s17 = smov 4  }
  0x2b   :  { %77 = dma.hbm_to_vmem [thread:$0]  %s2620_s8, 2048, %s72_s13, [#allocation8], %s2054_s2, %s2054_s2, %s2055_s17  }
  0x2c   :  { %2042 = dma.done.wait [#allocation3], 2048  }
  0x2d   :  { %2043 = vsyncadd [#allocation3], 4294965248 }
  0x2e   :  { %2044 = dma.done.wait [#allocation5], 8192  }
  0x2f   :  { %2045 = vsyncadd [#allocation5], 4294959104 }
  0x30   :  { %2046 = dma.done.wait [#allocation8], 2048  }
  0x31   :  { %2047 = vsyncadd [#allocation8], 4294965248  ;;  %v2056_v0 = vmov 0   ;;  %v1818_v1 = vld [vmem:[#allocation2 + $0x74] ss:$8 sps:$4 sm:$0xff]   ;;  %v128_v2 = vlaneseq }
  0x32   :  { %306 = vmatprep.mubr.bf16.mxu0 %v2056_v0  ;;  %v1820_v3 = vld [vmem:[#allocation2 + $0x70] ss:$8 sps:$4 sm:$0xff]   ;;  %274 = vmatprep.subr.bf16.mxu0 %v1818_v1  ;;  %v1821_v4 = vld [vmem:[#allocation2 + $0x64] ss:$8 sps:$4 sm:$0xff]   ;;  %v1823_v6 = vld [vmem:[#allocation2 + $0x60] ss:$8 sps:$4 sm:$0xff]  }
  0x33   :  { %v778_v5 = vand.u32 127, %v128_v2  ;;  %275 = vmatpush1.bf16.msra.mxu0 %v1820_v3  ;;  %v1824_v7 = vld [vmem:[#allocation2 + $0x54] ss:$8 sps:$4 sm:$0xff]   ;;  %v1826_v8 = vld [vmem:[#allocation2 + $0x50] ss:$8 sps:$4 sm:$0xff]  }
  0x34   :  { %276 = vmatprep.subr.bf16.mxu0 %v1821_v4  ;;  %v1827_v9 = vld [vmem:[#allocation2 + $0x44] ss:$8 sps:$4 sm:$0xff]   ;;  %v1829_v11 = vld [vmem:[#allocation2 + $0x40] ss:$8 sps:$4 sm:$0xff]   ;;  %v1830_v12 = vld [vmem:[#allocation2 + $0x34] ss:$8 sps:$4 sm:$0xff]  }
  0x35   :  { %vm779_vm0 = vcmp.lt.s32.totalorder %v778_v5, 3  ;;  %v2139_v13 = vld [vmem:[%s2612_s0] sm:$0xf]  ;;  %v2144_v14 = vld [vmem:[%s2612_s0 + $0x4] sm:$0xf] }
  0x36   :  { %vm2132_vm1 = vmpackc.low %vm779_vm0, %vm779_vm0  ;;  %v2152_v16 = vld [vmem:[%s2612_s0 + $0x8] sm:$0xf]  ;;  %v1832_v17 = vld [vmem:[#allocation2 + $0x30] ss:$8 sps:$4 sm:$0xff]   ;;  %v1591_v60 = vcombine.low %v2139_v13, %v2144_v14 }
  0x37   :  { %277 = vmatpush1.bf16.msra.mxu0 %v1823_v6  ;;  %v781_v15 = vsel %vm2132_vm1, %v2139_v13, 0  ;;  %v782_v18 = vsel %vm2132_vm1, %v2144_v14, 0  ;;  %v783_v19 = vsel %vm2132_vm1, %v2152_v16, 0  ;;  %v1833_v20 = vld [vmem:[#allocation2 + $0x24] ss:$8 sps:$4 sm:$0xff]  }
  0x38   :  { %278 = vmatprep.subr.bf16.mxu0 %v1824_v7  ;;  %797 = vst [vmem:[%s2623_s11] sm:$0xf] %v781_v15  ;;  %798 = vst [vmem:[%s2623_s11 + $0xc] sm:$0xf] %v782_v18  ;;  %v2169_v21 = vld [vmem:[%s2612_s0 + $0xc] sm:$0xf] }
  0x39   :  { %799 = vst [vmem:[%s2623_s11 + $0x18] sm:$0xf] %v783_v19  ;;  %v2177_v22 = vld [vmem:[%s2612_s0 + $0x10] sm:$0xf]  ;;  %v784_v23 = vsel %vm2132_vm1, %v2169_v21, 0  ;;  %v1592_v5 = vcombine.low %v2152_v16, %v2169_v21 }
  0x3a   :  { %v2185_v24 = vld [vmem:[%s2612_s0 + $0x14] sm:$0xf]  ;;  %v2190_v25 = vld [vmem:[%s2612_s0 + $0x18] sm:$0xf]  ;;  %800 = vst [vmem:[%s2623_s11 + $0x24] sm:$0xf] %v784_v23 }
  0x3b   :  { %279 = vmatpush1.bf16.msra.mxu0 %v1826_v8  ;;  %v2198_v26 = vld [vmem:[%s2612_s0 + $0x1c] sm:$0xf]  ;;  %v2203_v27 = vld [vmem:[%s2612_s0 + $0x20] sm:$0xf]  ;;  %v2208_v28 = vld [vmem:[%s2612_s0 + $0x24] sm:$0xf]  ;;  %v1593_v10 = vcombine.low %v2177_v22, %v2185_v24 }
  0x3c   :  { %280 = vmatprep.subr.bf16.mxu0 %v1827_v9  ;;  %v1835_v29 = vld [vmem:[#allocation2 + $0x20] ss:$8 sps:$4 sm:$0xff]   ;;  %v785_v30 = vsel %vm2132_vm1, %v2177_v22, 0  ;;  %v2221_v32 = vld [vmem:[%s2612_s0 + $0x2c] sm:$0xf]  ;;  %v786_v36 = vsel %vm2132_vm1, %v2185_v24, 0  ;;  %v1594_v15 = vcombine.low %v2190_v25, %v2198_v26  ;;  %v1595_v18 = vcombine.low %v2203_v27, %v2208_v28 }
  0x3d   :  { %v2216_v31 = vld [vmem:[%s2612_s0 + $0x28] sm:$0xf]  ;;  %v2226_v33 = vld [vmem:[%s2612_s0 + $0x30] sm:$0xf]  ;;  %v2231_v34 = vld [vmem:[%s2612_s0 + $0x38] sm:$0xf] }
  0x3e   :  { %v1836_v35 = vld [vmem:[#allocation2 + $0x14] ss:$8 sps:$4 sm:$0xff]   ;;  %801 = vst [vmem:[%s2623_s11 + $0x30] sm:$0xf] %v785_v30  ;;  %v787_v37 = vsel %vm2132_vm1, %v2190_v25, 0  ;;  %v788_v38 = vsel %vm2132_vm1, %v2198_v26, 0  ;;  %v1596_v22 = vcombine.low %v2216_v31, %v2221_v32 }
  0x3f   :  { %281 = vmatpush1.bf16.msra.mxu0 %v1829_v11  ;;  %v2248_v39 = vld [vmem:[%s2612_s0 + $0x34] sm:$0xf]  ;;  %v2253_v40 = vld [vmem:[%s2612_s0 + $0x3c] sm:$0xf]  ;;  %802 = vst [vmem:[%s2623_s11 + $0x3c] sm:$0xf] %v786_v36 }
  0x40   :  { %282 = vmatprep.subr.bf16.mxu0 %v1830_v12  ;;  %803 = vst [vmem:[%s2623_s11 + $0x48] sm:$0xf] %v787_v37  ;;  %804 = vst [vmem:[%s2623_s11 + $0x54] sm:$0xf] %v788_v38  ;;  %v789_v41 = vsel %vm2132_vm1, %v2203_v27, 0  ;;  %v790_v42 = vsel %vm2132_vm1, %v2208_v28, 0  ;;  %v1598_v50 = vcombine.low %v2231_v34, %v2253_v40  ;;  %v1597_v23 = vcombine.low %v2226_v33, %v2248_v39 }
  0x41   :  { %v1850_v43 = vld [vmem:[#allocation4 + $0x74] ss:$8 sps:$4 sm:$0xff]   ;;  %v1852_v44 = vld [vmem:[#allocation4 + $0x70] ss:$8 sps:$4 sm:$0xff]   ;;  %805 = vst [vmem:[%s2623_s11 + $0x60] sm:$0xf] %v789_v41 }
  0x42   :  { %806 = vst [vmem:[%s2623_s11 + $0x6c] sm:$0xf] %v790_v42  ;;  %v791_v45 = vsel %vm2132_vm1, %v2216_v31, 0  ;;  %v792_v46 = vsel %vm2132_vm1, %v2221_v32, 0  ;;  %v793_v47 = vsel %vm2132_vm1, %v2226_v33, 0  ;;  %v794_v49 = vsel %vm2132_vm1, %v2248_v39, 0  ;;  %648 = vmatprep.subr.bf16.mxu1 %v1850_v43 }
  0x43   :  { %283 = vmatpush1.bf16.msra.mxu0 %v1832_v17  ;;  %v1853_v48 = vld [vmem:[#allocation4 + $0x64] ss:$8 sps:$4 sm:$0xff]   ;;  %807 = vst [vmem:[%s2623_s11 + $0x78] sm:$0xf] %v791_v45  ;;  %808 = vst [vmem:[%s2623_s11 + $0x84] sm:$0xf] %v792_v46  ;;  %649 = vmatpush1.bf16.msra.mxu1 %v1852_v44 }
  0x44   :  { %284 = vmatprep.subr.bf16.mxu0 %v1833_v20  ;;  %809 = vst [vmem:[%s2623_s11 + $0x90] sm:$0xf] %v793_v47  ;;  %v795_v51 = vsel %vm2132_vm1, %v2231_v34, 0  ;;  %v796_v52 = vsel %vm2132_vm1, %v2253_v40, 0  ;;  %810 = vst [vmem:[%s2623_s11 + $0x9c] sm:$0xf] %v794_v49  ;;  %650 = vmatprep.subr.bf16.mxu1 %v1853_v48 }
  0x45   :  { %811 = vst [vmem:[%s2623_s11 + $0xa8] sm:$0xf] %v795_v51  ;;  %812 = vst [vmem:[%s2623_s11 + $0xb4] sm:$0xf] %v796_v52  ;;  %v1855_v53 = vld [vmem:[#allocation4 + $0x60] ss:$8 sps:$4 sm:$0xff]  }
  0x46   :  { %v1838_v54 = vld [vmem:[#allocation2 + $0x10] ss:$8 sps:$4 sm:$0xff]   ;;  %v1856_v55 = vld [vmem:[#allocation4 + $0x54] ss:$8 sps:$4 sm:$0xff]   ;;  %v1839_v56 = vld [vmem:[#allocation2 + $0x4] ss:$8 sps:$4 sm:$0xff]  }
  0x47   :  { %285 = vmatpush1.bf16.msra.mxu0 %v1835_v29  ;;  %651 = vmatpush1.bf16.msra.mxu1 %v1855_v53  ;;  %v1858_v57 = vld [vmem:[#allocation4 + $0x50] ss:$8 sps:$4 sm:$0xff]   ;;  %v1841_v58 = vld [vmem:[#allocation2] ss:$8 sps:$4 sm:$0xff]   ;;  %v1859_v59 = vld [vmem:[#allocation4 + $0x44] ss:$8 sps:$4 sm:$0xff]  }
  0x48   :  { %286 = vmatprep.subr.bf16.mxu0 %v1836_v35  ;;  %652 = vmatprep.subr.bf16.mxu1 %v1856_v55  ;;  %v1861_v61 = vld [vmem:[#allocation4 + $0x40] ss:$8 sps:$4 sm:$0xff]   ;;  %v1862_v62 = vld [vmem:[#allocation4 + $0x34] ss:$8 sps:$4 sm:$0xff]   ;;  %v1864_v63 = vld [vmem:[#allocation4 + $0x30] ss:$8 sps:$4 sm:$0xff]  }
  0x49   :  { %v1865_v1 = vld [vmem:[#allocation4 + $0x24] ss:$8 sps:$4 sm:$0xff]   ;;  %v1867_v3 = vld [vmem:[#allocation4 + $0x20] ss:$8 sps:$4 sm:$0xff]   ;;  %v1868_v4 = vld [vmem:[#allocation4 + $0x14] ss:$8 sps:$4 sm:$0xff]  }
  0x4a   :  { %v1870_v6 = vld [vmem:[#allocation4 + $0x10] ss:$8 sps:$4 sm:$0xff]   ;;  %v1871_v7 = vld [vmem:[#allocation4 + $0x4] ss:$8 sps:$4 sm:$0xff]   ;;  %v1873_v8 = vld [vmem:[#allocation4] ss:$8 sps:$4 sm:$0xff]  }
  0x4b   :  { %287 = vmatpush1.bf16.msra.mxu0 %v1838_v54  ;;  %653 = vmatpush1.bf16.msra.mxu1 %v1858_v57  ;;  %v1874_v9 = vld [vmem:[#allocation4 + $0xf4] ss:$8 sps:$4 sm:$0xff]   ;;  %v1876_v11 = vld [vmem:[#allocation4 + $0xf0] ss:$8 sps:$4 sm:$0xff]   ;;  %v1877_v12 = vld [vmem:[#allocation4 + $0xe4] ss:$8 sps:$4 sm:$0xff]  }
  0x4c   :  { %288 = vmatprep.subr.bf16.mxu0 %v1839_v56  ;;  %654 = vmatprep.subr.bf16.mxu1 %v1859_v59  ;;  %v1879_v13 = vld [vmem:[#allocation4 + $0xe0] ss:$8 sps:$4 sm:$0xff]   ;;  %v1880_v14 = vld [vmem:[#allocation4 + $0xd4] ss:$8 sps:$4 sm:$0xff]   ;;  %v1882_v16 = vld [vmem:[#allocation4 + $0xd0] ss:$8 sps:$4 sm:$0xff]  }
  0x4d   :  { %v1883_v17 = vld [vmem:[#allocation4 + $0xc4] ss:$8 sps:$4 sm:$0xff]   ;;  %v1885_v19 = vld [vmem:[#allocation4 + $0xc0] ss:$8 sps:$4 sm:$0xff]   ;;  %v1886_v20 = vld [vmem:[#allocation4 + $0xb4] ss:$8 sps:$4 sm:$0xff]  }
  0x4e   :  { %v1888_v21 = vld [vmem:[#allocation4 + $0xb0] ss:$8 sps:$4 sm:$0xff]   ;;  %v1889_v24 = vld [vmem:[#allocation4 + $0xa4] ss:$8 sps:$4 sm:$0xff]   ;;  %v1891_v25 = vld [vmem:[#allocation4 + $0xa0] ss:$8 sps:$4 sm:$0xff]  }
  0x4f   :  { %289 = vmatpush1.bf16.msra.mxu0 %v1841_v58  ;;  %655 = vmatpush1.bf16.msra.mxu1 %v1861_v61  ;;  %v1892_v26 = vld [vmem:[#allocation4 + $0x94] ss:$8 sps:$4 sm:$0xff]   ;;  %v1894_v27 = vld [vmem:[#allocation4 + $0x90] ss:$8 sps:$4 sm:$0xff]   ;;  %v1895_v28 = vld [vmem:[#allocation4 + $0x84] ss:$8 sps:$4 sm:$0xff]  }
  0x50   :  { %656 = vmatprep.subr.bf16.mxu1 %v1862_v62  ;;  %v1897_v29 = vld [vmem:[#allocation4 + $0x80] ss:$8 sps:$4 sm:$0xff]   ;;  %v1898_v30 = vld [vmem:[#allocation6 + $0x70] ss:$8 sps:$4 sm:$0xff]   ;;  %v1900_v31 = vld [vmem:[#allocation6 + $0x74] ss:$8 sps:$4 sm:$0xff]  }
  0x51   :  { %v1903_v32 = vld [vmem:[#allocation6 + $0x64] ss:$8 sps:$4 sm:$0xff]   ;;  %1122 = vmatprep.subr.bf16.mxu0 %v1900_v31  ;;  %v1906_v33 = vld [vmem:[#allocation6 + $0x54] ss:$8 sps:$4 sm:$0xff]   ;;  %v1904_v34 = vld [vmem:[#allocation6 + $0x50] ss:$8 sps:$4 sm:$0xff]  }
  0x52   :  { %307 = vmatmul.mubr.bf16.vlgmr.msra.gmra.mxu0 %v1591_v60  ;;  %v1909_v35 = vld [vmem:[#allocation6 + $0x44] ss:$8 sps:$4 sm:$0xff]   ;;  %v1907_v36 = vld [vmem:[#allocation6 + $0x40] ss:$8 sps:$4 sm:$0xff]   ;;  %v1912_v37 = vld [vmem:[#allocation6 + $0x34] ss:$8 sps:$4 sm:$0xff]  }
  0x53   :  { %316 = vmatprep.mubr.bf16.mxu0 %v2056_v0  ;;  %657 = vmatpush1.bf16.msra.mxu1 %v1864_v63  ;;  %v1910_v38 = vld [vmem:[#allocation6 + $0x30] ss:$8 sps:$4 sm:$0xff]   ;;  %v1915_v39 = vld [vmem:[#allocation6 + $0x24] ss:$8 sps:$4 sm:$0xff]   ;;  %v1913_v40 = vld [vmem:[#allocation6 + $0x20] ss:$8 sps:$4 sm:$0xff]  }
  0x54   :  { %658 = vmatprep.subr.bf16.mxu1 %v1865_v1  ;;  %1123 = vmatpush1.bf16.msra.mxu0 %v1898_v30  ;;  %v1918_v41 = vld [vmem:[#allocation6 + $0x14] ss:$8 sps:$4 sm:$0xff]   ;;  %v1916_v42 = vld [vmem:[#allocation6 + $0x10] ss:$8 sps:$4 sm:$0xff]   ;;  %v1921_v43 = vld [vmem:[#allocation6 + $0x4] ss:$8 sps:$4 sm:$0xff]  }
  0x55   :  { %1124 = vmatprep.subr.bf16.mxu0 %v1903_v32  ;;  %v1919_v44 = vld [vmem:[#allocation6] ss:$8 sps:$4 sm:$0xff]   ;;  %v1924_v45 = vld [vmem:[#allocation6 + $0xf4] ss:$8 sps:$4 sm:$0xff]   ;;  %v1922_v46 = vld [vmem:[#allocation6 + $0xf0] ss:$8 sps:$4 sm:$0xff]  }
  0x56   :  { %v1927_v47 = vld [vmem:[#allocation6 + $0xe4] ss:$8 sps:$4 sm:$0xff]   ;;  %v1925_v48 = vld [vmem:[#allocation6 + $0xe0] ss:$8 sps:$4 sm:$0xff]   ;;  %v1930_v49 = vld [vmem:[#allocation6 + $0xd4] ss:$8 sps:$4 sm:$0xff]  }
  0x57   :  { %659 = vmatpush1.bf16.msra.mxu1 %v1867_v3  ;;  %v1933_v51 = vld [vmem:[#allocation6 + $0xc4] ss:$8 sps:$4 sm:$0xff]   ;;  %v1931_v52 = vld [vmem:[#allocation6 + $0xc0] ss:$8 sps:$4 sm:$0xff]   ;;  %v1936_v53 = vld [vmem:[#allocation6 + $0xb4] ss:$8 sps:$4 sm:$0xff]  }
  0x58   :  { %660 = vmatprep.subr.bf16.mxu1 %v1868_v4  ;;  %v1934_v54 = vld [vmem:[#allocation6 + $0xb0] ss:$8 sps:$4 sm:$0xff]   ;;  %v2339_v55 = vshrl.u32 %v128_v2, 7  ;;  %v1939_v56 = vld [vmem:[#allocation6 + $0xa4] ss:$8 sps:$4 sm:$0xff]  }
  0x59   :  { %v125_v57 = vld [vmem:[%s2615_s3] sm:$0x3] }
  0x5a   :  { %317 = vmatmul.mubr.bf16.gmra.mxu0 %v1592_v5  ;;  %v2345_v58 = vsub.s32 2, %v2339_v55  ;;  %v1937_v59 = vld [vmem:[#allocation6 + $0xa0] ss:$8 sps:$4 sm:$0xff]   ;;  %v126_v60 = vunpack.c.l.bf16 %v125_v57  ;;  %v2348_v61 = vsub.s32 0, %v2339_v55 }
  0x5b   :  { %326 = vmatprep.mubr.bf16.mxu0 %v2056_v0  ;;  %661 = vmatpush1.bf16.msra.mxu1 %v1870_v6 }
  0x5c   :  { %662 = vmatprep.subr.bf16.mxu1 %v1871_v7  ;;  %v135_v62 = vrot.slane %v126_v60, %v2345_v58  ;;  %v131_v2 = vrot.slane %v126_v60, %v2348_v61 }
  0x5e   :  { %v2353_v1 = vrot.slane %v135_v62, %v2348_v61  ;;  %v2356_v3 = vrot.slane %v131_v2, %v2348_v61 }
  0x5f   :  { %663 = vmatpush1.bf16.msra.mxu1 %v1873_v8 }
  0x60   :  { %664 = vmatprep.subr.bf16.mxu1 %v1874_v9 }
  0x62   :  { %327 = vmatmul.mubr.bf16.gmra.mxu0 %v1593_v10 }
  0x63   :  { %336 = vmatprep.mubr.bf16.mxu0 %v2056_v0  ;;  %665 = vmatpush2.bf16.msra.mxu1 %v1876_v11 }
  0x64   :  { %666 = vmatprep.subr.bf16.mxu1 %v1877_v12 }
  0x67   :  { %667 = vmatpush2.bf16.msra.mxu1 %v1879_v13 }
  0x68   :  { %668 = vmatprep.subr.bf16.mxu1 %v1880_v14 }
  0x6a   :  { %337 = vmatmul.mubr.bf16.gmra.mxu0 %v1594_v15 }
  0x6b   :  { %346 = vmatprep.mubr.bf16.mxu0 %v2056_v0  ;;  %669 = vmatpush2.bf16.msra.mxu1 %v1882_v16 }
  0x6c   :  { %670 = vmatprep.subr.bf16.mxu1 %v1883_v17 }
  0x6f   :  { %671 = vmatpush2.bf16.msra.mxu1 %v1885_v19 }
  0x70   :  { %672 = vmatprep.subr.bf16.mxu1 %v1886_v20 }
  0x72   :  { %347 = vmatmul.mubr.bf16.gmra.mxu0 %v1595_v18 }
  0x73   :  { %356 = vmatprep.mubr.bf16.mxu0 %v2056_v0  ;;  %673 = vmatpush2.bf16.msra.mxu1 %v1888_v21 }
  0x74   :  { %674 = vmatprep.subr.bf16.mxu1 %v1889_v24 }
  0x77   :  { %675 = vmatpush2.bf16.msra.mxu1 %v1891_v25 }
  0x78   :  { %676 = vmatprep.subr.bf16.mxu1 %v1892_v26 }
  0x7a   :  { %357 = vmatmul.mubr.bf16.gmra.mxu0 %v1596_v22 }
  0x7b   :  { %366 = vmatprep.mubr.bf16.mxu0 %v2056_v0  ;;  %677 = vmatpush2.bf16.msra.mxu1 %v1894_v27 }
  0x7c   :  { %678 = vmatprep.subr.bf16.mxu1 %v1895_v28 }
  0x7f   :  { %679 = vmatpush2.bf16.msra.mxu1 %v1897_v29 }
  0x82   :  { %367 = vmatmul.mubr.bf16.gmra.mxu0 %v1597_v23 }
  0x83   :  { %376 = vmatprep.mubr.bf16.mxu0 %v2056_v0  ;;  %v1901_v0 = vld [vmem:[#allocation6 + $0x60] ss:$8 sps:$4 sm:$0xff]  }
  0x84   :  { %1125 = vmatpush1.bf16.msra.mxu0 %v1901_v0 }
  0x85   :  { %1126 = vmatprep.subr.bf16.mxu0 %v1906_v33 }
  0x88   :  { %1127 = vmatpush1.bf16.msra.mxu0 %v1904_v34 }
  0x89   :  { %1128 = vmatprep.subr.bf16.mxu0 %v1909_v35 }
  0x8a   :  { %377 = vmatmul.mubr.bf16.gmra.mxu0 %v1598_v50  ;;  %v1928_v50 = vld [vmem:[#allocation6 + $0xd0] ss:$8 sps:$4 sm:$0xff]  }
  0x8c   :  { %1129 = vmatpush1.bf16.msra.mxu0 %v1907_v36 }
  0x8d   :  { %1130 = vmatprep.subr.bf16.mxu0 %v1912_v37 }
  0x90   :  { %1131 = vmatpush1.bf16.msra.mxu0 %v1910_v38 }
  0x91   :  { %1132 = vmatprep.subr.bf16.mxu0 %v1915_v39 }
  0x94   :  { %1133 = vmatpush1.bf16.msra.mxu0 %v1913_v40 }
  0x95   :  { %1134 = vmatprep.subr.bf16.mxu0 %v1918_v41 }
  0x98   :  { %1135 = vmatpush1.bf16.msra.mxu0 %v1916_v42 }
  0x99   :  { %1136 = vmatprep.subr.bf16.mxu0 %v1921_v43 }
  0x9c   :  { %1137 = vmatpush1.bf16.msra.mxu0 %v1919_v44 }
  0x9d   :  { %1138 = vmatprep.subr.bf16.mxu0 %v1924_v45 }
  0xa0   :  { %1139 = vmatpush2.bf16.msra.mxu0 %v1922_v46 }
  0xa1   :  { %1140 = vmatprep.subr.bf16.mxu0 %v1927_v47 }
  0xa4   :  { %1141 = vmatpush2.bf16.msra.mxu0 %v1925_v48 }
  0xa5   :  { %1142 = vmatprep.subr.bf16.mxu0 %v1930_v49 }
  0xa8   :  { %1143 = vmatpush2.bf16.msra.mxu0 %v1928_v50 }
  0xa9   :  { %1144 = vmatprep.subr.bf16.mxu0 %v1933_v51 }
  0xac   :  { %1145 = vmatpush2.bf16.msra.mxu0 %v1931_v52 }
  0xad   :  { %1146 = vmatprep.subr.bf16.mxu0 %v1936_v53 }
  0xb0   :  { %1147 = vmatpush2.bf16.msra.mxu0 %v1934_v54 }
  0xb1   :  { %1148 = vmatprep.subr.bf16.mxu0 %v1939_v56 }
  0xb4   :  { %1149 = vmatpush2.bf16.msra.mxu0 %v1937_v59 }
 0x112   :  { %v308_v63 = vpop.f32.mrf.mxu0 }
 0x113   :  { %v309_v8 = vadd.f32 %v308_v63, %v2356_v3 }
 0x114   :  { %v310_v4 = vpop.f32.mrf.mxu0 }
 0x115   :  { %v311_v6 = vadd.f32 %v310_v4, %v2353_v1  ;;  %v387_v15 = vmax.f32 %v309_v8, 0.0 }
 0x116   :  { %v312_v5 = vpop.f32.mrf.mxu0 }
 0x117   :  { %v313_v7 = vadd.f32 %v312_v5, %v2356_v3  ;;  %v388_v13 = vmax.f32 %v311_v6, 0.0 }
 0x118   :  { %v314_v9 = vpop.f32.mrf.mxu0 }
 0x119   :  { %v315_v10 = vadd.f32 %v314_v9, %v2353_v1  ;;  %v389_v11 = vmax.f32 %v313_v7, 0.0 }
 0x11a   :  { %v318_v12 = vpop.f32.mrf.mxu0 }
 0x11b   :  { %v390_v14 = vmax.f32 %v315_v10, 0.0  ;;  %v419_v18 = vpack.c.bf16 %v389_v11, %v387_v15  ;;  %v319_v22 = vadd.f32 %v318_v12, %v2356_v3 }
 0x11c   :  { %v320_v16 = vpop.f32.mrf.mxu0 }
 0x11d   :  { %v420_v17 = vpack.c.bf16 %v390_v14, %v388_v13  ;;  %v321_v20 = vadd.f32 %v320_v16, %v2353_v1  ;;  %v391_v29 = vmax.f32 %v319_v22, 0.0 }
 0x11e   :  { %v322_v19 = vpop.f32.mrf.mxu0 }
 0x11f   :  { %v323_v21 = vadd.f32 %v322_v19, %v2356_v3  ;;  %680 = vmatprep.mubr.bf16.mxu1 %v420_v17  ;;  %v392_v27 = vmax.f32 %v321_v20, 0.0 }
 0x120   :  { %v324_v23 = vpop.f32.mrf.mxu0  ;;  %681 = vmatmul.mubr.bf16.vlgmr.msra.gmra.mxu1 %v419_v18 }
 0x121   :  { %v325_v24 = vadd.f32 %v324_v23, %v2353_v1  ;;  %v393_v25 = vmax.f32 %v323_v21, 0.0 }
 0x122   :  { %v328_v26 = vpop.f32.mrf.mxu0 }
 0x123   :  { %v394_v28 = vmax.f32 %v325_v24, 0.0  ;;  %v421_v32 = vpack.c.bf16 %v393_v25, %v391_v29  ;;  %v329_v35 = vadd.f32 %v328_v26, %v2356_v3 }
 0x124   :  { %v330_v30 = vpop.f32.mrf.mxu0 }
 0x125   :  { %v422_v31 = vpack.c.bf16 %v394_v28, %v392_v27  ;;  %v331_v33 = vadd.f32 %v330_v30, %v2353_v1  ;;  %v395_v42 = vmax.f32 %v329_v35, 0.0 }
 0x126   :  { %v332_v0 = vpop.f32.mrf.mxu0 }
 0x127   :  { %v333_v34 = vadd.f32 %v332_v0, %v2356_v3  ;;  %690 = vmatprep.mubr.bf16.mxu1 %v422_v31  ;;  %v396_v40 = vmax.f32 %v331_v33, 0.0 }
 0x128   :  { %v334_v36 = vpop.f32.mrf.mxu0  ;;  %691 = vmatmul.mubr.bf16.gmra.mxu1 %v421_v32 }
 0x129   :  { %v335_v37 = vadd.f32 %v334_v36, %v2353_v1  ;;  %v397_v38 = vmax.f32 %v333_v34, 0.0 }
 0x12a   :  { %v338_v39 = vpop.f32.mrf.mxu0 }
 0x12b   :  { %v398_v41 = vmax.f32 %v335_v37, 0.0  ;;  %v423_v45 = vpack.c.bf16 %v397_v38, %v395_v42  ;;  %v339_v49 = vadd.f32 %v338_v39, %v2356_v3 }
 0x12c   :  { %v340_v43 = vpop.f32.mrf.mxu0 }
 0x12d   :  { %v424_v44 = vpack.c.bf16 %v398_v41, %v396_v40  ;;  %v341_v47 = vadd.f32 %v340_v43, %v2353_v1  ;;  %v399_v57 = vmax.f32 %v339_v49, 0.0 }
 0x12e   :  { %v342_v46 = vpop.f32.mrf.mxu0 }
 0x12f   :  { %v343_v48 = vadd.f32 %v342_v46, %v2356_v3  ;;  %700 = vmatprep.mubr.bf16.mxu1 %v424_v44  ;;  %v400_v54 = vmax.f32 %v341_v47, 0.0 }
 0x130   :  { %v344_v50 = vpop.f32.mrf.mxu0  ;;  %701 = vmatmul.mubr.bf16.gmra.mxu1 %v423_v45 }
 0x131   :  { %v345_v51 = vadd.f32 %v344_v50, %v2353_v1  ;;  %v401_v52 = vmax.f32 %v343_v48, 0.0 }
 0x132   :  { %v348_v53 = vpop.f32.mrf.mxu0 }
 0x133   :  { %v402_v56 = vmax.f32 %v345_v51, 0.0  ;;  %v425_v62 = vpack.c.bf16 %v401_v52, %v399_v57  ;;  %v349_v5 = vadd.f32 %v348_v53, %v2356_v3  ;;  %v1940_v57 = vld [vmem:[#allocation6 + $0x90] ss:$8 sps:$4 sm:$0xff]  }
 0x134   :  { %v350_v59 = vpop.f32.mrf.mxu0 }
 0x135   :  { %v426_v60 = vpack.c.bf16 %v402_v56, %v400_v54  ;;  %v351_v63 = vadd.f32 %v350_v59, %v2353_v1  ;;  %v403_v12 = vmax.f32 %v349_v5, 0.0  ;;  %v1942_v56 = vld [vmem:[#allocation6 + $0x94] ss:$8 sps:$4 sm:$0xff]   ;;  %v1945_v59 = vld [vmem:[#allocation6 + $0x84] ss:$8 sps:$4 sm:$0xff]  }
 0x136   :  { %v352_v2 = vpop.f32.mrf.mxu0  ;;  %1150 = vmatprep.subr.bf16.mxu0 %v1942_v56  ;;  %v1952_v5 = vld [vmem:[#allocation7 + $0x60] sm:$0xff]  }
 0x137   :  { %v353_v4 = vadd.f32 %v352_v2, %v2356_v3  ;;  %710 = vmatprep.mubr.bf16.mxu1 %v426_v60  ;;  %v404_v10 = vmax.f32 %v351_v63, 0.0  ;;  %1151 = vmatpush2.bf16.msra.mxu0 %v1940_v57  ;;  %v1943_v60 = vld [vmem:[#allocation6 + $0x80] ss:$8 sps:$4 sm:$0xff]   ;;  %v1949_v2 = vld [vmem:[#allocation7 + $0x30] sm:$0xff]  }
 0x138   :  { %v354_v6 = vpop.f32.mrf.mxu0  ;;  %711 = vmatmul.mubr.bf16.gmra.mxu1 %v425_v62  ;;  %1152 = vmatprep.subr.bf16.mxu0 %v1945_v59  ;;  %v1947_v62 = vld [vmem:[#allocation7 + $0x38] sm:$0xff]   ;;  %v1950_v63 = vld [vmem:[#allocation7 + $0x68] sm:$0xff]  }
 0x139   :  { %v355_v7 = vadd.f32 %v354_v6, %v2353_v1  ;;  %v405_v8 = vmax.f32 %v353_v4, 0.0  ;;  %v1951_v4 = vld [vmem:[#allocation7 + $0x28] sm:$0xff]   ;;  %v2390_v6 = vld [vmem:[#allocation7 + $0x20] sm:$0xff]  }
 0x13a   :  { %v358_v9 = vpop.f32.mrf.mxu0 }
 0x13b   :  { %v406_v11 = vmax.f32 %v355_v7, 0.0  ;;  %v427_v15 = vpack.c.bf16 %v405_v8, %v403_v12  ;;  %v359_v19 = vadd.f32 %v358_v9, %v2356_v3  ;;  %1153 = vmatpush2.bf16.msra.mxu0 %v1943_v60  ;;  %v2392_v7 = vld [vmem:[#allocation7 + $0x58] sm:$0xff]   ;;  %v467_v9 = vld [vmem:[%s2617_s5] sm:$0x3] }
 0x13c   :  { %v360_v13 = vpop.f32.mrf.mxu0  ;;  %v2396_v8 = vld [vmem:[#allocation7 + $0x18] sm:$0xff]  }
 0x13d   :  { %v428_v14 = vpack.c.bf16 %v406_v11, %v404_v10  ;;  %v361_v17 = vadd.f32 %v360_v13, %v2353_v1  ;;  %v407_v26 = vmax.f32 %v359_v19, 0.0  ;;  %v468_v10 = vunpack.c.l.bf16 %v467_v9 }
 0x13e   :  { %v362_v16 = vpop.f32.mrf.mxu0 }
 0x13f   :  { %v363_v18 = vadd.f32 %v362_v16, %v2356_v3  ;;  %720 = vmatprep.mubr.bf16.mxu1 %v428_v14  ;;  %v408_v24 = vmax.f32 %v361_v17, 0.0  ;;  %v473_v11 = vrot.slane %v468_v10, %v2348_v61  ;;  %v477_v12 = vrot.slane %v468_v10, %v2345_v58 }
 0x140   :  { %v364_v20 = vpop.f32.mrf.mxu0  ;;  %721 = vmatmul.mubr.bf16.gmra.mxu1 %v427_v15 }
 0x141   :  { %v365_v21 = vadd.f32 %v364_v20, %v2353_v1  ;;  %v409_v22 = vmax.f32 %v363_v18, 0.0  ;;  %v2405_v13 = vrot.slane %v473_v11, %v2348_v61  ;;  %v2408_v14 = vrot.slane %v477_v12, %v2348_v61 }
 0x142   :  { %v368_v23 = vpop.f32.mrf.mxu0 }
 0x143   :  { %v410_v25 = vmax.f32 %v365_v21, 0.0  ;;  %v429_v29 = vpack.c.bf16 %v409_v22, %v407_v26  ;;  %v369_v0 = vadd.f32 %v368_v23, %v2356_v3 }
 0x144   :  { %v370_v27 = vpop.f32.mrf.mxu0 }
 0x145   :  { %v430_v28 = vpack.c.bf16 %v410_v25, %v408_v24  ;;  %v371_v31 = vadd.f32 %v370_v27, %v2353_v1  ;;  %v411_v39 = vmax.f32 %v369_v0, 0.0 }
 0x146   :  { %v372_v30 = vpop.f32.mrf.mxu0 }
 0x147   :  { %v373_v32 = vadd.f32 %v372_v30, %v2356_v3  ;;  %730 = vmatprep.mubr.bf16.mxu1 %v430_v28  ;;  %v412_v37 = vmax.f32 %v371_v31, 0.0 }
 0x148   :  { %v374_v33 = vpop.f32.mrf.mxu0  ;;  %731 = vmatmul.mubr.bf16.gmra.mxu1 %v429_v29 }
 0x149   :  { %v375_v34 = vadd.f32 %v374_v33, %v2353_v1  ;;  %v413_v35 = vmax.f32 %v373_v32, 0.0 }
 0x14a   :  { %v378_v36 = vpop.f32.mrf.mxu0 }
 0x14b   :  { %v414_v38 = vmax.f32 %v375_v34, 0.0  ;;  %v431_v42 = vpack.c.bf16 %v413_v35, %v411_v39  ;;  %v379_v46 = vadd.f32 %v378_v36, %v2356_v3 }
 0x14c   :  { %v380_v40 = vpop.f32.mrf.mxu0 }
 0x14d   :  { %v432_v41 = vpack.c.bf16 %v414_v38, %v412_v37  ;;  %v381_v44 = vadd.f32 %v380_v40, %v2353_v1  ;;  %v415_v52 = vmax.f32 %v379_v46, 0.0 }
 0x14e   :  { %v382_v43 = vpop.f32.mrf.mxu0 }
 0x14f   :  { %v383_v45 = vadd.f32 %v382_v43, %v2356_v3  ;;  %740 = vmatprep.mubr.bf16.mxu1 %v432_v41  ;;  %v416_v50 = vmax.f32 %v381_v44, 0.0  ;;  %v1946_v3 = vld [vmem:[#allocation7 + $0x78] sm:$0xff]  }
 0x150   :  { %v384_v47 = vpop.f32.mrf.mxu0  ;;  %741 = vmatmul.mubr.bf16.gmra.mxu1 %v431_v42  ;;  %1792 = vmatprep.subr.bf16.mxu1 %v1946_v3 }
 0x151   :  { %v385_v48 = vadd.f32 %v384_v47, %v2353_v1  ;;  %v417_v49 = vmax.f32 %v383_v45, 0.0  ;;  %v1948_v1 = vld [vmem:[#allocation7 + $0x70] sm:$0xff]   ;;  %1728 = vmatprep.subr.bf16.mxu0 %v1946_v3  ;;  %1800 = vmatpush3.bf16.msra.mxu1 %v1947_v62 }
 0x152   :  { %1793 = vmatprep.subr.bf16.mxu1 %v1948_v1 }
 0x153   :  { %v418_v51 = vmax.f32 %v385_v48, 0.0  ;;  %v433_v54 = vpack.c.bf16 %v417_v49, %v415_v52 }
 0x155   :  { %v434_v53 = vpack.c.bf16 %v418_v51, %v416_v50  ;;  %1801 = vmatpush3.bf16.msra.mxu1 %v1949_v2 }
 0x156   :  { %1794 = vmatprep.subr.bf16.mxu1 %v1950_v63 }
 0x157   :  { %750 = vmatprep.mubr.bf16.mxu1 %v434_v53 }
 0x158   :  { %751 = vmatmul.mubr.bf16.gmra.mxu1 %v433_v54 }
 0x159   :  { %1802 = vmatpush3.bf16.msra.mxu1 %v1951_v4 }
 0x15a   :  { %1795 = vmatprep.subr.bf16.mxu1 %v1952_v5 }
 0x15d   :  { %1803 = vmatpush3.bf16.msra.mxu1 %v2390_v6 }
 0x15e   :  { %1796 = vmatprep.subr.bf16.mxu1 %v2392_v7 }
 0x161   :  { %1804 = vmatpush3.bf16.msra.mxu1 %v2396_v8 }
 0x1e0   :  { %v682_v15 = vpop.f32.mrf.mxu1 }
 0x1e1   :  { %v683_v17 = vadd.f32 %v682_v15, %v2405_v13 }
 0x1e2   :  { %v684_v16 = vpop.f32.mrf.mxu1 }
 0x1e3   :  { %v685_v18 = vadd.f32 %v684_v16, %v2408_v14 }
 0x1e4   :  { %v686_v19 = vpop.f32.mrf.mxu1 }
 0x1e5   :  { %v1712_v20 = vpack.c.bf16 %v685_v18, %v683_v17  ;;  %v687_v21 = vadd.f32 %v686_v19, %v2405_v13 }
 0x1e6   :  { %v688_v22 = vpop.f32.mrf.mxu1 }
 0x1e7   :  { %893 = vst [vmem:[%s2623_s11 + $0x4] sm:$0xff] %v1712_v20  ;;  %v689_v23 = vadd.f32 %v688_v22, %v2408_v14  ;;  %v761_v27 = vpack.c.bf16 %v687_v21, %v683_v17 }
 0x1e8   :  { %v692_v24 = vpop.f32.mrf.mxu1 }
 0x1e9   :  { %v762_v25 = vpack.c.bf16 %v689_v23, %v685_v18  ;;  %v1713_v26 = vpack.c.bf16 %v689_v23, %v687_v21  ;;  %v693_v29 = vadd.f32 %v692_v24, %v2405_v13 }
 0x1ea   :  { %v694_v28 = vpop.f32.mrf.mxu1 }
 0x1eb   :  { %894 = vst [vmem:[%s2623_s11 + $0x10] sm:$0xff] %v1713_v26  ;;  %v695_v30 = vadd.f32 %v694_v28, %v2408_v14  ;;  %1154 = vmatprep.mubr.bf16.mxu0 %v762_v25 }
 0x1ec   :  { %v696_v31 = vpop.f32.mrf.mxu1  ;;  %1155 = vmatmul.mubr.bf16.vlgmr.msra.gmra.mxu0 %v761_v27 }
 0x1ed   :  { %v1714_v32 = vpack.c.bf16 %v695_v30, %v693_v29  ;;  %1729 = vmatpush3.bf16.msra.mxu0 %v1947_v62  ;;  %v697_v0 = vadd.f32 %v696_v31, %v2405_v13 }
 0x1ee   :  { %v698_v33 = vpop.f32.mrf.mxu1  ;;  %1730 = vmatprep.subr.bf16.mxu0 %v1948_v1 }
 0x1ef   :  { %895 = vst [vmem:[%s2623_s11 + $0x1c] sm:$0xff] %v1714_v32  ;;  %v699_v34 = vadd.f32 %v698_v33, %v2408_v14  ;;  %v763_v38 = vpack.c.bf16 %v697_v0, %v693_v29 }
 0x1f0   :  { %v702_v35 = vpop.f32.mrf.mxu1 }
 0x1f1   :  { %v764_v36 = vpack.c.bf16 %v699_v34, %v695_v30  ;;  %v1715_v37 = vpack.c.bf16 %v699_v34, %v697_v0  ;;  %1731 = vmatpush3.bf16.msra.mxu0 %v1949_v2  ;;  %v703_v40 = vadd.f32 %v702_v35, %v2405_v13 }
 0x1f2   :  { %v704_v39 = vpop.f32.mrf.mxu1  ;;  %1732 = vmatprep.subr.bf16.mxu0 %v1950_v63 }
 0x1f3   :  { %896 = vst [vmem:[%s2623_s11 + $0x28] sm:$0xff] %v1715_v37  ;;  %v705_v41 = vadd.f32 %v704_v39, %v2408_v14  ;;  %1164 = vmatprep.mubr.bf16.mxu0 %v764_v36 }
 0x1f4   :  { %v706_v42 = vpop.f32.mrf.mxu1  ;;  %1165 = vmatmul.mubr.bf16.gmra.mxu0 %v763_v38 }
 0x1f5   :  { %v1716_v43 = vpack.c.bf16 %v705_v41, %v703_v40  ;;  %1733 = vmatpush3.bf16.msra.mxu0 %v1951_v4  ;;  %v707_v44 = vadd.f32 %v706_v42, %v2405_v13 }
 0x1f6   :  { %v708_v45 = vpop.f32.mrf.mxu1  ;;  %1734 = vmatprep.subr.bf16.mxu0 %v1952_v5 }
 0x1f7   :  { %897 = vst [vmem:[%s2623_s11 + $0x34] sm:$0xff] %v1716_v43  ;;  %v709_v46 = vadd.f32 %v708_v45, %v2408_v14  ;;  %v765_v50 = vpack.c.bf16 %v707_v44, %v703_v40 }
 0x1f8   :  { %v712_v47 = vpop.f32.mrf.mxu1 }
 0x1f9   :  { %v766_v48 = vpack.c.bf16 %v709_v46, %v705_v41  ;;  %v1717_v49 = vpack.c.bf16 %v709_v46, %v707_v44  ;;  %1735 = vmatpush3.bf16.msra.mxu0 %v2390_v6  ;;  %v713_v52 = vadd.f32 %v712_v47, %v2405_v13 }
 0x1fa   :  { %v714_v51 = vpop.f32.mrf.mxu1  ;;  %1736 = vmatprep.subr.bf16.mxu0 %v2392_v7 }
 0x1fb   :  { %898 = vst [vmem:[%s2623_s11 + $0x40] sm:$0xff] %v1717_v49  ;;  %v715_v53 = vadd.f32 %v714_v51, %v2408_v14  ;;  %1174 = vmatprep.mubr.bf16.mxu0 %v766_v48  ;;  %v1956_v51 = vld [vmem:[#allocation7 + $0x50] sm:$0xff]  }
 0x1fc   :  { %v716_v54 = vpop.f32.mrf.mxu1  ;;  %1175 = vmatmul.mubr.bf16.gmra.mxu0 %v765_v50  ;;  %1797 = vmatprep.subr.bf16.mxu1 %v1956_v51 }
 0x1fd   :  { %v1718_v56 = vpack.c.bf16 %v715_v53, %v713_v52  ;;  %1737 = vmatpush3.bf16.msra.mxu0 %v2396_v8  ;;  %v717_v57 = vadd.f32 %v716_v54, %v2405_v13  ;;  %v1961_v54 = vld [vmem:[#allocation7] sm:$0xff]  }
 0x1fe   :  { %v718_v59 = vpop.f32.mrf.mxu1  ;;  %1738 = vmatprep.subr.bf16.mxu0 %v1956_v51 }
 0x1ff   :  { %899 = vst [vmem:[%s2623_s11 + $0x4c] sm:$0xff] %v1718_v56  ;;  %v719_v60 = vadd.f32 %v718_v59, %v2408_v14  ;;  %v767_v2 = vpack.c.bf16 %v717_v57, %v713_v52  ;;  %v1957_v52 = vld [vmem:[#allocation7 + $0x10] sm:$0xff]   ;;  %v941_v56 = vld [vmem:[%s2619_s7] sm:$0x3] }
 0x200   :  { %v722_v3 = vpop.f32.mrf.mxu1  ;;  %1805 = vmatpush3.bf16.msra.mxu1 %v1957_v52 }
 0x201   :  { %v768_v62 = vpack.c.bf16 %v719_v60, %v715_v53  ;;  %v1719_v1 = vpack.c.bf16 %v719_v60, %v717_v57  ;;  %v723_v4 = vadd.f32 %v722_v3, %v2405_v13  ;;  %1739 = vmatpush3.bf16.msra.mxu0 %v1957_v52  ;;  %v1959_v53 = vld [vmem:[#allocation7 + $0x8] sm:$0xff]   ;;  %v942_v57 = vunpack.c.l.bf16 %v941_v56 }
 0x202   :  { %v724_v63 = vpop.f32.mrf.mxu1 }
 0x203   :  { %900 = vst [vmem:[%s2623_s11 + $0x58] sm:$0xff] %v1719_v1  ;;  %v725_v5 = vadd.f32 %v724_v63, %v2408_v14  ;;  %1184 = vmatprep.mubr.bf16.mxu0 %v768_v62  ;;  %v951_v59 = vrot.slane %v942_v57, %v2345_v58  ;;  %v947_v60 = vrot.slane %v942_v57, %v2348_v61 }
 0x204   :  { %v726_v6 = vpop.f32.mrf.mxu1  ;;  %1185 = vmatmul.mubr.bf16.gmra.mxu0 %v767_v2 }
 0x205   :  { %v1720_v7 = vpack.c.bf16 %v725_v5, %v723_v4  ;;  %v727_v8 = vadd.f32 %v726_v6, %v2405_v13  ;;  %v2499_v62 = vrot.slane %v951_v59, %v2348_v61  ;;  %v2502_v1 = vrot.slane %v947_v60, %v2348_v61 }
 0x206   :  { %v728_v9 = vpop.f32.mrf.mxu1 }
 0x207   :  { %901 = vst [vmem:[%s2623_s11 + $0x64] sm:$0xff] %v1720_v7  ;;  %v729_v10 = vadd.f32 %v728_v9, %v2408_v14  ;;  %v769_v16 = vpack.c.bf16 %v727_v8, %v723_v4 }
 0x208   :  { %v732_v11 = vpop.f32.mrf.mxu1 }
 0x209   :  { %v770_v12 = vpack.c.bf16 %v729_v10, %v725_v5  ;;  %v1721_v15 = vpack.c.bf16 %v729_v10, %v727_v8  ;;  %v733_v18 = vadd.f32 %v732_v11, %v2405_v13 }
 0x20a   :  { %v734_v17 = vpop.f32.mrf.mxu1 }
 0x20b   :  { %902 = vst [vmem:[%s2623_s11 + $0x70] sm:$0xff] %v1721_v15  ;;  %v735_v19 = vadd.f32 %v734_v17, %v2408_v14  ;;  %1194 = vmatprep.mubr.bf16.mxu0 %v770_v12 }
 0x20c   :  { %v736_v20 = vpop.f32.mrf.mxu1  ;;  %1195 = vmatmul.mubr.bf16.gmra.mxu0 %v769_v16 }
 0x20d   :  { %v1722_v21 = vpack.c.bf16 %v735_v19, %v733_v18  ;;  %v737_v22 = vadd.f32 %v736_v20, %v2405_v13 }
 0x20e   :  { %v738_v23 = vpop.f32.mrf.mxu1 }
 0x20f   :  { %903 = vst [vmem:[%s2623_s11 + $0x7c] sm:$0xff] %v1722_v21  ;;  %v739_v24 = vadd.f32 %v738_v23, %v2408_v14  ;;  %v771_v28 = vpack.c.bf16 %v737_v22, %v733_v18 }
 0x210   :  { %v742_v25 = vpop.f32.mrf.mxu1 }
 0x211   :  { %v772_v26 = vpack.c.bf16 %v739_v24, %v735_v19  ;;  %v1723_v27 = vpack.c.bf16 %v739_v24, %v737_v22  ;;  %v743_v30 = vadd.f32 %v742_v25, %v2405_v13 }
 0x212   :  { %v744_v29 = vpop.f32.mrf.mxu1 }
 0x213   :  { %904 = vst [vmem:[%s2623_s11 + $0x88] sm:$0xff] %v1723_v27  ;;  %v745_v31 = vadd.f32 %v744_v29, %v2408_v14  ;;  %1204 = vmatprep.mubr.bf16.mxu0 %v772_v26 }
 0x214   :  { %v746_v32 = vpop.f32.mrf.mxu1  ;;  %1205 = vmatmul.mubr.bf16.gmra.mxu0 %v771_v28 }
 0x215   :  { %v1724_v0 = vpack.c.bf16 %v745_v31, %v743_v30  ;;  %v747_v33 = vadd.f32 %v746_v32, %v2405_v13 }
 0x216   :  { %v748_v34 = vpop.f32.mrf.mxu1 }
 0x217   :  { %905 = vst [vmem:[%s2623_s11 + $0x94] sm:$0xff] %v1724_v0  ;;  %v749_v35 = vadd.f32 %v748_v34, %v2408_v14  ;;  %v773_v39 = vpack.c.bf16 %v747_v33, %v743_v30 }
 0x218   :  { %v752_v36 = vpop.f32.mrf.mxu1 }
 0x219   :  { %v774_v37 = vpack.c.bf16 %v749_v35, %v745_v31  ;;  %v1725_v38 = vpack.c.bf16 %v749_v35, %v747_v33  ;;  %v753_v41 = vadd.f32 %v752_v36, %v2405_v13 }
 0x21a   :  { %v754_v40 = vpop.f32.mrf.mxu1 }
 0x21b   :  { %906 = vst [vmem:[%s2623_s11 + $0xa0] sm:$0xff] %v1725_v38  ;;  %v755_v42 = vadd.f32 %v754_v40, %v2408_v14  ;;  %1214 = vmatprep.mubr.bf16.mxu0 %v774_v37 }
 0x21c   :  { %v756_v43 = vpop.f32.mrf.mxu1  ;;  %1215 = vmatmul.mubr.bf16.gmra.mxu0 %v773_v39 }
 0x21d   :  { %v1726_v44 = vpack.c.bf16 %v755_v42, %v753_v41  ;;  %v757_v45 = vadd.f32 %v756_v43, %v2405_v13  ;;  %v1958_v13 = vld [vmem:[#allocation7 + $0x48] sm:$0xff]  }
 0x21e   :  { %v758_v46 = vpop.f32.mrf.mxu1  ;;  %1740 = vmatprep.subr.bf16.mxu0 %v1958_v13  ;;  %1798 = vmatprep.subr.bf16.mxu1 %v1958_v13 }
 0x21f   :  { %907 = vst [vmem:[%s2623_s11 + $0xac] sm:$0xff] %v1726_v44  ;;  %v759_v47 = vadd.f32 %v758_v46, %v2408_v14  ;;  %v775_v50 = vpack.c.bf16 %v757_v45, %v753_v41  ;;  %1741 = vmatpush3.bf16.msra.mxu0 %v1959_v53  ;;  %1806 = vmatpush3.bf16.msra.mxu1 %v1959_v53  ;;  %v1960_v14 = vld [vmem:[#allocation7 + $0x40] sm:$0xff]  }
 0x220   :  { %1742 = vmatprep.subr.bf16.mxu0 %v1960_v14  ;;  %1799 = vmatprep.subr.bf16.mxu1 %v1960_v14 }
 0x221   :  { %v776_v48 = vpack.c.bf16 %v759_v47, %v755_v42  ;;  %v1727_v49 = vpack.c.bf16 %v759_v47, %v757_v45 }
 0x223   :  { %908 = vst [vmem:[%s2623_s11 + $0xb8] sm:$0xff] %v1727_v49  ;;  %1224 = vmatprep.mubr.bf16.mxu0 %v776_v48  ;;  %1743 = vmatpush3.bf16.msra.mxu0 %v1961_v54 }
 0x224   :  { %1225 = vmatmul.mubr.bf16.gmra.mxu0 %v775_v50  ;;  %1807 = vmatpush3.bf16.msra.mxu1 %v1961_v54 }
 0x2ac   :  { %v1156_v3 = vpop.f32.mrf.mxu0 }
 0x2ad   :  { %v1157_v6 = vadd.f32 %v1156_v3, %v2502_v1 }
 0x2ae   :  { %v1158_v2 = vpop.f32.mrf.mxu0 }
 0x2af   :  { %v1159_v4 = vadd.f32 %v1158_v2, %v2499_v62  ;;  %v1235_v12 = vmax.f32 %v1157_v6, 0.0 }
 0x2b0   :  { %v1160_v63 = vpop.f32.mrf.mxu0 }
 0x2b1   :  { %v1161_v5 = vadd.f32 %v1160_v63, %v2502_v1  ;;  %v1236_v10 = vmax.f32 %v1159_v4, 0.0 }
 0x2b2   :  { %v1162_v7 = vpop.f32.mrf.mxu0 }
 0x2b3   :  { %v1163_v58 = vadd.f32 %v1162_v7, %v2499_v62  ;;  %v1237_v8 = vmax.f32 %v1161_v5, 0.0 }
 0x2b4   :  { %v1166_v9 = vpop.f32.mrf.mxu0 }
 0x2b5   :  { %v1238_v11 = vmax.f32 %v1163_v58, 0.0  ;;  %v1267_v17 = vpack.c.bf16 %v1237_v8, %v1235_v12  ;;  %v1167_v21 = vadd.f32 %v1166_v9, %v2502_v1 }
 0x2b6   :  { %v1168_v15 = vpop.f32.mrf.mxu0 }
 0x2b7   :  { %v1268_v16 = vpack.c.bf16 %v1238_v11, %v1236_v10  ;;  %v1169_v19 = vadd.f32 %v1168_v15, %v2499_v62  ;;  %v1239_v28 = vmax.f32 %v1167_v21, 0.0 }
 0x2b8   :  { %v1170_v18 = vpop.f32.mrf.mxu0 }
 0x2b9   :  { %v1171_v20 = vadd.f32 %v1170_v18, %v2502_v1  ;;  %1449 = vmatprep.mubr.bf16.mxu0 %v1268_v16  ;;  %v1240_v26 = vmax.f32 %v1169_v19, 0.0 }
 0x2ba   :  { %v1172_v22 = vpop.f32.mrf.mxu0  ;;  %1450 = vmatmul.mubr.bf16.vlgmr.msra.gmra.mxu0 %v1267_v17 }
 0x2bb   :  { %v1173_v23 = vadd.f32 %v1172_v22, %v2499_v62  ;;  %v1241_v24 = vmax.f32 %v1171_v20, 0.0 }
 0x2bc   :  { %v1176_v25 = vpop.f32.mrf.mxu0 }
 0x2bd   :  { %v1242_v27 = vmax.f32 %v1173_v23, 0.0  ;;  %v1269_v31 = vpack.c.bf16 %v1241_v24, %v1239_v28  ;;  %v1177_v34 = vadd.f32 %v1176_v25, %v2502_v1 }
 0x2be   :  { %v1178_v29 = vpop.f32.mrf.mxu0 }
 0x2bf   :  { %v1270_v30 = vpack.c.bf16 %v1242_v27, %v1240_v26  ;;  %v1179_v0 = vadd.f32 %v1178_v29, %v2499_v62  ;;  %v1243_v41 = vmax.f32 %v1177_v34, 0.0 }
 0x2c0   :  { %v1180_v32 = vpop.f32.mrf.mxu0 }
 0x2c1   :  { %v1181_v33 = vadd.f32 %v1180_v32, %v2502_v1  ;;  %1457 = vmatprep.mubr.bf16.mxu0 %v1270_v30  ;;  %v1244_v39 = vmax.f32 %v1179_v0, 0.0 }
 0x2c2   :  { %v1182_v35 = vpop.f32.mrf.mxu0  ;;  %1458 = vmatmul.mubr.bf16.gmra.mxu0 %v1269_v31 }
 0x2c3   :  { %v1183_v36 = vadd.f32 %v1182_v35, %v2499_v62  ;;  %v1245_v37 = vmax.f32 %v1181_v33, 0.0 }
 0x2c4   :  { %v1186_v38 = vpop.f32.mrf.mxu0 }
 0x2c5   :  { %v1246_v40 = vmax.f32 %v1183_v36, 0.0  ;;  %v1271_v44 = vpack.c.bf16 %v1245_v37, %v1243_v41  ;;  %v1187_v48 = vadd.f32 %v1186_v38, %v2502_v1 }
 0x2c6   :  { %v1188_v42 = vpop.f32.mrf.mxu0 }
 0x2c7   :  { %v1272_v43 = vpack.c.bf16 %v1246_v40, %v1244_v39  ;;  %v1189_v46 = vadd.f32 %v1188_v42, %v2499_v62  ;;  %v1247_v14 = vmax.f32 %v1187_v48, 0.0 }
 0x2c8   :  { %v1190_v45 = vpop.f32.mrf.mxu0 }
 0x2c9   :  { %v1191_v47 = vadd.f32 %v1190_v45, %v2502_v1  ;;  %1465 = vmatprep.mubr.bf16.mxu1 %v1272_v43  ;;  %v1248_v13 = vmax.f32 %v1189_v46, 0.0 }
 0x2ca   :  { %v1192_v49 = vpop.f32.mrf.mxu0  ;;  %1466 = vmatmul.mubr.bf16.vlgmr.msra.gmra.mxu1 %v1271_v44 }
 0x2cb   :  { %v1193_v50 = vadd.f32 %v1192_v49, %v2499_v62  ;;  %v1249_v51 = vmax.f32 %v1191_v47, 0.0 }
 0x2cc   :  { %v1196_v52 = vpop.f32.mrf.mxu0 }
 0x2cd   :  { %v1250_v53 = vmax.f32 %v1193_v50, 0.0  ;;  %v1273_v57 = vpack.c.bf16 %v1249_v51, %v1247_v14  ;;  %v1197_v2 = vadd.f32 %v1196_v52, %v2502_v1 }
 0x2ce   :  { %v1198_v54 = vpop.f32.mrf.mxu0 }
 0x2cf   :  { %v1274_v56 = vpack.c.bf16 %v1250_v53, %v1248_v13  ;;  %v1199_v60 = vadd.f32 %v1198_v54, %v2499_v62  ;;  %v1251_v8 = vmax.f32 %v1197_v2, 0.0  ;;  %v2057_v13 = vmov 1966171168   ;;  %v1315_v54 = vld [vmem:[%s2621_s9] sm:$0x1] }
 0x2d0   :  { %v1200_v59 = vpop.f32.mrf.mxu0  ;;  %v1525_v53 = vunpack.c.l.s4 %v2057_v13 }
 0x2d1   :  { %v1201_v3 = vadd.f32 %v1200_v59, %v2502_v1  ;;  %1473 = vmatprep.mubr.bf16.mxu1 %v1274_v56  ;;  %v1252_v7 = vmax.f32 %v1199_v60, 0.0  ;;  %v1316_v56 = vunpack.c.l.bf16 %v1315_v54 }
 0x2d2   :  { %v1202_v63 = vpop.f32.mrf.mxu0  ;;  %1474 = vmatmul.mubr.bf16.gmra.mxu1 %v1273_v57  ;;  %v1526_v14 = vunpack.c.0.s8 %v1525_v53 }
 0x2d3   :  { %v1203_v4 = vadd.f32 %v1202_v63, %v2499_v62  ;;  %v1253_v5 = vmax.f32 %v1201_v3, 0.0  ;;  %v2544_v60 = vrot.slane %v1316_v56, %v2348_v61 }
 0x2d4   :  { %v1206_v6 = vpop.f32.mrf.mxu0 }
 0x2d5   :  { %v1254_v58 = vmax.f32 %v1203_v4, 0.0  ;;  %v1275_v11 = vpack.c.bf16 %v1253_v5, %v1251_v8  ;;  %v1207_v17 = vadd.f32 %v1206_v6, %v2502_v1 }
 0x2d6   :  { %v1208_v9 = vpop.f32.mrf.mxu0 }
 0x2d7   :  { %v1276_v10 = vpack.c.bf16 %v1254_v58, %v1252_v7  ;;  %v1209_v15 = vadd.f32 %v1208_v9, %v2499_v62  ;;  %v1255_v24 = vmax.f32 %v1207_v17, 0.0 }
 0x2d8   :  { %v1210_v12 = vpop.f32.mrf.mxu0 }
 0x2d9   :  { %v1211_v16 = vadd.f32 %v1210_v12, %v2502_v1  ;;  %1481 = vmatprep.mubr.bf16.mxu1 %v1276_v10  ;;  %v1256_v22 = vmax.f32 %v1209_v15, 0.0 }
 0x2da   :  { %v1212_v18 = vpop.f32.mrf.mxu0  ;;  %1482 = vmatmul.mubr.bf16.gmra.mxu1 %v1275_v11 }
 0x2db   :  { %v1213_v19 = vadd.f32 %v1212_v18, %v2499_v62  ;;  %v1257_v20 = vmax.f32 %v1211_v16, 0.0 }
 0x2dc   :  { %v1216_v21 = vpop.f32.mrf.mxu0 }
 0x2dd   :  { %v1258_v23 = vmax.f32 %v1213_v19, 0.0  ;;  %v1277_v27 = vpack.c.bf16 %v1257_v20, %v1255_v24  ;;  %v1217_v31 = vadd.f32 %v1216_v21, %v2502_v1 }
 0x2de   :  { %v1218_v25 = vpop.f32.mrf.mxu0 }
 0x2df   :  { %v1278_v26 = vpack.c.bf16 %v1258_v23, %v1256_v22  ;;  %v1219_v29 = vadd.f32 %v1218_v25, %v2499_v62  ;;  %v1259_v37 = vmax.f32 %v1217_v31, 0.0 }
 0x2e0   :  { %v1220_v28 = vpop.f32.mrf.mxu0 }
 0x2e1   :  { %v1221_v30 = vadd.f32 %v1220_v28, %v2502_v1  ;;  %1489 = vmatprep.mubr.bf16.mxu1 %v1278_v26  ;;  %v1260_v35 = vmax.f32 %v1219_v29, 0.0 }
 0x2e2   :  { %v1222_v32 = vpop.f32.mrf.mxu0  ;;  %1490 = vmatmul.mubr.bf16.gmra.mxu1 %v1277_v27 }
 0x2e3   :  { %v1223_v0 = vadd.f32 %v1222_v32, %v2499_v62  ;;  %v1261_v33 = vmax.f32 %v1221_v30, 0.0 }
 0x2e4   :  { %v1226_v34 = vpop.f32.mrf.mxu0 }
 0x2e5   :  { %v1262_v36 = vmax.f32 %v1223_v0, 0.0  ;;  %v1279_v40 = vpack.c.bf16 %v1261_v33, %v1259_v37  ;;  %v1227_v44 = vadd.f32 %v1226_v34, %v2502_v1 }
 0x2e6   :  { %v1228_v38 = vpop.f32.mrf.mxu0 }
 0x2e7   :  { %v1280_v39 = vpack.c.bf16 %v1262_v36, %v1260_v35  ;;  %v1229_v42 = vadd.f32 %v1228_v38, %v2499_v62  ;;  %v1263_v50 = vmax.f32 %v1227_v44, 0.0 }
 0x2e8   :  { %v1230_v41 = vpop.f32.mrf.mxu0 }
 0x2e9   :  { %v1231_v43 = vadd.f32 %v1230_v41, %v2502_v1  ;;  %1497 = vmatprep.mubr.bf16.mxu1 %v1280_v39  ;;  %v1264_v48 = vmax.f32 %v1229_v42, 0.0  ;;  %v1529_v1 = vsub.s32 %v1526_v14, %v2339_v55 }
 0x2ea   :  { %v1232_v45 = vpop.f32.mrf.mxu0  ;;  %1498 = vmatmul.mubr.bf16.gmra.mxu1 %v1279_v40 }
 0x2eb   :  { %v1233_v46 = vadd.f32 %v1232_v45, %v2499_v62  ;;  %v1265_v47 = vmax.f32 %v1231_v43, 0.0  ;;  %v1711_v62 = vld.sshfl [vmem:[%s2613_s1] sm:$0x11 pattern:$0x75316420] }
 0x2ec   :  { %v1530_v57 = vrot.slane %v1711_v62, %v1529_v1  ;;  %v1523_v33 = vcombine.high %v1711_v62, %v1711_v62 }
 0x2ed   :  { %v1266_v49 = vmax.f32 %v1233_v46, 0.0  ;;  %v1281_v52 = vpack.c.bf16 %v1265_v47, %v1263_v50 }
 0x2ee   :  { %v1541_v63 = vrot.slane %v1530_v57, %v2348_v61  ;;  %v1537_v39 = vrot.slane %v1523_v33, %v1529_v1 }
 0x2ef   :  { %v1282_v51 = vpack.c.bf16 %v1266_v49, %v1264_v48 }
 0x2f0   :  { %v1545_v45 = vrot.slane %v1537_v39, %v2348_v61 }
 0x2f1   :  { %1505 = vmatprep.mubr.bf16.mxu1 %v1282_v51 }
 0x2f2   :  { %1506 = vmatmul.mubr.bf16.gmra.mxu1 %v1281_v52 }
 0x37a   :  { %v1744_v59 = vpop.f32.mrf.mxu0 }
 0x37c   :  { %v1745_v3 = vpop.f32.mrf.mxu0 }
 0x37d   :  { %v1746_v2 = vadd.f32 %v1745_v3, %v1744_v59 }
 0x37e   :  { %v1747_v4 = vpop.f32.mrf.mxu0 }
 0x37f   :  { %v1452_v5 = vadd.f32 %v1746_v2, %v2544_v60 }
 0x380   :  { %v1748_v6 = vpop.f32.mrf.mxu0 }
 0x381   :  { %v1548_v7 = vadd.f32 %v1541_v63, %v1452_v5  ;;  %v1749_v55 = vadd.f32 %v1748_v6, %v1747_v4 }
 0x382   :  { %v1750_v58 = vpop.f32.mrf.mxu0 }
 0x383   :  { %1564 = vst [vmem:[%s2622_s10] sm:$0xff] %v1548_v7  ;;  %v1455_v8 = vadd.f32 %v1749_v55, %v2544_v60 }
 0x384   :  { %v1751_v9 = vpop.f32.mrf.mxu0 }
 0x385   :  { %v1549_v10 = vadd.f32 %v1541_v63, %v1455_v8  ;;  %v1752_v11 = vadd.f32 %v1751_v9, %v1750_v58 }
 0x386   :  { %v1753_v12 = vpop.f32.mrf.mxu0 }
 0x387   :  { %1565 = vst [vmem:[%s2622_s10 + $0x8] sm:$0xff] %v1549_v10  ;;  %v1460_v15 = vadd.f32 %v1752_v11, %v2544_v60 }
 0x388   :  { %v1754_v16 = vpop.f32.mrf.mxu0 }
 0x389   :  { %v1550_v17 = vadd.f32 %v1541_v63, %v1460_v15  ;;  %v1755_v18 = vadd.f32 %v1754_v16, %v1753_v12 }
 0x38a   :  { %v1756_v19 = vpop.f32.mrf.mxu1 }
 0x38b   :  { %1566 = vst [vmem:[%s2622_s10 + $0x10] sm:$0xff] %v1550_v17  ;;  %v1463_v20 = vadd.f32 %v1755_v18, %v2544_v60 }
 0x38c   :  { %v1757_v21 = vpop.f32.mrf.mxu1 }
 0x38d   :  { %v1551_v22 = vadd.f32 %v1541_v63, %v1463_v20  ;;  %v1758_v23 = vadd.f32 %v1757_v21, %v1756_v19 }
 0x38e   :  { %v1759_v24 = vpop.f32.mrf.mxu1 }
 0x38f   :  { %1567 = vst [vmem:[%s2622_s10 + $0x18] sm:$0xff] %v1551_v22  ;;  %v1468_v25 = vadd.f32 %v1758_v23, %v2544_v60 }
 0x390   :  { %v1760_v26 = vpop.f32.mrf.mxu1 }
 0x391   :  { %v1552_v27 = vadd.f32 %v1541_v63, %v1468_v25  ;;  %v1761_v28 = vadd.f32 %v1760_v26, %v1759_v24 }
 0x392   :  { %v1762_v29 = vpop.f32.mrf.mxu1 }
 0x393   :  { %1568 = vst [vmem:[%s2622_s10 + $0x20] sm:$0xff] %v1552_v27  ;;  %v1471_v30 = vadd.f32 %v1761_v28, %v2544_v60 }
 0x394   :  { %v1763_v31 = vpop.f32.mrf.mxu1 }
 0x395   :  { %v1553_v32 = vadd.f32 %v1541_v63, %v1471_v30  ;;  %v1764_v0 = vadd.f32 %v1763_v31, %v1762_v29 }
 0x396   :  { %v1765_v34 = vpop.f32.mrf.mxu1 }
 0x397   :  { %1569 = vst [vmem:[%s2622_s10 + $0x28] sm:$0xff] %v1553_v32  ;;  %v1476_v35 = vadd.f32 %v1764_v0, %v2544_v60 }
 0x398   :  { %v1766_v36 = vpop.f32.mrf.mxu1 }
 0x399   :  { %v1554_v37 = vadd.f32 %v1541_v63, %v1476_v35  ;;  %v1767_v38 = vadd.f32 %v1766_v36, %v1765_v34 }
 0x39a   :  { %v1768_v40 = vpop.f32.mrf.mxu1 }
 0x39b   :  { %1570 = vst [vmem:[%s2622_s10 + $0x30] sm:$0xff] %v1554_v37  ;;  %v1479_v41 = vadd.f32 %v1767_v38, %v2544_v60 }
 0x39c   :  { %v1769_v42 = vpop.f32.mrf.mxu1 }
 0x39d   :  { %v1555_v43 = vadd.f32 %v1541_v63, %v1479_v41  ;;  %v1770_v44 = vadd.f32 %v1769_v42, %v1768_v40 }
 0x39e   :  { %v1771_v46 = vpop.f32.mrf.mxu1 }
 0x39f   :  { %1571 = vst [vmem:[%s2622_s10 + $0x38] sm:$0xff] %v1555_v43  ;;  %v1484_v47 = vadd.f32 %v1770_v44, %v2544_v60 }
 0x3a0   :  { %v1772_v48 = vpop.f32.mrf.mxu1 }
 0x3a1   :  { %v1556_v49 = vadd.f32 %v1545_v45, %v1484_v47  ;;  %v1773_v50 = vadd.f32 %v1772_v48, %v1771_v46 }
 0x3a2   :  { %v1774_v51 = vpop.f32.mrf.mxu1 }
 0x3a3   :  { %1572 = vst [vmem:[%s2622_s10 + $0x40] sm:$0xff] %v1556_v49  ;;  %v1487_v52 = vadd.f32 %v1773_v50, %v2544_v60 }
 0x3a4   :  { %v1775_v13 = vpop.f32.mrf.mxu1 }
 0x3a5   :  { %v1557_v53 = vadd.f32 %v1545_v45, %v1487_v52  ;;  %v1776_v61 = vadd.f32 %v1775_v13, %v1774_v51 }
 0x3a6   :  { %v1777_v14 = vpop.f32.mrf.mxu1 }
 0x3a7   :  { %1573 = vst [vmem:[%s2622_s10 + $0x48] sm:$0xff] %v1557_v53  ;;  %v1492_v54 = vadd.f32 %v1776_v61, %v2544_v60 }
 0x3a8   :  { %v1778_v1 = vpop.f32.mrf.mxu1 }
 0x3a9   :  { %v1558_v62 = vadd.f32 %v1545_v45, %v1492_v54  ;;  %v1779_v56 = vadd.f32 %v1778_v1, %v1777_v14 }
 0x3aa   :  { %v1780_v57 = vpop.f32.mrf.mxu1 }
 0x3ab   :  { %1574 = vst [vmem:[%s2622_s10 + $0x50] sm:$0xff] %v1558_v62  ;;  %v1495_v59 = vadd.f32 %v1779_v56, %v2544_v60 }
 0x3ac   :  { %v1781_v3 = vpop.f32.mrf.mxu1 }
 0x3ad   :  { %v1559_v2 = vadd.f32 %v1545_v45, %v1495_v59  ;;  %v1782_v63 = vadd.f32 %v1781_v3, %v1780_v57 }
 0x3ae   :  { %v1783_v4 = vpop.f32.mrf.mxu1 }
 0x3af   :  { %1575 = vst [vmem:[%s2622_s10 + $0x58] sm:$0xff] %v1559_v2  ;;  %v1500_v5 = vadd.f32 %v1782_v63, %v2544_v60 }
 0x3b0   :  { %v1784_v6 = vpop.f32.mrf.mxu1 }
 0x3b1   :  { %v1560_v7 = vadd.f32 %v1545_v45, %v1500_v5  ;;  %v1785_v55 = vadd.f32 %v1784_v6, %v1783_v4 }
 0x3b2   :  { %v1786_v58 = vpop.f32.mrf.mxu1 }
 0x3b3   :  { %1576 = vst [vmem:[%s2622_s10 + $0x60] sm:$0xff] %v1560_v7  ;;  %v1503_v8 = vadd.f32 %v1785_v55, %v2544_v60 }
 0x3b4   :  { %v1787_v9 = vpop.f32.mrf.mxu1 }
 0x3b5   :  { %v1561_v10 = vadd.f32 %v1545_v45, %v1503_v8  ;;  %v1788_v11 = vadd.f32 %v1787_v9, %v1786_v58 }
 0x3b6   :  { %v1789_v12 = vpop.f32.mrf.mxu1 }
 0x3b7   :  { %1577 = vst [vmem:[%s2622_s10 + $0x68] sm:$0xff] %v1561_v10  ;;  %v1508_v15 = vadd.f32 %v1788_v11, %v2544_v60 }
 0x3b8   :  { %v1790_v16 = vpop.f32.mrf.mxu1 }
 0x3b9   :  { %v1562_v17 = vadd.f32 %v1545_v45, %v1508_v15  ;;  %v1791_v18 = vadd.f32 %v1790_v16, %v1789_v12 }
 0x3bb   :  { %1578 = vst [vmem:[%s2622_s10 + $0x70] sm:$0xff] %v1562_v17  ;;  %v1511_v19 = vadd.f32 %v1791_v18, %v2544_v60 }
 0x3bd   :  { %v1563_v20 = vadd.f32 %v1545_v45, %v1511_v19 }
 0x3bf   :  { %1579 = vst [vmem:[%s2622_s10 + $0x78] sm:$0xff] %v1563_v20 }
 0x3c0   :  { %1588 = vsyncpa [#allocation3], 1 }
 0x3c1   :  { %1589 = vsyncpa [#allocation5], 1 }
 0x3c2   :  { %1590 = vsyncpa [#allocation8], 1 }

// kernel: _forward_core.5
= control target key start
LH: loop header
LB: loop body
LE: loop exit
PB: predicated region body
PF: predicated region fallthrough
CT: control target
= control target key end

     0   :  { %17 = vsyncpa [#allocation3], 0  ;;  %s5012_s0 = inlined_call_operand.vmem [shape: bf16[64,384], index: 0, kind: input, shape index: {}]   ;;  %s5013_s1 = inlined_call_operand.vmem [shape: f32[2,128], index: 1, kind: input, shape index: {}]   ;;  %s5014_s2 = inlined_call_operand.vmem [shape: bf16[384,384], index: 2, kind: input, shape index: {}]   ;;  %s5015_s3 = inlined_call_operand.vmem [shape: bf16[1,384], index: 3, kind: input, shape index: {}]   ;;  %s5016_s4 = inlined_call_operand.hbm [shape: bf16[384,384], index: 4, kind: input, shape index: {}]   ;;  %s5017_s5 = inlined_call_operand.hbm [shape: bf16[1,384], index: 5, kind: input, shape index: {}]   ;;  %s5018_s6 = inlined_call_operand.hbm [shape: bf16[384,384], index: 6, kind: input, shape index: {}]   ;;  %s5019_s7 = inlined_call_operand.hbm [shape: bf16[1,384], index: 7, kind: input, shape index: {}]   ;;  %s5020_s8 = inlined_call_operand.hbm [shape: bf16[384,128], index: 8, kind: input, shape index: {}]   ;;  %s5021_s9 = inlined_call_operand.hbm [shape: bf16[1,128], index: 9, kind: input, shape index: {}]   ;;  %s5022_s10 = inlined_call_operand.vmem [shape: f32[2,32,128], index: 10, kind: output, shape index: {0}]   ;;  %s5023_s11 = inlined_call_operand.vmem [shape: bf16[64,512], index: 11, kind: output, shape index: {1}]  }
   0x1   :  { %18 = vsyncpa [#allocation5], 0 }
   0x2   :  { %19 = vsyncpa [#allocation8], 0 }
   0x3   :  { %20 = vsyncpa [#allocation11], 0  ;;  %s4199_s17 = smov [#allocation4]   ;;  %s4200_s19 = smov [#allocation7]  }
   0x4   :  { %s47_s18 = sshll.u32 %s4199_s17, 4  ;;  %s69_s20 = sshll.u32 %s4200_s19, 4  ;;  %s48_s18 = int_to_ptr.vmem [resolvable:$true] %s47_s18  ;;  %s70_s20 = int_to_ptr.vmem [resolvable:$true] %s69_s20 }
   0x5   :  { %s4079_s21 = scalar_lea.vmem %s48_s18, 48  ;;  %s4083_s22 = scalar_lea.vmem %s48_s18, 64 }
   0x6   :  { %p4080_p0 = scmp.ne.s32.totalorder %s48_s18, %s4079_s21  ;;  %p4084_p1 = scmp.lt.s32.totalorder %s48_s18, %s48_s18 }
   0x7   :  { %p4085_p2 = scmp.lt.s32.totalorder %s4083_s22, %s4079_s21 }
   0x9   :  { %p4086_p3 = por %p4085_p2, %p4084_p1 }
   0xb   :  { %p4087_p4 = pnand %p4086_p3, %p4080_p0 }
   0xd   :  { %4090 = shalt.err (!%p4087_p4)
}
   0xe   :  { %50 = dma.hbm_to_vmem [thread:$0]  %s5017_s5, 48, %s48_s18, [#allocation5]  }
   0xf   :  { %s4099_s25 = scalar_lea.vmem %s70_s20, 48  ;;  %s4103_s26 = scalar_lea.vmem %s70_s20, 64 }
  0x10   :  { %p4100_p5 = scmp.ne.s32.totalorder %s70_s20, %s4099_s25  ;;  %p4104_p6 = scmp.lt.s32.totalorder %s70_s20, %s70_s20 }
  0x11   :  { %p4105_p7 = scmp.lt.s32.totalorder %s4103_s26, %s4099_s25 }
  0x13   :  { %p4106_p8 = por %p4105_p7, %p4104_p6 }
  0x15   :  { %p4107_p9 = pnand %p4106_p8, %p4100_p5 }
  0x17   :  { %4110 = shalt.err (!%p4107_p9)
}
  0x18   :  { %72 = dma.hbm_to_vmem [thread:$0]  %s5019_s7, 48, %s70_s20, [#allocation8]  }
  0x19   :  { %s4201_s29 = smov [#allocation2]  }
  0x1a   :  { %s34_s30 = sshll.u32 %s4201_s29, 4  ;;  %s35_s30 = int_to_ptr.vmem [resolvable:$true] %s34_s30 }
  0x1b   :  { %s4119_s12 = scalar_lea.vmem %s35_s30, 9216  ;;  %p4124_p11 = scmp.lt.s32.totalorder %s35_s30, %s35_s30 }
  0x1c   :  { %p4120_p10 = scmp.ne.s32.totalorder %s35_s30, %s4119_s12  ;;  %p4125_p12 = scmp.lt.s32.totalorder %s4119_s12, %s4119_s12 }
  0x1e   :  { %p4126_p13 = por %p4125_p12, %p4124_p11 }
  0x20   :  { %p4127_p0 = pnand %p4126_p13, %p4120_p10 }
  0x22   :  { %4130 = shalt.err (!%p4127_p0)
}
  0x23   :  { %s4202_s5 = smov 192   ;;  %s4203_s13 = smov 12  }
  0x24   :  { %40 = dma.hbm_to_vmem [thread:$0]  %s5016_s4, 9216, %s35_s30, [#allocation3], %s4202_s5, %s4202_s5, %s4203_s13  }
  0x25   :  { %s4204_s16 = smov [#allocation6]   ;;  %s4205_s7 = smov [#allocation9]  }
  0x26   :  { %s56_s17 = sshll.u32 %s4204_s16, 4  ;;  %s78_s18 = sshll.u32 %s4205_s7, 4  ;;  %s57_s17 = int_to_ptr.vmem [resolvable:$true] %s56_s17  ;;  %s79_s18 = int_to_ptr.vmem [resolvable:$true] %s78_s18 }
  0x27   :  { %s4139_s19 = scalar_lea.vmem %s57_s17, 9216  ;;  %p4144_p2 = scmp.lt.s32.totalorder %s57_s17, %s57_s17 }
  0x28   :  { %p4140_p1 = scmp.ne.s32.totalorder %s57_s17, %s4139_s19  ;;  %p4145_p3 = scmp.lt.s32.totalorder %s4139_s19, %s4139_s19 }
  0x2a   :  { %p4146_p4 = por %p4145_p3, %p4144_p2 }
  0x2c   :  { %p4147_p5 = pnand %p4146_p4, %p4140_p1 }
  0x2e   :  { %4150 = shalt.err (!%p4147_p5)
}
  0x2f   :  { %62 = dma.hbm_to_vmem [thread:$0]  %s5018_s6, 9216, %s57_s17, [#allocation5], %s4202_s5, %s4202_s5, %s4203_s13  }
  0x30   :  { %s4159_s22 = scalar_lea.vmem %s79_s18, 3072  ;;  %p4164_p7 = scmp.lt.s32.totalorder %s79_s18, %s79_s18 }
  0x31   :  { %p4160_p6 = scmp.ne.s32.totalorder %s79_s18, %s4159_s22  ;;  %p4165_p8 = scmp.lt.s32.totalorder %s4159_s22, %s4159_s22 }
  0x33   :  { %p4166_p9 = por %p4165_p8, %p4164_p7 }
  0x35   :  { %p4167_p10 = pnand %p4166_p9, %p4160_p6 }
  0x37   :  { %4170 = shalt.err (!%p4167_p10)
}
  0x38   :  { %s4206_s4 = smov 64   ;;  %s4207_s23 = smov 4  }
  0x39   :  { %84 = dma.hbm_to_vmem [thread:$0]  %s5020_s8, 3072, %s79_s18, [#allocation8], %s4206_s4, %s4206_s4, %s4207_s23  }
  0x3a   :  { %s4208_s26 = smov [#allocation10]  }
  0x3b   :  { %s91_s27 = sshll.u32 %s4208_s26, 4  ;;  %s92_s27 = int_to_ptr.vmem [resolvable:$true] %s91_s27 }
  0x3c   :  { %s4179_s28 = scalar_lea.vmem %s92_s27, 16  ;;  %s4183_s6 = scalar_lea.vmem %s92_s27, 32 }
  0x3d   :  { %p4180_p11 = scmp.ne.s32.totalorder %s92_s27, %s4179_s28  ;;  %p4184_p12 = scmp.lt.s32.totalorder %s92_s27, %s92_s27 }
  0x3e   :  { %p4185_p13 = scmp.lt.s32.totalorder %s4183_s6, %s4179_s28 }
  0x40   :  { %p4186_p0 = por %p4185_p13, %p4184_p12 }
  0x42   :  { %p4187_p1 = pnand %p4186_p0, %p4180_p11 }
  0x44   :  { %4190 = shalt.err (!%p4187_p1)
}
  0x45   :  { %94 = dma.hbm_to_vmem [thread:$0]  %s5021_s9, 16, %s92_s27, [#allocation11]  }
  0x46   :  { %4191 = dma.done.wait [#allocation3], 9216  }
  0x47   :  { %4192 = vsyncadd [#allocation3], 4294958080 }
  0x48   :  { %4193 = dma.done.wait [#allocation5], 9264  }
  0x49   :  { %4194 = vsyncadd [#allocation5], 4294958032 }
  0x4a   :  { %4195 = dma.done.wait [#allocation8], 3120  }
  0x4b   :  { %4196 = vsyncadd [#allocation8], 4294964176 }
  0x4c   :  { %4197 = dma.done.wait [#allocation11], 16  }
  0x4d   :  { %4198 = vsyncadd [#allocation11], 4294967280  ;;  %v4209_v0 = vmov 0   ;;  %v3747_v1 = vld [vmem:[%s5014_s2 + $0xac] ss:$12 sps:$4 sm:$0xff]   ;;  %v229_v29 = vlaneseq  ;;  %v4440_v50 = vld [vmem:[%s5012_s0] sm:$0xff] }
  0x4e   :  { %809 = vmatprep.mubr.bf16.mxu1 %v4209_v0  ;;  %v3749_v2 = vld [vmem:[%s5014_s2 + $0xa8] ss:$12 sps:$4 sm:$0xff]   ;;  %704 = vmatprep.subr.bf16.mxu0 %v3747_v1  ;;  %v3752_v4 = vld [vmem:[%s5014_s2 + $0x90] ss:$12 sps:$4 sm:$0xff]   ;;  %v3759_v6 = vld [vmem:[%s5014_s2 + $0x22c] ss:$12 sps:$4 sm:$0xff]  }
  0x4f   :  { %v3750_v3 = vld [vmem:[%s5014_s2 + $0x94] ss:$12 sps:$4 sm:$0xff]   ;;  %705 = vmatpush1.bf16.msra.mxu0 %v3749_v2  ;;  %v3753_v5 = vld [vmem:[%s5014_s2 + $0x7c] ss:$12 sps:$4 sm:$0xff]   ;;  %v3755_v7 = vld [vmem:[%s5014_s2 + $0x78] ss:$12 sps:$4 sm:$0xff]   ;;  %777 = vmatprep.subr.bf16.mxu1 %v3759_v6 }
  0x50   :  { %706 = vmatprep.subr.bf16.mxu0 %v3750_v3  ;;  %v3756_v8 = vld [vmem:[%s5014_s2 + $0x64] ss:$12 sps:$4 sm:$0xff]   ;;  %v3763_v9 = vld [vmem:[%s5014_s2 + $0x228] ss:$12 sps:$4 sm:$0xff]   ;;  %v3758_v11 = vld [vmem:[%s5014_s2 + $0x60] ss:$12 sps:$4 sm:$0xff]  }
  0x51   :  { %v3765_v10 = vld [vmem:[%s5014_s2 + $0x214] ss:$12 sps:$4 sm:$0xff]   ;;  %778 = vmatpush1.bf16.msra.mxu1 %v3763_v9  ;;  %v3769_v12 = vld [vmem:[%s5014_s2 + $0x210] ss:$12 sps:$4 sm:$0xff]   ;;  %v3761_v14 = vld [vmem:[%s5014_s2 + $0x4c] ss:$12 sps:$4 sm:$0xff]  }
  0x52   :  { %779 = vmatprep.subr.bf16.mxu1 %v3765_v10  ;;  %v3771_v13 = vld [vmem:[%s5014_s2 + $0x1fc] ss:$12 sps:$4 sm:$0xff]   ;;  %v3775_v15 = vld [vmem:[%s5014_s2 + $0x1f8] ss:$12 sps:$4 sm:$0xff]   ;;  %v3767_v18 = vld [vmem:[%s5014_s2 + $0x34] ss:$12 sps:$4 sm:$0xff]  }
  0x53   :  { %707 = vmatpush1.bf16.msra.mxu0 %v3752_v4  ;;  %v3777_v16 = vld [vmem:[%s5014_s2 + $0x1e4] ss:$12 sps:$4 sm:$0xff]   ;;  %v3764_v17 = vld [vmem:[%s5014_s2 + $0x48] ss:$12 sps:$4 sm:$0xff]   ;;  %v3781_v19 = vld [vmem:[%s5014_s2 + $0x1e0] ss:$12 sps:$4 sm:$0xff]  }
  0x54   :  { %708 = vmatprep.subr.bf16.mxu0 %v3753_v5  ;;  %v3783_v20 = vld [vmem:[%s5014_s2 + $0x1cc] ss:$12 sps:$4 sm:$0xff]   ;;  %v3770_v21 = vld [vmem:[%s5014_s2 + $0x30] ss:$12 sps:$4 sm:$0xff]   ;;  %v3787_v23 = vld [vmem:[%s5014_s2 + $0x1c8] ss:$12 sps:$4 sm:$0xff]  }
  0x55   :  { %780 = vmatpush1.bf16.msra.mxu1 %v3769_v12  ;;  %v3773_v22 = vld [vmem:[%s5014_s2 + $0x1c] ss:$12 sps:$4 sm:$0xff]   ;;  %v3789_v24 = vld [vmem:[%s5014_s2 + $0x1b4] ss:$12 sps:$4 sm:$0xff]   ;;  %v3776_v25 = vld [vmem:[%s5014_s2 + $0x18] ss:$12 sps:$4 sm:$0xff]  }
  0x56   :  { %781 = vmatprep.subr.bf16.mxu1 %v3771_v13  ;;  %v3779_v26 = vld [vmem:[%s5014_s2 + $0x4] ss:$12 sps:$4 sm:$0xff]   ;;  %v3795_v28 = vld [vmem:[%s5014_s2 + $0x19c] ss:$12 sps:$4 sm:$0xff]   ;;  %v3782_v30 = vld [vmem:[%s5014_s2] ss:$12 sps:$4 sm:$0xff]  }
  0x57   :  { %709 = vmatpush1.bf16.msra.mxu0 %v3755_v7  ;;  %v3793_v27 = vld [vmem:[%s5014_s2 + $0x1b0] ss:$12 sps:$4 sm:$0xff]   ;;  %v3785_v31 = vld [vmem:[%s5014_s2 + $0x16c] ss:$12 sps:$4 sm:$0xff]   ;;  %v1815_v32 = vand.u32 127, %v229_v29  ;;  %v120_v2 = vld [vmem:[%s5012_s0 + $0x24] sm:$0xff] }
  0x58   :  { %710 = vmatprep.subr.bf16.mxu0 %v3756_v8  ;;  %v3799_v33 = vld [vmem:[%s5014_s2 + $0x198] ss:$12 sps:$4 sm:$0xff]   ;;  %v3788_v35 = vld [vmem:[%s5014_s2 + $0x168] ss:$12 sps:$4 sm:$0xff]   ;;  %v3794_v37 = vld [vmem:[%s5014_s2 + $0x150] ss:$12 sps:$4 sm:$0xff]  }
  0x59   :  { %782 = vmatpush1.bf16.msra.mxu1 %v3775_v15  ;;  %v3801_v34 = vld [vmem:[%s5014_s2 + $0x184] ss:$12 sps:$4 sm:$0xff]   ;;  %v3791_v36 = vld [vmem:[%s5014_s2 + $0x154] ss:$12 sps:$4 sm:$0xff]   ;;  %vm1816_vm0 = vcmp.lt.s32.totalorder %v1815_v32, 3  ;;  %v4498_v1 = vld [vmem:[%s5012_s0 + $0x18] sm:$0xff] }
  0x5a   :  { %783 = vmatprep.subr.bf16.mxu1 %v3777_v16  ;;  %v3805_v38 = vld [vmem:[%s5014_s2 + $0x180] ss:$12 sps:$4 sm:$0xff]   ;;  %v3808_v39 = vld [vmem:[%s5014_s2 + $0x170] ss:$12 sps:$4 sm:$0xff]   ;;  %v4408_v41 = vld [vmem:[%s5012_s0 + $0x8] ss:$12 sps:$4 sm:$0xff]  }
  0x5b   :  { %711 = vmatpush1.bf16.msra.mxu0 %v3758_v11  ;;  %v3797_v40 = vld [vmem:[%s5014_s2 + $0x13c] ss:$12 sps:$4 sm:$0xff]   ;;  %v3813_v43 = vld [vmem:[%s5014_s2 + $0x158] ss:$12 sps:$4 sm:$0xff]   ;;  %vm4416_vm1 = vmpackc.low %vm1816_vm0, %vm1816_vm0 }
  0x5c   :  { %712 = vmatprep.subr.bf16.mxu0 %v3761_v14  ;;  %v3811_v42 = vld [vmem:[%s5014_s2 + $0xb0] ss:$12 sps:$4 sm:$0xff]   ;;  %v3800_v45 = vld [vmem:[%s5014_s2 + $0x138] ss:$12 sps:$4 sm:$0xff]   ;;  %v3806_v47 = vld [vmem:[%s5014_s2 + $0x120] ss:$12 sps:$4 sm:$0xff]  }
  0x5d   :  { %784 = vmatpush1.bf16.msra.mxu1 %v3781_v19  ;;  %v3803_v46 = vld [vmem:[%s5014_s2 + $0x124] ss:$12 sps:$4 sm:$0xff]   ;;  %v3819_v49 = vld [vmem:[%s5014_s2 + $0x140] ss:$12 sps:$4 sm:$0xff]   ;;  %v1818_v54 = vsel %vm4416_vm1, %v4440_v50, 0  ;;  %v1820_v4 = vsel %vm4416_vm1, %v4498_v1, 0 }
  0x5e   :  { %785 = vmatprep.subr.bf16.mxu1 %v3783_v20  ;;  %v3816_v48 = vld [vmem:[%s5014_s2 + $0x98] ss:$12 sps:$4 sm:$0xff]   ;;  %v4445_v51 = vld [vmem:[%s5012_s0 + $0xc] sm:$0xff]  ;;  %1826 = vst [vmem:[%s5023_s11] sm:$0xf] %v1818_v54  ;;  %v3812_v57 = vld [vmem:[%s5014_s2 + $0x108] ss:$12 sps:$4 sm:$0xff]  }
  0x5f   :  { %713 = vmatpush1.bf16.msra.mxu0 %v3764_v17  ;;  %v3809_v52 = vld [vmem:[%s5014_s2 + $0x10c] ss:$12 sps:$4 sm:$0xff]   ;;  %v4452_v53 = vcombine.high %v4440_v50, %v4445_v51  ;;  %v1819_v55 = vsel %vm4416_vm1, %v4445_v51, 0  ;;  %v3824_v59 = vld [vmem:[%s5014_s2 + $0x128] ss:$12 sps:$4 sm:$0xff]   ;;  %v1821_v5 = vsel %vm4416_vm1, %v120_v2, 0 }
  0x60   :  { %714 = vmatprep.subr.bf16.mxu0 %v3767_v18  ;;  %v4463_v56 = vld [vmem:[%s5012_s0 + $0x20] ss:$12 sps:$4 sm:$0xff]   ;;  %1827 = vst [vmem:[%s5023_s11 + $0x10] sm:$0xf] %v1819_v55  ;;  %v3827_v61 = vld [vmem:[%s5014_s2 + $0x68] ss:$12 sps:$4 sm:$0xff]  }
  0x61   :  { %786 = vmatpush1.bf16.msra.mxu1 %v3787_v23  ;;  %v3822_v58 = vld [vmem:[%s5014_s2 + $0x80] ss:$12 sps:$4 sm:$0xff]   ;;  %736 = vmatprep.mubr.bf16.mxu0 %v4452_v53  ;;  %v3817_v62 = vld [vmem:[%s5014_s2 + $0xf0] ss:$12 sps:$4 sm:$0xff]   ;;  %v4514_v6 = vld [vmem:[%s5012_s0 + $0x38] ss:$12 sps:$4 sm:$0xff]   ;;  %v3130_v23 = vcombine.low %v4440_v50, %v4445_v51 }
  0x62   :  { %787 = vmatprep.subr.bf16.mxu1 %v3789_v24  ;;  %v3814_v60 = vld [vmem:[%s5014_s2 + $0xf4] ss:$12 sps:$4 sm:$0xff]   ;;  %v3831_v63 = vld [vmem:[%s5014_s2 + $0x110] ss:$12 sps:$4 sm:$0xff]   ;;  %1828 = vst [vmem:[%s5023_s11 + $0x20] sm:$0xf] %v1820_v4 }
  0x63   :  { %715 = vmatpush1.bf16.msra.mxu0 %v3770_v21  ;;  %v3820_v3 = vld [vmem:[%s5014_s2 + $0xdc] ss:$12 sps:$4 sm:$0xff]   ;;  %1829 = vst [vmem:[%s5023_s11 + $0x30] sm:$0xf] %v1821_v5  ;;  %v3823_v7 = vld [vmem:[%s5014_s2 + $0xd8] ss:$12 sps:$4 sm:$0xff]  }
  0x64   :  { %716 = vmatprep.subr.bf16.mxu0 %v3773_v22  ;;  %v3833_v8 = vld [vmem:[%s5014_s2 + $0x50] ss:$12 sps:$4 sm:$0xff]   ;;  %v3835_v9 = vld [vmem:[%s5014_s2 + $0xf8] ss:$12 sps:$4 sm:$0xff]   ;;  %v3828_v12 = vld [vmem:[%s5014_s2 + $0xc0] ss:$12 sps:$4 sm:$0xff]  }
  0x65   :  { %788 = vmatpush1.bf16.msra.mxu1 %v3793_v27  ;;  %v3825_v10 = vld [vmem:[%s5014_s2 + $0xc4] ss:$12 sps:$4 sm:$0xff]   ;;  %v3840_v13 = vld [vmem:[%s5014_s2 + $0xe0] ss:$12 sps:$4 sm:$0xff]   ;;  %v4580_v22 = vld [vmem:[%s5012_s0 + $0x54] sm:$0xff]  ;;  %v3134_v27 = vcombine.high %v4498_v1, %v120_v2 }
  0x66   :  { %789 = vmatprep.subr.bf16.mxu1 %v3795_v28  ;;  %v3836_v11 = vld [vmem:[%s5014_s2 + $0x38] ss:$12 sps:$4 sm:$0xff]   ;;  %v3834_v14 = vld [vmem:[%s5014_s2 + $0x230] ss:$12 sps:$4 sm:$0xff]   ;;  %v3842_v20 = vld [vmem:[%s5014_s2 + $0x20] ss:$12 sps:$4 sm:$0xff]  }
  0x67   :  { %717 = vmatpush1.bf16.msra.mxu0 %v3776_v25  ;;  %v122_v15 = vld [vmem:[%s5012_s0 + $0x30] sm:$0xff]  ;;  %v124_v16 = vld [vmem:[%s5012_s0 + $0x3c] sm:$0xff]  ;;  %v4575_v21 = vld [vmem:[%s5012_s0 + $0x48] sm:$0xff] }
  0x68   :  { %718 = vmatprep.subr.bf16.mxu0 %v3779_v26  ;;  %v4557_v17 = vld [vmem:[%s5012_s0 + $0x50] ss:$12 sps:$4 sm:$0xff]   ;;  %v1822_v18 = vsel %vm4416_vm1, %v122_v15, 0  ;;  %v1823_v19 = vsel %vm4416_vm1, %v124_v16, 0  ;;  %v3844_v24 = vld [vmem:[%s5014_s2 + $0xc8] ss:$12 sps:$4 sm:$0xff]   ;;  %v3136_v44 = vcombine.low %v122_v15, %v124_v16 }
  0x69   :  { %790 = vmatpush1.bf16.msra.mxu1 %v3799_v33  ;;  %1830 = vst [vmem:[%s5023_s11 + $0x40] sm:$0xf] %v1822_v18  ;;  %1831 = vst [vmem:[%s5023_s11 + $0x50] sm:$0xf] %v1823_v19  ;;  %v1824_v25 = vsel %vm4416_vm1, %v4575_v21, 0  ;;  %v1825_v26 = vsel %vm4416_vm1, %v4580_v22, 0 }
  0x6a   :  { %791 = vmatprep.subr.bf16.mxu1 %v3801_v34  ;;  %1832 = vst [vmem:[%s5023_s11 + $0x60] sm:$0xf] %v1824_v25  ;;  %1833 = vst [vmem:[%s5023_s11 + $0x70] sm:$0xf] %v1825_v26  ;;  %v3837_v28 = vld [vmem:[%s5014_s2 + $0x218] ss:$12 sps:$4 sm:$0xff]   ;;  %v3133_v34 = vcombine.low %v4498_v1, %v120_v2 }
  0x6b   :  { %719 = vmatpush1.bf16.msra.mxu0 %v3782_v30  ;;  %v3845_v30 = vld [vmem:[%s5014_s2 + $0x8] ss:$12 sps:$4 sm:$0xff]   ;;  %v3843_v32 = vld [vmem:[%s5014_s2 + $0x200] ss:$12 sps:$4 sm:$0xff]   ;;  %v3870_v54 = vld [vmem:[#allocation2 + $0x30] ss:$12 sps:$4 sm:$0xff]  }
  0x6c   :  { %720 = vmatprep.subr.bf16.mxu0 %v3785_v31  ;;  %v3857_v31 = vld [vmem:[#allocation2 + $0xac] ss:$12 sps:$4 sm:$0xff]   ;;  %v3855_v33 = vld [vmem:[#allocation2 + $0xa8] ss:$12 sps:$4 sm:$0xff]   ;;  %v3890_v2 = vld [vmem:[#allocation2 + $0x124] ss:$12 sps:$4 sm:$0xff]  }
  0x6d   :  { %792 = vmatpush1.bf16.msra.mxu1 %v3805_v38  ;;  %v3858_v38 = vld [vmem:[#allocation2 + $0x90] ss:$12 sps:$4 sm:$0xff]   ;;  %v3867_v50 = vld [vmem:[#allocation2 + $0x48] ss:$12 sps:$4 sm:$0xff]   ;;  %v3915_v19 = vld [vmem:[#allocation2 + $0x1e0] ss:$12 sps:$4 sm:$0xff]  }
  0x6e   :  { %3415 = vmatprep.subr.bf16.mxu1 %v3808_v39  ;;  %v3849_v39 = vld [vmem:[%s5014_s2 + $0x1d0] ss:$12 sps:$4 sm:$0xff]   ;;  %v3872_v51 = vld [vmem:[#allocation2 + $0x34] ss:$12 sps:$4 sm:$0xff]   ;;  %v3927_v25 = vld [vmem:[#allocation2 + $0x198] ss:$12 sps:$4 sm:$0xff]  }
  0x6f   :  { %721 = vmatpush2.bf16.msra.mxu0 %v3788_v35  ;;  %v3860_v35 = vld [vmem:[#allocation2 + $0x94] ss:$12 sps:$4 sm:$0xff]   ;;  %v3875_v55 = vld [vmem:[#allocation2 + $0x1c] ss:$12 sps:$4 sm:$0xff]   ;;  %v3917_v18 = vld [vmem:[#allocation2 + $0x1e4] ss:$12 sps:$4 sm:$0xff]  }
  0x70   :  { %722 = vmatprep.subr.bf16.mxu0 %v3791_v36  ;;  %810 = vmatmul.mubr.bf16.vlgmr.msra.gmra.mxu1 %v4408_v41  ;;  %v3137_v36 = vcombine.high %v122_v15, %v124_v16  ;;  %v3887_v1 = vld [vmem:[#allocation2 + $0x13c] ss:$12 sps:$4 sm:$0xff]   ;;  %v3896_v5 = vld [vmem:[#allocation2 + $0xf4] ss:$12 sps:$4 sm:$0xff]   ;;  %v3933_v26 = vld [vmem:[#allocation2 + $0x184] ss:$12 sps:$4 sm:$0xff]  }
  0x71   :  { %3416 = vmatpush3.bf16.msra.mxu1 %v3811_v42  ;;  %819 = vmatprep.mubr.bf16.mxu1 %v4209_v0  ;;  %v3861_v42 = vld [vmem:[#allocation2 + $0x78] ss:$12 sps:$4 sm:$0xff]   ;;  %v3891_v4 = vld [vmem:[#allocation2 + $0x108] ss:$12 sps:$4 sm:$0xff]   ;;  %v3907_v15 = vld [vmem:[#allocation2 + $0x210] ss:$12 sps:$4 sm:$0xff]  }
  0x72   :  { %3417 = vmatprep.subr.bf16.mxu1 %v3813_v43  ;;  %v3866_v43 = vld [vmem:[#allocation2 + $0x64] ss:$12 sps:$4 sm:$0xff]   ;;  %v3913_v16 = vld [vmem:[#allocation2 + $0x1fc] ss:$12 sps:$4 sm:$0xff]  }
  0x73   :  { %723 = vmatpush2.bf16.msra.mxu0 %v3794_v37  ;;  %v3846_v37 = vld [vmem:[%s5014_s2 + $0x1e8] ss:$12 sps:$4 sm:$0xff]  }
  0x74   :  { %724 = vmatprep.subr.bf16.mxu0 %v3797_v40  ;;  %v3863_v40 = vld [vmem:[#allocation2 + $0x7c] ss:$12 sps:$4 sm:$0xff]  }
  0x75   :  { %3418 = vmatpush3.bf16.msra.mxu1 %v3816_v48  ;;  %v3869_v48 = vld [vmem:[#allocation2 + $0x4c] ss:$12 sps:$4 sm:$0xff]  }
  0x76   :  { %3419 = vmatprep.subr.bf16.mxu1 %v3819_v49  ;;  %v3853_v49 = vld [vmem:[%s5014_s2 + $0x1a0] ss:$12 sps:$4 sm:$0xff]  }
  0x77   :  { %725 = vmatpush2.bf16.msra.mxu0 %v3800_v45  ;;  %v3850_v45 = vld [vmem:[%s5014_s2 + $0x1b8] ss:$12 sps:$4 sm:$0xff]  }
  0x78   :  { %726 = vmatprep.subr.bf16.mxu0 %v3803_v46  ;;  %820 = vmatmul.mubr.bf16.gmra.mxu1 %v4463_v56  ;;  %v3140_v46 = vcombine.high %v4575_v21, %v4580_v22 }
  0x79   :  { %3420 = vmatpush3.bf16.msra.mxu1 %v3822_v58  ;;  %829 = vmatprep.mubr.bf16.mxu1 %v4209_v0  ;;  %v3878_v58 = vld [vmem:[#allocation2 + $0x4] ss:$12 sps:$4 sm:$0xff]  }
  0x7a   :  { %3421 = vmatprep.subr.bf16.mxu1 %v3824_v59  ;;  %v3876_v59 = vld [vmem:[#allocation2] ss:$12 sps:$4 sm:$0xff]  }
  0x7b   :  { %727 = vmatpush2.bf16.msra.mxu0 %v3806_v47  ;;  %v3864_v47 = vld [vmem:[#allocation2 + $0x60] ss:$12 sps:$4 sm:$0xff]  }
  0x7c   :  { %728 = vmatprep.subr.bf16.mxu0 %v3809_v52  ;;  %v3139_v52 = vcombine.low %v4575_v21, %v4580_v22  ;;  %v3919_v21 = vld [vmem:[#allocation2 + $0x1c8] ss:$12 sps:$4 sm:$0xff]  }
  0x7d   :  { %3422 = vmatpush3.bf16.msra.mxu1 %v3827_v61  ;;  %v3881_v61 = vld [vmem:[#allocation2 + $0x16c] ss:$12 sps:$4 sm:$0xff]   ;;  %v3925_v22 = vld [vmem:[#allocation2 + $0x1b4] ss:$12 sps:$4 sm:$0xff]  }
  0x7e   :  { %3423 = vmatprep.subr.bf16.mxu1 %v3831_v63  ;;  %v3885_v63 = vld [vmem:[#allocation2 + $0x138] ss:$12 sps:$4 sm:$0xff]  }
  0x7f   :  { %729 = vmatpush2.bf16.msra.mxu0 %v3812_v57  ;;  %v3873_v57 = vld [vmem:[#allocation2 + $0x18] ss:$12 sps:$4 sm:$0xff]  }
  0x80   :  { %730 = vmatprep.subr.bf16.mxu0 %v3814_v60  ;;  %830 = vmatmul.mubr.bf16.gmra.mxu1 %v4514_v6  ;;  %v3879_v60 = vld [vmem:[#allocation2 + $0x168] ss:$12 sps:$4 sm:$0xff]  }
  0x81   :  { %3424 = vmatpush3.bf16.msra.mxu1 %v3833_v8  ;;  %839 = vmatprep.mubr.bf16.mxu1 %v4209_v0  ;;  %v3897_v8 = vld [vmem:[#allocation2 + $0xd8] ss:$12 sps:$4 sm:$0xff]  }
  0x82   :  { %3425 = vmatprep.subr.bf16.mxu1 %v3835_v9  ;;  %v3902_v9 = vld [vmem:[#allocation2 + $0xc4] ss:$12 sps:$4 sm:$0xff]  }
  0x83   :  { %731 = vmatpush2.bf16.msra.mxu0 %v3817_v62  ;;  %v3884_v62 = vld [vmem:[#allocation2 + $0x154] ss:$12 sps:$4 sm:$0xff]  }
  0x84   :  { %732 = vmatprep.subr.bf16.mxu0 %v3820_v3  ;;  %v3893_v3 = vld [vmem:[#allocation2 + $0x10c] ss:$12 sps:$4 sm:$0xff]  }
  0x85   :  { %3426 = vmatpush3.bf16.msra.mxu1 %v3836_v11  ;;  %v3905_v11 = vld [vmem:[#allocation2 + $0x22c] ss:$12 sps:$4 sm:$0xff]  }
  0x86   :  { %3427 = vmatprep.subr.bf16.mxu1 %v3840_v13  ;;  %v4636_v13 = vld [vmem:[#allocation2 + $0x230] ss:$12 sps:$4 sm:$0xff]  }
  0x87   :  { %733 = vmatpush2.bf16.msra.mxu0 %v3823_v7  ;;  %v3899_v7 = vld [vmem:[#allocation2 + $0xdc] ss:$12 sps:$4 sm:$0xff]  }
  0x88   :  { %734 = vmatprep.subr.bf16.mxu0 %v3825_v10  ;;  %840 = vmatmul.mubr.bf16.gmra.mxu1 %v4557_v17  ;;  %v3900_v10 = vld [vmem:[#allocation2 + $0xc0] ss:$12 sps:$4 sm:$0xff]  }
  0x89   :  { %3428 = vmatpush3.bf16.msra.mxu1 %v3842_v20  ;;  %882 = vmatprep.mubr.bf16.mxu1 %v4452_v53  ;;  %v3854_v53 = vld [vmem:[%s5014_s2 + $0x188] ss:$12 sps:$4 sm:$0xff]   ;;  %v3921_v20 = vld [vmem:[#allocation2 + $0x1cc] ss:$12 sps:$4 sm:$0xff]  }
  0x8a   :  { %3429 = vmatprep.subr.bf16.mxu1 %v3844_v24  ;;  %v3929_v24 = vld [vmem:[#allocation2 + $0x19c] ss:$12 sps:$4 sm:$0xff]  }
  0x8b   :  { %735 = vmatpush2.bf16.msra.mxu0 %v3828_v12  ;;  %v3903_v12 = vld [vmem:[#allocation2 + $0x228] ss:$12 sps:$4 sm:$0xff]  }
  0x8c   :  { %3623 = vmatprep.subr.bf16.mxu0 %v3834_v14 }
  0x8d   :  { %3430 = vmatpush3.bf16.msra.mxu1 %v3845_v30 }
  0x8e   :  { %737 = vmatmul.mubr.bf16.vlgmr.msra.gmra.mxu0 %v3130_v23  ;;  %1526 = vmatprep.subr.bf16.mxu1 %v3857_v31 }
  0x8f   :  { %3624 = vmatpush3.bf16.msra.mxu0 %v3834_v14  ;;  %746 = vmatprep.mubr.bf16.mxu0 %v3134_v27  ;;  %v3909_v14 = vld [vmem:[#allocation2 + $0x214] ss:$12 sps:$4 sm:$0xff]  }
  0x90   :  { %3625 = vmatprep.subr.bf16.mxu0 %v3837_v28  ;;  %883 = vmatmul.mubr.bf16.vlgmr.msra.gmra.mxu1 %v3130_v23  ;;  %v3923_v23 = vld [vmem:[#allocation2 + $0x1b0] ss:$12 sps:$4 sm:$0xff]  }
  0x91   :  { %890 = vmatprep.mubr.bf16.mxu1 %v3134_v27  ;;  %1527 = vmatpush1.bf16.msra.mxu1 %v3855_v33  ;;  %v3931_v27 = vld [vmem:[#allocation2 + $0x180] ss:$12 sps:$4 sm:$0xff]  }
  0x92   :  { %1528 = vmatprep.subr.bf16.mxu1 %v3860_v35 }
  0x93   :  { %3626 = vmatpush3.bf16.msra.mxu0 %v3837_v28  ;;  %v3935_v28 = vld [vmem:[#allocation2 + $0x170] ss:$12 sps:$4 sm:$0xff]  }
  0x94   :  { %3627 = vmatprep.subr.bf16.mxu0 %v3843_v32 }
  0x95   :  { %1529 = vmatpush1.bf16.msra.mxu1 %v3858_v38 }
  0x96   :  { %747 = vmatmul.mubr.bf16.gmra.mxu0 %v3133_v34  ;;  %1530 = vmatprep.subr.bf16.mxu1 %v3863_v40 }
  0x97   :  { %3628 = vmatpush3.bf16.msra.mxu0 %v3843_v32  ;;  %756 = vmatprep.mubr.bf16.mxu0 %v3137_v36 }
  0x98   :  { %3629 = vmatprep.subr.bf16.mxu0 %v3846_v37  ;;  %891 = vmatmul.mubr.bf16.gmra.mxu1 %v3133_v34 }
  0x99   :  { %898 = vmatprep.mubr.bf16.mxu1 %v3137_v36  ;;  %1531 = vmatpush1.bf16.msra.mxu1 %v3861_v42 }
  0x9a   :  { %1532 = vmatprep.subr.bf16.mxu1 %v3866_v43 }
  0x9b   :  { %3630 = vmatpush3.bf16.msra.mxu0 %v3846_v37  ;;  %v4640_v37 = vshrl.u32 %v229_v29, 7 }
  0x9c   :  { %3631 = vmatprep.subr.bf16.mxu0 %v3849_v39 }
  0x9d   :  { %1533 = vmatpush1.bf16.msra.mxu1 %v3864_v47  ;;  %v4648_v42 = vsub.s32 2, %v4640_v37  ;;  %v4651_v43 = vsub.s32 0, %v4640_v37 }
  0x9e   :  { %757 = vmatmul.mubr.bf16.gmra.mxu0 %v3136_v44  ;;  %1534 = vmatprep.subr.bf16.mxu1 %v3869_v48 }
  0x9f   :  { %3632 = vmatpush3.bf16.msra.mxu0 %v3849_v39  ;;  %766 = vmatprep.mubr.bf16.mxu0 %v3140_v46  ;;  %v226_v39 = vld [vmem:[%s5015_s3] sm:$0x7] }
  0xa0   :  { %3633 = vmatprep.subr.bf16.mxu0 %v3850_v45  ;;  %899 = vmatmul.mubr.bf16.gmra.mxu1 %v3136_v44  ;;  %v4653_v44 = vunpack.c.l.bf16 %v226_v39 }
  0xa1   :  { %906 = vmatprep.mubr.bf16.mxu1 %v3140_v46  ;;  %1535 = vmatpush1.bf16.msra.mxu1 %v3867_v50 }
  0xa2   :  { %1536 = vmatprep.subr.bf16.mxu1 %v3872_v51  ;;  %v236_v29 = vrot.slane %v4653_v44, %v4648_v42  ;;  %v232_v47 = vrot.slane %v4653_v44, %v4651_v43 }
  0xa3   :  { %3634 = vmatpush3.bf16.msra.mxu0 %v3850_v45 }
  0xa4   :  { %3635 = vmatprep.subr.bf16.mxu0 %v3853_v49  ;;  %v4668_v50 = vrot.slane %v236_v29, %v4651_v43  ;;  %v4671_v51 = vrot.slane %v232_v47, %v4651_v43 }
  0xa5   :  { %1537 = vmatpush1.bf16.msra.mxu1 %v3870_v54 }
  0xa6   :  { %767 = vmatmul.mubr.bf16.gmra.mxu0 %v3139_v52  ;;  %1538 = vmatprep.subr.bf16.mxu1 %v3875_v55 }
  0xa7   :  { %3636 = vmatpush3.bf16.msra.mxu0 %v3853_v49  ;;  %3639 = vmatprep.mubr.bf16.mxu0 %v4408_v41  ;;  %v3882_v41 = vld [vmem:[#allocation2 + $0x150] ss:$12 sps:$4 sm:$0xff]  }
  0xa8   :  { %3637 = vmatprep.subr.bf16.mxu0 %v3854_v53  ;;  %907 = vmatmul.mubr.bf16.gmra.mxu1 %v3139_v52 }
  0xa9   :  { %1539 = vmatpush1.bf16.msra.mxu1 %v3873_v57 }
  0xaa   :  { %1540 = vmatprep.subr.bf16.mxu1 %v3878_v58 }
  0xab   :  { %3638 = vmatpush3.bf16.msra.mxu0 %v3854_v53 }
  0xac   :  { %1599 = vmatprep.subr.bf16.mxu0 %v3905_v11 }
  0xad   :  { %1541 = vmatpush1.bf16.msra.mxu1 %v3876_v59 }
  0xae   :  { %3640 = vmatmul.mubr.bf16.vlgmr.msra.gmra.mxu0 %v4463_v56  ;;  %1542 = vmatprep.subr.bf16.mxu1 %v3881_v61  ;;  %v3888_v56 = vld [vmem:[#allocation2 + $0x120] ss:$12 sps:$4 sm:$0xff]  }
  0xaf   :  { %3643 = vmatprep.mubr.bf16.mxu0 %v4514_v6  ;;  %v3894_v6 = vld [vmem:[#allocation2 + $0xf0] ss:$12 sps:$4 sm:$0xff]   ;;  %1600 = vmatpush1.bf16.msra.mxu0 %v3903_v12 }
  0xb0   :  { %1601 = vmatprep.subr.bf16.mxu0 %v3909_v14 }
  0xb1   :  { %1543 = vmatpush2.bf16.msra.mxu1 %v3879_v60 }
  0xb2   :  { %1544 = vmatprep.subr.bf16.mxu1 %v3884_v62 }
  0xb3   :  { %1602 = vmatpush1.bf16.msra.mxu0 %v3907_v15 }
  0xb4   :  { %1603 = vmatprep.subr.bf16.mxu0 %v3913_v16 }
  0xb5   :  { %1545 = vmatpush2.bf16.msra.mxu1 %v3882_v41 }
  0xb6   :  { %3644 = vmatmul.mubr.bf16.gmra.mxu0 %v4557_v17  ;;  %1546 = vmatprep.subr.bf16.mxu1 %v3887_v1  ;;  %v3911_v17 = vld [vmem:[#allocation2 + $0x1f8] ss:$12 sps:$4 sm:$0xff]  }
  0xb7   :  { %1631 = vmatprep.mubr.bf16.mxu0 %v4209_v0  ;;  %1604 = vmatpush1.bf16.msra.mxu0 %v3911_v17 }
  0xb8   :  { %1605 = vmatprep.subr.bf16.mxu0 %v3917_v18 }
  0xb9   :  { %1547 = vmatpush2.bf16.msra.mxu1 %v3885_v63 }
  0xba   :  { %1548 = vmatprep.subr.bf16.mxu1 %v3890_v2 }
  0xbb   :  { %1606 = vmatpush1.bf16.msra.mxu0 %v3915_v19 }
  0xbc   :  { %1607 = vmatprep.subr.bf16.mxu0 %v3921_v20 }
  0xbd   :  { %1549 = vmatpush2.bf16.msra.mxu1 %v3888_v56 }
  0xbe   :  { %1550 = vmatprep.subr.bf16.mxu1 %v3893_v3 }
  0xbf   :  { %1608 = vmatpush1.bf16.msra.mxu0 %v3919_v21  ;;  %v3910_v21 = vld [vmem:[#allocation2 + $0x218] ss:$12 sps:$4 sm:$0xff]  }
  0xc0   :  { %1609 = vmatprep.subr.bf16.mxu0 %v3925_v22 }
  0xc1   :  { %1551 = vmatpush2.bf16.msra.mxu1 %v3891_v4 }
  0xc2   :  { %1552 = vmatprep.subr.bf16.mxu1 %v3896_v5 }
  0xc3   :  { %1610 = vmatpush1.bf16.msra.mxu0 %v3923_v23 }
  0xc4   :  { %1611 = vmatprep.subr.bf16.mxu0 %v3929_v24 }
  0xc5   :  { %1553 = vmatpush2.bf16.msra.mxu1 %v3894_v6 }
  0xc6   :  { %1554 = vmatprep.subr.bf16.mxu1 %v3899_v7 }
  0xc7   :  { %1612 = vmatpush1.bf16.msra.mxu0 %v3927_v25 }
  0xc8   :  { %1613 = vmatprep.subr.bf16.mxu0 %v3933_v26 }
  0xc9   :  { %1555 = vmatpush2.bf16.msra.mxu1 %v3897_v8 }
  0xca   :  { %1556 = vmatprep.subr.bf16.mxu1 %v3902_v9 }
  0xcb   :  { %1614 = vmatpush1.bf16.msra.mxu0 %v3931_v27 }
  0xcc   :  { %3467 = vmatprep.subr.bf16.mxu0 %v3935_v28 }
  0xcd   :  { %1557 = vmatpush2.bf16.msra.mxu1 %v3900_v10 }
  0xce   :  { %3647 = vmatprep.subr.bf16.mxu1 %v4636_v13 }
 0x130   :  { %v811_v30 = vpop.f32.mrf.mxu1 }
 0x132   :  { %v813_v31 = vpop.f32.mrf.mxu1 }
 0x134   :  { %v815_v32 = vpop.f32.mrf.mxu1 }
 0x136   :  { %v817_v33 = vpop.f32.mrf.mxu1 }
 0x138   :  { %v821_v34 = vpop.f32.mrf.mxu1 }
 0x13a   :  { %v823_v35 = vpop.f32.mrf.mxu1 }
 0x13c   :  { %v825_v36 = vpop.f32.mrf.mxu1 }
 0x13e   :  { %v827_v38 = vpop.f32.mrf.mxu1 }
 0x140   :  { %v4645_v40 = vpop.f32.mrf.mxu1 }
 0x142   :  { %v4655_v45 = vpop.f32.mrf.mxu1 }
 0x144   :  { %v4657_v46 = vpop.f32.mrf.mxu1 }
 0x146   :  { %v4663_v48 = vpop.f32.mrf.mxu1 }
 0x148   :  { %v4665_v49 = vpop.f32.mrf.mxu1 }
 0x14a   :  { %v4673_v53 = vpop.f32.mrf.mxu1 }
 0x14c   :  { %v4675_v55 = vpop.f32.mrf.mxu1 }
 0x14e   :  { %v738_v52 = vpop.f32.mrf.mxu0  ;;  %v4679_v60 = vpop.f32.mrf.mxu1 }
 0x14f   :  { %v739_v58 = vadd.f32 %v738_v52, %v4671_v51 }
 0x150   :  { %v740_v54 = vpop.f32.mrf.mxu0  ;;  %v4682_v62 = vpop.f32.mrf.mxu1 }
 0x151   :  { %v741_v57 = vadd.f32 %v740_v54, %v4668_v50  ;;  %v812_v2 = vadd.f32 %v811_v30, %v739_v58 }
 0x152   :  { %v742_v59 = vpop.f32.mrf.mxu0  ;;  %v4685_v4 = vpop.f32.mrf.mxu1 }
 0x153   :  { %v743_v61 = vadd.f32 %v742_v59, %v4671_v51  ;;  %v814_v63 = vadd.f32 %v813_v31, %v741_v57  ;;  %v980_v12 = vmax.f32 %v812_v2, 0.0 }
 0x154   :  { %v744_v41 = vpop.f32.mrf.mxu0  ;;  %v4687_v8 = vpop.f32.mrf.mxu1 }
 0x155   :  { %v816_v1 = vadd.f32 %v815_v32, %v743_v61  ;;  %v745_v56 = vadd.f32 %v744_v41, %v4668_v50  ;;  %v981_v9 = vmax.f32 %v814_v63, 0.0  ;;  %v3918_v61 = vld [vmem:[#allocation2 + $0x1e8] ss:$12 sps:$4 sm:$0xff]  }
 0x156   :  { %v748_v3 = vpop.f32.mrf.mxu0  ;;  %v4691_v16 = vpop.f32.mrf.mxu1 }
 0x157   :  { %v818_v5 = vadd.f32 %v817_v33, %v745_v56  ;;  %v983_v6 = vmax.f32 %v816_v1, 0.0  ;;  %v749_v14 = vadd.f32 %v748_v3, %v4671_v51  ;;  %v3914_v33 = vld [vmem:[#allocation2 + $0x200] ss:$12 sps:$4 sm:$0xff]  }
 0x158   :  { %v750_v7 = vpop.f32.mrf.mxu0  ;;  %v4698_v22 = vpop.f32.mrf.mxu1 }
 0x159   :  { %v984_v10 = vmax.f32 %v818_v5, 0.0  ;;  %v751_v11 = vadd.f32 %v750_v7, %v4668_v50  ;;  %v4696_v19 = vpack.c.bf16 %v983_v6, %v980_v12  ;;  %v822_v26 = vadd.f32 %v821_v34, %v749_v14 }
 0x15a   :  { %v752_v15 = vpop.f32.mrf.mxu0  ;;  %v4703_v28 = vpop.f32.mrf.mxu1 }
 0x15b   :  { %v753_v17 = vadd.f32 %v752_v15, %v4671_v51  ;;  %v4694_v18 = vpack.c.bf16 %v984_v10, %v981_v9  ;;  %v824_v23 = vadd.f32 %v823_v35, %v751_v11  ;;  %v986_v47 = vmax.f32 %v822_v26, 0.0  ;;  %v3926_v26 = vld [vmem:[#allocation2 + $0x1b8] ss:$12 sps:$4 sm:$0xff]  }
 0x15c   :  { %v754_v20 = vpop.f32.mrf.mxu0  ;;  %v3440_v39 = vpop.f32.mrf.mxu1 }
 0x15d   :  { %v826_v24 = vadd.f32 %v825_v36, %v753_v17  ;;  %v755_v25 = vadd.f32 %v754_v20, %v4668_v50  ;;  %1558 = vmatprep.mubr.bf16.mxu1 %v4694_v18  ;;  %v987_v35 = vmax.f32 %v824_v23, 0.0 }
 0x15e   :  { %v758_v27 = vpop.f32.mrf.mxu0  ;;  %1559 = vmatmul.mubr.bf16.vlgmr.msra.gmra.mxu1 %v4696_v19  ;;  %v3441_v54 = vpop.f32.mrf.mxu1 }
 0x15f   :  { %v828_v30 = vadd.f32 %v827_v38, %v755_v25  ;;  %3648 = vmatpush3.bf16.msra.mxu1 %v4636_v13  ;;  %v989_v31 = vmax.f32 %v826_v24, 0.0  ;;  %v759_v34 = vadd.f32 %v758_v27, %v4671_v51  ;;  %v4712_v13 = vsub.s32 4, %v4640_v37 }
 0x160   :  { %v760_v32 = vpop.f32.mrf.mxu0  ;;  %3649 = vmatprep.subr.bf16.mxu1 %v3910_v21  ;;  %v3443_v41 = vpop.f32.mrf.mxu1  ;;  %v3442_v23 = vadd.f32 %v3441_v54, %v3440_v39  ;;  %v3439_v39 = vadd.f32 %v4703_v28, %v4698_v22 }
 0x161   :  { %v990_v36 = vmax.f32 %v828_v30, 0.0  ;;  %v761_v29 = vadd.f32 %v760_v32, %v4668_v50  ;;  %v4714_v59 = vpack.c.bf16 %v989_v31, %v986_v47  ;;  %v832_v2 = vadd.f32 %v4645_v40, %v759_v34 }
 0x162   :  { %v762_v52 = vpop.f32.mrf.mxu0  ;;  %v3444_v5 = vpop.f32.mrf.mxu1  ;;  %v3433_v30 = vadd.f32 %v4685_v4, %v4682_v62  ;;  %v3436_v62 = vadd.f32 %v4691_v16, %v4687_v8 }
 0x163   :  { %v763_v57 = vadd.f32 %v762_v52, %v4671_v51  ;;  %3650 = vmatpush3.bf16.msra.mxu1 %v3910_v21  ;;  %v4709_v38 = vpack.c.bf16 %v990_v36, %v987_v35  ;;  %v834_v63 = vadd.f32 %v4655_v45, %v761_v29  ;;  %v240_v45 = vrot.slane %v4653_v44, %v4712_v13  ;;  %v3930_v29 = vld [vmem:[#allocation2 + $0x1a0] ss:$12 sps:$4 sm:$0xff]  }
 0x164   :  { %v764_v58 = vpop.f32.mrf.mxu0  ;;  %3651 = vmatprep.subr.bf16.mxu1 %v3914_v33  ;;  %v3446_v10 = vpop.f32.mrf.mxu1  ;;  %v992_v40 = vmax.f32 %v832_v2, 0.0  ;;  %v3445_v52 = vadd.f32 %v3444_v5, %v3443_v41 }
 0x165   :  { %v836_v1 = vadd.f32 %v4657_v46, %v763_v57  ;;  %v765_v56 = vadd.f32 %v764_v58, %v4668_v50  ;;  %1568 = vmatprep.mubr.bf16.mxu1 %v4709_v38  ;;  %v3922_v46 = vld [vmem:[#allocation2 + $0x1d0] ss:$12 sps:$4 sm:$0xff]   ;;  %v993_v11 = vmax.f32 %v834_v63, 0.0  ;;  %v255_v44 = vrot.slane %v240_v45, %v4651_v43 }
 0x166   :  { %v768_v3 = vpop.f32.mrf.mxu0  ;;  %1569 = vmatmul.mubr.bf16.gmra.mxu1 %v4714_v59  ;;  %v3447_v20 = vpop.f32.mrf.mxu1 }
 0x167   :  { %v838_v6 = vadd.f32 %v4663_v48, %v765_v56  ;;  %3652 = vmatpush3.bf16.msra.mxu1 %v3914_v33  ;;  %v995_v7 = vmax.f32 %v836_v1, 0.0  ;;  %v769_v15 = vadd.f32 %v768_v3, %v4671_v51  ;;  %v885_v22 = vadd.f32 %v3433_v30, %v255_v44  ;;  %v3934_v3 = vld [vmem:[#allocation2 + $0x188] ss:$12 sps:$4 sm:$0xff]  }
 0x168   :  { %v770_v9 = vpop.f32.mrf.mxu0  ;;  %3653 = vmatprep.subr.bf16.mxu1 %v3918_v61  ;;  %v3449_v27 = vpop.f32.mrf.mxu1  ;;  %v893_v54 = vadd.f32 %v3439_v39, %v255_v44  ;;  %v888_v8 = vadd.f32 %v3436_v62, %v255_v44  ;;  %v901_v5 = vadd.f32 %v3445_v52, %v255_v44  ;;  %v3939_v39 = vld [vmem:[#allocation2 + $0x140] ss:$12 sps:$4 sm:$0xff]  }
 0x169   :  { %v996_v12 = vmax.f32 %v838_v6, 0.0  ;;  %v771_v14 = vadd.f32 %v770_v9, %v4668_v50  ;;  %v4731_v25 = vpack.c.bf16 %v995_v7, %v992_v40  ;;  %v842_v33 = vadd.f32 %v4665_v49, %v769_v15  ;;  %v3936_v15 = vld [vmem:[#allocation2 + $0xb0] ss:$12 sps:$4 sm:$0xff]   ;;  %v3940_v62 = vld [vmem:[#allocation2 + $0x80] ss:$12 sps:$4 sm:$0xff]  }
 0x16a   :  { %v772_v17 = vpop.f32.mrf.mxu0  ;;  %v3450_v36 = vpop.f32.mrf.mxu1  ;;  %v3448_v6 = vadd.f32 %v3447_v20, %v3446_v10  ;;  %v3937_v20 = vld [vmem:[#allocation2 + $0x158] ss:$12 sps:$4 sm:$0xff]   ;;  %v3947_v52 = vld [vmem:[#allocation2 + $0xe0] ss:$12 sps:$4 sm:$0xff]  }
 0x16b   :  { %v773_v48 = vadd.f32 %v772_v17, %v4671_v51  ;;  %3654 = vmatpush3.bf16.msra.mxu1 %v3918_v61  ;;  %v4728_v21 = vpack.c.bf16 %v996_v12, %v993_v11  ;;  %v844_v31 = vadd.f32 %v4673_v53, %v771_v14  ;;  %v998_v28 = vmax.f32 %v842_v33, 0.0 }
 0x16c   :  { %v774_v24 = vpop.f32.mrf.mxu0  ;;  %3655 = vmatprep.subr.bf16.mxu1 %v3922_v46  ;;  %v3452_v47 = vpop.f32.mrf.mxu1  ;;  %v3451_v58 = vadd.f32 %v3450_v36, %v3449_v27  ;;  %v904_v10 = vadd.f32 %v3448_v6, %v255_v44  ;;  %v3971_v6 = vld [vmem:[#allocation6 + $0x1c] ss:$12 sps:$4 sm:$0xff]  }
 0x16d   :  { %v846_v32 = vadd.f32 %v4675_v55, %v773_v48  ;;  %v775_v51 = vadd.f32 %v774_v24, %v4668_v50  ;;  %1578 = vmatprep.mubr.bf16.mxu1 %v4728_v21  ;;  %v896_v50 = vadd.f32 %v3442_v23, %v255_v44  ;;  %v999_v49 = vmax.f32 %v844_v31, 0.0 }
 0x16e   :  { %v3641_v35 = vpop.f32.mrf.mxu0  ;;  %1579 = vmatmul.mubr.bf16.gmra.mxu1 %v4731_v25  ;;  %v3453_v61 = vpop.f32.mrf.mxu1  ;;  %v909_v9 = vadd.f32 %v3451_v58, %v255_v44  ;;  %v3951_v58 = vld [vmem:[#allocation6 + $0xa8] ss:$12 sps:$4 sm:$0xff]  }
 0x16f   :  { %v848_v53 = vadd.f32 %v4679_v60, %v775_v51  ;;  %3656 = vmatpush3.bf16.msra.mxu1 %v3922_v46  ;;  %v1001_v55 = vmax.f32 %v846_v32, 0.0  ;;  %v3454_v16 = vadd.f32 %v3453_v61, %v3452_v47  ;;  %v958_v7 = vadd.f32 %v3641_v35, %v893_v54  ;;  %v3938_v32 = vld [vmem:[#allocation2 + $0x98] ss:$12 sps:$4 sm:$0xff]   ;;  %v3944_v47 = vld [vmem:[#allocation2 + $0x50] ss:$12 sps:$4 sm:$0xff]  }
 0x170   :  { %v949_v4 = vpop.f32.mrf.mxu0  ;;  %3657 = vmatprep.subr.bf16.mxu1 %v3926_v26  ;;  %v3950_v54 = vld [vmem:[#allocation2 + $0x8] ss:$12 sps:$4 sm:$0xff]   ;;  %v3956_v61 = vld [vmem:[#allocation6 + $0x94] ss:$12 sps:$4 sm:$0xff]  }
 0x171   :  { %v1002_v34 = vmax.f32 %v848_v53, 0.0  ;;  %v950_v63 = vadd.f32 %v949_v4, %v885_v22  ;;  %v4748_v2 = vpack.c.bf16 %v1001_v55, %v998_v28  ;;  %v912_v12 = vadd.f32 %v3454_v16, %v255_v44  ;;  %v3941_v55 = vld [vmem:[#allocation2 + $0x128] ss:$12 sps:$4 sm:$0xff]   ;;  %v3948_v22 = vld [vmem:[#allocation2 + $0x20] ss:$12 sps:$4 sm:$0xff]  }
 0x172   :  { %v3642_v57 = vpop.f32.mrf.mxu0  ;;  %v988_v23 = vmax.f32 %v958_v7, 0.0  ;;  %v3949_v28 = vld [vmem:[#allocation2 + $0xc8] ss:$12 sps:$4 sm:$0xff]   ;;  %v3975_v7 = vld [vmem:[#allocation6 + $0x168] ss:$12 sps:$4 sm:$0xff]  }
 0x173   :  { %3658 = vmatpush3.bf16.msra.mxu1 %v3926_v26  ;;  %v4746_v60 = vpack.c.bf16 %v1002_v34, %v999_v49  ;;  %v961_v1 = vadd.f32 %v3642_v57, %v896_v50  ;;  %v982_v46 = vmax.f32 %v950_v63, 0.0  ;;  %v3942_v50 = vld [vmem:[#allocation2 + $0x68] ss:$12 sps:$4 sm:$0xff]   ;;  %v3945_v49 = vld [vmem:[#allocation2 + $0xf8] ss:$12 sps:$4 sm:$0xff]  }
 0x174   :  { %v952_v56 = vpop.f32.mrf.mxu0  ;;  %3659 = vmatprep.subr.bf16.mxu1 %v3930_v29  ;;  %v3946_v34 = vld [vmem:[#allocation2 + $0x38] ss:$12 sps:$4 sm:$0xff]   ;;  %v3953_v57 = vld [vmem:[#allocation6 + $0xac] ss:$12 sps:$4 sm:$0xff]   ;;  %v3954_v63 = vld [vmem:[#allocation6 + $0x90] ss:$12 sps:$4 sm:$0xff]  }
 0x175   :  { %v953_v41 = vadd.f32 %v952_v56, %v888_v8  ;;  %1588 = vmatprep.mubr.bf16.mxu1 %v4746_v60  ;;  %v991_v14 = vmax.f32 %v961_v1, 0.0  ;;  %v3959_v8 = vld [vmem:[#allocation6 + $0x7c] ss:$12 sps:$4 sm:$0xff]   ;;  %v3957_v16 = vld [vmem:[#allocation6 + $0x78] ss:$12 sps:$4 sm:$0xff]  }
 0x176   :  { %1589 = vmatmul.mubr.bf16.gmra.mxu1 %v4748_v2  ;;  %v3645_v45 = vpop.f32.mrf.mxu0  ;;  %v3962_v1 = vld [vmem:[#allocation6 + $0x64] ss:$12 sps:$4 sm:$0xff]   ;;  %v3965_v56 = vld [vmem:[#allocation6 + $0x4c] ss:$12 sps:$4 sm:$0xff]  }
 0x177   :  { %v985_v11 = vmax.f32 %v953_v41, 0.0  ;;  %3660 = vmatpush3.bf16.msra.mxu1 %v3930_v29  ;;  %v974_v24 = vadd.f32 %v3645_v45, %v909_v9  ;;  %v1009_v30 = vpack.c.bf16 %v991_v14, %v988_v23  ;;  %v3943_v29 = vld [vmem:[#allocation2 + $0x110] ss:$12 sps:$4 sm:$0xff]   ;;  %v3983_v9 = vld [vmem:[#allocation6 + $0x13c] ss:$12 sps:$4 sm:$0xff]  }
 0x178   :  { %v965_v40 = vpop.f32.mrf.mxu0  ;;  %3661 = vmatprep.subr.bf16.mxu1 %v3934_v3  ;;  %v3972_v41 = vld [vmem:[#allocation6] ss:$12 sps:$4 sm:$0xff]   ;;  %v3981_v45 = vld [vmem:[#allocation6 + $0x138] ss:$12 sps:$4 sm:$0xff]  }
 0x179   :  { %v1006_v17 = vpack.c.bf16 %v985_v11, %v982_v46  ;;  %v966_v48 = vadd.f32 %v965_v40, %v901_v5  ;;  %v1000_v35 = vmax.f32 %v974_v24, 0.0  ;;  %v3977_v5 = vld [vmem:[#allocation6 + $0x16c] ss:$12 sps:$4 sm:$0xff]   ;;  %v3986_v46 = vld [vmem:[#allocation6 + $0x124] ss:$12 sps:$4 sm:$0xff]  }
 0x17a   :  { %v3646_v26 = vpop.f32.mrf.mxu0  ;;  %v3984_v11 = vld [vmem:[#allocation6 + $0x120] ss:$12 sps:$4 sm:$0xff]   ;;  %v3993_v23 = vld [vmem:[#allocation6 + $0xd8] ss:$12 sps:$4 sm:$0xff]  }
 0x17b   :  { %1632 = vmatmul.mubr.bf16.vlgmr.msra.gmra.mxu0 %v1006_v17  ;;  %3662 = vmatpush3.bf16.msra.mxu1 %v3934_v3  ;;  %v977_v27 = vadd.f32 %v3646_v26, %v912_v12  ;;  %v994_v51 = vmax.f32 %v966_v48, 0.0  ;;  %v3966_v3 = vld [vmem:[#allocation6 + $0x30] ss:$12 sps:$4 sm:$0xff]   ;;  %v3987_v12 = vld [vmem:[#allocation6 + $0x108] ss:$12 sps:$4 sm:$0xff]  }
 0x17c   :  { %3663 = vmatprep.mubr.bf16.mxu1 %v1006_v17  ;;  %3468 = vmatpush3.bf16.msra.mxu0 %v3936_v15  ;;  %v968_v31 = vpop.f32.mrf.mxu0  ;;  %v3992_v14 = vld [vmem:[#allocation6 + $0xf4] ss:$12 sps:$4 sm:$0xff]   ;;  %v4001_v40 = vld [vmem:[#allocation6 + $0x22c] ss:$12 sps:$4 sm:$0xff]   ;;  %v3990_v17 = vld [vmem:[#allocation6 + $0xf0] ss:$12 sps:$4 sm:$0xff]  }
 0x17d   :  { %v969_v33 = vadd.f32 %v968_v31, %v904_v10  ;;  %3469 = vmatprep.subr.bf16.mxu0 %v3937_v20  ;;  %1641 = vmatprep.mubr.bf16.mxu0 %v4209_v0  ;;  %v1003_v44 = vmax.f32 %v977_v27, 0.0  ;;  %v3999_v15 = vld [vmem:[#allocation6 + $0x228] ss:$12 sps:$4 sm:$0xff]   ;;  %v4002_v20 = vld [vmem:[#allocation6 + $0x210] ss:$12 sps:$4 sm:$0xff]  }
 0x17e   :  { %3664 = vmatmul.mubr.bf16.vlgmr.msra.gmra.mxu1 %v1009_v30  ;;  %2501 = vmatprep.subr.bf16.mxu1 %v4001_v40  ;;  %v3995_v48 = vld [vmem:[#allocation6 + $0xdc] ss:$12 sps:$4 sm:$0xff]   ;;  %v4004_v10 = vld [vmem:[#allocation6 + $0x214] ss:$12 sps:$4 sm:$0xff]   ;;  %v3998_v24 = vld [vmem:[#allocation6 + $0xc4] ss:$12 sps:$4 sm:$0xff]  }
 0x17f   :  { %v997_v36 = vmax.f32 %v969_v33, 0.0  ;;  %v1015_v4 = vpack.c.bf16 %v1003_v44, %v1000_v35  ;;  %2502 = vmatpush1.bf16.msra.mxu1 %v3999_v15  ;;  %v4007_v26 = vld [vmem:[#allocation6 + $0x1fc] ss:$12 sps:$4 sm:$0xff]   ;;  %v4005_v27 = vld [vmem:[#allocation6 + $0x1f8] ss:$12 sps:$4 sm:$0xff]  }
 0x180   :  { %3470 = vmatpush3.bf16.msra.mxu0 %v3938_v32  ;;  %2503 = vmatprep.subr.bf16.mxu1 %v4004_v10  ;;  %v4764_v31 = vld [vmem:[#allocation6 + $0x230] ss:$12 sps:$4 sm:$0xff]   ;;  %v4015_v33 = vld [vmem:[#allocation6 + $0x1cc] ss:$12 sps:$4 sm:$0xff]   ;;  %v4019_v35 = vld [vmem:[#allocation6 + $0x1b4] ss:$12 sps:$4 sm:$0xff]  }
 0x181   :  { %v1012_v53 = vpack.c.bf16 %v997_v36, %v994_v51  ;;  %3471 = vmatprep.subr.bf16.mxu0 %v3939_v39  ;;  %v4011_v32 = vld [vmem:[#allocation6 + $0x1e4] ss:$12 sps:$4 sm:$0xff]   ;;  %v4009_v51 = vld [vmem:[#allocation6 + $0x1e0] ss:$12 sps:$4 sm:$0xff]   ;;  %v4013_v39 = vld [vmem:[#allocation6 + $0x1c8] ss:$12 sps:$4 sm:$0xff]  }
 0x182   :  { %v4017_v44 = vld [vmem:[#allocation6 + $0x1b0] ss:$12 sps:$4 sm:$0xff]  }
 0x183   :  { %1642 = vmatmul.mubr.bf16.gmra.mxu0 %v1009_v30  ;;  %3667 = vmatprep.mubr.bf16.mxu1 %v1012_v53  ;;  %v3996_v30 = vld [vmem:[#allocation6 + $0xc0] ss:$12 sps:$4 sm:$0xff]   ;;  %v4023_v36 = vld [vmem:[#allocation6 + $0x19c] ss:$12 sps:$4 sm:$0xff]  }
 0x184   :  { %3472 = vmatpush3.bf16.msra.mxu0 %v3940_v62  ;;  %1651 = vmatprep.mubr.bf16.mxu0 %v4209_v0  ;;  %v4021_v62 = vld [vmem:[#allocation6 + $0x198] ss:$12 sps:$4 sm:$0xff]  }
 0x185   :  { %3473 = vmatprep.subr.bf16.mxu0 %v3941_v55  ;;  %2504 = vmatpush1.bf16.msra.mxu1 %v4002_v20  ;;  %v4025_v55 = vld [vmem:[#allocation6 + $0x180] ss:$12 sps:$4 sm:$0xff]  }
 0x186   :  { %3668 = vmatmul.mubr.bf16.gmra.mxu1 %v1015_v4  ;;  %2505 = vmatprep.subr.bf16.mxu1 %v4007_v26 }
 0x187   :  { %2533 = vmatprep.mubr.bf16.mxu1 %v4209_v0 }
 0x188   :  { %3474 = vmatpush3.bf16.msra.mxu0 %v3942_v50 }
 0x189   :  { %3475 = vmatprep.subr.bf16.mxu0 %v3943_v29  ;;  %2506 = vmatpush1.bf16.msra.mxu1 %v4005_v27 }
 0x18a   :  { %2507 = vmatprep.subr.bf16.mxu1 %v4011_v32 }
 0x18b   :  { %1652 = vmatmul.mubr.bf16.gmra.mxu0 %v1012_v53  ;;  %v4027_v53 = vld [vmem:[#allocation6 + $0x184] ss:$12 sps:$4 sm:$0xff]  }
 0x18c   :  { %3476 = vmatpush3.bf16.msra.mxu0 %v3944_v47  ;;  %1661 = vmatprep.mubr.bf16.mxu0 %v4209_v0 }
 0x18d   :  { %3477 = vmatprep.subr.bf16.mxu0 %v3945_v49  ;;  %2508 = vmatpush1.bf16.msra.mxu1 %v4009_v51  ;;  %v4016_v51 = vld [vmem:[#allocation6 + $0x200] ss:$12 sps:$4 sm:$0xff]  }
 0x18e   :  { %2509 = vmatprep.subr.bf16.mxu1 %v4015_v33 }
 0x190   :  { %3478 = vmatpush3.bf16.msra.mxu0 %v3946_v34 }
 0x191   :  { %3479 = vmatprep.subr.bf16.mxu0 %v3947_v52  ;;  %2510 = vmatpush1.bf16.msra.mxu1 %v4013_v39  ;;  %v1112_v52 = vld [vmem:[#allocation4] sm:$0x7] }
 0x192   :  { %2511 = vmatprep.subr.bf16.mxu1 %v4019_v35 }
 0x193   :  { %1662 = vmatmul.mubr.bf16.gmra.mxu0 %v1015_v4  ;;  %v4029_v4 = vld [vmem:[#allocation6 + $0x170] ss:$12 sps:$4 sm:$0xff]  }
 0x194   :  { %3480 = vmatpush3.bf16.msra.mxu0 %v3948_v22  ;;  %1704 = vmatprep.mubr.bf16.mxu0 %v4694_v18  ;;  %v3960_v18 = vld [vmem:[#allocation6 + $0x60] ss:$12 sps:$4 sm:$0xff]  }
 0x195   :  { %3481 = vmatprep.subr.bf16.mxu0 %v3949_v28  ;;  %2512 = vmatpush1.bf16.msra.mxu1 %v4017_v44  ;;  %v4767_v28 = vunpack.c.l.bf16 %v1112_v52 }
 0x196   :  { %2513 = vmatprep.subr.bf16.mxu1 %v4023_v36 }
 0x198   :  { %3482 = vmatpush3.bf16.msra.mxu0 %v3950_v54 }
 0x199   :  { %2428 = vmatprep.subr.bf16.mxu0 %v3953_v57  ;;  %2514 = vmatpush1.bf16.msra.mxu1 %v4021_v62  ;;  %v1118_v57 = vrot.slane %v4767_v28, %v4651_v43 }
 0x19a   :  { %2515 = vmatprep.subr.bf16.mxu1 %v4027_v53 }
 0x19b   :  { %1705 = vmatmul.mubr.bf16.vlgmr.msra.gmra.mxu0 %v4696_v19  ;;  %v3963_v19 = vld [vmem:[#allocation6 + $0x48] ss:$12 sps:$4 sm:$0xff]  }
 0x19c   :  { %1712 = vmatprep.mubr.bf16.mxu0 %v4709_v38  ;;  %2429 = vmatpush1.bf16.msra.mxu0 %v3951_v58  ;;  %v3968_v38 = vld [vmem:[#allocation6 + $0x34] ss:$12 sps:$4 sm:$0xff]   ;;  %v1122_v58 = vrot.slane %v4767_v28, %v4648_v42 }
 0x19d   :  { %2430 = vmatprep.subr.bf16.mxu0 %v3956_v61  ;;  %2516 = vmatpush1.bf16.msra.mxu1 %v4025_v55 }
 0x19e   :  { %3519 = vmatprep.subr.bf16.mxu1 %v4029_v4  ;;  %v4020_v4 = vld [vmem:[#allocation6 + $0x1e8] ss:$12 sps:$4 sm:$0xff]  }
 0x1a0   :  { %2431 = vmatpush1.bf16.msra.mxu0 %v3954_v63  ;;  %v4774_v63 = vrot.slane %v1118_v57, %v4651_v43 }
 0x1a1   :  { %2432 = vmatprep.subr.bf16.mxu0 %v3959_v8  ;;  %v4777_v8 = vrot.slane %v1122_v58, %v4651_v43  ;;  %v4024_v58 = vld [vmem:[#allocation6 + $0x1d0] ss:$12 sps:$4 sm:$0xff]  }
 0x1a3   :  { %1713 = vmatmul.mubr.bf16.gmra.mxu0 %v4714_v59  ;;  %v3969_v59 = vld [vmem:[#allocation6 + $0x18] ss:$12 sps:$4 sm:$0xff]  }
 0x1a4   :  { %1720 = vmatprep.mubr.bf16.mxu0 %v4728_v21  ;;  %2433 = vmatpush1.bf16.msra.mxu0 %v3957_v16  ;;  %v3974_v21 = vld [vmem:[#allocation6 + $0x4] ss:$12 sps:$4 sm:$0xff]  }
 0x1a5   :  { %2434 = vmatprep.subr.bf16.mxu0 %v3962_v1 }
 0x1a8   :  { %2435 = vmatpush1.bf16.msra.mxu0 %v3960_v18 }
 0x1a9   :  { %2436 = vmatprep.subr.bf16.mxu0 %v3965_v56 }
 0x1ab   :  { %1721 = vmatmul.mubr.bf16.gmra.mxu0 %v4731_v25  ;;  %v3980_v25 = vld [vmem:[#allocation6 + $0x154] ss:$12 sps:$4 sm:$0xff]  }
 0x1ac   :  { %1728 = vmatprep.mubr.bf16.mxu0 %v4746_v60  ;;  %2437 = vmatpush1.bf16.msra.mxu0 %v3963_v19  ;;  %v3978_v60 = vld [vmem:[#allocation6 + $0x150] ss:$12 sps:$4 sm:$0xff]  }
 0x1ad   :  { %2438 = vmatprep.subr.bf16.mxu0 %v3968_v38 }
 0x1b0   :  { %2439 = vmatpush1.bf16.msra.mxu0 %v3966_v3 }
 0x1b1   :  { %2440 = vmatprep.subr.bf16.mxu0 %v3971_v6 }
 0x1b3   :  { %1729 = vmatmul.mubr.bf16.gmra.mxu0 %v4748_v2  ;;  %v3989_v2 = vld [vmem:[#allocation6 + $0x10c] ss:$12 sps:$4 sm:$0xff]  }
 0x1b4   :  { %2441 = vmatpush1.bf16.msra.mxu0 %v3969_v59 }
 0x1b5   :  { %2442 = vmatprep.subr.bf16.mxu0 %v3974_v21 }
 0x1b8   :  { %2443 = vmatpush1.bf16.msra.mxu0 %v3972_v41 }
 0x1b9   :  { %2444 = vmatprep.subr.bf16.mxu0 %v3977_v5 }
 0x1bc   :  { %2445 = vmatpush2.bf16.msra.mxu0 %v3975_v7 }
 0x1bd   :  { %2446 = vmatprep.subr.bf16.mxu0 %v3980_v25 }
 0x1c0   :  { %2447 = vmatpush2.bf16.msra.mxu0 %v3978_v60 }
 0x1c1   :  { %2448 = vmatprep.subr.bf16.mxu0 %v3983_v9 }
 0x1c4   :  { %2449 = vmatpush2.bf16.msra.mxu0 %v3981_v45 }
 0x1c5   :  { %2450 = vmatprep.subr.bf16.mxu0 %v3986_v46 }
 0x1c8   :  { %2451 = vmatpush2.bf16.msra.mxu0 %v3984_v11 }
 0x1c9   :  { %2452 = vmatprep.subr.bf16.mxu0 %v3989_v2 }
 0x1cc   :  { %2453 = vmatpush2.bf16.msra.mxu0 %v3987_v12 }
 0x1cd   :  { %2454 = vmatprep.subr.bf16.mxu0 %v3992_v14 }
 0x1d0   :  { %2455 = vmatpush2.bf16.msra.mxu0 %v3990_v17  ;;  %v4012_v17 = vld [vmem:[#allocation6 + $0x218] ss:$12 sps:$4 sm:$0xff]  }
 0x1d1   :  { %2456 = vmatprep.subr.bf16.mxu0 %v3995_v48 }
 0x1d4   :  { %2457 = vmatpush2.bf16.msra.mxu0 %v3993_v23 }
 0x1d5   :  { %2458 = vmatprep.subr.bf16.mxu0 %v3998_v24 }
 0x1d8   :  { %2459 = vmatpush2.bf16.msra.mxu0 %v3996_v30 }
 0x1d9   :  { %3671 = vmatprep.subr.bf16.mxu0 %v4764_v31 }
 0x21e   :  { %v1560_v50 = vpop.f32.mrf.mxu1 }
 0x21f   :  { %v1561_v18 = vadd.f32 %v1560_v50, %v4774_v63 }
 0x220   :  { %v1562_v29 = vpop.f32.mrf.mxu1 }
 0x221   :  { %v1563_v56 = vadd.f32 %v1562_v29, %v4777_v8 }
 0x222   :  { %v1564_v47 = vpop.f32.mrf.mxu1 }
 0x223   :  { %v1565_v59 = vadd.f32 %v1564_v47, %v4774_v63 }
 0x224   :  { %v1566_v49 = vpop.f32.mrf.mxu1 }
 0x225   :  { %v1567_v41 = vadd.f32 %v1566_v49, %v4777_v8 }
 0x226   :  { %v1570_v34 = vpop.f32.mrf.mxu1 }
 0x227   :  { %v1571_v46 = vadd.f32 %v1570_v34, %v4774_v63 }
 0x228   :  { %v1572_v22 = vpop.f32.mrf.mxu1 }
 0x229   :  { %v1573_v11 = vadd.f32 %v1572_v22, %v4777_v8 }
 0x22a   :  { %v1574_v54 = vpop.f32.mrf.mxu1 }
 0x22b   :  { %v1575_v20 = vadd.f32 %v1574_v54, %v4774_v63 }
 0x22c   :  { %v1576_v61 = vpop.f32.mrf.mxu1 }
 0x22d   :  { %v1577_v24 = vadd.f32 %v1576_v61, %v4777_v8 }
 0x22e   :  { %v1580_v16 = vpop.f32.mrf.mxu1 }
 0x22f   :  { %v1581_v35 = vadd.f32 %v1580_v16, %v4774_v63 }
 0x230   :  { %v1582_v19 = vpop.f32.mrf.mxu1 }
 0x231   :  { %v1583_v44 = vadd.f32 %v1582_v19, %v4777_v8 }
 0x232   :  { %v1584_v7 = vpop.f32.mrf.mxu1 }
 0x233   :  { %v1585_v47 = vadd.f32 %v1584_v7, %v4774_v63 }
 0x234   :  { %v1586_v14 = vpop.f32.mrf.mxu1 }
 0x235   :  { %v1587_v34 = vadd.f32 %v1586_v14, %v4777_v8 }
 0x236   :  { %v1590_v27 = vpop.f32.mrf.mxu1 }
 0x23b   :  { %v1633_v1 = vpop.f32.mrf.mxu0 }
 0x23c   :  { %v1634_v3 = vadd.f32 %v1633_v1, %v1561_v18  ;;  %v1591_v1 = vadd.f32 %v1590_v27, %v4774_v63 }
 0x23d   :  { %v1635_v38 = vpop.f32.mrf.mxu0 }
 0x23e   :  { %v1636_v6 = vadd.f32 %v1635_v38, %v1563_v56 }
 0x23f   :  { %v1637_v21 = vpop.f32.mrf.mxu0 }
 0x240   :  { %v3399_v5 = vpack.c.bf16 %v1636_v6, %v1634_v3  ;;  %v1638_v25 = vadd.f32 %v1637_v21, %v1565_v59  ;;  %v4028_v59 = vld [vmem:[#allocation6 + $0x1b8] ss:$12 sps:$4 sm:$0xff]  }
 0x241   :  { %v1639_v60 = vpop.f32.mrf.mxu0 }
 0x242   :  { %1902 = vst [vmem:[%s5023_s11 + $0x4] sm:$0xff] %v3399_v5  ;;  %v1640_v9 = vadd.f32 %v1639_v60, %v1567_v41  ;;  %v4790_v40 = vpack.c.bf16 %v1638_v25, %v1634_v3 }
 0x243   :  { %v1643_v45 = vpop.f32.mrf.mxu0 }
 0x244   :  { %v4788_v2 = vpack.c.bf16 %v1640_v9, %v1636_v6  ;;  %v3401_v12 = vpack.c.bf16 %v1640_v9, %v1638_v25  ;;  %v1644_v48 = vadd.f32 %v1643_v45, %v1571_v46  ;;  %v1126_v9 = vrot.slane %v4767_v28, %v4712_v13 }
 0x245   :  { %v1645_v15 = vpop.f32.mrf.mxu0 }
 0x246   :  { %1904 = vst [vmem:[%s5023_s11 + $0x14] sm:$0xff] %v3401_v12  ;;  %v1646_v10 = vadd.f32 %v1645_v15, %v1573_v11  ;;  %2460 = vmatprep.mubr.bf16.mxu0 %v4788_v2  ;;  %v4030_v12 = vld [vmem:[#allocation6 + $0x1a0] ss:$12 sps:$4 sm:$0xff]  }
 0x247   :  { %v1647_v23 = vpop.f32.mrf.mxu0  ;;  %2461 = vmatmul.mubr.bf16.vlgmr.msra.gmra.mxu0 %v4790_v40 }
 0x248   :  { %v3403_v26 = vpack.c.bf16 %v1646_v10, %v1644_v48  ;;  %3672 = vmatpush3.bf16.msra.mxu0 %v4764_v31  ;;  %v1648_v30 = vadd.f32 %v1647_v23, %v1575_v20  ;;  %v1592_v31 = vpop.f32.mrf.mxu1  ;;  %v4033_v20 = vld [vmem:[#allocation6 + $0x188] ss:$12 sps:$4 sm:$0xff]  }
 0x249   :  { %v1649_v32 = vpop.f32.mrf.mxu0  ;;  %3673 = vmatprep.subr.bf16.mxu0 %v4012_v17  ;;  %v1593_v18 = vadd.f32 %v1592_v31, %v4777_v8 }
 0x24a   :  { %1906 = vst [vmem:[%s5023_s11 + $0x24] sm:$0xff] %v3403_v26  ;;  %v1650_v33 = vadd.f32 %v1649_v32, %v1577_v24  ;;  %v4807_v53 = vpack.c.bf16 %v1648_v30, %v1644_v48  ;;  %v1594_v22 = vpop.f32.mrf.mxu1 }
 0x24b   :  { %v1653_v39 = vpop.f32.mrf.mxu0  ;;  %v1595_v5 = vadd.f32 %v1594_v22, %v4774_v63 }
 0x24c   :  { %v4805_v36 = vpack.c.bf16 %v1650_v33, %v1646_v10  ;;  %v3405_v62 = vpack.c.bf16 %v1650_v33, %v1648_v30  ;;  %3674 = vmatpush3.bf16.msra.mxu0 %v4012_v17  ;;  %v1654_v50 = vadd.f32 %v1653_v39, %v1581_v35  ;;  %v1596_v38 = vpop.f32.mrf.mxu1 }
 0x24d   :  { %v1655_v55 = vpop.f32.mrf.mxu0  ;;  %3675 = vmatprep.subr.bf16.mxu0 %v4016_v51  ;;  %v1597_v25 = vadd.f32 %v1596_v38, %v4777_v8  ;;  %v4840_v8 = vrot.slane %v1126_v9, %v4651_v43 }
 0x24e   :  { %1908 = vst [vmem:[%s5023_s11 + $0x34] sm:$0xff] %v3405_v62  ;;  %v1656_v29 = vadd.f32 %v1655_v55, %v1583_v44  ;;  %2470 = vmatprep.mubr.bf16.mxu0 %v4805_v36  ;;  %v3665_v45 = vpop.f32.mrf.mxu1 }
 0x24f   :  { %v1657_v49 = vpop.f32.mrf.mxu0  ;;  %2471 = vmatmul.mubr.bf16.gmra.mxu0 %v4807_v53 }
 0x250   :  { %v3407_v52 = vpack.c.bf16 %v1656_v29, %v1654_v50  ;;  %3676 = vmatpush3.bf16.msra.mxu0 %v4016_v51  ;;  %v1658_v54 = vadd.f32 %v1657_v49, %v1585_v47  ;;  %v1771_v28 = vpop.f32.mrf.mxu1 }
 0x251   :  { %v1659_v57 = vpop.f32.mrf.mxu0  ;;  %3677 = vmatprep.subr.bf16.mxu0 %v4020_v4 }
 0x252   :  { %1910 = vst [vmem:[%s5023_s11 + $0x44] sm:$0xff] %v3407_v52  ;;  %v1660_v61 = vadd.f32 %v1659_v57, %v1587_v34  ;;  %v4823_v3 = vpack.c.bf16 %v1658_v54, %v1654_v50  ;;  %v3666_v27 = vpop.f32.mrf.mxu1  ;;  %v4031_v50 = vld [vmem:[#allocation6 + $0xb0] ss:$12 sps:$4 sm:$0xff]   ;;  %v4032_v34 = vld [vmem:[#allocation6 + $0x158] ss:$12 sps:$4 sm:$0xff]  }
 0x253   :  { %v1663_v16 = vpop.f32.mrf.mxu0 }
 0x254   :  { %v4821_v56 = vpack.c.bf16 %v1660_v61, %v1656_v29  ;;  %v3409_v19 = vpack.c.bf16 %v1660_v61, %v1658_v54  ;;  %3678 = vmatpush3.bf16.msra.mxu0 %v4020_v4  ;;  %v1664_v21 = vadd.f32 %v1663_v16, %v1591_v1  ;;  %v1774_v44 = vpop.f32.mrf.mxu1  ;;  %v4034_v61 = vld [vmem:[#allocation6 + $0x98] ss:$12 sps:$4 sm:$0xff]  }
 0x255   :  { %v1665_v6 = vpop.f32.mrf.mxu0  ;;  %3679 = vmatprep.subr.bf16.mxu0 %v4024_v58 }
 0x256   :  { %1912 = vst [vmem:[%s5023_s11 + $0x54] sm:$0xff] %v3409_v19  ;;  %v1666_v41 = vadd.f32 %v1665_v6, %v1593_v18  ;;  %2480 = vmatprep.mubr.bf16.mxu0 %v4821_v56  ;;  %v3669_v52 = vpop.f32.mrf.mxu1  ;;  %v4035_v18 = vld [vmem:[#allocation6 + $0x140] ss:$12 sps:$4 sm:$0xff]  }
 0x257   :  { %v1667_v7 = vpop.f32.mrf.mxu0  ;;  %2481 = vmatmul.mubr.bf16.gmra.mxu0 %v4823_v3 }
 0x258   :  { %v3411_v60 = vpack.c.bf16 %v1666_v41, %v1664_v21  ;;  %3680 = vmatpush3.bf16.msra.mxu0 %v4024_v58  ;;  %v1668_v46 = vadd.f32 %v1667_v7, %v1595_v5  ;;  %v1787_v19 = vpop.f32.mrf.mxu1 }
 0x259   :  { %v1669_v11 = vpop.f32.mrf.mxu0  ;;  %3681 = vmatprep.subr.bf16.mxu0 %v4028_v59 }
 0x25a   :  { %1914 = vst [vmem:[%s5023_s11 + $0x64] sm:$0xff] %v3411_v60  ;;  %v1670_v63 = vadd.f32 %v1669_v11, %v1597_v25  ;;  %v4842_v48 = vpack.c.bf16 %v1668_v46, %v1664_v21  ;;  %v4037_v60 = vld [vmem:[#allocation6 + $0x128] ss:$12 sps:$4 sm:$0xff]   ;;  %v3670_v9 = vpop.f32.mrf.mxu1 }
 0x25b   :  { %v3483_v14 = vpop.f32.mrf.mxu0 }
 0x25c   :  { %v4837_v15 = vpack.c.bf16 %v1670_v63, %v1666_v41  ;;  %v3413_v17 = vpack.c.bf16 %v1670_v63, %v1668_v46  ;;  %3682 = vmatpush3.bf16.msra.mxu0 %v4028_v59  ;;  %v4036_v41 = vld [vmem:[#allocation6 + $0x80] ss:$12 sps:$4 sm:$0xff]   ;;  %v4038_v63 = vld [vmem:[#allocation6 + $0x68] ss:$12 sps:$4 sm:$0xff]  }
 0x25d   :  { %v3484_v10 = vpop.f32.mrf.mxu0  ;;  %3683 = vmatprep.subr.bf16.mxu0 %v4030_v12 }
 0x25e   :  { %1916 = vst [vmem:[%s5023_s11 + $0x74] sm:$0xff] %v3413_v17  ;;  %v3485_v23 = vadd.f32 %v3484_v10, %v3483_v14  ;;  %2490 = vmatprep.mubr.bf16.mxu0 %v4837_v15  ;;  %v1790_v10 = vpop.f32.mrf.mxu1 }
 0x25f   :  { %v3486_v24 = vpop.f32.mrf.mxu0  ;;  %2491 = vmatmul.mubr.bf16.gmra.mxu0 %v4842_v48 }
 0x260   :  { %v1707_v26 = vadd.f32 %v3485_v23, %v4840_v8  ;;  %3684 = vmatpush3.bf16.msra.mxu0 %v4030_v12 }
 0x261   :  { %v3487_v30 = vpop.f32.mrf.mxu0  ;;  %3685 = vmatprep.subr.bf16.mxu0 %v4033_v20 }
 0x262   :  { %v1772_v32 = vadd.f32 %v1771_v28, %v1707_v26  ;;  %v3488_v51 = vadd.f32 %v3487_v30, %v3486_v24  ;;  %v4039_v28 = vld [vmem:[#allocation6 + $0x110] ss:$12 sps:$4 sm:$0xff]  }
 0x263   :  { %v3489_v33 = vpop.f32.mrf.mxu0 }
 0x264   :  { %v3400_v39 = vpack.c.bf16 %v1772_v32, %v1772_v32  ;;  %v1710_v35 = vadd.f32 %v3488_v51, %v4840_v8  ;;  %3686 = vmatpush3.bf16.msra.mxu0 %v4033_v20 }
 0x265   :  { %v3490_v62 = vpop.f32.mrf.mxu0 }
 0x266   :  { %1903 = vst [vmem:[%s5023_s11 + $0xc] sm:$0xf] %v3400_v39  ;;  %v1775_v31 = vadd.f32 %v1774_v44, %v1710_v35  ;;  %v3491_v55 = vadd.f32 %v3490_v62, %v3489_v33  ;;  %v4041_v33 = vld [vmem:[#allocation6 + $0xf8] ss:$12 sps:$4 sm:$0xff]  }
 0x267   :  { %v3492_v4 = vpop.f32.mrf.mxu0  ;;  %v4042_v62 = vld [vmem:[#allocation6 + $0x38] ss:$12 sps:$4 sm:$0xff]  }
 0x268   :  { %v1804_v29 = vpack.c.bf16 %v1775_v31, %v1772_v32  ;;  %v3402_v47 = vpack.c.bf16 %v1775_v31, %v1775_v31  ;;  %v1715_v49 = vadd.f32 %v3491_v55, %v4840_v8 }
 0x269   :  { %v3493_v22 = vpop.f32.mrf.mxu0 }
 0x26a   :  { %1905 = vst [vmem:[%s5023_s11 + $0x1c] sm:$0xf] %v3402_v47  ;;  %v1780_v54 = vadd.f32 %v3665_v45, %v1715_v49  ;;  %v3494_v57 = vadd.f32 %v3493_v22, %v3492_v4  ;;  %2534 = vmatmul.mubr.bf16.vlgmr.msra.gmra.mxu1 %v1804_v29  ;;  %3687 = vmatprep.mubr.bf16.mxu0 %v1804_v29  ;;  %v4043_v4 = vld [vmem:[#allocation6 + $0xe0] ss:$12 sps:$4 sm:$0xff]   ;;  %v4050_v22 = vld [vmem:[#allocation9 + $0x30] sm:$0xff]  }
 0x26b   :  { %v3495_v58 = vpop.f32.mrf.mxu0  ;;  %3520 = vmatpush3.bf16.msra.mxu1 %v4031_v50  ;;  %2543 = vmatprep.mubr.bf16.mxu1 %v4209_v0  ;;  %v4044_v29 = vld [vmem:[#allocation6 + $0x20] ss:$12 sps:$4 sm:$0xff]  }
 0x26c   :  { %v3404_v16 = vpack.c.bf16 %v1780_v54, %v1780_v54  ;;  %v1718_v1 = vadd.f32 %v3494_v57, %v4840_v8  ;;  %3521 = vmatprep.subr.bf16.mxu1 %v4032_v34  ;;  %v4045_v34 = vld [vmem:[#allocation6 + $0xc8] ss:$12 sps:$4 sm:$0xff]   ;;  %v4056_v57 = vld [vmem:[#allocation9 + $0x18] sm:$0xff]  }
 0x26d   :  { %v3496_v38 = vpop.f32.mrf.mxu0 }
 0x26e   :  { %1907 = vst [vmem:[%s5023_s11 + $0x2c] sm:$0xf] %v3404_v16  ;;  %v1783_v6 = vadd.f32 %v3666_v27, %v1718_v1  ;;  %v3497_v59 = vadd.f32 %v3496_v38, %v3495_v58  ;;  %v4040_v27 = vld [vmem:[#allocation6 + $0x50] ss:$12 sps:$4 sm:$0xff]   ;;  %v4061_v16 = vld [vmem:[#allocation9 + $0x40] sm:$0xff]  }
 0x26f   :  { %v3498_v21 = vpop.f32.mrf.mxu0  ;;  %3522 = vmatpush3.bf16.msra.mxu1 %v4034_v61  ;;  %v4059_v58 = vld [vmem:[#allocation9 + $0x48] sm:$0xff]   ;;  %v4062_v1 = vld [vmem:[#allocation9] sm:$0xff]  }
 0x270   :  { %v3406_v5 = vpack.c.bf16 %v1783_v6, %v1783_v6  ;;  %v1723_v7 = vadd.f32 %v3497_v59, %v4840_v8  ;;  %v1807_v25 = vpack.c.bf16 %v1783_v6, %v1780_v54  ;;  %3523 = vmatprep.subr.bf16.mxu1 %v4035_v18  ;;  %v4051_v54 = vld [vmem:[#allocation9 + $0x68] sm:$0xff]   ;;  %v4897_v18 = vld [vmem:[#allocation9 + $0xb0] sm:$0xff]   ;;  %v4905_v38 = vld [vmem:[#allocation9 + $0xa0] sm:$0xff]  }
 0x271   :  { %v3499_v45 = vpop.f32.mrf.mxu0  ;;  %v4060_v61 = vld [vmem:[#allocation9 + $0x8] sm:$0xff]   ;;  %v4909_v6 = vld [vmem:[#allocation9 + $0x98] sm:$0xff]   ;;  %v4913_v59 = vld [vmem:[#allocation9 + $0x90] sm:$0xff]  }
 0x272   :  { %1909 = vst [vmem:[%s5023_s11 + $0x3c] sm:$0xf] %v3406_v5  ;;  %v1788_v46 = vadd.f32 %v1787_v19, %v1723_v7  ;;  %v3500_v11 = vadd.f32 %v3499_v45, %v3498_v21  ;;  %2544 = vmatmul.mubr.bf16.gmra.mxu1 %v1807_v25  ;;  %3688 = vmatmul.mubr.bf16.vlgmr.msra.gmra.mxu0 %v1807_v25  ;;  %v4901_v19 = vld [vmem:[#allocation9 + $0xa8] sm:$0xff]  }
 0x273   :  { %v3501_v12 = vpop.f32.mrf.mxu0  ;;  %3524 = vmatpush3.bf16.msra.mxu1 %v4036_v41  ;;  %2553 = vmatprep.mubr.bf16.mxu1 %v4209_v0  ;;  %v4917_v21 = vld [vmem:[#allocation9 + $0x88] sm:$0xff]   ;;  %v4921_v41 = vld [vmem:[#allocation9 + $0x80] sm:$0xff]  }
 0x274   :  { %v3408_v14 = vpack.c.bf16 %v1788_v46, %v1788_v46  ;;  %v1726_v17 = vadd.f32 %v3500_v11, %v4840_v8  ;;  %3525 = vmatprep.subr.bf16.mxu1 %v4037_v60 }
 0x275   :  { %v3502_v20 = vpop.f32.mrf.mxu0 }
 0x276   :  { %1911 = vst [vmem:[%s5023_s11 + $0x4c] sm:$0xf] %v3408_v14  ;;  %v1791_v23 = vadd.f32 %v1790_v10, %v1726_v17  ;;  %v3503_v24 = vadd.f32 %v3502_v20, %v3501_v12 }
 0x277   :  { %v3504_v26 = vpop.f32.mrf.mxu0  ;;  %3526 = vmatpush3.bf16.msra.mxu1 %v4038_v63 }
 0x278   :  { %v3410_v30 = vpack.c.bf16 %v1791_v23, %v1791_v23  ;;  %v1731_v32 = vadd.f32 %v3503_v24, %v4840_v8  ;;  %v1810_v51 = vpack.c.bf16 %v1791_v23, %v1788_v46  ;;  %3527 = vmatprep.subr.bf16.mxu1 %v4039_v28  ;;  %v2014_v46 = vld [vmem:[#allocation7] sm:$0x7] }
 0x279   :  { %v3505_v39 = vpop.f32.mrf.mxu0  ;;  %v4925_v12 = vunpack.c.l.bf16 %v2014_v46 }
 0x27a   :  { %1913 = vst [vmem:[%s5023_s11 + $0x5c] sm:$0xf] %v3410_v30  ;;  %v1796_v35 = vadd.f32 %v3669_v52, %v1731_v32  ;;  %v3506_v44 = vadd.f32 %v3505_v39, %v3504_v26  ;;  %2554 = vmatmul.mubr.bf16.gmra.mxu1 %v1810_v51  ;;  %3691 = vmatprep.mubr.bf16.mxu0 %v1810_v51  ;;  %v4048_v52 = vld [vmem:[#allocation9 + $0x38] sm:$0xff]  }
 0x27b   :  { %3528 = vmatpush3.bf16.msra.mxu1 %v4040_v27  ;;  %2563 = vmatprep.mubr.bf16.mxu1 %v4209_v0  ;;  %v4046_v0 = vld [vmem:[#allocation6 + $0x8] ss:$12 sps:$4 sm:$0xff]   ;;  %v2024_v14 = vrot.slane %v4925_v12, %v4648_v42  ;;  %v2020_v17 = vrot.slane %v4925_v12, %v4651_v43 }
 0x27c   :  { %v3412_v31 = vpack.c.bf16 %v1796_v35, %v1796_v35  ;;  %v1734_v55 = vadd.f32 %v3506_v44, %v4840_v8  ;;  %3529 = vmatprep.subr.bf16.mxu1 %v4041_v33  ;;  %v4047_v8 = vld [vmem:[#allocation9 + $0x78] sm:$0xff]  }
 0x27d   :  { %v4932_v10 = vrot.slane %v2024_v14, %v4651_v43  ;;  %v4935_v20 = vrot.slane %v2020_v17, %v4651_v43 }
 0x27e   :  { %1915 = vst [vmem:[%s5023_s11 + $0x6c] sm:$0xf] %v3412_v31  ;;  %v1799_v50 = vadd.f32 %v3670_v9, %v1734_v55 }
 0x27f   :  { %3530 = vmatpush3.bf16.msra.mxu1 %v4042_v62 }
 0x280   :  { %v3414_v47 = vpack.c.bf16 %v1799_v50, %v1799_v50  ;;  %v1813_v49 = vpack.c.bf16 %v1799_v50, %v1796_v35  ;;  %3531 = vmatprep.subr.bf16.mxu1 %v4043_v4 }
 0x282   :  { %1917 = vst [vmem:[%s5023_s11 + $0x7c] sm:$0xf] %v3414_v47  ;;  %2564 = vmatmul.mubr.bf16.gmra.mxu1 %v1813_v49  ;;  %3692 = vmatmul.mubr.bf16.gmra.mxu0 %v1813_v49 }
 0x283   :  { %3532 = vmatpush3.bf16.msra.mxu1 %v4044_v29  ;;  %2606 = vmatprep.mubr.bf16.mxu1 %v4788_v2  ;;  %v4049_v2 = vld [vmem:[#allocation9 + $0x70] sm:$0xff]  }
 0x284   :  { %3533 = vmatprep.subr.bf16.mxu1 %v4045_v34 }
 0x287   :  { %3534 = vmatpush3.bf16.msra.mxu1 %v4046_v0 }
 0x288   :  { %3571 = vmatprep.subr.bf16.mxu1 %v4047_v8 }
 0x28a   :  { %2607 = vmatmul.mubr.bf16.vlgmr.msra.gmra.mxu1 %v4790_v40  ;;  %v4052_v40 = vld [vmem:[#allocation9 + $0x28] sm:$0xff]  }
 0x28b   :  { %2614 = vmatprep.mubr.bf16.mxu1 %v4805_v36  ;;  %3572 = vmatpush3.bf16.msra.mxu1 %v4048_v52  ;;  %v4053_v36 = vld [vmem:[#allocation9 + $0x60] sm:$0xff]  }
 0x28c   :  { %3573 = vmatprep.subr.bf16.mxu1 %v4049_v2 }
 0x28f   :  { %3574 = vmatpush3.bf16.msra.mxu1 %v4050_v22 }
 0x290   :  { %3575 = vmatprep.subr.bf16.mxu1 %v4051_v54 }
 0x292   :  { %2615 = vmatmul.mubr.bf16.gmra.mxu1 %v4807_v53  ;;  %v4054_v53 = vld [vmem:[#allocation9 + $0x20] sm:$0xff]  }
 0x293   :  { %2622 = vmatprep.mubr.bf16.mxu1 %v4821_v56  ;;  %3576 = vmatpush3.bf16.msra.mxu1 %v4052_v40  ;;  %v4055_v56 = vld [vmem:[#allocation9 + $0x58] sm:$0xff]  }
 0x294   :  { %3577 = vmatprep.subr.bf16.mxu1 %v4053_v36 }
 0x297   :  { %3578 = vmatpush3.bf16.msra.mxu1 %v4054_v53 }
 0x298   :  { %3579 = vmatprep.subr.bf16.mxu1 %v4055_v56 }
 0x29a   :  { %2623 = vmatmul.mubr.bf16.gmra.mxu1 %v4823_v3  ;;  %v4057_v3 = vld [vmem:[#allocation9 + $0x50] sm:$0xff]  }
 0x29b   :  { %2630 = vmatprep.mubr.bf16.mxu1 %v4837_v15  ;;  %3580 = vmatpush3.bf16.msra.mxu1 %v4056_v57  ;;  %v4058_v15 = vld [vmem:[#allocation9 + $0x10] sm:$0xff]  }
 0x29c   :  { %3581 = vmatprep.subr.bf16.mxu1 %v4057_v3 }
 0x29f   :  { %3582 = vmatpush3.bf16.msra.mxu1 %v4058_v15 }
 0x2a0   :  { %3583 = vmatprep.subr.bf16.mxu1 %v4059_v58 }
 0x2a2   :  { %2631 = vmatmul.mubr.bf16.gmra.mxu1 %v4842_v48  ;;  %v4892_v48 = vld [vmem:[#allocation9 + $0xb8] sm:$0xff]  }
 0x2a3   :  { %3584 = vmatpush3.bf16.msra.mxu1 %v4060_v61  ;;  %3695 = vmatprep.subr.bf16.mxu0 %v4892_v48 }
 0x2a4   :  { %3585 = vmatprep.subr.bf16.mxu1 %v4061_v16  ;;  %3696 = vmatpush3.bf16.msra.mxu0 %v4892_v48 }
 0x2a5   :  { %3697 = vmatprep.subr.bf16.mxu0 %v4897_v18 }
 0x2a7   :  { %3586 = vmatpush3.bf16.msra.mxu1 %v4062_v1 }
 0x2a8   :  { %3719 = vmatprep.subr.bf16.mxu1 %v4892_v48  ;;  %3698 = vmatpush3.bf16.msra.mxu0 %v4897_v18 }
 0x2a9   :  { %3699 = vmatprep.subr.bf16.mxu0 %v4901_v19 }
 0x2ac   :  { %3700 = vmatpush3.bf16.msra.mxu0 %v4901_v19 }
 0x2ad   :  { %3701 = vmatprep.subr.bf16.mxu0 %v4905_v38 }
 0x2b0   :  { %3702 = vmatpush3.bf16.msra.mxu0 %v4905_v38 }
 0x2b1   :  { %3703 = vmatprep.subr.bf16.mxu0 %v4909_v6 }
 0x2b4   :  { %3704 = vmatpush3.bf16.msra.mxu0 %v4909_v6 }
 0x2b5   :  { %3705 = vmatprep.subr.bf16.mxu0 %v4913_v59 }
 0x2b8   :  { %3706 = vmatpush3.bf16.msra.mxu0 %v4913_v59 }
 0x2b9   :  { %3707 = vmatprep.subr.bf16.mxu0 %v4917_v21 }
 0x2bc   :  { %3708 = vmatpush3.bf16.msra.mxu0 %v4917_v21 }
 0x2bd   :  { %3709 = vmatprep.subr.bf16.mxu0 %v4921_v41 }
 0x2c0   :  { %3710 = vmatpush3.bf16.msra.mxu0 %v4921_v41 }
 0x307   :  { %v2462_v5 = vpop.f32.mrf.mxu0 }
 0x308   :  { %v2463_v32 = vadd.f32 %v2462_v5, %v4935_v20 }
 0x309   :  { %v2464_v7 = vpop.f32.mrf.mxu0 }
 0x30a   :  { %v2465_v27 = vadd.f32 %v2464_v7, %v4932_v10 }
 0x30b   :  { %v2466_v25 = vpop.f32.mrf.mxu0 }
 0x30c   :  { %v2467_v30 = vadd.f32 %v2466_v25, %v4935_v20 }
 0x30d   :  { %v2468_v60 = vpop.f32.mrf.mxu0 }
 0x30e   :  { %v2469_v51 = vadd.f32 %v2468_v60, %v4932_v10 }
 0x30f   :  { %v2472_v9 = vpop.f32.mrf.mxu0 }
 0x310   :  { %v2473_v2 = vadd.f32 %v2472_v9, %v4935_v20 }
 0x311   :  { %v2474_v45 = vpop.f32.mrf.mxu0 }
 0x312   :  { %v2475_v0 = vadd.f32 %v2474_v45, %v4932_v10 }
 0x313   :  { %v2476_v11 = vpop.f32.mrf.mxu0 }
 0x314   :  { %v2477_v8 = vadd.f32 %v2476_v11, %v4935_v20 }
 0x315   :  { %v2478_v63 = vpop.f32.mrf.mxu0 }
 0x316   :  { %v2479_v40 = vadd.f32 %v2478_v63, %v4932_v10 }
 0x317   :  { %v2482_v28 = vpop.f32.mrf.mxu0 }
 0x318   :  { %v2483_v46 = vadd.f32 %v2482_v28, %v4935_v20 }
 0x319   :  { %v2484_v24 = vpop.f32.mrf.mxu0 }
 0x31a   :  { %v2485_v60 = vadd.f32 %v2484_v24, %v4932_v10 }
 0x31b   :  { %v2486_v35 = vpop.f32.mrf.mxu0 }
 0x31c   :  { %v2487_v9 = vadd.f32 %v2486_v35, %v4935_v20 }
 0x31d   :  { %v2488_v47 = vpop.f32.mrf.mxu0 }
 0x31e   :  { %v2489_v63 = vadd.f32 %v2488_v47, %v4932_v10 }
 0x31f   :  { %v2492_v56 = vpop.f32.mrf.mxu0 }
 0x321   :  { %v2494_v5 = vpop.f32.mrf.mxu0 }
 0x32a   :  { %v2535_v23 = vpop.f32.mrf.mxu1 }
 0x32b   :  { %v2536_v44 = vadd.f32 %v2535_v23, %v2463_v32  ;;  %v2496_v23 = vpop.f32.mrf.mxu0 }
 0x32c   :  { %v2537_v26 = vpop.f32.mrf.mxu1  ;;  %v2497_v35 = vadd.f32 %v2496_v23, %v4935_v20 }
 0x32d   :  { %v2538_v33 = vadd.f32 %v2537_v26, %v2465_v27  ;;  %v2704_v49 = vmax.f32 %v2536_v44, 0.0 }
 0x32e   :  { %v2539_v42 = vpop.f32.mrf.mxu1 }
 0x32f   :  { %v2540_v39 = vadd.f32 %v2539_v42, %v2467_v30  ;;  %v2705_v50 = vmax.f32 %v2538_v33, 0.0  ;;  %v2498_v42 = vpop.f32.mrf.mxu0 }
 0x330   :  { %v2541_v62 = vpop.f32.mrf.mxu1 }
 0x331   :  { %v2542_v31 = vadd.f32 %v2541_v62, %v2469_v51  ;;  %v2707_v55 = vmax.f32 %v2540_v39, 0.0  ;;  %v2495_v39 = vadd.f32 %v2494_v5, %v4932_v10  ;;  %v2493_v62 = vadd.f32 %v2492_v56, %v4935_v20 }
 0x332   :  { %v2545_v4 = vpop.f32.mrf.mxu1  ;;  %v3689_v47 = vpop.f32.mrf.mxu0 }
 0x333   :  { %v2708_v29 = vmax.f32 %v2542_v31, 0.0  ;;  %v2728_v22 = vpack.c.bf16 %v2707_v55, %v2704_v49  ;;  %v2546_v57 = vadd.f32 %v2545_v4, %v2473_v2  ;;  %v2499_v55 = vadd.f32 %v2498_v42, %v4932_v10 }
 0x334   :  { %v2547_v34 = vpop.f32.mrf.mxu1  ;;  %v2673_v2 = vpop.f32.mrf.mxu0 }
 0x335   :  { %v2729_v52 = vpack.c.bf16 %v2708_v29, %v2705_v50  ;;  %v2548_v36 = vadd.f32 %v2547_v34, %v2475_v0  ;;  %v2710_v7 = vmax.f32 %v2546_v57, 0.0  ;;  %v2028_v29 = vrot.slane %v4925_v12, %v4712_v13 }
 0x336   :  { %v2549_v54 = vpop.f32.mrf.mxu1 }
 0x337   :  { %v2550_v53 = vadd.f32 %v2549_v54, %v2477_v8  ;;  %2970 = vmatprep.mubr.bf16.mxu1 %v2729_v52  ;;  %v2711_v16 = vmax.f32 %v2548_v36, 0.0  ;;  %v4966_v10 = vrot.slane %v2028_v29, %v4651_v43 }
 0x338   :  { %v2551_v3 = vpop.f32.mrf.mxu1  ;;  %2971 = vmatmul.mubr.bf16.vlgmr.msra.gmra.mxu1 %v2728_v22 }
 0x339   :  { %v2552_v15 = vadd.f32 %v2551_v3, %v2479_v40  ;;  %3727 = vmatpush3.bf16.msra.mxu1 %v4892_v48  ;;  %v2713_v58 = vmax.f32 %v2550_v53, 0.0  ;;  %v3690_v53 = vpop.f32.mrf.mxu0 }
 0x33a   :  { %v2555_v61 = vpop.f32.mrf.mxu1  ;;  %3720 = vmatprep.subr.bf16.mxu1 %v4897_v18 }
 0x33b   :  { %v2714_v1 = vmax.f32 %v2552_v15, 0.0  ;;  %v2731_v11 = vpack.c.bf16 %v2713_v58, %v2710_v7  ;;  %v2556_v26 = vadd.f32 %v2555_v61, %v2483_v46 }
 0x33c   :  { %v2557_v25 = vpop.f32.mrf.mxu1 }
 0x33d   :  { %v2732_v45 = vpack.c.bf16 %v2714_v1, %v2711_v16  ;;  %3728 = vmatpush3.bf16.msra.mxu1 %v4897_v18  ;;  %v2558_v14 = vadd.f32 %v2557_v25, %v2485_v60  ;;  %v2716_v51 = vmax.f32 %v2556_v26, 0.0 }
 0x33e   :  { %v2559_v48 = vpop.f32.mrf.mxu1  ;;  %3721 = vmatprep.subr.bf16.mxu1 %v4901_v19 }
 0x33f   :  { %v2560_v17 = vadd.f32 %v2559_v48, %v2487_v9  ;;  %2978 = vmatprep.mubr.bf16.mxu1 %v2732_v45  ;;  %v2717_v28 = vmax.f32 %v2558_v14, 0.0 }
 0x340   :  { %v2561_v27 = vpop.f32.mrf.mxu1  ;;  %2979 = vmatmul.mubr.bf16.gmra.mxu1 %v2731_v11 }
 0x341   :  { %v2562_v24 = vadd.f32 %v2561_v27, %v2489_v63  ;;  %3729 = vmatpush3.bf16.msra.mxu1 %v4901_v19  ;;  %v2719_v30 = vmax.f32 %v2560_v17, 0.0 }
 0x342   :  { %v2565_v18 = vpop.f32.mrf.mxu1  ;;  %3722 = vmatprep.subr.bf16.mxu1 %v4905_v38 }
 0x343   :  { %v2720_v32 = vmax.f32 %v2562_v24, 0.0  ;;  %v2734_v31 = vpack.c.bf16 %v2719_v30, %v2716_v51  ;;  %v2566_v49 = vadd.f32 %v2565_v18, %v2493_v62 }
 0x344   :  { %v2567_v33 = vpop.f32.mrf.mxu1 }
 0x345   :  { %v2735_v44 = vpack.c.bf16 %v2720_v32, %v2717_v28  ;;  %3730 = vmatpush3.bf16.msra.mxu1 %v4905_v38  ;;  %v2568_v4 = vadd.f32 %v2567_v33, %v2495_v39  ;;  %v2722_v22 = vmax.f32 %v2566_v49, 0.0 }
 0x346   :  { %v2569_v19 = vpop.f32.mrf.mxu1  ;;  %3723 = vmatprep.subr.bf16.mxu1 %v4909_v6 }
 0x347   :  { %v2570_v50 = vadd.f32 %v2569_v19, %v2497_v35  ;;  %2986 = vmatprep.mubr.bf16.mxu1 %v2735_v44  ;;  %v2723_v8 = vmax.f32 %v2568_v4, 0.0 }
 0x348   :  { %v2571_v34 = vpop.f32.mrf.mxu1  ;;  %2987 = vmatmul.mubr.bf16.gmra.mxu1 %v2734_v31 }
 0x349   :  { %v2572_v0 = vadd.f32 %v2571_v34, %v2499_v55  ;;  %3731 = vmatpush3.bf16.msra.mxu1 %v4909_v6  ;;  %v2725_v38 = vmax.f32 %v2570_v50, 0.0 }
 0x34a   :  { %v3535_v20 = vpop.f32.mrf.mxu1  ;;  %3724 = vmatprep.subr.bf16.mxu1 %v4913_v59 }
 0x34b   :  { %v2726_v52 = vmax.f32 %v2572_v0, 0.0  ;;  %v2737_v40 = vpack.c.bf16 %v2725_v38, %v2722_v22 }
 0x34c   :  { %v3536_v54 = vpop.f32.mrf.mxu1 }
 0x34d   :  { %v2738_v13 = vpack.c.bf16 %v2726_v52, %v2723_v8  ;;  %v3537_v12 = vadd.f32 %v3536_v54, %v3535_v20  ;;  %3732 = vmatpush3.bf16.msra.mxu1 %v4913_v59  ;;  %v2676_v59 = vpop.f32.mrf.mxu0 }
 0x34e   :  { %v3538_v36 = vpop.f32.mrf.mxu1  ;;  %3725 = vmatprep.subr.bf16.mxu1 %v4917_v21 }
 0x34f   :  { %v2609_v6 = vadd.f32 %v3537_v12, %v4966_v10  ;;  %2994 = vmatprep.mubr.bf16.mxu1 %v2738_v13  ;;  %v3693_v9 = vpop.f32.mrf.mxu0 }
 0x350   :  { %v3539_v56 = vpop.f32.mrf.mxu1  ;;  %2995 = vmatmul.mubr.bf16.gmra.mxu1 %v2737_v40 }
 0x351   :  { %v3540_v57 = vadd.f32 %v3539_v56, %v3538_v36  ;;  %3733 = vmatpush3.bf16.msra.mxu1 %v4917_v21  ;;  %v2674_v15 = vadd.f32 %v2673_v2, %v2609_v6  ;;  %v2689_v14 = vpop.f32.mrf.mxu0 }
 0x352   :  { %v3541_v3 = vpop.f32.mrf.mxu1  ;;  %3726 = vmatprep.subr.bf16.mxu1 %v4921_v41 }
 0x353   :  { %v2612_v58 = vadd.f32 %v3540_v57, %v4966_v10  ;;  %v2706_v7 = vmax.f32 %v2674_v15, 0.0  ;;  %v3694_v18 = vpop.f32.mrf.mxu0 }
 0x354   :  { %v3542_v61 = vpop.f32.mrf.mxu1 }
 0x355   :  { %v2677_v16 = vadd.f32 %v2676_v59, %v2612_v58  ;;  %v3543_v1 = vadd.f32 %v3542_v61, %v3541_v3  ;;  %3734 = vmatpush3.bf16.msra.mxu1 %v4921_v41  ;;  %v2692_v35 = vpop.f32.mrf.mxu0  ;;  %v3398_v61 = vld.sshfl [vmem:[%s5013_s1] sm:$0x11 pattern:$0x75316420] }
 0x356   :  { %v3544_v5 = vpop.f32.mrf.mxu1 }
 0x357   :  { %v2709_v25 = vmax.f32 %v2677_v16, 0.0  ;;  %v2617_v60 = vadd.f32 %v3543_v1, %v4966_v10 }
 0x358   :  { %v3545_v45 = vpop.f32.mrf.mxu1 }
 0x359   :  { %v3546_v21 = vadd.f32 %v3545_v45, %v3544_v5  ;;  %v2730_v46 = vpack.c.bf16 %v2709_v25, %v2706_v7  ;;  %v2682_v48 = vadd.f32 %v3689_v47, %v2617_v60 }
 0x35a   :  { %v3547_v11 = vpop.f32.mrf.mxu1 }
 0x35b   :  { %v2620_v63 = vadd.f32 %v3546_v21, %v4966_v10  ;;  %3711 = vmatprep.mubr.bf16.mxu0 %v2730_v46  ;;  %v2712_v41 = vmax.f32 %v2682_v48, 0.0 }
 0x35c   :  { %v3548_v17 = vpop.f32.mrf.mxu1 }
 0x35d   :  { %v2685_v23 = vadd.f32 %v3690_v53, %v2620_v63  ;;  %v3549_v26 = vadd.f32 %v3548_v17, %v3547_v11  ;;  %v4210_v53 = vmov 1966171168  }
 0x35e   :  { %v3550_v27 = vpop.f32.mrf.mxu1  ;;  %v3079_v56 = vunpack.c.l.s4 %v4210_v53 }
 0x35f   :  { %v2715_v24 = vmax.f32 %v2685_v23, 0.0  ;;  %v2625_v30 = vadd.f32 %v3549_v26, %v4966_v10 }
 0x360   :  { %v3551_v28 = vpop.f32.mrf.mxu1  ;;  %v3080_v3 = vunpack.c.0.s8 %v3079_v56 }
 0x361   :  { %v2733_v32 = vpack.c.bf16 %v2715_v24, %v2712_v41  ;;  %v3552_v42 = vadd.f32 %v3551_v28, %v3550_v27  ;;  %v2690_v33 = vadd.f32 %v2689_v14, %v2625_v30 }
 0x362   :  { %v3553_v51 = vpop.f32.mrf.mxu1  ;;  %v3083_v58 = vsub.s32 %v3080_v3, %v4640_v37 }
 0x363   :  { %v2628_v39 = vadd.f32 %v3552_v42, %v4966_v10  ;;  %3712 = vmatmul.mubr.bf16.vlgmr.msra.gmra.mxu0 %v2733_v32  ;;  %v2718_v55 = vmax.f32 %v2690_v33, 0.0 }
 0x364   :  { %v3554_v44 = vpop.f32.mrf.mxu1  ;;  %v3084_v5 = vrot.slane %v3398_v61, %v3083_v58 }
 0x365   :  { %v2693_v62 = vadd.f32 %v2692_v35, %v2628_v39  ;;  %v3555_v31 = vadd.f32 %v3554_v44, %v3553_v51  ;;  %v3077_v51 = vcombine.high %v3398_v61, %v3398_v61 }
 0x366   :  { %v3556_v19 = vpop.f32.mrf.mxu1  ;;  %v3095_v21 = vrot.slane %v3084_v5, %v4651_v43 }
 0x367   :  { %v2721_v4 = vmax.f32 %v2693_v62, 0.0  ;;  %v2633_v50 = vadd.f32 %v3555_v31, %v4966_v10  ;;  %v3091_v44 = vrot.slane %v3077_v51, %v3083_v58 }
 0x368   :  { %v3557_v29 = vpop.f32.mrf.mxu1 }
 0x369   :  { %v3558_v47 = vadd.f32 %v3557_v29, %v3556_v19  ;;  %v2736_v49 = vpack.c.bf16 %v2721_v4, %v2718_v55  ;;  %v2698_v34 = vadd.f32 %v3693_v9, %v2633_v50  ;;  %v3099_v4 = vrot.slane %v3091_v44, %v4651_v43 }
 0x36b   :  { %v2636_v0 = vadd.f32 %v3558_v47, %v4966_v10  ;;  %3715 = vmatprep.mubr.bf16.mxu1 %v2736_v49  ;;  %v2724_v20 = vmax.f32 %v2698_v34, 0.0  ;;  %v2788_v10 = vld [vmem:[#allocation10] sm:$0x1] }
 0x36c   :  { %v2789_v16 = vunpack.c.l.bf16 %v2788_v10 }
 0x36d   :  { %v2701_v38 = vadd.f32 %v3694_v18, %v2636_v0 }
 0x36e   :  { %v2793_v60 = vrot.slane %v2789_v16, %v4651_v43 }
 0x36f   :  { %v2727_v8 = vmax.f32 %v2701_v38, 0.0 }
 0x371   :  { %v2739_v52 = vpack.c.bf16 %v2727_v8, %v2724_v20 }
 0x373   :  { %3716 = vmatmul.mubr.bf16.vlgmr.msra.gmra.mxu1 %v2739_v52 }
 0x3f8   :  { %v3587_v2 = vpop.f32.mrf.mxu1 }
 0x3fa   :  { %v3588_v22 = vpop.f32.mrf.mxu1 }
 0x3fb   :  { %v3589_v25 = vadd.f32 %v3588_v22, %v3587_v2 }
 0x3fc   :  { %v3590_v54 = vpop.f32.mrf.mxu1 }
 0x3fd   :  { %v2973_v63 = vadd.f32 %v3589_v25, %v2793_v60 }
 0x3fe   :  { %v3591_v13 = vpop.f32.mrf.mxu1 }
 0x3ff   :  { %v3592_v48 = vadd.f32 %v3591_v13, %v3590_v54 }
 0x400   :  { %v3593_v12 = vpop.f32.mrf.mxu1 }
 0x401   :  { %v2976_v18 = vadd.f32 %v3592_v48, %v2793_v60 }
 0x402   :  { %v3594_v40 = vpop.f32.mrf.mxu1 }
 0x403   :  { %v3595_v1 = vadd.f32 %v3594_v40, %v3593_v12 }
 0x404   :  { %v3596_v36 = vpop.f32.mrf.mxu1 }
 0x405   :  { %v2981_v45 = vadd.f32 %v3595_v1, %v2793_v60 }
 0x406   :  { %v3597_v6 = vpop.f32.mrf.mxu1 }
 0x407   :  { %v3598_v9 = vadd.f32 %v3597_v6, %v3596_v36 }
 0x408   :  { %v3599_v57 = vpop.f32.mrf.mxu1 }
 0x409   :  { %v2984_v26 = vadd.f32 %v3598_v9, %v2793_v60 }
 0x40a   :  { %v3600_v15 = vpop.f32.mrf.mxu1 }
 0x40b   :  { %v3601_v31 = vadd.f32 %v3600_v15, %v3599_v57 }
 0x40c   :  { %v3602_v59 = vpop.f32.mrf.mxu1 }
 0x40d   :  { %v2989_v49 = vadd.f32 %v3601_v31, %v2793_v60 }
 0x40e   :  { %v3603_v7 = vpop.f32.mrf.mxu1 }
 0x40f   :  { %v3604_v29 = vadd.f32 %v3603_v7, %v3602_v59 }
 0x410   :  { %v3605_v46 = vpop.f32.mrf.mxu1 }
 0x411   :  { %v2992_v22 = vadd.f32 %v3604_v29, %v2793_v60 }
 0x412   :  { %v3606_v27 = vpop.f32.mrf.mxu1 }
 0x413   :  { %v3607_v35 = vadd.f32 %v3606_v27, %v3605_v46 }
 0x414   :  { %v3608_v33 = vpop.f32.mrf.mxu1 }
 0x415   :  { %v2997_v55 = vadd.f32 %v3607_v35, %v2793_v60 }
 0x416   :  { %v3609_v62 = vpop.f32.mrf.mxu1 }
 0x417   :  { %v3610_v19 = vadd.f32 %v3609_v62, %v3608_v33 }
 0x419   :  { %v3000_v20 = vadd.f32 %v3610_v19, %v2793_v60 }
 0x423   :  { %v3713_v11 = vpop.f32.mrf.mxu0 }
 0x424   :  { %v3046_v37 = vadd.f32 %v3713_v11, %v2981_v45 }
 0x425   :  { %v3037_v14 = vpop.f32.mrf.mxu0 }
 0x426   :  { %v3104_v17 = vadd.f32 %v3095_v21, %v3046_v37  ;;  %v3038_v23 = vadd.f32 %v3037_v14, %v2973_v63 }
 0x427   :  { %v3714_v41 = vpop.f32.mrf.mxu0 }
 0x428   :  { %3112 = vst [vmem:[%s5022_s10 + $0x10] sm:$0xff] %v3104_v17  ;;  %v3102_v24 = vadd.f32 %v3095_v21, %v3038_v23  ;;  %v3049_v30 = vadd.f32 %v3714_v41, %v2984_v26 }
 0x429   :  { %v3040_v28 = vpop.f32.mrf.mxu0 }
 0x42a   :  { %3110 = vst [vmem:[%s5022_s10] sm:$0xff] %v3102_v24  ;;  %v3105_v32 = vadd.f32 %v3095_v21, %v3049_v30  ;;  %v3041_v42 = vadd.f32 %v3040_v28, %v2976_v18 }
 0x42c   :  { %3113 = vst [vmem:[%s5022_s10 + $0x18] sm:$0xff] %v3105_v32  ;;  %v3103_v39 = vadd.f32 %v3095_v21, %v3041_v42 }
 0x42e   :  { %3111 = vst [vmem:[%s5022_s10 + $0x8] sm:$0xff] %v3103_v39 }
 0x433   :  { %v3717_v50 = vpop.f32.mrf.mxu1 }
 0x434   :  { %v3062_v47 = vadd.f32 %v3717_v50, %v2997_v55 }
 0x435   :  { %v3053_v34 = vpop.f32.mrf.mxu1 }
 0x436   :  { %v3108_v0 = vadd.f32 %v3099_v4, %v3062_v47  ;;  %v3054_v38 = vadd.f32 %v3053_v34, %v2989_v49 }
 0x437   :  { %v3718_v8 = vpop.f32.mrf.mxu1 }
 0x438   :  { %3116 = vst [vmem:[%s5022_s10 + $0x30] sm:$0xff] %v3108_v0  ;;  %v3106_v52 = vadd.f32 %v3099_v4, %v3054_v38  ;;  %v3065_v2 = vadd.f32 %v3718_v8, %v3000_v20 }
 0x439   :  { %v3056_v54 = vpop.f32.mrf.mxu1 }
 0x43a   :  { %3114 = vst [vmem:[%s5022_s10 + $0x20] sm:$0xff] %v3106_v52  ;;  %v3109_v43 = vadd.f32 %v3099_v4, %v3065_v2  ;;  %v3057_v13 = vadd.f32 %v3056_v54, %v2992_v22 }
 0x43c   :  { %3117 = vst [vmem:[%s5022_s10 + $0x38] sm:$0xff] %v3109_v43  ;;  %v3107_v12 = vadd.f32 %v3099_v4, %v3057_v13 }
 0x43e   :  { %3115 = vst [vmem:[%s5022_s10 + $0x28] sm:$0xff] %v3107_v12 }
 0x43f   :  { %3126 = vsyncpa [#allocation3], 1 }
 0x440   :  { %3127 = vsyncpa [#allocation5], 1 }
 0x441   :  { %3128 = vsyncpa [#allocation8], 1 }
 0x442   :  { %3129 = vsyncpa [#allocation11], 1 }

// kernel: neg.6
= control target key start
LH: loop header
LB: loop body
LE: loop exit
PB: predicated region body
PF: predicated region fallthrough
CT: control target
= control target key end

     0   :  { %s72_s0 = inlined_call_operand.vmem [shape: f32[2,64,16], index: 0, kind: input, shape index: {}]   ;;  %s73_s1 = inlined_call_operand.vmem [shape: f32[2,64,16], index: 1, kind: output, shape index: {}]  }
   0x1   :  { %v2_v0 = vld [vmem:[%s72_s0] sm:$0xff]  ;;  %v32_v1 = vld [vmem:[%s72_s0 + $0x10] sm:$0xff]  ;;  %v34_v2 = vld [vmem:[%s72_s0 + $0x8] sm:$0xff] }
   0x2   :  { %v5_v3 = vxor.u32 2147483648, %v2_v0  ;;  %v12_v4 = vxor.u32 2147483648, %v32_v1  ;;  %v20_v5 = vxor.u32 2147483648, %v34_v2  ;;  %v36_v6 = vld [vmem:[%s72_s0 + $0x18] sm:$0xff] }
   0x3   :  { %v28_v7 = vxor.u32 2147483648, %v36_v6 }
   0x4   :  { %7 = vst [vmem:[%s73_s1] sm:$0xff] %v5_v3  ;;  %33 = vst [vmem:[%s73_s1 + $0x10] sm:$0xff] %v12_v4 }
   0x5   :  { %35 = vst [vmem:[%s73_s1 + $0x8] sm:$0xff] %v20_v5  ;;  %37 = vst [vmem:[%s73_s1 + $0x18] sm:$0xff] %v28_v7 }

// kernel: neg.8
= control target key start
LH: loop header
LB: loop body
LE: loop exit
PB: predicated region body
PF: predicated region fallthrough
CT: control target
= control target key end

     0   :  { %s136_s0 = inlined_call_operand.vmem [shape: f32[2,64,32], index: 0, kind: input, shape index: {}]   ;;  %s137_s1 = inlined_call_operand.vmem [shape: f32[2,64,32], index: 1, kind: output, shape index: {}]  }
   0x1   :  { %v2_v0 = vld [vmem:[%s136_s0] sm:$0xff]  ;;  %v66_v2 = vld [vmem:[%s136_s0 + $0x8] sm:$0xff]  ;;  %v70_v7 = vld [vmem:[%s136_s0 + $0x10] sm:$0xff] }
   0x2   :  { %v64_v1 = vld [vmem:[%s136_s0 + $0x20] sm:$0xff]  ;;  %v5_v3 = vxor.u32 2147483648, %v2_v0  ;;  %v20_v5 = vxor.u32 2147483648, %v66_v2  ;;  %v68_v6 = vld [vmem:[%s136_s0 + $0x28] sm:$0xff]  ;;  %v72_v8 = vld [vmem:[%s136_s0 + $0x30] sm:$0xff]  ;;  %v36_v10 = vxor.u32 2147483648, %v70_v7 }
   0x3   :  { %v12_v4 = vxor.u32 2147483648, %v64_v1  ;;  %v28_v9 = vxor.u32 2147483648, %v68_v6  ;;  %v44_v11 = vxor.u32 2147483648, %v72_v8  ;;  %v74_v12 = vld [vmem:[%s136_s0 + $0x18] sm:$0xff] }
   0x4   :  { %v76_v13 = vld [vmem:[%s136_s0 + $0x38] sm:$0xff]  ;;  %7 = vst [vmem:[%s137_s1] sm:$0xff] %v5_v3  ;;  %67 = vst [vmem:[%s137_s1 + $0x8] sm:$0xff] %v20_v5  ;;  %v52_v14 = vxor.u32 2147483648, %v74_v12 }
   0x5   :  { %65 = vst [vmem:[%s137_s1 + $0x20] sm:$0xff] %v12_v4  ;;  %v60_v15 = vxor.u32 2147483648, %v76_v13  ;;  %69 = vst [vmem:[%s137_s1 + $0x28] sm:$0xff] %v28_v9 }
   0x6   :  { %71 = vst [vmem:[%s137_s1 + $0x10] sm:$0xff] %v36_v10  ;;  %73 = vst [vmem:[%s137_s1 + $0x30] sm:$0xff] %v44_v11 }
   0x7   :  { %75 = vst [vmem:[%s137_s1 + $0x18] sm:$0xff] %v52_v14  ;;  %77 = vst [vmem:[%s137_s1 + $0x38] sm:$0xff] %v60_v15 }

// kernel: _forward_core.6
= control target key start
LH: loop header
LB: loop body
LE: loop exit
PB: predicated region body
PF: predicated region fallthrough
CT: control target
= control target key end

     0   :  { %15 = vsyncpa [#allocation3], 0  ;;  %s9248_s0 = inlined_call_operand.vmem [shape: bf16[32,512], index: 0, kind: input, shape index: {}]   ;;  %s9249_s1 = inlined_call_operand.vmem [shape: f32[2,128], index: 1, kind: input, shape index: {}]   ;;  %s9250_s2 = inlined_call_operand.hbm [shape: bf16[512,640], index: 2, kind: input, shape index: {}]   ;;  %s9251_s3 = inlined_call_operand.hbm [shape: bf16[1,640], index: 3, kind: input, shape index: {}]   ;;  %s9252_s4 = inlined_call_operand.vmem [shape: bf16[640,640], index: 4, kind: input, shape index: {}]   ;;  %s9253_s5 = inlined_call_operand.hbm [shape: bf16[1,640], index: 5, kind: input, shape index: {}]   ;;  %s9254_s6 = inlined_call_operand.vmem [shape: bf16[640,640], index: 6, kind: input, shape index: {}]   ;;  %s9255_s7 = inlined_call_operand.hbm [shape: bf16[1,640], index: 7, kind: input, shape index: {}]   ;;  %s9256_s8 = inlined_call_operand.vmem [shape: bf16[640,128], index: 8, kind: input, shape index: {}]   ;;  %s9257_s9 = inlined_call_operand.hbm [shape: bf16[1,128], index: 9, kind: input, shape index: {}]   ;;  %s9258_s10 = inlined_call_operand.vmem [shape: f32[2,16,128], index: 10, kind: output, shape index: {}]  }
   0x1   :  { %16 = vsyncpa [#allocation5], 0 }
   0x2   :  { %17 = vsyncpa [#allocation8], 0  ;;  %s7584_s13 = smov [#allocation4]   ;;  %s7585_s15 = smov [#allocation7]  }
   0x3   :  { %s40_s14 = sshll.u32 %s7584_s13, 4  ;;  %s64_s16 = sshll.u32 %s7585_s15, 4  ;;  %s41_s14 = int_to_ptr.vmem [resolvable:$true] %s40_s14  ;;  %s65_s16 = int_to_ptr.vmem [resolvable:$true] %s64_s16 }
   0x4   :  { %s7486_s17 = scalar_lea.vmem %s41_s14, 80  ;;  %s7490_s18 = scalar_lea.vmem %s41_s14, 96 }
   0x5   :  { %p7487_p0 = scmp.ne.s32.totalorder %s41_s14, %s7486_s17  ;;  %p7491_p1 = scmp.lt.s32.totalorder %s41_s14, %s41_s14 }
   0x6   :  { %p7492_p2 = scmp.lt.s32.totalorder %s7490_s18, %s7486_s17 }
   0x8   :  { %p7493_p3 = por %p7492_p2, %p7491_p1 }
   0xa   :  { %p7494_p4 = pnand %p7493_p3, %p7487_p0 }
   0xc   :  { %7497 = shalt.err (!%p7494_p4)
}
   0xd   :  { %43 = dma.hbm_to_vmem [thread:$0]  %s9251_s3, 80, %s41_s14, [#allocation5]  }
   0xe   :  { %s7506_s21 = scalar_lea.vmem %s65_s16, 80  ;;  %s7510_s22 = scalar_lea.vmem %s65_s16, 96 }
   0xf   :  { %p7507_p5 = scmp.ne.s32.totalorder %s65_s16, %s7506_s21  ;;  %p7511_p6 = scmp.lt.s32.totalorder %s65_s16, %s65_s16 }
  0x10   :  { %p7512_p7 = scmp.lt.s32.totalorder %s7510_s22, %s7506_s21 }
  0x12   :  { %p7513_p8 = por %p7512_p7, %p7511_p6 }
  0x14   :  { %p7514_p9 = pnand %p7513_p8, %p7507_p5 }
  0x16   :  { %7517 = shalt.err (!%p7514_p9)
}
  0x17   :  { %67 = dma.hbm_to_vmem [thread:$0]  %s9255_s7, 80, %s65_s16, [#allocation8]  }
  0x18   :  { %s7586_s25 = smov [#allocation2]  }
  0x19   :  { %s27_s26 = sshll.u32 %s7586_s25, 4  ;;  %s28_s26 = int_to_ptr.vmem [resolvable:$true] %s27_s26 }
  0x1a   :  { %s7526_s27 = scalar_lea.vmem %s28_s26, 20480  ;;  %p7531_p11 = scmp.lt.s32.totalorder %s28_s26, %s28_s26 }
  0x1b   :  { %p7527_p10 = scmp.ne.s32.totalorder %s28_s26, %s7526_s27  ;;  %p7532_p12 = scmp.lt.s32.totalorder %s7526_s27, %s7526_s27 }
  0x1d   :  { %p7533_p13 = por %p7532_p12, %p7531_p11 }
  0x1f   :  { %p7534_p0 = pnand %p7533_p13, %p7527_p10 }
  0x21   :  { %7537 = shalt.err (!%p7534_p0)
}
  0x22   :  { %s7587_s3 = smov 320   ;;  %s7588_s28 = smov 20  }
  0x23   :  { %33 = dma.hbm_to_vmem [thread:$0]  %s9250_s2, 20480, %s28_s26, [#allocation3], %s7587_s3, %s7587_s3, %s7588_s28  }
  0x24   :  { %s7589_s11 = smov [#allocation6]   ;;  %s7590_s7 = smov [#allocation9]  }
  0x25   :  { %s52_s12 = sshll.u32 %s7589_s11, 4  ;;  %s76_s13 = sshll.u32 %s7590_s7, 4  ;;  %s53_s12 = int_to_ptr.vmem [resolvable:$true] %s52_s12  ;;  %s77_s13 = int_to_ptr.vmem [resolvable:$true] %s76_s13 }
  0x26   :  { %s7546_s14 = scalar_lea.vmem %s53_s12, 80  ;;  %s7550_s15 = scalar_lea.vmem %s53_s12, 96 }
  0x27   :  { %p7547_p1 = scmp.ne.s32.totalorder %s53_s12, %s7546_s14  ;;  %p7551_p2 = scmp.lt.s32.totalorder %s53_s12, %s53_s12 }
  0x28   :  { %p7552_p3 = scmp.lt.s32.totalorder %s7550_s15, %s7546_s14 }
  0x2a   :  { %p7553_p4 = por %p7552_p3, %p7551_p2 }
  0x2c   :  { %p7554_p5 = pnand %p7553_p4, %p7547_p1 }
  0x2e   :  { %7557 = shalt.err (!%p7554_p5)
}
  0x2f   :  { %55 = dma.hbm_to_vmem [thread:$0]  %s9253_s5, 80, %s53_s12, [#allocation5]  }
  0x30   :  { %s7566_s18 = scalar_lea.vmem %s77_s13, 16  ;;  %s7570_s2 = scalar_lea.vmem %s77_s13, 32 }
  0x31   :  { %p7567_p6 = scmp.ne.s32.totalorder %s77_s13, %s7566_s18  ;;  %p7571_p7 = scmp.lt.s32.totalorder %s77_s13, %s77_s13 }
  0x32   :  { %p7572_p8 = scmp.lt.s32.totalorder %s7570_s2, %s7566_s18 }
  0x34   :  { %p7573_p9 = por %p7572_p8, %p7571_p7 }
  0x36   :  { %p7574_p10 = pnand %p7573_p9, %p7567_p6 }
  0x38   :  { %7577 = shalt.err (!%p7574_p10)
}
  0x39   :  { %79 = dma.hbm_to_vmem [thread:$0]  %s9257_s9, 16, %s77_s13, [#allocation8]  }
  0x3a   :  { %7578 = dma.done.wait [#allocation3], 20480  }
  0x3b   :  { %7579 = vsyncadd [#allocation3], 4294946816 }
  0x3c   :  { %7580 = dma.done.wait [#allocation5], 160  }
  0x3d   :  { %7581 = vsyncadd [#allocation5], 4294967136 }
  0x3e   :  { %7582 = dma.done.wait [#allocation8], 96  }
  0x3f   :  { %7583 = vsyncadd [#allocation8], 4294967200  ;;  %v6642_v0 = vld [vmem:[#allocation2 + $0x11c] ss:$20 sps:$4 sm:$0xff]   ;;  %v6646_v2 = vld [vmem:[#allocation2 + $0x118] ss:$20 sps:$4 sm:$0xff]  }
  0x40   :  { %v6644_v1 = vld [vmem:[#allocation2 + $0x39c] ss:$20 sps:$4 sm:$0xff]   ;;  %1218 = vmatprep.subr.bf16.mxu0 %v6642_v0  ;;  %v6647_v3 = vld [vmem:[#allocation2 + $0x398] ss:$20 sps:$4 sm:$0xff]   ;;  %v6648_v4 = vld [vmem:[#allocation2 + $0xf4] ss:$20 sps:$4 sm:$0xff]  }
  0x41   :  { %1271 = vmatprep.subr.bf16.mxu1 %v6644_v1  ;;  %1219 = vmatpush1.bf16.msra.mxu0 %v6646_v2  ;;  %v6650_v5 = vld [vmem:[#allocation2 + $0x374] ss:$20 sps:$4 sm:$0xff]   ;;  %v6652_v6 = vld [vmem:[#allocation2 + $0xf0] ss:$20 sps:$4 sm:$0xff]   ;;  %v6654_v8 = vld [vmem:[#allocation2 + $0xcc] ss:$20 sps:$4 sm:$0xff]  }
  0x42   :  { %1272 = vmatpush1.bf16.msra.mxu1 %v6647_v3  ;;  %1220 = vmatprep.subr.bf16.mxu0 %v6648_v4  ;;  %v6653_v7 = vld [vmem:[#allocation2 + $0x370] ss:$20 sps:$4 sm:$0xff]   ;;  %v6656_v9 = vld [vmem:[#allocation2 + $0x34c] ss:$20 sps:$4 sm:$0xff]   ;;  %v6658_v10 = vld [vmem:[#allocation2 + $0xc8] ss:$20 sps:$4 sm:$0xff]  }
  0x43   :  { %1273 = vmatprep.subr.bf16.mxu1 %v6650_v5  ;;  %v6659_v11 = vld [vmem:[#allocation2 + $0x348] ss:$20 sps:$4 sm:$0xff]   ;;  %v6660_v12 = vld [vmem:[#allocation2 + $0xa4] ss:$20 sps:$4 sm:$0xff]   ;;  %v6664_v14 = vld [vmem:[#allocation2 + $0xa0] ss:$20 sps:$4 sm:$0xff]  }
  0x44   :  { %v6662_v13 = vld [vmem:[#allocation2 + $0x324] ss:$20 sps:$4 sm:$0xff]   ;;  %v6665_v15 = vld [vmem:[#allocation2 + $0x320] ss:$20 sps:$4 sm:$0xff]   ;;  %v6666_v16 = vld [vmem:[#allocation2 + $0x7c] ss:$20 sps:$4 sm:$0xff]  }
  0x45   :  { %1221 = vmatpush1.bf16.msra.mxu0 %v6652_v6  ;;  %v6668_v17 = vld [vmem:[#allocation2 + $0x2fc] ss:$20 sps:$4 sm:$0xff]   ;;  %v6670_v18 = vld [vmem:[#allocation2 + $0x78] ss:$20 sps:$4 sm:$0xff]   ;;  %v6672_v20 = vld [vmem:[#allocation2 + $0x54] ss:$20 sps:$4 sm:$0xff]  }
  0x46   :  { %1274 = vmatpush1.bf16.msra.mxu1 %v6653_v7  ;;  %1222 = vmatprep.subr.bf16.mxu0 %v6654_v8  ;;  %v6671_v19 = vld [vmem:[#allocation2 + $0x2f8] ss:$20 sps:$4 sm:$0xff]   ;;  %v6674_v21 = vld [vmem:[#allocation2 + $0x2d4] ss:$20 sps:$4 sm:$0xff]   ;;  %v6676_v22 = vld [vmem:[#allocation2 + $0x50] ss:$20 sps:$4 sm:$0xff]  }
  0x47   :  { %1275 = vmatprep.subr.bf16.mxu1 %v6656_v9  ;;  %v6677_v23 = vld [vmem:[#allocation2 + $0x2d0] ss:$20 sps:$4 sm:$0xff]   ;;  %v6678_v24 = vld [vmem:[#allocation2 + $0x2c] ss:$20 sps:$4 sm:$0xff]   ;;  %v6682_v26 = vld [vmem:[#allocation2 + $0x28] ss:$20 sps:$4 sm:$0xff]  }
  0x48   :  { %v6680_v25 = vld [vmem:[#allocation2 + $0x2ac] ss:$20 sps:$4 sm:$0xff]   ;;  %v6683_v27 = vld [vmem:[#allocation2 + $0x2a8] ss:$20 sps:$4 sm:$0xff]   ;;  %v6684_v28 = vld [vmem:[#allocation2 + $0x4] ss:$20 sps:$4 sm:$0xff]  }
  0x49   :  { %1223 = vmatpush1.bf16.msra.mxu0 %v6658_v10  ;;  %v6686_v29 = vld [vmem:[#allocation2 + $0x284] ss:$20 sps:$4 sm:$0xff]   ;;  %v6688_v30 = vld [vmem:[#allocation2] ss:$20 sps:$4 sm:$0xff]   ;;  %v6690_v32 = vld [vmem:[#allocation2 + $0x25c] ss:$20 sps:$4 sm:$0xff]  }
  0x4a   :  { %1276 = vmatpush1.bf16.msra.mxu1 %v6659_v11  ;;  %1224 = vmatprep.subr.bf16.mxu0 %v6660_v12  ;;  %v6689_v31 = vld [vmem:[#allocation2 + $0x280] ss:$20 sps:$4 sm:$0xff]   ;;  %v6692_v33 = vld [vmem:[#allocation2 + $0x4dc] ss:$20 sps:$4 sm:$0xff]   ;;  %v6694_v34 = vld [vmem:[#allocation2 + $0x258] ss:$20 sps:$4 sm:$0xff]  }
  0x4b   :  { %1277 = vmatprep.subr.bf16.mxu1 %v6662_v13  ;;  %v6695_v35 = vld [vmem:[#allocation2 + $0x4d8] ss:$20 sps:$4 sm:$0xff]   ;;  %v6696_v36 = vld [vmem:[#allocation2 + $0x234] ss:$20 sps:$4 sm:$0xff]   ;;  %v6700_v38 = vld [vmem:[#allocation2 + $0x230] ss:$20 sps:$4 sm:$0xff]  }
  0x4c   :  { %v6698_v37 = vld [vmem:[#allocation2 + $0x4b4] ss:$20 sps:$4 sm:$0xff]   ;;  %v6701_v39 = vld [vmem:[#allocation2 + $0x4b0] ss:$20 sps:$4 sm:$0xff]   ;;  %v6702_v40 = vld [vmem:[#allocation2 + $0x20c] ss:$20 sps:$4 sm:$0xff]  }
  0x4d   :  { %1225 = vmatpush1.bf16.msra.mxu0 %v6664_v14  ;;  %v6704_v41 = vld [vmem:[#allocation2 + $0x48c] ss:$20 sps:$4 sm:$0xff]   ;;  %v6706_v42 = vld [vmem:[#allocation2 + $0x208] ss:$20 sps:$4 sm:$0xff]   ;;  %v6708_v44 = vld [vmem:[#allocation2 + $0x1e4] ss:$20 sps:$4 sm:$0xff]  }
  0x4e   :  { %1278 = vmatpush1.bf16.msra.mxu1 %v6665_v15  ;;  %1226 = vmatprep.subr.bf16.mxu0 %v6666_v16  ;;  %v6707_v43 = vld [vmem:[#allocation2 + $0x488] ss:$20 sps:$4 sm:$0xff]   ;;  %v6710_v45 = vld [vmem:[#allocation2 + $0x464] ss:$20 sps:$4 sm:$0xff]   ;;  %v6712_v46 = vld [vmem:[#allocation2 + $0x1e0] ss:$20 sps:$4 sm:$0xff]  }
  0x4f   :  { %1279 = vmatprep.subr.bf16.mxu1 %v6668_v17  ;;  %v6713_v47 = vld [vmem:[#allocation2 + $0x460] ss:$20 sps:$4 sm:$0xff]   ;;  %v6714_v49 = vld [vmem:[#allocation2 + $0x1bc] ss:$20 sps:$4 sm:$0xff]   ;;  %v6718_v52 = vld [vmem:[#allocation2 + $0x1b8] ss:$20 sps:$4 sm:$0xff]  }
  0x50   :  { %v7666_v48 = vld [vmem:[%s9248_s0 + $0x4] ss:$16 sps:$4 sm:$0xff]   ;;  %v7671_v50 = vld [vmem:[%s9248_s0 + $0xc] ss:$16 sps:$4 sm:$0xff]   ;;  %v7678_v4 = vld [vmem:[%s9248_s0] ss:$16 sps:$4 sm:$0xff]  }
  0x51   :  { %1227 = vmatpush1.bf16.msra.mxu0 %v6670_v18  ;;  %v6716_v51 = vld [vmem:[#allocation2 + $0x43c] ss:$20 sps:$4 sm:$0xff]   ;;  %1250 = vmatprep.mubr.bf16.mxu0 %v7666_v48  ;;  %v6719_v53 = vld [vmem:[#allocation2 + $0x438] ss:$20 sps:$4 sm:$0xff]   ;;  %v6720_v54 = vld [vmem:[#allocation2 + $0x194] ss:$20 sps:$4 sm:$0xff]  }
  0x52   :  { %1280 = vmatpush1.bf16.msra.mxu1 %v6671_v19  ;;  %1228 = vmatprep.subr.bf16.mxu0 %v6672_v20  ;;  %v6722_v55 = vld [vmem:[#allocation2 + $0x414] ss:$20 sps:$4 sm:$0xff]   ;;  %v6724_v56 = vld [vmem:[#allocation2 + $0x190] ss:$20 sps:$4 sm:$0xff]   ;;  %v6726_v58 = vld [vmem:[#allocation2 + $0x16c] ss:$20 sps:$4 sm:$0xff]  }
  0x53   :  { %1281 = vmatprep.subr.bf16.mxu1 %v6674_v21  ;;  %1303 = vmatprep.mubr.bf16.mxu1 %v7671_v50  ;;  %v6725_v57 = vld [vmem:[#allocation2 + $0x410] ss:$20 sps:$4 sm:$0xff]   ;;  %v6728_v59 = vld [vmem:[#allocation2 + $0x3ec] ss:$20 sps:$4 sm:$0xff]   ;;  %v6730_v60 = vld [vmem:[#allocation2 + $0x168] ss:$20 sps:$4 sm:$0xff]  }
  0x54   :  { %v6731_v61 = vld [vmem:[#allocation2 + $0x3e8] ss:$20 sps:$4 sm:$0xff]   ;;  %v6732_v62 = vld [vmem:[#allocation2 + $0x144] ss:$20 sps:$4 sm:$0xff]   ;;  %v6736_v0 = vld [vmem:[#allocation2 + $0x140] ss:$20 sps:$4 sm:$0xff]  }
  0x55   :  { %1229 = vmatpush1.bf16.msra.mxu0 %v6676_v22  ;;  %v6734_v63 = vld [vmem:[#allocation2 + $0x3c4] ss:$20 sps:$4 sm:$0xff]   ;;  %v6737_v1 = vld [vmem:[#allocation2 + $0x3c0] ss:$20 sps:$4 sm:$0xff]   ;;  %v6752_v8 = vld [vmem:[#allocation2 + $0xfc] ss:$20 sps:$4 sm:$0xff]  }
  0x56   :  { %1282 = vmatpush1.bf16.msra.mxu1 %v6677_v23  ;;  %1230 = vmatprep.subr.bf16.mxu0 %v6678_v24  ;;  %v6746_v2 = vld [vmem:[#allocation2 + $0x124] ss:$20 sps:$4 sm:$0xff]   ;;  %v6744_v6 = vld [vmem:[#allocation2 + $0x120] ss:$20 sps:$4 sm:$0xff]   ;;  %v6755_v9 = vld [vmem:[#allocation2 + $0x37c] ss:$20 sps:$4 sm:$0xff]  }
  0x57   :  { %1283 = vmatprep.subr.bf16.mxu1 %v6680_v25  ;;  %v6749_v3 = vld [vmem:[#allocation2 + $0x3a4] ss:$20 sps:$4 sm:$0xff]   ;;  %v6747_v7 = vld [vmem:[#allocation2 + $0x3a0] ss:$20 sps:$4 sm:$0xff]   ;;  %v6762_v18 = vld [vmem:[#allocation2 + $0xa8] ss:$20 sps:$4 sm:$0xff]  }
  0x58   :  { %v7683_v5 = vld [vmem:[%s9248_s0 + $0x8] ss:$16 sps:$4 sm:$0xff]   ;;  %v6756_v14 = vld [vmem:[#allocation2 + $0xd0] ss:$20 sps:$4 sm:$0xff]   ;;  %v6764_v16 = vld [vmem:[#allocation2 + $0xac] ss:$20 sps:$4 sm:$0xff]  }
  0x59   :  { %1231 = vmatpush1.bf16.msra.mxu0 %v6682_v26  ;;  %v6750_v10 = vld [vmem:[#allocation2 + $0xf8] ss:$20 sps:$4 sm:$0xff]   ;;  %v6758_v12 = vld [vmem:[#allocation2 + $0xd4] ss:$20 sps:$4 sm:$0xff]   ;;  %v6759_v15 = vld [vmem:[#allocation2 + $0x350] ss:$20 sps:$4 sm:$0xff]  }
  0x5a   :  { %1284 = vmatpush1.bf16.msra.mxu1 %v6683_v27  ;;  %1232 = vmatprep.subr.bf16.mxu0 %v6684_v28  ;;  %v6753_v11 = vld [vmem:[#allocation2 + $0x378] ss:$20 sps:$4 sm:$0xff]   ;;  %v6761_v13 = vld [vmem:[#allocation2 + $0x354] ss:$20 sps:$4 sm:$0xff]   ;;  %v7695_v21 = vld [vmem:[%s9248_s0 + $0x20] ss:$16 sps:$4 sm:$0xff]  }
  0x5b   :  { %1285 = vmatprep.subr.bf16.mxu1 %v6686_v29  ;;  %v6767_v17 = vld [vmem:[#allocation2 + $0x32c] ss:$20 sps:$4 sm:$0xff]   ;;  %v6765_v19 = vld [vmem:[#allocation2 + $0x328] ss:$20 sps:$4 sm:$0xff]   ;;  %v7690_v20 = vld [vmem:[%s9248_s0 + $0x24] ss:$16 sps:$4 sm:$0xff]  }
  0x5c   :  { %v6770_v22 = vld [vmem:[#allocation2 + $0x84] ss:$20 sps:$4 sm:$0xff]   ;;  %v6768_v24 = vld [vmem:[#allocation2 + $0x80] ss:$20 sps:$4 sm:$0xff]   ;;  %v7702_v26 = vld [vmem:[%s9248_s0 + $0x2c] ss:$16 sps:$4 sm:$0xff]  }
  0x5d   :  { %1233 = vmatpush1.bf16.msra.mxu0 %v6688_v30  ;;  %v6773_v23 = vld [vmem:[#allocation2 + $0x304] ss:$20 sps:$4 sm:$0xff]   ;;  %v6771_v25 = vld [vmem:[#allocation2 + $0x300] ss:$20 sps:$4 sm:$0xff]   ;;  %v6776_v28 = vld [vmem:[#allocation2 + $0x5c] ss:$20 sps:$4 sm:$0xff]  }
  0x5e   :  { %1286 = vmatpush1.bf16.msra.mxu1 %v6689_v31  ;;  %1234 = vmatprep.subr.bf16.mxu0 %v6690_v32  ;;  %v7707_v27 = vld [vmem:[%s9248_s0 + $0x28] ss:$16 sps:$4 sm:$0xff]   ;;  %v6779_v29 = vld [vmem:[#allocation2 + $0x2dc] ss:$20 sps:$4 sm:$0xff]  }
  0x5f   :  { %1287 = vmatprep.subr.bf16.mxu1 %v6692_v33  ;;  %v6774_v30 = vld [vmem:[#allocation2 + $0x58] ss:$20 sps:$4 sm:$0xff]   ;;  %v6782_v32 = vld [vmem:[#allocation2 + $0x34] ss:$20 sps:$4 sm:$0xff]  }
  0x60   :  { %v6777_v31 = vld [vmem:[#allocation2 + $0x2d8] ss:$20 sps:$4 sm:$0xff]   ;;  %v6785_v33 = vld [vmem:[#allocation2 + $0x2b4] ss:$20 sps:$4 sm:$0xff]  }
  0x61   :  { %1235 = vmatpush2.bf16.msra.mxu0 %v6694_v34  ;;  %v6780_v34 = vld [vmem:[#allocation2 + $0x30] ss:$20 sps:$4 sm:$0xff]  }
  0x62   :  { %1288 = vmatpush2.bf16.msra.mxu1 %v6695_v35  ;;  %1236 = vmatprep.subr.bf16.mxu0 %v6696_v36  ;;  %v6783_v35 = vld [vmem:[#allocation2 + $0x2b0] ss:$20 sps:$4 sm:$0xff]   ;;  %v6788_v36 = vld [vmem:[#allocation2 + $0xc] ss:$20 sps:$4 sm:$0xff]  }
  0x63   :  { %1289 = vmatprep.subr.bf16.mxu1 %v6698_v37  ;;  %v6791_v37 = vld [vmem:[#allocation2 + $0x28c] ss:$20 sps:$4 sm:$0xff]  }
  0x65   :  { %1237 = vmatpush2.bf16.msra.mxu0 %v6700_v38  ;;  %v6786_v38 = vld [vmem:[#allocation2 + $0x8] ss:$20 sps:$4 sm:$0xff]  }
  0x66   :  { %1290 = vmatpush2.bf16.msra.mxu1 %v6701_v39  ;;  %1238 = vmatprep.subr.bf16.mxu0 %v6702_v40  ;;  %v6789_v39 = vld [vmem:[#allocation2 + $0x288] ss:$20 sps:$4 sm:$0xff]   ;;  %v6794_v40 = vld [vmem:[#allocation2 + $0x264] ss:$20 sps:$4 sm:$0xff]  }
  0x67   :  { %1291 = vmatprep.subr.bf16.mxu1 %v6704_v41  ;;  %v6797_v41 = vld [vmem:[#allocation2 + $0x4e4] ss:$20 sps:$4 sm:$0xff]  }
  0x69   :  { %1239 = vmatpush2.bf16.msra.mxu0 %v6706_v42  ;;  %v6792_v42 = vld [vmem:[#allocation2 + $0x260] ss:$20 sps:$4 sm:$0xff]  }
  0x6a   :  { %1292 = vmatpush2.bf16.msra.mxu1 %v6707_v43  ;;  %1240 = vmatprep.subr.bf16.mxu0 %v6708_v44  ;;  %v6795_v43 = vld [vmem:[#allocation2 + $0x4e0] ss:$20 sps:$4 sm:$0xff]   ;;  %v6800_v44 = vld [vmem:[#allocation2 + $0x23c] ss:$20 sps:$4 sm:$0xff]  }
  0x6b   :  { %1293 = vmatprep.subr.bf16.mxu1 %v6710_v45  ;;  %v6803_v45 = vld [vmem:[#allocation2 + $0x4bc] ss:$20 sps:$4 sm:$0xff]  }
  0x6d   :  { %1241 = vmatpush2.bf16.msra.mxu0 %v6712_v46  ;;  %v6798_v46 = vld [vmem:[#allocation2 + $0x238] ss:$20 sps:$4 sm:$0xff]  }
  0x6e   :  { %1294 = vmatpush2.bf16.msra.mxu1 %v6713_v47  ;;  %1242 = vmatprep.subr.bf16.mxu0 %v6714_v49  ;;  %v6801_v47 = vld [vmem:[#allocation2 + $0x4b8] ss:$20 sps:$4 sm:$0xff]   ;;  %v6806_v49 = vld [vmem:[#allocation2 + $0x214] ss:$20 sps:$4 sm:$0xff]  }
  0x6f   :  { %1295 = vmatprep.subr.bf16.mxu1 %v6716_v51  ;;  %v6809_v51 = vld [vmem:[#allocation2 + $0x494] ss:$20 sps:$4 sm:$0xff]  }
  0x71   :  { %1243 = vmatpush2.bf16.msra.mxu0 %v6718_v52  ;;  %v6804_v52 = vld [vmem:[#allocation2 + $0x210] ss:$20 sps:$4 sm:$0xff]  }
  0x72   :  { %1296 = vmatpush2.bf16.msra.mxu1 %v6719_v53  ;;  %1244 = vmatprep.subr.bf16.mxu0 %v6720_v54  ;;  %v6807_v53 = vld [vmem:[#allocation2 + $0x490] ss:$20 sps:$4 sm:$0xff]   ;;  %v6815_v54 = vld [vmem:[#allocation2 + $0x1ec] ss:$20 sps:$4 sm:$0xff]  }
  0x73   :  { %1297 = vmatprep.subr.bf16.mxu1 %v6722_v55  ;;  %v6818_v55 = vld [vmem:[#allocation2 + $0x46c] ss:$20 sps:$4 sm:$0xff]  }
  0x75   :  { %1245 = vmatpush2.bf16.msra.mxu0 %v6724_v56  ;;  %v6813_v56 = vld [vmem:[#allocation2 + $0x1e8] ss:$20 sps:$4 sm:$0xff]  }
  0x76   :  { %1298 = vmatpush2.bf16.msra.mxu1 %v6725_v57  ;;  %1246 = vmatprep.subr.bf16.mxu0 %v6726_v58  ;;  %v6816_v57 = vld [vmem:[#allocation2 + $0x468] ss:$20 sps:$4 sm:$0xff]   ;;  %v6824_v58 = vld [vmem:[#allocation2 + $0x1c4] ss:$20 sps:$4 sm:$0xff]  }
  0x77   :  { %1299 = vmatprep.subr.bf16.mxu1 %v6728_v59  ;;  %v6827_v59 = vld [vmem:[#allocation2 + $0x444] ss:$20 sps:$4 sm:$0xff]  }
  0x79   :  { %1247 = vmatpush2.bf16.msra.mxu0 %v6730_v60  ;;  %v6822_v60 = vld [vmem:[#allocation2 + $0x1c0] ss:$20 sps:$4 sm:$0xff]  }
  0x7a   :  { %1300 = vmatpush2.bf16.msra.mxu1 %v6731_v61  ;;  %1248 = vmatprep.subr.bf16.mxu0 %v6732_v62  ;;  %v6825_v61 = vld [vmem:[#allocation2 + $0x440] ss:$20 sps:$4 sm:$0xff]   ;;  %v6830_v62 = vld [vmem:[#allocation2 + $0x19c] ss:$20 sps:$4 sm:$0xff]  }
  0x7b   :  { %1301 = vmatprep.subr.bf16.mxu1 %v6734_v63  ;;  %v6833_v63 = vld [vmem:[#allocation2 + $0x41c] ss:$20 sps:$4 sm:$0xff]  }
  0x7d   :  { %1249 = vmatpush2.bf16.msra.mxu0 %v6736_v0  ;;  %v6828_v0 = vld [vmem:[#allocation2 + $0x198] ss:$20 sps:$4 sm:$0xff]  }
  0x7e   :  { %1302 = vmatpush2.bf16.msra.mxu1 %v6737_v1  ;;  %1324 = vmatprep.subr.bf16.mxu0 %v6746_v2  ;;  %v6831_v1 = vld [vmem:[#allocation2 + $0x418] ss:$20 sps:$4 sm:$0xff]   ;;  %v6836_v2 = vld [vmem:[#allocation2 + $0x174] ss:$20 sps:$4 sm:$0xff]  }
  0x7f   :  { %1377 = vmatprep.subr.bf16.mxu1 %v6749_v3  ;;  %v6839_v3 = vld [vmem:[#allocation2 + $0x3f4] ss:$20 sps:$4 sm:$0xff]  }
  0x80   :  { %1251 = vmatmul.mubr.bf16.vlgmr.msra.gmra.mxu0 %v7678_v4 }
  0x81   :  { %1304 = vmatmul.mubr.bf16.vlgmr.msra.gmra.mxu1 %v7683_v5  ;;  %1325 = vmatpush1.bf16.msra.mxu0 %v6744_v6  ;;  %v6834_v6 = vld [vmem:[#allocation2 + $0x170] ss:$20 sps:$4 sm:$0xff]  }
  0x82   :  { %1378 = vmatpush1.bf16.msra.mxu1 %v6747_v7  ;;  %1326 = vmatprep.subr.bf16.mxu0 %v6752_v8  ;;  %v6837_v7 = vld [vmem:[#allocation2 + $0x3f0] ss:$20 sps:$4 sm:$0xff]   ;;  %v6842_v8 = vld [vmem:[#allocation2 + $0x14c] ss:$20 sps:$4 sm:$0xff]  }
  0x83   :  { %1379 = vmatprep.subr.bf16.mxu1 %v6755_v9  ;;  %1260 = vmatprep.mubr.bf16.mxu0 %v7690_v20  ;;  %v6845_v9 = vld [vmem:[#allocation2 + $0x3cc] ss:$20 sps:$4 sm:$0xff]  }
  0x84   :  { %1313 = vmatprep.mubr.bf16.mxu1 %v7702_v26 }
  0x85   :  { %1327 = vmatpush1.bf16.msra.mxu0 %v6750_v10  ;;  %v6840_v10 = vld [vmem:[#allocation2 + $0x148] ss:$20 sps:$4 sm:$0xff]  }
  0x86   :  { %1380 = vmatpush1.bf16.msra.mxu1 %v6753_v11  ;;  %1328 = vmatprep.subr.bf16.mxu0 %v6758_v12  ;;  %v6843_v11 = vld [vmem:[#allocation2 + $0x3c8] ss:$20 sps:$4 sm:$0xff]  }
  0x87   :  { %1381 = vmatprep.subr.bf16.mxu1 %v6761_v13  ;;  %v6846_v12 = vld [vmem:[#allocation2 + $0x268] ss:$20 sps:$4 sm:$0xff]  }
  0x88   :  { %1261 = vmatmul.mubr.bf16.gmra.mxu0 %v7695_v21  ;;  %v6847_v13 = vld [vmem:[#allocation2 + $0x4e8] ss:$20 sps:$4 sm:$0xff]  }
  0x89   :  { %1329 = vmatpush1.bf16.msra.mxu0 %v6756_v14  ;;  %1356 = vmatprep.mubr.bf16.mxu0 %v7666_v48  ;;  %v6848_v14 = vld [vmem:[#allocation2 + $0x128] ss:$20 sps:$4 sm:$0xff]  }
  0x8a   :  { %1382 = vmatpush1.bf16.msra.mxu1 %v6759_v15  ;;  %1330 = vmatprep.subr.bf16.mxu0 %v6764_v16  ;;  %v6849_v15 = vld [vmem:[#allocation2 + $0x3a8] ss:$20 sps:$4 sm:$0xff]   ;;  %v6850_v16 = vld [vmem:[#allocation2 + $0x240] ss:$20 sps:$4 sm:$0xff]  }
  0x8b   :  { %1383 = vmatprep.subr.bf16.mxu1 %v6767_v17  ;;  %1314 = vmatmul.mubr.bf16.gmra.mxu1 %v7707_v27  ;;  %v6851_v17 = vld [vmem:[#allocation2 + $0x4c0] ss:$20 sps:$4 sm:$0xff]  }
  0x8c   :  { %1409 = vmatprep.mubr.bf16.mxu1 %v7671_v50 }
  0x8d   :  { %1331 = vmatpush1.bf16.msra.mxu0 %v6762_v18  ;;  %v6852_v18 = vld [vmem:[#allocation2 + $0x100] ss:$20 sps:$4 sm:$0xff]  }
  0x8e   :  { %1384 = vmatpush1.bf16.msra.mxu1 %v6765_v19  ;;  %1332 = vmatprep.subr.bf16.mxu0 %v6770_v22  ;;  %v6853_v19 = vld [vmem:[#allocation2 + $0x380] ss:$20 sps:$4 sm:$0xff]   ;;  %v6854_v22 = vld [vmem:[#allocation2 + $0x218] ss:$20 sps:$4 sm:$0xff]  }
  0x8f   :  { %1385 = vmatprep.subr.bf16.mxu1 %v6773_v23  ;;  %v6855_v23 = vld [vmem:[#allocation2 + $0x498] ss:$20 sps:$4 sm:$0xff]  }
  0x91   :  { %1333 = vmatpush1.bf16.msra.mxu0 %v6768_v24  ;;  %v6856_v24 = vld [vmem:[#allocation2 + $0xd8] ss:$20 sps:$4 sm:$0xff]  }
  0x92   :  { %1386 = vmatpush1.bf16.msra.mxu1 %v6771_v25  ;;  %1334 = vmatprep.subr.bf16.mxu0 %v6776_v28  ;;  %v6857_v25 = vld [vmem:[#allocation2 + $0x358] ss:$20 sps:$4 sm:$0xff]   ;;  %v6858_v28 = vld [vmem:[#allocation2 + $0x1f0] ss:$20 sps:$4 sm:$0xff]  }
  0x93   :  { %1387 = vmatprep.subr.bf16.mxu1 %v6779_v29  ;;  %v6859_v29 = vld [vmem:[#allocation2 + $0x470] ss:$20 sps:$4 sm:$0xff]  }
  0x95   :  { %1335 = vmatpush1.bf16.msra.mxu0 %v6774_v30  ;;  %v6860_v30 = vld [vmem:[#allocation2 + $0xb0] ss:$20 sps:$4 sm:$0xff]  }
  0x96   :  { %1388 = vmatpush1.bf16.msra.mxu1 %v6777_v31  ;;  %1336 = vmatprep.subr.bf16.mxu0 %v6782_v32  ;;  %v6861_v31 = vld [vmem:[#allocation2 + $0x330] ss:$20 sps:$4 sm:$0xff]   ;;  %v6862_v32 = vld [vmem:[#allocation2 + $0x1c8] ss:$20 sps:$4 sm:$0xff]  }
  0x97   :  { %1389 = vmatprep.subr.bf16.mxu1 %v6785_v33  ;;  %v6863_v33 = vld [vmem:[#allocation2 + $0x448] ss:$20 sps:$4 sm:$0xff]  }
  0x99   :  { %1337 = vmatpush1.bf16.msra.mxu0 %v6780_v34  ;;  %v6864_v34 = vld [vmem:[#allocation2 + $0x88] ss:$20 sps:$4 sm:$0xff]  }
  0x9a   :  { %1390 = vmatpush1.bf16.msra.mxu1 %v6783_v35  ;;  %1338 = vmatprep.subr.bf16.mxu0 %v6788_v36  ;;  %v6865_v35 = vld [vmem:[#allocation2 + $0x308] ss:$20 sps:$4 sm:$0xff]   ;;  %v6866_v36 = vld [vmem:[#allocation2 + $0x1a0] ss:$20 sps:$4 sm:$0xff]  }
  0x9b   :  { %1391 = vmatprep.subr.bf16.mxu1 %v6791_v37  ;;  %v6867_v37 = vld [vmem:[#allocation2 + $0x420] ss:$20 sps:$4 sm:$0xff]  }
  0x9d   :  { %1339 = vmatpush1.bf16.msra.mxu0 %v6786_v38  ;;  %v6868_v38 = vld [vmem:[#allocation2 + $0x60] ss:$20 sps:$4 sm:$0xff]  }
  0x9e   :  { %1392 = vmatpush1.bf16.msra.mxu1 %v6789_v39  ;;  %1340 = vmatprep.subr.bf16.mxu0 %v6794_v40  ;;  %v6869_v39 = vld [vmem:[#allocation2 + $0x2e0] ss:$20 sps:$4 sm:$0xff]   ;;  %v6870_v40 = vld [vmem:[#allocation2 + $0x178] ss:$20 sps:$4 sm:$0xff]  }
  0x9f   :  { %1393 = vmatprep.subr.bf16.mxu1 %v6797_v41  ;;  %v6871_v41 = vld [vmem:[#allocation2 + $0x3f8] ss:$20 sps:$4 sm:$0xff]  }
  0xa1   :  { %1341 = vmatpush2.bf16.msra.mxu0 %v6792_v42  ;;  %v6872_v42 = vld [vmem:[#allocation2 + $0x38] ss:$20 sps:$4 sm:$0xff]  }
  0xa2   :  { %1394 = vmatpush2.bf16.msra.mxu1 %v6795_v43  ;;  %1342 = vmatprep.subr.bf16.mxu0 %v6800_v44  ;;  %v6875_v43 = vld [vmem:[#allocation2 + $0x3d0] ss:$20 sps:$4 sm:$0xff]  }
  0xa3   :  { %1395 = vmatprep.subr.bf16.mxu1 %v6803_v45  ;;  %v6876_v44 = vld [vmem:[#allocation2 + $0x10] ss:$20 sps:$4 sm:$0xff]  }
  0xa4   :  { %v6877_v45 = vld [vmem:[#allocation2 + $0x290] ss:$20 sps:$4 sm:$0xff]  }
  0xa5   :  { %1343 = vmatpush2.bf16.msra.mxu0 %v6798_v46  ;;  %v6880_v46 = vld [vmem:[%s9252_s4 + $0x11c] ss:$20 sps:$4 sm:$0xff]  }
  0xa6   :  { %1396 = vmatpush2.bf16.msra.mxu1 %v6801_v47  ;;  %1344 = vmatprep.subr.bf16.mxu0 %v6806_v49  ;;  %v6928_v47 = vld [vmem:[%s9252_s4 + $0x39c] ss:$20 sps:$4 sm:$0xff]   ;;  %v6878_v49 = vld [vmem:[%s9252_s4 + $0x118] ss:$20 sps:$4 sm:$0xff]  }
  0xa7   :  { %1397 = vmatprep.subr.bf16.mxu1 %v6809_v51  ;;  %v6883_v51 = vld [vmem:[%s9252_s4 + $0xf4] ss:$20 sps:$4 sm:$0xff]  }
  0xa9   :  { %1345 = vmatpush2.bf16.msra.mxu0 %v6804_v52  ;;  %v6926_v52 = vld [vmem:[%s9252_s4 + $0x398] ss:$20 sps:$4 sm:$0xff]  }
  0xaa   :  { %1398 = vmatpush2.bf16.msra.mxu1 %v6807_v53  ;;  %1346 = vmatprep.subr.bf16.mxu0 %v6815_v54  ;;  %v6931_v53 = vld [vmem:[%s9252_s4 + $0x374] ss:$20 sps:$4 sm:$0xff]   ;;  %v6881_v54 = vld [vmem:[%s9252_s4 + $0xf0] ss:$20 sps:$4 sm:$0xff]  }
  0xab   :  { %1399 = vmatprep.subr.bf16.mxu1 %v6818_v55  ;;  %v6929_v55 = vld [vmem:[%s9252_s4 + $0x370] ss:$20 sps:$4 sm:$0xff]  }
  0xad   :  { %1347 = vmatpush2.bf16.msra.mxu0 %v6813_v56  ;;  %v6886_v56 = vld [vmem:[%s9252_s4 + $0xcc] ss:$20 sps:$4 sm:$0xff]  }
  0xae   :  { %1400 = vmatpush2.bf16.msra.mxu1 %v6816_v57  ;;  %1348 = vmatprep.subr.bf16.mxu0 %v6824_v58  ;;  %v6937_v57 = vld [vmem:[%s9252_s4 + $0x324] ss:$20 sps:$4 sm:$0xff]   ;;  %v6887_v58 = vld [vmem:[%s9252_s4 + $0xa0] ss:$20 sps:$4 sm:$0xff]  }
  0xaf   :  { %1401 = vmatprep.subr.bf16.mxu1 %v6827_v59  ;;  %v6935_v59 = vld [vmem:[%s9252_s4 + $0x320] ss:$20 sps:$4 sm:$0xff]  }
  0xb1   :  { %1349 = vmatpush2.bf16.msra.mxu0 %v6822_v60  ;;  %v6892_v60 = vld [vmem:[%s9252_s4 + $0x7c] ss:$20 sps:$4 sm:$0xff]  }
  0xb2   :  { %1402 = vmatpush2.bf16.msra.mxu1 %v6825_v61  ;;  %1350 = vmatprep.subr.bf16.mxu0 %v6830_v62  ;;  %v6940_v61 = vld [vmem:[%s9252_s4 + $0x2fc] ss:$20 sps:$4 sm:$0xff]   ;;  %v6895_v62 = vld [vmem:[%s9252_s4 + $0x54] ss:$20 sps:$4 sm:$0xff]  }
  0xb3   :  { %1403 = vmatprep.subr.bf16.mxu1 %v6833_v63  ;;  %v6943_v63 = vld [vmem:[%s9252_s4 + $0x2d4] ss:$20 sps:$4 sm:$0xff]  }
  0xb5   :  { %1351 = vmatpush2.bf16.msra.mxu0 %v6828_v0  ;;  %v6893_v0 = vld [vmem:[%s9252_s4 + $0x50] ss:$20 sps:$4 sm:$0xff]  }
  0xb6   :  { %1404 = vmatpush2.bf16.msra.mxu1 %v6831_v1  ;;  %1352 = vmatprep.subr.bf16.mxu0 %v6836_v2  ;;  %v6941_v1 = vld [vmem:[%s9252_s4 + $0x2d0] ss:$20 sps:$4 sm:$0xff]   ;;  %v6898_v2 = vld [vmem:[%s9252_s4 + $0x2c] ss:$20 sps:$4 sm:$0xff]  }
  0xb7   :  { %1405 = vmatprep.subr.bf16.mxu1 %v6839_v3  ;;  %v6946_v3 = vld [vmem:[%s9252_s4 + $0x2ac] ss:$20 sps:$4 sm:$0xff]  }
  0xb9   :  { %1353 = vmatpush2.bf16.msra.mxu0 %v6834_v6  ;;  %v6896_v6 = vld [vmem:[%s9252_s4 + $0x28] ss:$20 sps:$4 sm:$0xff]  }
  0xba   :  { %1406 = vmatpush2.bf16.msra.mxu1 %v6837_v7  ;;  %1354 = vmatprep.subr.bf16.mxu0 %v6842_v8  ;;  %v6944_v7 = vld [vmem:[%s9252_s4 + $0x2a8] ss:$20 sps:$4 sm:$0xff]   ;;  %v6901_v8 = vld [vmem:[%s9252_s4 + $0x4] ss:$20 sps:$4 sm:$0xff]  }
  0xbb   :  { %1407 = vmatprep.subr.bf16.mxu1 %v6845_v9  ;;  %v6949_v9 = vld [vmem:[%s9252_s4 + $0x284] ss:$20 sps:$4 sm:$0xff]  }
  0xbd   :  { %1355 = vmatpush2.bf16.msra.mxu0 %v6840_v10  ;;  %v6899_v10 = vld [vmem:[%s9252_s4] ss:$20 sps:$4 sm:$0xff]  }
  0xbe   :  { %1408 = vmatpush2.bf16.msra.mxu1 %v6843_v11  ;;  %6319 = vmatprep.subr.bf16.mxu0 %v6846_v12  ;;  %v6947_v11 = vld [vmem:[%s9252_s4 + $0x280] ss:$20 sps:$4 sm:$0xff]   ;;  %v6904_v12 = vld [vmem:[%s9252_s4 + $0x25c] ss:$20 sps:$4 sm:$0xff]  }
  0xbf   :  { %6347 = vmatprep.subr.bf16.mxu1 %v6847_v13  ;;  %v6952_v13 = vld [vmem:[%s9252_s4 + $0x4dc] ss:$20 sps:$4 sm:$0xff]  }
  0xc0   :  { %1357 = vmatmul.mubr.bf16.vlgmr.msra.gmra.mxu0 %v7678_v4 }
  0xc1   :  { %1410 = vmatmul.mubr.bf16.vlgmr.msra.gmra.mxu1 %v7683_v5  ;;  %6320 = vmatpush3.bf16.msra.mxu0 %v6848_v14  ;;  %v6902_v14 = vld [vmem:[%s9252_s4 + $0x258] ss:$20 sps:$4 sm:$0xff]  }
  0xc2   :  { %6348 = vmatpush3.bf16.msra.mxu1 %v6849_v15  ;;  %6321 = vmatprep.subr.bf16.mxu0 %v6850_v16  ;;  %v6950_v15 = vld [vmem:[%s9252_s4 + $0x4d8] ss:$20 sps:$4 sm:$0xff]   ;;  %v6907_v16 = vld [vmem:[%s9252_s4 + $0x234] ss:$20 sps:$4 sm:$0xff]  }
  0xc3   :  { %6349 = vmatprep.subr.bf16.mxu1 %v6851_v17  ;;  %1366 = vmatprep.mubr.bf16.mxu0 %v7690_v20  ;;  %v6955_v17 = vld [vmem:[%s9252_s4 + $0x4b4] ss:$20 sps:$4 sm:$0xff]  }
  0xc4   :  { %1419 = vmatprep.mubr.bf16.mxu1 %v7702_v26 }
  0xc5   :  { %6322 = vmatpush3.bf16.msra.mxu0 %v6852_v18  ;;  %v6905_v18 = vld [vmem:[%s9252_s4 + $0x230] ss:$20 sps:$4 sm:$0xff]  }
  0xc6   :  { %6350 = vmatpush3.bf16.msra.mxu1 %v6853_v19  ;;  %6323 = vmatprep.subr.bf16.mxu0 %v6854_v22  ;;  %v6910_v19 = vld [vmem:[%s9252_s4 + $0x20c] ss:$20 sps:$4 sm:$0xff]   ;;  %v6953_v22 = vld [vmem:[%s9252_s4 + $0x4b0] ss:$20 sps:$4 sm:$0xff]  }
  0xc7   :  { %6351 = vmatprep.subr.bf16.mxu1 %v6855_v23  ;;  %v6958_v23 = vld [vmem:[%s9252_s4 + $0x48c] ss:$20 sps:$4 sm:$0xff]  }
  0xc8   :  { %1367 = vmatmul.mubr.bf16.gmra.mxu0 %v7695_v21 }
  0xc9   :  { %1420 = vmatmul.mubr.bf16.gmra.mxu1 %v7707_v27  ;;  %6324 = vmatpush3.bf16.msra.mxu0 %v6856_v24  ;;  %v6908_v24 = vld [vmem:[%s9252_s4 + $0x208] ss:$20 sps:$4 sm:$0xff]  }
  0xca   :  { %6352 = vmatpush3.bf16.msra.mxu1 %v6857_v25  ;;  %6325 = vmatprep.subr.bf16.mxu0 %v6858_v28  ;;  %v6913_v25 = vld [vmem:[%s9252_s4 + $0x1e4] ss:$20 sps:$4 sm:$0xff]   ;;  %v6956_v28 = vld [vmem:[%s9252_s4 + $0x488] ss:$20 sps:$4 sm:$0xff]  }
  0xcb   :  { %6353 = vmatprep.subr.bf16.mxu1 %v6859_v29  ;;  %1462 = vmatprep.mubr.bf16.mxu0 %v7666_v48  ;;  %v6873_v48 = vld [vmem:[#allocation2 + $0x2b8] ss:$20 sps:$4 sm:$0xff]  }
  0xcc   :  { %1511 = vmatprep.mubr.bf16.mxu1 %v7671_v50  ;;  %v6874_v50 = vld [vmem:[#allocation2 + $0x150] ss:$20 sps:$4 sm:$0xff]  }
  0xcd   :  { %6326 = vmatpush3.bf16.msra.mxu0 %v6860_v30  ;;  %v6961_v29 = vld [vmem:[%s9252_s4 + $0x464] ss:$20 sps:$4 sm:$0xff]   ;;  %v6911_v30 = vld [vmem:[%s9252_s4 + $0x1e0] ss:$20 sps:$4 sm:$0xff]  }
  0xce   :  { %6354 = vmatpush3.bf16.msra.mxu1 %v6861_v31  ;;  %6327 = vmatprep.subr.bf16.mxu0 %v6862_v32  ;;  %v6916_v31 = vld [vmem:[%s9252_s4 + $0x1bc] ss:$20 sps:$4 sm:$0xff]   ;;  %v6959_v32 = vld [vmem:[%s9252_s4 + $0x460] ss:$20 sps:$4 sm:$0xff]  }
  0xcf   :  { %6355 = vmatprep.subr.bf16.mxu1 %v6863_v33  ;;  %v6964_v33 = vld [vmem:[%s9252_s4 + $0x43c] ss:$20 sps:$4 sm:$0xff]  }
  0xd1   :  { %6328 = vmatpush3.bf16.msra.mxu0 %v6864_v34  ;;  %v6914_v34 = vld [vmem:[%s9252_s4 + $0x1b8] ss:$20 sps:$4 sm:$0xff]  }
  0xd2   :  { %6356 = vmatpush3.bf16.msra.mxu1 %v6865_v35  ;;  %6329 = vmatprep.subr.bf16.mxu0 %v6866_v36  ;;  %v6919_v35 = vld [vmem:[%s9252_s4 + $0x194] ss:$20 sps:$4 sm:$0xff]   ;;  %v6962_v36 = vld [vmem:[%s9252_s4 + $0x438] ss:$20 sps:$4 sm:$0xff]  }
  0xd3   :  { %6357 = vmatprep.subr.bf16.mxu1 %v6867_v37  ;;  %v6967_v37 = vld [vmem:[%s9252_s4 + $0x414] ss:$20 sps:$4 sm:$0xff]  }
  0xd5   :  { %6330 = vmatpush3.bf16.msra.mxu0 %v6868_v38  ;;  %v6917_v38 = vld [vmem:[%s9252_s4 + $0x190] ss:$20 sps:$4 sm:$0xff]  }
  0xd6   :  { %6358 = vmatpush3.bf16.msra.mxu1 %v6869_v39  ;;  %6331 = vmatprep.subr.bf16.mxu0 %v6870_v40  ;;  %v6965_v39 = vld [vmem:[%s9252_s4 + $0x410] ss:$20 sps:$4 sm:$0xff]   ;;  %v6922_v40 = vld [vmem:[%s9252_s4 + $0x16c] ss:$20 sps:$4 sm:$0xff]  }
  0xd7   :  { %6359 = vmatprep.subr.bf16.mxu1 %v6871_v41  ;;  %v6970_v41 = vld [vmem:[%s9252_s4 + $0x3ec] ss:$20 sps:$4 sm:$0xff]  }
  0xd9   :  { %6332 = vmatpush3.bf16.msra.mxu0 %v6872_v42  ;;  %v6920_v42 = vld [vmem:[%s9252_s4 + $0x168] ss:$20 sps:$4 sm:$0xff]  }
  0xda   :  { %6360 = vmatpush3.bf16.msra.mxu1 %v6873_v48  ;;  %6333 = vmatprep.subr.bf16.mxu0 %v6874_v50  ;;  %v6968_v48 = vld [vmem:[%s9252_s4 + $0x3e8] ss:$20 sps:$4 sm:$0xff]   ;;  %v6925_v50 = vld [vmem:[%s9252_s4 + $0x144] ss:$20 sps:$4 sm:$0xff]  }
  0xdb   :  { %6361 = vmatprep.subr.bf16.mxu1 %v6875_v43  ;;  %v6973_v43 = vld [vmem:[%s9252_s4 + $0x3c4] ss:$20 sps:$4 sm:$0xff]  }
  0xdd   :  { %6334 = vmatpush3.bf16.msra.mxu0 %v6876_v44  ;;  %v6923_v44 = vld [vmem:[%s9252_s4 + $0x140] ss:$20 sps:$4 sm:$0xff]  }
  0xde   :  { %6362 = vmatpush3.bf16.msra.mxu1 %v6877_v45  ;;  %2888 = vmatprep.subr.bf16.mxu0 %v6880_v46  ;;  %v6971_v45 = vld [vmem:[%s9252_s4 + $0x3c0] ss:$20 sps:$4 sm:$0xff]   ;;  %v6976_v46 = vld [vmem:[%s9252_s4 + $0x124] ss:$20 sps:$4 sm:$0xff]  }
  0xdf   :  { %2941 = vmatprep.subr.bf16.mxu1 %v6928_v47  ;;  %v6979_v47 = vld [vmem:[%s9252_s4 + $0x61c] ss:$20 sps:$4 sm:$0xff]  }
  0xe0   :  { %1463 = vmatmul.mubr.bf16.vlgmr.msra.gmra.mxu0 %v7678_v4  ;;  %v6934_v4 = vld [vmem:[%s9252_s4 + $0x34c] ss:$20 sps:$4 sm:$0xff]  }
  0xe1   :  { %1512 = vmatmul.mubr.bf16.vlgmr.msra.gmra.mxu1 %v7683_v5  ;;  %1470 = vmatprep.mubr.bf16.mxu0 %v7690_v20  ;;  %v6884_v5 = vld [vmem:[%s9252_s4 + $0xc8] ss:$20 sps:$4 sm:$0xff]  }
  0xe2   :  { %1519 = vmatprep.mubr.bf16.mxu1 %v7702_v26  ;;  %2889 = vmatpush1.bf16.msra.mxu0 %v6878_v49  ;;  %v6932_v20 = vld [vmem:[%s9252_s4 + $0x348] ss:$20 sps:$4 sm:$0xff]   ;;  %v6889_v26 = vld [vmem:[%s9252_s4 + $0xa4] ss:$20 sps:$4 sm:$0xff]   ;;  %v301_v49 = vlaneseq }
  0xe3   :  { %2942 = vmatpush1.bf16.msra.mxu1 %v6926_v52  ;;  %2890 = vmatprep.subr.bf16.mxu0 %v6883_v51  ;;  %v7927_v52 = vld [vmem:[#allocation4] sm:$0x1f] }
  0xe4   :  { %2943 = vmatprep.subr.bf16.mxu1 %v6931_v53  ;;  %v7925_v51 = vshrl.u32 %v301_v49, 7  ;;  %v7930_v53 = vunpack.c.l.bf16 %v7927_v52  ;;  %v7007_v49 = vld [vmem:[%s9252_s4 + $0x550] ss:$20 sps:$4 sm:$0xff]  }
  0xe6   :  { %2891 = vmatpush1.bf16.msra.mxu0 %v6881_v54  ;;  %v7933_v54 = vsub.s32 2, %v7925_v51 }
  0xe7   :  { %2944 = vmatpush1.bf16.msra.mxu1 %v6929_v55  ;;  %2892 = vmatprep.subr.bf16.mxu0 %v6886_v56  ;;  %v7936_v55 = vsub.s32 0, %v7925_v51 }
  0xe8   :  { %2945 = vmatprep.subr.bf16.mxu1 %v6934_v4  ;;  %1471 = vmatmul.mubr.bf16.gmra.mxu0 %v7695_v21  ;;  %v6890_v21 = vld [vmem:[%s9252_s4 + $0x78] ss:$20 sps:$4 sm:$0xff]   ;;  %v308_v56 = vrot.slane %v7930_v53, %v7933_v54 }
  0xe9   :  { %1520 = vmatmul.mubr.bf16.gmra.mxu1 %v7707_v27  ;;  %v6938_v27 = vld [vmem:[%s9252_s4 + $0x2f8] ss:$20 sps:$4 sm:$0xff]   ;;  %v304_v4 = vrot.slane %v7930_v53, %v7936_v55 }
  0xea   :  { %2893 = vmatpush1.bf16.msra.mxu0 %v6884_v5  ;;  %v333_v5 = vrot.slane %v308_v56, %v7936_v55  ;;  %v7591_v56 = vmov 0  }
  0xeb   :  { %2946 = vmatpush1.bf16.msra.mxu1 %v6932_v20  ;;  %2894 = vmatprep.subr.bf16.mxu0 %v6889_v26  ;;  %v329_v20 = vrot.slane %v304_v4, %v7936_v55  ;;  %v7015_v4 = vld [vmem:[%s9252_s4 + $0x52c] ss:$20 sps:$4 sm:$0xff]  }
  0xec   :  { %2947 = vmatprep.subr.bf16.mxu1 %v6937_v57 }
  0xee   :  { %2895 = vmatpush1.bf16.msra.mxu0 %v6887_v58 }
  0xef   :  { %2948 = vmatpush1.bf16.msra.mxu1 %v6935_v59  ;;  %2896 = vmatprep.subr.bf16.mxu0 %v6892_v60 }
  0xf0   :  { %2949 = vmatprep.subr.bf16.mxu1 %v6940_v61 }
  0xf2   :  { %2897 = vmatpush1.bf16.msra.mxu0 %v6890_v21 }
  0xf3   :  { %2950 = vmatpush1.bf16.msra.mxu1 %v6938_v27  ;;  %2898 = vmatprep.subr.bf16.mxu0 %v6895_v62 }
  0xf4   :  { %2951 = vmatprep.subr.bf16.mxu1 %v6943_v63 }
  0xf6   :  { %2899 = vmatpush1.bf16.msra.mxu0 %v6893_v0 }
  0xf7   :  { %2952 = vmatpush1.bf16.msra.mxu1 %v6941_v1  ;;  %2900 = vmatprep.subr.bf16.mxu0 %v6898_v2 }
  0xf8   :  { %2953 = vmatprep.subr.bf16.mxu1 %v6946_v3 }
  0xfa   :  { %2901 = vmatpush1.bf16.msra.mxu0 %v6896_v6 }
  0xfb   :  { %2954 = vmatpush1.bf16.msra.mxu1 %v6944_v7  ;;  %2902 = vmatprep.subr.bf16.mxu0 %v6901_v8 }
  0xfc   :  { %2955 = vmatprep.subr.bf16.mxu1 %v6949_v9 }
  0xfe   :  { %2903 = vmatpush1.bf16.msra.mxu0 %v6899_v10 }
  0xff   :  { %2956 = vmatpush1.bf16.msra.mxu1 %v6947_v11  ;;  %2904 = vmatprep.subr.bf16.mxu0 %v6904_v12 }
 0x100   :  { %2957 = vmatprep.subr.bf16.mxu1 %v6952_v13  ;;  %v6977_v13 = vld [vmem:[%s9252_s4 + $0x618] ss:$20 sps:$4 sm:$0xff]  }
 0x102   :  { %2905 = vmatpush2.bf16.msra.mxu0 %v6902_v14 }
 0x103   :  { %2958 = vmatpush2.bf16.msra.mxu1 %v6950_v15  ;;  %2906 = vmatprep.subr.bf16.mxu0 %v6907_v16 }
 0x104   :  { %2959 = vmatprep.subr.bf16.mxu1 %v6955_v17 }
 0x106   :  { %2907 = vmatpush2.bf16.msra.mxu0 %v6905_v18  ;;  %v6985_v18 = vld [vmem:[%s9252_s4 + $0x5f4] ss:$20 sps:$4 sm:$0xff]  }
 0x107   :  { %2960 = vmatpush2.bf16.msra.mxu1 %v6953_v22  ;;  %2908 = vmatprep.subr.bf16.mxu0 %v6910_v19 }
 0x108   :  { %2961 = vmatprep.subr.bf16.mxu1 %v6958_v23 }
 0x10a   :  { %2909 = vmatpush2.bf16.msra.mxu0 %v6908_v24  ;;  %v6983_v24 = vld [vmem:[%s9252_s4 + $0x5f0] ss:$20 sps:$4 sm:$0xff]  }
 0x10b   :  { %2962 = vmatpush2.bf16.msra.mxu1 %v6956_v28  ;;  %2910 = vmatprep.subr.bf16.mxu0 %v6913_v25 }
 0x10c   :  { %2963 = vmatprep.subr.bf16.mxu1 %v6961_v29 }
 0x10e   :  { %2911 = vmatpush2.bf16.msra.mxu0 %v6911_v30 }
 0x10f   :  { %2964 = vmatpush2.bf16.msra.mxu1 %v6959_v32  ;;  %2912 = vmatprep.subr.bf16.mxu0 %v6916_v31  ;;  %v6991_v31 = vld [vmem:[%s9252_s4 + $0x5cc] ss:$20 sps:$4 sm:$0xff]  }
 0x110   :  { %2965 = vmatprep.subr.bf16.mxu1 %v6964_v33 }
 0x112   :  { %2913 = vmatpush2.bf16.msra.mxu0 %v6914_v34  ;;  %v6989_v34 = vld [vmem:[%s9252_s4 + $0x5c8] ss:$20 sps:$4 sm:$0xff]  }
 0x113   :  { %2966 = vmatpush2.bf16.msra.mxu1 %v6962_v36  ;;  %2914 = vmatprep.subr.bf16.mxu0 %v6919_v35 }
 0x114   :  { %2967 = vmatprep.subr.bf16.mxu1 %v6967_v37 }
 0x116   :  { %2915 = vmatpush2.bf16.msra.mxu0 %v6917_v38 }
 0x117   :  { %2968 = vmatpush2.bf16.msra.mxu1 %v6965_v39  ;;  %2916 = vmatprep.subr.bf16.mxu0 %v6922_v40  ;;  %v6997_v39 = vld [vmem:[%s9252_s4 + $0x5a4] ss:$20 sps:$4 sm:$0xff]  }
 0x118   :  { %2969 = vmatprep.subr.bf16.mxu1 %v6970_v41 }
 0x11a   :  { %2917 = vmatpush2.bf16.msra.mxu0 %v6920_v42 }
 0x11b   :  { %2970 = vmatpush2.bf16.msra.mxu1 %v6968_v48  ;;  %2918 = vmatprep.subr.bf16.mxu0 %v6925_v50  ;;  %v6995_v48 = vld [vmem:[%s9252_s4 + $0x5a0] ss:$20 sps:$4 sm:$0xff]  }
 0x11c   :  { %2971 = vmatprep.subr.bf16.mxu1 %v6973_v43 }
 0x11e   :  { %2919 = vmatpush2.bf16.msra.mxu0 %v6923_v44  ;;  %v7003_v44 = vld [vmem:[%s9252_s4 + $0x57c] ss:$20 sps:$4 sm:$0xff]  }
 0x11f   :  { %2972 = vmatpush2.bf16.msra.mxu1 %v6971_v45  ;;  %2994 = vmatprep.subr.bf16.mxu0 %v6979_v47  ;;  %v7009_v47 = vld [vmem:[%s9252_s4 + $0x554] ss:$20 sps:$4 sm:$0xff]  }
 0x120   :  { %3047 = vmatprep.subr.bf16.mxu1 %v6976_v46  ;;  %v7001_v46 = vld [vmem:[%s9252_s4 + $0x578] ss:$20 sps:$4 sm:$0xff]  }
 0x140   :  { %v1252_v26 = vpop.f32.mrf.mxu0 }
 0x141   :  { %v1305_v57 = vpop.f32.mrf.mxu1  ;;  %v1253_v61 = vadd.f32 %v1252_v26, %v329_v20  ;;  %v7019_v26 = vld [vmem:[%s9252_s4 + $0x500] ss:$20 sps:$4 sm:$0xff]  }
 0x142   :  { %v1254_v58 = vpop.f32.mrf.mxu0 }
 0x143   :  { %v1307_v59 = vpop.f32.mrf.mxu1  ;;  %v1255_v60 = vadd.f32 %v1254_v58, %v333_v5  ;;  %v1306_v3 = vadd.f32 %v1305_v57, %v1253_v61  ;;  %v7027_v57 = vld [vmem:[%s9252_s4 + $0x3a4] ss:$20 sps:$4 sm:$0xff]   ;;  %v8006_v58 = vsub.s32 6, %v7925_v51 }
 0x144   :  { %v1256_v21 = vpop.f32.mrf.mxu0 }
 0x145   :  { %v1309_v27 = vpop.f32.mrf.mxu1  ;;  %v1257_v62 = vadd.f32 %v1256_v21, %v329_v20  ;;  %v1308_v0 = vadd.f32 %v1307_v59, %v1255_v60  ;;  %v1528_v11 = vmax.f32 %v1306_v3, 0.0  ;;  %v8009_v59 = vsub.s32 4, %v7925_v51 }
 0x146   :  { %v1258_v63 = vpop.f32.mrf.mxu0  ;;  %v316_v60 = vrot.slane %v7930_v53, %v8006_v58 }
 0x147   :  { %v1310_v1 = vadd.f32 %v1309_v27, %v1257_v62  ;;  %v1259_v2 = vadd.f32 %v1258_v63, %v333_v5  ;;  %v1311_v6 = vpop.f32.mrf.mxu1  ;;  %v1529_v9 = vmax.f32 %v1308_v0, 0.0  ;;  %v312_v61 = vrot.slane %v7930_v53, %v8009_v59 }
 0x148   :  { %v1262_v12 = vpop.f32.mrf.mxu0  ;;  %v341_v21 = vrot.slane %v316_v60, %v7936_v55 }
 0x149   :  { %v1312_v7 = vadd.f32 %v1311_v6, %v1259_v2  ;;  %v1533_v8 = vmax.f32 %v1310_v1, 0.0  ;;  %v1263_v16 = vadd.f32 %v1262_v12, %v329_v20  ;;  %v337_v27 = vrot.slane %v312_v61, %v7936_v55  ;;  %v6992_v61 = vld [vmem:[%s9252_s4 + $0xa8] ss:$20 sps:$4 sm:$0xff]  }
 0x14a   :  { %v1264_v17 = vpop.f32.mrf.mxu0 }
 0x14b   :  { %v1534_v10 = vmax.f32 %v1312_v7, 0.0  ;;  %v7949_v15 = vpack.c.bf16 %v1533_v8, %v1528_v11  ;;  %v1265_v19 = vadd.f32 %v1264_v17, %v333_v5  ;;  %v1315_v22 = vpop.f32.mrf.mxu1 }
 0x14c   :  { %v1266_v23 = vpop.f32.mrf.mxu0  ;;  %v1316_v28 = vadd.f32 %v1315_v22, %v1263_v16 }
 0x14d   :  { %v7947_v14 = vpack.c.bf16 %v1534_v10, %v1529_v9  ;;  %v1267_v25 = vadd.f32 %v1266_v23, %v329_v20  ;;  %v1317_v29 = vpop.f32.mrf.mxu1  ;;  %v7021_v20 = vld [vmem:[%s9252_s4 + $0x504] ss:$20 sps:$4 sm:$0xff]  }
 0x14e   :  { %v1268_v30 = vpop.f32.mrf.mxu0  ;;  %v1318_v32 = vadd.f32 %v1317_v29, %v1265_v19  ;;  %v1538_v37 = vmax.f32 %v1316_v28, 0.0 }
 0x14f   :  { %2920 = vmatprep.mubr.bf16.mxu0 %v7947_v14  ;;  %v1269_v33 = vadd.f32 %v1268_v30, %v333_v5  ;;  %v1319_v35 = vpop.f32.mrf.mxu1  ;;  %v7013_v5 = vld [vmem:[%s9252_s4 + $0x528] ss:$20 sps:$4 sm:$0xff]  }
 0x150   :  { %2921 = vmatmul.mubr.bf16.vlgmr.msra.gmra.mxu0 %v7949_v15  ;;  %v1320_v36 = vadd.f32 %v1319_v35, %v1267_v25  ;;  %v1539_v40 = vmax.f32 %v1318_v32, 0.0 }
 0x151   :  { %2995 = vmatpush1.bf16.msra.mxu0 %v6977_v13  ;;  %v1321_v38 = vpop.f32.mrf.mxu1 }
 0x152   :  { %2996 = vmatprep.subr.bf16.mxu0 %v6985_v18  ;;  %v1543_v41 = vmax.f32 %v1320_v36, 0.0  ;;  %v1322_v42 = vadd.f32 %v1321_v38, %v1269_v33  ;;  %v6982_v38 = vld [vmem:[%s9252_s4 + $0xfc] ss:$20 sps:$4 sm:$0xff]  }
 0x154   :  { %v1544_v50 = vmax.f32 %v1322_v42, 0.0  ;;  %v7971_v43 = vpack.c.bf16 %v1543_v41, %v1538_v37  ;;  %v6974_v37 = vld [vmem:[%s9252_s4 + $0x120] ss:$20 sps:$4 sm:$0xff]  }
 0x155   :  { %2997 = vmatpush1.bf16.msra.mxu0 %v6983_v24 }
 0x156   :  { %2998 = vmatprep.subr.bf16.mxu0 %v6991_v31  ;;  %v7976_v45 = vpack.c.bf16 %v1544_v50, %v1539_v40  ;;  %v6980_v50 = vld [vmem:[%s9252_s4 + $0xf8] ss:$20 sps:$4 sm:$0xff]  }
 0x158   :  { %2930 = vmatprep.mubr.bf16.mxu0 %v7976_v45 }
 0x159   :  { %2999 = vmatpush1.bf16.msra.mxu0 %v6989_v34 }
 0x15a   :  { %3000 = vmatprep.subr.bf16.mxu0 %v6997_v39  ;;  %2931 = vmatmul.mubr.bf16.gmra.mxu0 %v7971_v43 }
 0x15b   :  { %3026 = vmatprep.mubr.bf16.mxu0 %v7591_v56 }
 0x15d   :  { %3001 = vmatpush1.bf16.msra.mxu0 %v6995_v48 }
 0x15e   :  { %3002 = vmatprep.subr.bf16.mxu0 %v7003_v44 }
 0x161   :  { %3003 = vmatpush1.bf16.msra.mxu0 %v7001_v46  ;;  %v6988_v46 = vld [vmem:[%s9252_s4 + $0xd4] ss:$20 sps:$4 sm:$0xff]  }
 0x162   :  { %3004 = vmatprep.subr.bf16.mxu0 %v7009_v47 }
 0x165   :  { %3005 = vmatpush1.bf16.msra.mxu0 %v7007_v49 }
 0x166   :  { %3006 = vmatprep.subr.bf16.mxu0 %v7015_v4 }
 0x169   :  { %3007 = vmatpush1.bf16.msra.mxu0 %v7013_v5 }
 0x16a   :  { %3008 = vmatprep.subr.bf16.mxu0 %v7021_v20  ;;  %v6986_v20 = vld [vmem:[%s9252_s4 + $0xd0] ss:$20 sps:$4 sm:$0xff]  }
 0x16d   :  { %3009 = vmatpush1.bf16.msra.mxu0 %v7019_v26 }
 0x16e   :  { %3100 = vmatprep.subr.bf16.mxu0 %v7027_v57  ;;  %v6994_v57 = vld [vmem:[%s9252_s4 + $0xac] ss:$20 sps:$4 sm:$0xff]  }
 0x180   :  { %v1358_v62 = vpop.f32.mrf.mxu0 }
 0x181   :  { %v1411_v63 = vpop.f32.mrf.mxu1  ;;  %v1359_v3 = vadd.f32 %v1358_v62, %v337_v27  ;;  %v6998_v62 = vld [vmem:[%s9252_s4 + $0x80] ss:$20 sps:$4 sm:$0xff]  }
 0x182   :  { %v1360_v0 = vpop.f32.mrf.mxu0 }
 0x183   :  { %v1413_v1 = vpop.f32.mrf.mxu1  ;;  %v1361_v2 = vadd.f32 %v1360_v0, %v341_v21  ;;  %v1412_v16 = vadd.f32 %v1411_v63, %v1359_v3  ;;  %v7006_v0 = vld [vmem:[%s9252_s4 + $0x5c] ss:$20 sps:$4 sm:$0xff]  }
 0x184   :  { %v1362_v6 = vpop.f32.mrf.mxu0 }
 0x185   :  { %v1415_v7 = vpop.f32.mrf.mxu1  ;;  %v1363_v8 = vadd.f32 %v1362_v6, %v337_v27  ;;  %v1414_v11 = vadd.f32 %v1413_v1, %v1361_v2  ;;  %v1530_v30 = vmax.f32 %v1412_v16, 0.0 }
 0x186   :  { %v1364_v9 = vpop.f32.mrf.mxu0 }
 0x187   :  { %v1417_v10 = vpop.f32.mrf.mxu1  ;;  %v1416_v12 = vadd.f32 %v1415_v7, %v1363_v8  ;;  %v1365_v13 = vadd.f32 %v1364_v9, %v341_v21  ;;  %v1531_v25 = vmax.f32 %v1414_v11, 0.0  ;;  %v7012_v8 = vld [vmem:[%s9252_s4 + $0x34] ss:$20 sps:$4 sm:$0xff]  }
 0x188   :  { %v1368_v53 = vpop.f32.mrf.mxu0 }
 0x189   :  { %v1421_v17 = vpop.f32.mrf.mxu1  ;;  %v1418_v18 = vadd.f32 %v1417_v10, %v1365_v13  ;;  %v1369_v19 = vadd.f32 %v1368_v53, %v337_v27  ;;  %v1535_v22 = vmax.f32 %v1416_v12, 0.0  ;;  %v7010_v10 = vld [vmem:[%s9252_s4 + $0x30] ss:$20 sps:$4 sm:$0xff]  }
 0x18a   :  { %v1370_v23 = vpop.f32.mrf.mxu0 }
 0x18b   :  { %v1423_v24 = vpop.f32.mrf.mxu1  ;;  %v1536_v28 = vmax.f32 %v1418_v18, 0.0  ;;  %v1371_v29 = vadd.f32 %v1370_v23, %v341_v21  ;;  %v1422_v31 = vadd.f32 %v1421_v17, %v1369_v19  ;;  %v8025_v39 = vpack.c.bf16 %v1535_v22, %v1530_v30  ;;  %v7018_v17 = vld [vmem:[%s9252_s4 + $0xc] ss:$20 sps:$4 sm:$0xff]  }
 0x18c   :  { %v1372_v32 = vpop.f32.mrf.mxu0 }
 0x18d   :  { %v1425_v33 = vpop.f32.mrf.mxu1  ;;  %v8017_v34 = vpack.c.bf16 %v1536_v28, %v1531_v25  ;;  %v1373_v35 = vadd.f32 %v1372_v32, %v337_v27  ;;  %v1424_v36 = vadd.f32 %v1423_v24, %v1371_v29  ;;  %v1540_v44 = vmax.f32 %v1422_v31, 0.0  ;;  %v7000_v27 = vld [vmem:[%s9252_s4 + $0x84] ss:$20 sps:$4 sm:$0xff]   ;;  %v7016_v29 = vld [vmem:[%s9252_s4 + $0x8] ss:$20 sps:$4 sm:$0xff]  }
 0x18e   :  { %v1374_v40 = vpop.f32.mrf.mxu0  ;;  %v7024_v32 = vld [vmem:[%s9252_s4 + $0x264] ss:$20 sps:$4 sm:$0xff]  }
 0x18f   :  { %v1427_v41 = vpop.f32.mrf.mxu1  ;;  %v1375_v42 = vadd.f32 %v1374_v40, %v341_v21  ;;  %v1426_v48 = vadd.f32 %v1425_v33, %v1373_v35  ;;  %2973 = vmatprep.mubr.bf16.mxu1 %v8017_v34  ;;  %v1541_v47 = vmax.f32 %v1424_v36, 0.0  ;;  %v298_v21 = vunpack.c.h.bf16 %v7927_v52  ;;  %v7004_v52 = vld [vmem:[%s9252_s4 + $0x58] ss:$20 sps:$4 sm:$0xff]  }
 0x190   :  { %2974 = vmatmul.mubr.bf16.vlgmr.msra.gmra.mxu1 %v8025_v39 }
 0x191   :  { %v1545_v49 = vmax.f32 %v1426_v48, 0.0  ;;  %v1428_v4 = vadd.f32 %v1427_v41, %v1375_v42  ;;  %3048 = vmatpush1.bf16.msra.mxu1 %v6974_v37  ;;  %v320_v63 = vrot.slane %v298_v21, %v7936_v55  ;;  %v7022_v37 = vld [vmem:[%s9252_s4 + $0x260] ss:$20 sps:$4 sm:$0xff]   ;;  %v7030_v42 = vld [vmem:[%s9252_s4 + $0x23c] ss:$20 sps:$4 sm:$0xff]  }
 0x192   :  { %3049 = vmatprep.subr.bf16.mxu1 %v6982_v38  ;;  %v7025_v41 = vld [vmem:[%s9252_s4 + $0x3a0] ss:$20 sps:$4 sm:$0xff]   ;;  %v7028_v21 = vld [vmem:[%s9252_s4 + $0x238] ss:$20 sps:$4 sm:$0xff]  }
 0x193   :  { %v1546_v5 = vmax.f32 %v1428_v4, 0.0  ;;  %v8038_v26 = vpack.c.bf16 %v1545_v49, %v1540_v44  ;;  %v345_v3 = vrot.slane %v320_v63, %v7936_v55 }
 0x195   :  { %v8043_v60 = vpack.c.bf16 %v1546_v5, %v1541_v47  ;;  %3050 = vmatpush1.bf16.msra.mxu1 %v6980_v50 }
 0x196   :  { %3051 = vmatprep.subr.bf16.mxu1 %v6988_v46  ;;  %v7033_v46 = vld [vmem:[%s9252_s4 + $0x37c] ss:$20 sps:$4 sm:$0xff]  }
 0x197   :  { %2983 = vmatprep.mubr.bf16.mxu1 %v8043_v60 }
 0x198   :  { %2984 = vmatmul.mubr.bf16.gmra.mxu1 %v8038_v26 }
 0x199   :  { %3052 = vmatpush1.bf16.msra.mxu1 %v6986_v20  ;;  %3079 = vmatprep.mubr.bf16.mxu1 %v7947_v14 }
 0x19a   :  { %3053 = vmatprep.subr.bf16.mxu1 %v6994_v57 }
 0x19d   :  { %3054 = vmatpush1.bf16.msra.mxu1 %v6992_v61 }
 0x19e   :  { %3055 = vmatprep.subr.bf16.mxu1 %v7000_v27  ;;  %v7031_v27 = vld [vmem:[%s9252_s4 + $0x378] ss:$20 sps:$4 sm:$0xff]  }
 0x1a0   :  { %v6335_v1 = vpop.f32.mrf.mxu0 }
 0x1a1   :  { %v6363_v2 = vpop.f32.mrf.mxu1  ;;  %3056 = vmatpush1.bf16.msra.mxu1 %v6998_v62  ;;  %v7036_v62 = vld [vmem:[%s9252_s4 + $0x214] ss:$20 sps:$4 sm:$0xff]  }
 0x1a2   :  { %v6336_v6 = vpop.f32.mrf.mxu0  ;;  %3057 = vmatprep.subr.bf16.mxu1 %v7006_v0 }
 0x1a3   :  { %v6364_v7 = vpop.f32.mrf.mxu1  ;;  %v6337_v9 = vadd.f32 %v6336_v6, %v6335_v1  ;;  %v7034_v1 = vld [vmem:[%s9252_s4 + $0x210] ss:$20 sps:$4 sm:$0xff]   ;;  %v7042_v6 = vld [vmem:[%s9252_s4 + $0x1ec] ss:$20 sps:$4 sm:$0xff]  }
 0x1a4   :  { %v6338_v11 = vpop.f32.mrf.mxu0  ;;  %v6365_v18 = vadd.f32 %v6364_v7, %v6363_v2  ;;  %v7037_v2 = vld [vmem:[%s9252_s4 + $0x350] ss:$20 sps:$4 sm:$0xff]   ;;  %v7045_v7 = vld [vmem:[%s9252_s4 + $0x32c] ss:$20 sps:$4 sm:$0xff]  }
 0x1a5   :  { %v6366_v12 = vpop.f32.mrf.mxu1  ;;  %v1465_v13 = vadd.f32 %v6337_v9, %v345_v3  ;;  %3058 = vmatpush1.bf16.msra.mxu1 %v7004_v52  ;;  %v7039_v52 = vld [vmem:[%s9252_s4 + $0x354] ss:$20 sps:$4 sm:$0xff]  }
 0x1a6   :  { %v6339_v16 = vpop.f32.mrf.mxu0  ;;  %3059 = vmatprep.subr.bf16.mxu1 %v7012_v8  ;;  %v7040_v9 = vld [vmem:[%s9252_s4 + $0x1e8] ss:$20 sps:$4 sm:$0xff]  }
 0x1a7   :  { %v6367_v53 = vpop.f32.mrf.mxu1  ;;  %v6340_v19 = vadd.f32 %v6339_v16, %v6338_v11  ;;  %v1514_v24 = vadd.f32 %v6365_v18, %v1465_v13  ;;  %v7048_v11 = vld [vmem:[%s9252_s4 + $0x1c4] ss:$20 sps:$4 sm:$0xff]   ;;  %v7046_v13 = vld [vmem:[%s9252_s4 + $0x1c0] ss:$20 sps:$4 sm:$0xff]  }
 0x1a8   :  { %v6341_v22 = vpop.f32.mrf.mxu0  ;;  %v6368_v28 = vadd.f32 %v6367_v53, %v6366_v12  ;;  %v7051_v12 = vld [vmem:[%s9252_s4 + $0x304] ss:$20 sps:$4 sm:$0xff]   ;;  %v7049_v16 = vld [vmem:[%s9252_s4 + $0x300] ss:$20 sps:$4 sm:$0xff]   ;;  %v7054_v53 = vld [vmem:[%s9252_s4 + $0x19c] ss:$20 sps:$4 sm:$0xff]  }
 0x1a9   :  { %v6369_v23 = vpop.f32.mrf.mxu1  ;;  %v1468_v25 = vadd.f32 %v6340_v19, %v345_v3  ;;  %3060 = vmatpush1.bf16.msra.mxu1 %v7010_v10  ;;  %v1532_v48 = vmax.f32 %v1514_v24, 0.0  ;;  %v7043_v10 = vld [vmem:[%s9252_s4 + $0x328] ss:$20 sps:$4 sm:$0xff]   ;;  %v7052_v18 = vld [vmem:[%s9252_s4 + $0x198] ss:$20 sps:$4 sm:$0xff]  }
 0x1aa   :  { %v6342_v30 = vpop.f32.mrf.mxu0  ;;  %3061 = vmatprep.subr.bf16.mxu1 %v7018_v17  ;;  %v7057_v17 = vld [vmem:[%s9252_s4 + $0x2dc] ss:$20 sps:$4 sm:$0xff]   ;;  %v7055_v19 = vld [vmem:[%s9252_s4 + $0x2d8] ss:$20 sps:$4 sm:$0xff]  }
 0x1ab   :  { %v6370_v31 = vpop.f32.mrf.mxu1  ;;  %v1517_v33 = vadd.f32 %v6368_v28, %v1468_v25  ;;  %v6343_v35 = vadd.f32 %v6342_v30, %v6341_v22  ;;  %v7060_v22 = vld [vmem:[%s9252_s4 + $0x174] ss:$20 sps:$4 sm:$0xff]   ;;  %v7058_v24 = vld [vmem:[%s9252_s4 + $0x170] ss:$20 sps:$4 sm:$0xff]   ;;  %v7066_v28 = vld [vmem:[%s9252_s4 + $0x14c] ss:$20 sps:$4 sm:$0xff]  }
 0x1ac   :  { %v6371_v36 = vadd.f32 %v6370_v31, %v6369_v23  ;;  %v6344_v38 = vpop.f32.mrf.mxu0  ;;  %v7063_v23 = vld [vmem:[%s9252_s4 + $0x2b4] ss:$20 sps:$4 sm:$0xff]   ;;  %v7061_v25 = vld [vmem:[%s9252_s4 + $0x2b0] ss:$20 sps:$4 sm:$0xff]  }
 0x1ad   :  { %v6372_v40 = vpop.f32.mrf.mxu1  ;;  %v1537_v50 = vmax.f32 %v1517_v33, 0.0  ;;  %v1473_v44 = vadd.f32 %v6343_v35, %v345_v3  ;;  %3062 = vmatpush1.bf16.msra.mxu1 %v7016_v29  ;;  %v7069_v29 = vld [vmem:[%s9252_s4 + $0x28c] ss:$20 sps:$4 sm:$0xff]   ;;  %v7064_v30 = vld [vmem:[%s9252_s4 + $0x148] ss:$20 sps:$4 sm:$0xff]  }
 0x1ae   :  { %v6345_v47 = vpop.f32.mrf.mxu0  ;;  %3063 = vmatprep.subr.bf16.mxu1 %v7024_v32  ;;  %v7067_v31 = vld [vmem:[%s9252_s4 + $0x288] ss:$20 sps:$4 sm:$0xff]   ;;  %v7072_v32 = vld [vmem:[%s9252_s4 + $0x624] ss:$20 sps:$4 sm:$0xff]   ;;  %v7070_v35 = vld [vmem:[%s9252_s4 + $0x620] ss:$20 sps:$4 sm:$0xff]  }
 0x1af   :  { %v6373_v49 = vpop.f32.mrf.mxu1  ;;  %v8093_v4 = vpack.c.bf16 %v1537_v50, %v1532_v48  ;;  %v1522_v5 = vadd.f32 %v6371_v36, %v1473_v44  ;;  %v6346_v20 = vadd.f32 %v6345_v47, %v6344_v38  ;;  %v7075_v33 = vld [vmem:[%s9252_s4 + $0x4e4] ss:$20 sps:$4 sm:$0xff]   ;;  %v7073_v36 = vld [vmem:[%s9252_s4 + $0x4e0] ss:$20 sps:$4 sm:$0xff]   ;;  %v7081_v38 = vld [vmem:[%s9252_s4 + $0x4bc] ss:$20 sps:$4 sm:$0xff]  }
 0x1b0   :  { %v6374_v57 = vadd.f32 %v6373_v49, %v6372_v40  ;;  %v7076_v40 = vld [vmem:[%s9252_s4 + $0x5f8] ss:$20 sps:$4 sm:$0xff]   ;;  %v7087_v48 = vld [vmem:[%s9252_s4 + $0x494] ss:$20 sps:$4 sm:$0xff]   ;;  %v7082_v50 = vld [vmem:[%s9252_s4 + $0x5d0] ss:$20 sps:$4 sm:$0xff]  }
 0x1b1   :  { %v1476_v61 = vadd.f32 %v6346_v20, %v345_v3  ;;  %3064 = vmatpush2.bf16.msra.mxu1 %v7022_v37  ;;  %3027 = vmatmul.mubr.bf16.vlgmr.msra.gmra.mxu0 %v8093_v4  ;;  %v1542_v63 = vmax.f32 %v1522_v5, 0.0  ;;  %v7078_v37 = vld [vmem:[%s9252_s4 + $0x5fc] ss:$20 sps:$4 sm:$0xff]   ;;  %v7093_v47 = vld [vmem:[%s9252_s4 + $0x46c] ss:$20 sps:$4 sm:$0xff]  }
 0x1b2   :  { %3101 = vmatpush1.bf16.msra.mxu0 %v7025_v41  ;;  %3065 = vmatprep.subr.bf16.mxu1 %v7030_v42  ;;  %v7079_v41 = vld [vmem:[%s9252_s4 + $0x4b8] ss:$20 sps:$4 sm:$0xff]   ;;  %v7084_v42 = vld [vmem:[%s9252_s4 + $0x5d4] ss:$20 sps:$4 sm:$0xff]   ;;  %v7085_v44 = vld [vmem:[%s9252_s4 + $0x490] ss:$20 sps:$4 sm:$0xff]  }
 0x1b3   :  { %v1525_v0 = vadd.f32 %v6374_v57, %v1476_v61  ;;  %3102 = vmatprep.subr.bf16.mxu0 %v7033_v46  ;;  %3036 = vmatprep.mubr.bf16.mxu0 %v7591_v56  ;;  %v7090_v46 = vld [vmem:[%s9252_s4 + $0x5ac] ss:$20 sps:$4 sm:$0xff]   ;;  %v7088_v49 = vld [vmem:[%s9252_s4 + $0x5a8] ss:$20 sps:$4 sm:$0xff]   ;;  %v7096_v20 = vld [vmem:[%s9252_s4 + $0x584] ss:$20 sps:$4 sm:$0xff]  }
 0x1b4   :  { %v7091_v5 = vld [vmem:[%s9252_s4 + $0x468] ss:$20 sps:$4 sm:$0xff]   ;;  %v7099_v57 = vld [vmem:[%s9252_s4 + $0x444] ss:$20 sps:$4 sm:$0xff]   ;;  %v7094_v61 = vld [vmem:[%s9252_s4 + $0x580] ss:$20 sps:$4 sm:$0xff]  }
 0x1b5   :  { %v1547_v3 = vmax.f32 %v1525_v0, 0.0  ;;  %3066 = vmatpush2.bf16.msra.mxu1 %v7028_v21  ;;  %v7097_v21 = vld [vmem:[%s9252_s4 + $0x440] ss:$20 sps:$4 sm:$0xff]   ;;  %v7103_v0 = vld [vmem:[%s9252_s4 + $0x418] ss:$20 sps:$4 sm:$0xff]  }
 0x1b6   :  { %3103 = vmatpush1.bf16.msra.mxu0 %v7031_v27  ;;  %3067 = vmatprep.subr.bf16.mxu1 %v7036_v62  ;;  %v7102_v27 = vld [vmem:[%s9252_s4 + $0x55c] ss:$20 sps:$4 sm:$0xff]  }
 0x1b7   :  { %3104 = vmatprep.subr.bf16.mxu0 %v7039_v52  ;;  %v8121_v8 = vpack.c.bf16 %v1547_v3, %v1542_v63  ;;  %v7105_v62 = vld [vmem:[%s9252_s4 + $0x41c] ss:$20 sps:$4 sm:$0xff]   ;;  %v7100_v63 = vld [vmem:[%s9252_s4 + $0x558] ss:$20 sps:$4 sm:$0xff]   ;;  %v7108_v52 = vld [vmem:[%s9252_s4 + $0x534] ss:$20 sps:$4 sm:$0xff]  }
 0x1b8   :  { %v7109_v3 = vld [vmem:[%s9252_s4 + $0x3f0] ss:$20 sps:$4 sm:$0xff]  }
 0x1b9   :  { %3068 = vmatpush2.bf16.msra.mxu1 %v7034_v1  ;;  %3037 = vmatmul.mubr.bf16.gmra.mxu0 %v8121_v8  ;;  %v7111_v1 = vld [vmem:[%s9252_s4 + $0x3f4] ss:$20 sps:$4 sm:$0xff]  }
 0x1ba   :  { %3105 = vmatpush1.bf16.msra.mxu0 %v7037_v2  ;;  %3132 = vmatprep.mubr.bf16.mxu0 %v8017_v34  ;;  %v7106_v2 = vld [vmem:[%s9252_s4 + $0x530] ss:$20 sps:$4 sm:$0xff]  }
 0x1bb   :  { %3069 = vmatprep.subr.bf16.mxu1 %v7042_v6  ;;  %3106 = vmatprep.subr.bf16.mxu0 %v7045_v7  ;;  %v7114_v6 = vld [vmem:[%s9252_s4 + $0x50c] ss:$20 sps:$4 sm:$0xff]  }
 0x1bc   :  { %v7117_v7 = vld [vmem:[%s9252_s4 + $0x3cc] ss:$20 sps:$4 sm:$0xff]  }
 0x1bd   :  { %3070 = vmatpush2.bf16.msra.mxu1 %v7040_v9  ;;  %v7112_v9 = vld [vmem:[%s9252_s4 + $0x508] ss:$20 sps:$4 sm:$0xff]  }
 0x1be   :  { %3107 = vmatpush1.bf16.msra.mxu0 %v7043_v10  ;;  %3071 = vmatprep.subr.bf16.mxu1 %v7048_v11  ;;  %v7115_v10 = vld [vmem:[%s9252_s4 + $0x3c8] ss:$20 sps:$4 sm:$0xff]  }
 0x1bf   :  { %3108 = vmatprep.subr.bf16.mxu0 %v7051_v12  ;;  %v7118_v11 = vld [vmem:[%s9252_s4 + $0x4e8] ss:$20 sps:$4 sm:$0xff]  }
 0x1c0   :  { %v7119_v12 = vld [vmem:[%s9252_s4 + $0x268] ss:$20 sps:$4 sm:$0xff]  }
 0x1c1   :  { %3072 = vmatpush2.bf16.msra.mxu1 %v7046_v13  ;;  %v7120_v13 = vld [vmem:[%s9252_s4 + $0x3a8] ss:$20 sps:$4 sm:$0xff]  }
 0x1c2   :  { %3109 = vmatpush1.bf16.msra.mxu0 %v7049_v16  ;;  %3073 = vmatprep.subr.bf16.mxu1 %v7054_v53  ;;  %v7121_v16 = vld [vmem:[%s9252_s4 + $0x128] ss:$20 sps:$4 sm:$0xff]   ;;  %v7122_v53 = vld [vmem:[%s9252_s4 + $0x4c0] ss:$20 sps:$4 sm:$0xff]  }
 0x1c3   :  { %3110 = vmatprep.subr.bf16.mxu0 %v7057_v17  ;;  %v7123_v17 = vld [vmem:[%s9252_s4 + $0x240] ss:$20 sps:$4 sm:$0xff]  }
 0x1c5   :  { %3074 = vmatpush2.bf16.msra.mxu1 %v7052_v18  ;;  %v7124_v18 = vld [vmem:[%s9252_s4 + $0x380] ss:$20 sps:$4 sm:$0xff]  }
 0x1c6   :  { %3111 = vmatpush1.bf16.msra.mxu0 %v7055_v19  ;;  %3075 = vmatprep.subr.bf16.mxu1 %v7060_v22  ;;  %v7125_v19 = vld [vmem:[%s9252_s4 + $0x100] ss:$20 sps:$4 sm:$0xff]   ;;  %v7126_v22 = vld [vmem:[%s9252_s4 + $0x498] ss:$20 sps:$4 sm:$0xff]  }
 0x1c7   :  { %3112 = vmatprep.subr.bf16.mxu0 %v7063_v23  ;;  %v7127_v23 = vld [vmem:[%s9252_s4 + $0x218] ss:$20 sps:$4 sm:$0xff]  }
 0x1c9   :  { %3076 = vmatpush2.bf16.msra.mxu1 %v7058_v24  ;;  %v7128_v24 = vld [vmem:[%s9252_s4 + $0x358] ss:$20 sps:$4 sm:$0xff]  }
 0x1ca   :  { %3113 = vmatpush1.bf16.msra.mxu0 %v7061_v25  ;;  %3077 = vmatprep.subr.bf16.mxu1 %v7066_v28  ;;  %v7129_v25 = vld [vmem:[%s9252_s4 + $0xd8] ss:$20 sps:$4 sm:$0xff]   ;;  %v7130_v28 = vld [vmem:[%s9252_s4 + $0x470] ss:$20 sps:$4 sm:$0xff]  }
 0x1cb   :  { %3114 = vmatprep.subr.bf16.mxu0 %v7069_v29  ;;  %v7131_v29 = vld [vmem:[%s9252_s4 + $0x1f0] ss:$20 sps:$4 sm:$0xff]  }
 0x1cd   :  { %3078 = vmatpush2.bf16.msra.mxu1 %v7064_v30  ;;  %v7132_v30 = vld [vmem:[%s9252_s4 + $0x330] ss:$20 sps:$4 sm:$0xff]  }
 0x1ce   :  { %3115 = vmatpush1.bf16.msra.mxu0 %v7067_v31  ;;  %3153 = vmatprep.subr.bf16.mxu1 %v7072_v32  ;;  %v7133_v31 = vld [vmem:[%s9252_s4 + $0xb0] ss:$20 sps:$4 sm:$0xff]   ;;  %v7134_v32 = vld [vmem:[%s9252_s4 + $0x448] ss:$20 sps:$4 sm:$0xff]  }
 0x1cf   :  { %3116 = vmatprep.subr.bf16.mxu0 %v7075_v33  ;;  %v7135_v33 = vld [vmem:[%s9252_s4 + $0x1c8] ss:$20 sps:$4 sm:$0xff]  }
 0x1d0   :  { %3080 = vmatmul.mubr.bf16.vlgmr.msra.gmra.mxu1 %v7949_v15 }
 0x1d1   :  { %3089 = vmatprep.mubr.bf16.mxu1 %v7976_v45  ;;  %3154 = vmatpush1.bf16.msra.mxu1 %v7070_v35  ;;  %v7137_v35 = vld [vmem:[%s9252_s4 + $0x88] ss:$20 sps:$4 sm:$0xff]  }
 0x1d2   :  { %3117 = vmatpush2.bf16.msra.mxu0 %v7073_v36  ;;  %3155 = vmatprep.subr.bf16.mxu1 %v7078_v37  ;;  %v7139_v36 = vld [vmem:[%s9252_s4 + $0x1a0] ss:$20 sps:$4 sm:$0xff]  }
 0x1d3   :  { %3118 = vmatprep.subr.bf16.mxu0 %v7081_v38  ;;  %v7140_v37 = vld [vmem:[%s9252_s4 + $0x2e0] ss:$20 sps:$4 sm:$0xff]  }
 0x1d4   :  { %v7141_v38 = vld [vmem:[%s9252_s4 + $0x60] ss:$20 sps:$4 sm:$0xff]  }
 0x1d5   :  { %3156 = vmatpush1.bf16.msra.mxu1 %v7076_v40  ;;  %v7142_v40 = vld [vmem:[%s9252_s4 + $0x3f8] ss:$20 sps:$4 sm:$0xff]  }
 0x1d6   :  { %3119 = vmatpush2.bf16.msra.mxu0 %v7079_v41  ;;  %3157 = vmatprep.subr.bf16.mxu1 %v7084_v42  ;;  %v7143_v41 = vld [vmem:[%s9252_s4 + $0x178] ss:$20 sps:$4 sm:$0xff]  }
 0x1d7   :  { %3120 = vmatprep.subr.bf16.mxu0 %v7087_v48  ;;  %v7144_v42 = vld [vmem:[%s9252_s4 + $0x2b8] ss:$20 sps:$4 sm:$0xff]  }
 0x1d8   :  { %3090 = vmatmul.mubr.bf16.gmra.mxu1 %v7971_v43  ;;  %v7145_v48 = vld [vmem:[%s9252_s4 + $0x38] ss:$20 sps:$4 sm:$0xff]  }
 0x1d9   :  { %3158 = vmatpush1.bf16.msra.mxu1 %v7082_v50  ;;  %3185 = vmatprep.mubr.bf16.mxu1 %v7591_v56  ;;  %v7146_v50 = vld [vmem:[%s9252_s4 + $0x3d0] ss:$20 sps:$4 sm:$0xff]  }
 0x1da   :  { %3121 = vmatpush2.bf16.msra.mxu0 %v7085_v44  ;;  %3159 = vmatprep.subr.bf16.mxu1 %v7090_v46  ;;  %v7147_v44 = vld [vmem:[%s9252_s4 + $0x150] ss:$20 sps:$4 sm:$0xff]  }
 0x1db   :  { %3122 = vmatprep.subr.bf16.mxu0 %v7093_v47  ;;  %v7148_v46 = vld [vmem:[%s9252_s4 + $0x290] ss:$20 sps:$4 sm:$0xff]  }
 0x1dc   :  { %v7149_v47 = vld [vmem:[%s9252_s4 + $0x10] ss:$20 sps:$4 sm:$0xff]  }
 0x1dd   :  { %3160 = vmatpush1.bf16.msra.mxu1 %v7088_v49  ;;  %v7160_v49 = vld [vmem:[%s9254_s6 + $0x11c] ss:$20 sps:$4 sm:$0xff]  }
 0x1de   :  { %3123 = vmatpush2.bf16.msra.mxu0 %v7091_v5  ;;  %3161 = vmatprep.subr.bf16.mxu1 %v7096_v20  ;;  %v7150_v5 = vld [vmem:[%s9252_s4 + $0x628] ss:$20 sps:$4 sm:$0xff]   ;;  %v7151_v20 = vld [vmem:[%s9252_s4 + $0x600] ss:$20 sps:$4 sm:$0xff]  }
 0x1df   :  { %3124 = vmatprep.subr.bf16.mxu0 %v7099_v57  ;;  %v7158_v57 = vld [vmem:[%s9254_s6 + $0x118] ss:$20 sps:$4 sm:$0xff]  }
 0x1e1   :  { %3162 = vmatpush1.bf16.msra.mxu1 %v7094_v61  ;;  %v7163_v61 = vld [vmem:[%s9254_s6 + $0xf4] ss:$20 sps:$4 sm:$0xff]  }
 0x1e2   :  { %3125 = vmatpush2.bf16.msra.mxu0 %v7097_v21  ;;  %3163 = vmatprep.subr.bf16.mxu1 %v7102_v27  ;;  %v7152_v21 = vld [vmem:[%s9252_s4 + $0x5d8] ss:$20 sps:$4 sm:$0xff]  }
 0x1e3   :  { %3126 = vmatprep.subr.bf16.mxu0 %v7105_v62  ;;  %v7169_v27 = vld [vmem:[%s9254_s6 + $0xa4] ss:$20 sps:$4 sm:$0xff]   ;;  %v7154_v62 = vld [vmem:[%s9252_s4 + $0x588] ss:$20 sps:$4 sm:$0xff]  }
 0x1e5   :  { %3164 = vmatpush1.bf16.msra.mxu1 %v7100_v63  ;;  %v7172_v63 = vld [vmem:[%s9254_s6 + $0x7c] ss:$20 sps:$4 sm:$0xff]  }
 0x1e6   :  { %3127 = vmatpush2.bf16.msra.mxu0 %v7103_v0  ;;  %3165 = vmatprep.subr.bf16.mxu1 %v7108_v52  ;;  %v7175_v0 = vld [vmem:[%s9254_s6 + $0x54] ss:$20 sps:$4 sm:$0xff]   ;;  %v7156_v52 = vld [vmem:[%s9252_s4 + $0x538] ss:$20 sps:$4 sm:$0xff]  }
 0x1e7   :  { %3128 = vmatprep.subr.bf16.mxu0 %v7111_v1  ;;  %v7173_v1 = vld [vmem:[%s9254_s6 + $0x50] ss:$20 sps:$4 sm:$0xff]  }
 0x1e9   :  { %3166 = vmatpush1.bf16.msra.mxu1 %v7106_v2  ;;  %v7178_v2 = vld [vmem:[%s9254_s6 + $0x2c] ss:$20 sps:$4 sm:$0xff]  }
 0x1ea   :  { %3129 = vmatpush2.bf16.msra.mxu0 %v7109_v3  ;;  %3167 = vmatprep.subr.bf16.mxu1 %v7114_v6  ;;  %v7157_v3 = vld [vmem:[%s9252_s4 + $0x510] ss:$20 sps:$4 sm:$0xff]   ;;  %v7176_v6 = vld [vmem:[%s9254_s6 + $0x28] ss:$20 sps:$4 sm:$0xff]  }
 0x1eb   :  { %3130 = vmatprep.subr.bf16.mxu0 %v7117_v7  ;;  %v7181_v7 = vld [vmem:[%s9254_s6 + $0x4] ss:$20 sps:$4 sm:$0xff]  }
 0x1ed   :  { %3168 = vmatpush1.bf16.msra.mxu1 %v7112_v9  ;;  %v7179_v9 = vld [vmem:[%s9254_s6] ss:$20 sps:$4 sm:$0xff]  }
 0x1ee   :  { %3131 = vmatpush2.bf16.msra.mxu0 %v7115_v10  ;;  %6403 = vmatprep.subr.bf16.mxu1 %v7118_v11  ;;  %v7208_v10 = vld [vmem:[%s9254_s6 + $0x39c] ss:$20 sps:$4 sm:$0xff]  }
 0x1ef   :  { %6375 = vmatprep.subr.bf16.mxu0 %v7119_v12  ;;  %v7184_v11 = vld [vmem:[%s9254_s6 + $0x25c] ss:$20 sps:$4 sm:$0xff]   ;;  %v7206_v12 = vld [vmem:[%s9254_s6 + $0x398] ss:$20 sps:$4 sm:$0xff]  }
 0x1f0   :  { %3186 = vmatmul.mubr.bf16.vlgmr.msra.gmra.mxu1 %v8093_v4 }
 0x1f1   :  { %3133 = vmatmul.mubr.bf16.vlgmr.msra.gmra.mxu0 %v8025_v39  ;;  %6404 = vmatpush3.bf16.msra.mxu1 %v7120_v13  ;;  %v7182_v13 = vld [vmem:[%s9254_s6 + $0x258] ss:$20 sps:$4 sm:$0xff]  }
 0x1f2   :  { %3142 = vmatprep.mubr.bf16.mxu0 %v8043_v60  ;;  %6376 = vmatpush3.bf16.msra.mxu0 %v7121_v16  ;;  %v7211_v16 = vld [vmem:[%s9254_s6 + $0x374] ss:$20 sps:$4 sm:$0xff]  }
 0x1f3   :  { %6405 = vmatprep.subr.bf16.mxu1 %v7122_v53  ;;  %6377 = vmatprep.subr.bf16.mxu0 %v7123_v17  ;;  %v7187_v53 = vld [vmem:[%s9254_s6 + $0x234] ss:$20 sps:$4 sm:$0xff]   ;;  %v7209_v17 = vld [vmem:[%s9254_s6 + $0x370] ss:$20 sps:$4 sm:$0xff]  }
 0x1f4   :  { %3195 = vmatprep.mubr.bf16.mxu1 %v7591_v56 }
 0x1f5   :  { %6406 = vmatpush3.bf16.msra.mxu1 %v7124_v18  ;;  %v7185_v18 = vld [vmem:[%s9254_s6 + $0x230] ss:$20 sps:$4 sm:$0xff]  }
 0x1f6   :  { %6378 = vmatpush3.bf16.msra.mxu0 %v7125_v19  ;;  %6407 = vmatprep.subr.bf16.mxu1 %v7126_v22  ;;  %v7214_v19 = vld [vmem:[%s9254_s6 + $0x34c] ss:$20 sps:$4 sm:$0xff]   ;;  %v7212_v22 = vld [vmem:[%s9254_s6 + $0x348] ss:$20 sps:$4 sm:$0xff]  }
 0x1f7   :  { %6379 = vmatprep.subr.bf16.mxu0 %v7127_v23  ;;  %v7188_v23 = vld [vmem:[%s9254_s6 + $0x208] ss:$20 sps:$4 sm:$0xff]  }
 0x1f8   :  { %3196 = vmatmul.mubr.bf16.gmra.mxu1 %v8121_v8 }
 0x1f9   :  { %3143 = vmatmul.mubr.bf16.gmra.mxu0 %v8038_v26  ;;  %6408 = vmatpush3.bf16.msra.mxu1 %v7128_v24  ;;  %v7217_v24 = vld [vmem:[%s9254_s6 + $0x324] ss:$20 sps:$4 sm:$0xff]  }
 0x1fa   :  { %3287 = vmatprep.mubr.bf16.mxu1 %v8017_v34  ;;  %6380 = vmatpush3.bf16.msra.mxu0 %v7129_v25  ;;  %v7136_v34 = vld [vmem:[%s9252_s4 + $0x308] ss:$20 sps:$4 sm:$0xff]   ;;  %v7193_v25 = vld [vmem:[%s9254_s6 + $0x1e4] ss:$20 sps:$4 sm:$0xff]  }
 0x1fb   :  { %3238 = vmatprep.mubr.bf16.mxu0 %v7947_v14  ;;  %6409 = vmatprep.subr.bf16.mxu1 %v7130_v28  ;;  %v7138_v14 = vld [vmem:[%s9252_s4 + $0x420] ss:$20 sps:$4 sm:$0xff]  }
 0x1fc   :  { %6381 = vmatprep.subr.bf16.mxu0 %v7131_v29  ;;  %v7215_v28 = vld [vmem:[%s9254_s6 + $0x320] ss:$20 sps:$4 sm:$0xff]  }
 0x1fd   :  { %6410 = vmatpush3.bf16.msra.mxu1 %v7132_v30  ;;  %v7191_v29 = vld [vmem:[%s9254_s6 + $0x1e0] ss:$20 sps:$4 sm:$0xff]   ;;  %v7220_v30 = vld [vmem:[%s9254_s6 + $0x2fc] ss:$20 sps:$4 sm:$0xff]  }
 0x1fe   :  { %6382 = vmatpush3.bf16.msra.mxu0 %v7133_v31  ;;  %6411 = vmatprep.subr.bf16.mxu1 %v7134_v32  ;;  %v7196_v31 = vld [vmem:[%s9254_s6 + $0x1bc] ss:$20 sps:$4 sm:$0xff]   ;;  %v7218_v32 = vld [vmem:[%s9254_s6 + $0x2f8] ss:$20 sps:$4 sm:$0xff]  }
 0x1ff   :  { %6383 = vmatprep.subr.bf16.mxu0 %v7135_v33  ;;  %v7194_v33 = vld [vmem:[%s9254_s6 + $0x1b8] ss:$20 sps:$4 sm:$0xff]  }
 0x201   :  { %6412 = vmatpush3.bf16.msra.mxu1 %v7136_v34  ;;  %v7223_v34 = vld [vmem:[%s9254_s6 + $0x2d4] ss:$20 sps:$4 sm:$0xff]  }
 0x202   :  { %6384 = vmatpush3.bf16.msra.mxu0 %v7137_v35  ;;  %6413 = vmatprep.subr.bf16.mxu1 %v7138_v14  ;;  %v7199_v35 = vld [vmem:[%s9254_s6 + $0x194] ss:$20 sps:$4 sm:$0xff]   ;;  %v7221_v14 = vld [vmem:[%s9254_s6 + $0x2d0] ss:$20 sps:$4 sm:$0xff]  }
 0x203   :  { %6385 = vmatprep.subr.bf16.mxu0 %v7139_v36  ;;  %v7197_v36 = vld [vmem:[%s9254_s6 + $0x190] ss:$20 sps:$4 sm:$0xff]  }
 0x205   :  { %6414 = vmatpush3.bf16.msra.mxu1 %v7140_v37  ;;  %v7226_v37 = vld [vmem:[%s9254_s6 + $0x2ac] ss:$20 sps:$4 sm:$0xff]  }
 0x206   :  { %6386 = vmatpush3.bf16.msra.mxu0 %v7141_v38  ;;  %6415 = vmatprep.subr.bf16.mxu1 %v7142_v40  ;;  %v7202_v38 = vld [vmem:[%s9254_s6 + $0x16c] ss:$20 sps:$4 sm:$0xff]   ;;  %v7224_v40 = vld [vmem:[%s9254_s6 + $0x2a8] ss:$20 sps:$4 sm:$0xff]  }
 0x207   :  { %6387 = vmatprep.subr.bf16.mxu0 %v7143_v41  ;;  %v7200_v41 = vld [vmem:[%s9254_s6 + $0x168] ss:$20 sps:$4 sm:$0xff]  }
 0x209   :  { %6416 = vmatpush3.bf16.msra.mxu1 %v7144_v42  ;;  %v7229_v42 = vld [vmem:[%s9254_s6 + $0x284] ss:$20 sps:$4 sm:$0xff]  }
 0x20a   :  { %6388 = vmatpush3.bf16.msra.mxu0 %v7145_v48  ;;  %6417 = vmatprep.subr.bf16.mxu1 %v7146_v50  ;;  %v7205_v48 = vld [vmem:[%s9254_s6 + $0x144] ss:$20 sps:$4 sm:$0xff]   ;;  %v7227_v50 = vld [vmem:[%s9254_s6 + $0x280] ss:$20 sps:$4 sm:$0xff]  }
 0x20b   :  { %6389 = vmatprep.subr.bf16.mxu0 %v7147_v44  ;;  %v7203_v44 = vld [vmem:[%s9254_s6 + $0x140] ss:$20 sps:$4 sm:$0xff]  }
 0x20d   :  { %6418 = vmatpush3.bf16.msra.mxu1 %v7148_v46  ;;  %v7232_v46 = vld [vmem:[%s9254_s6 + $0x4dc] ss:$20 sps:$4 sm:$0xff]  }
 0x20e   :  { %6390 = vmatpush3.bf16.msra.mxu0 %v7149_v47  ;;  %4693 = vmatprep.subr.bf16.mxu1 %v7160_v49  ;;  %v7230_v47 = vld [vmem:[%s9254_s6 + $0x4d8] ss:$20 sps:$4 sm:$0xff]   ;;  %v7235_v49 = vld [vmem:[%s9254_s6 + $0x4b4] ss:$20 sps:$4 sm:$0xff]  }
 0x20f   :  { %6573 = vmatprep.subr.bf16.mxu0 %v7150_v5 }
 0x210   :  { %3288 = vmatmul.mubr.bf16.vlgmr.msra.gmra.mxu1 %v8025_v39  ;;  %v7161_v39 = vld [vmem:[%s9254_s6 + $0xf0] ss:$20 sps:$4 sm:$0xff]  }
 0x211   :  { %3239 = vmatmul.mubr.bf16.vlgmr.msra.gmra.mxu0 %v7949_v15  ;;  %3295 = vmatprep.mubr.bf16.mxu1 %v8043_v60  ;;  %v7166_v15 = vld [vmem:[%s9254_s6 + $0xcc] ss:$20 sps:$4 sm:$0xff]   ;;  %v7164_v60 = vld [vmem:[%s9254_s6 + $0xc8] ss:$20 sps:$4 sm:$0xff]  }
 0x212   :  { %3246 = vmatprep.mubr.bf16.mxu0 %v7976_v45  ;;  %6574 = vmatpush3.bf16.msra.mxu0 %v7150_v5  ;;  %v7153_v45 = vld [vmem:[%s9252_s4 + $0x5b0] ss:$20 sps:$4 sm:$0xff]  }
 0x213   :  { %6575 = vmatprep.subr.bf16.mxu0 %v7151_v20  ;;  %4694 = vmatpush1.bf16.msra.mxu1 %v7158_v57  ;;  %v7233_v5 = vld [vmem:[%s9254_s6 + $0x4b0] ss:$20 sps:$4 sm:$0xff]   ;;  %v2922_v57 = vpop.f32.mrf.mxu0 }
 0x214   :  { %4695 = vmatprep.subr.bf16.mxu1 %v7163_v61  ;;  %v7236_v61 = vld [vmem:[%s9254_s6 + $0x488] ss:$20 sps:$4 sm:$0xff]  }
 0x216   :  { %6576 = vmatpush3.bf16.msra.mxu0 %v7151_v20  ;;  %v7238_v20 = vld [vmem:[%s9254_s6 + $0x48c] ss:$20 sps:$4 sm:$0xff]  }
 0x217   :  { %6577 = vmatprep.subr.bf16.mxu0 %v7152_v21  ;;  %4696 = vmatpush1.bf16.msra.mxu1 %v7161_v39  ;;  %v2924_v39 = vpop.f32.mrf.mxu0 }
 0x218   :  { %3296 = vmatmul.mubr.bf16.gmra.mxu1 %v8038_v26  ;;  %4697 = vmatprep.subr.bf16.mxu1 %v7166_v15  ;;  %v7167_v26 = vld [vmem:[%s9254_s6 + $0xa0] ss:$20 sps:$4 sm:$0xff]  }
 0x219   :  { %3247 = vmatmul.mubr.bf16.gmra.mxu0 %v7971_v43  ;;  %v7155_v43 = vld [vmem:[%s9252_s4 + $0x560] ss:$20 sps:$4 sm:$0xff]  }
 0x21a   :  { %6578 = vmatpush3.bf16.msra.mxu0 %v7152_v21  ;;  %6589 = vmatprep.mubr.bf16.mxu0 %v8093_v4  ;;  %v7170_v4 = vld [vmem:[%s9254_s6 + $0x78] ss:$20 sps:$4 sm:$0xff]   ;;  %v7239_v15 = vld [vmem:[%s9254_s6 + $0x460] ss:$20 sps:$4 sm:$0xff]  }
 0x21b   :  { %6579 = vmatprep.subr.bf16.mxu0 %v7153_v45  ;;  %4698 = vmatpush1.bf16.msra.mxu1 %v7164_v60  ;;  %v7241_v21 = vld [vmem:[%s9254_s6 + $0x464] ss:$20 sps:$4 sm:$0xff]   ;;  %v7244_v60 = vld [vmem:[%s9254_s6 + $0x43c] ss:$20 sps:$4 sm:$0xff]  }
 0x21c   :  { %4699 = vmatprep.subr.bf16.mxu1 %v7169_v27  ;;  %v2926_v27 = vpop.f32.mrf.mxu0 }
 0x21e   :  { %6580 = vmatpush3.bf16.msra.mxu0 %v7153_v45  ;;  %v7280_v45 = vld [vmem:[%s9254_s6 + $0x61c] ss:$20 sps:$4 sm:$0xff]  }
 0x21f   :  { %6581 = vmatprep.subr.bf16.mxu0 %v7154_v62  ;;  %4700 = vmatpush1.bf16.msra.mxu1 %v7167_v26 }
 0x220   :  { %4701 = vmatprep.subr.bf16.mxu1 %v7172_v63  ;;  %v7247_v63 = vld [vmem:[%s9254_s6 + $0x414] ss:$20 sps:$4 sm:$0xff]  }
 0x222   :  { %6582 = vmatpush3.bf16.msra.mxu0 %v7154_v62  ;;  %v7242_v62 = vld [vmem:[%s9254_s6 + $0x438] ss:$20 sps:$4 sm:$0xff]  }
 0x223   :  { %6583 = vmatprep.subr.bf16.mxu0 %v7155_v43  ;;  %4702 = vmatpush1.bf16.msra.mxu1 %v7170_v4  ;;  %v7245_v4 = vld [vmem:[%s9254_s6 + $0x410] ss:$20 sps:$4 sm:$0xff]  }
 0x224   :  { %4703 = vmatprep.subr.bf16.mxu1 %v7175_v0 }
 0x226   :  { %6584 = vmatpush3.bf16.msra.mxu0 %v7155_v43  ;;  %v2928_v43 = vpop.f32.mrf.mxu0 }
 0x227   :  { %6585 = vmatprep.subr.bf16.mxu0 %v7156_v52  ;;  %4704 = vmatpush1.bf16.msra.mxu1 %v7173_v1  ;;  %v7250_v1 = vld [vmem:[%s9254_s6 + $0x3ec] ss:$20 sps:$4 sm:$0xff]  }
 0x228   :  { %4705 = vmatprep.subr.bf16.mxu1 %v7178_v2  ;;  %v2932_v0 = vpop.f32.mrf.mxu0  ;;  %v8601_v2 = vld [vmem:[#allocation6] sm:$0x1f] }
 0x22a   :  { %6586 = vmatpush3.bf16.msra.mxu0 %v7156_v52 }
 0x22b   :  { %6587 = vmatprep.subr.bf16.mxu0 %v7157_v3  ;;  %4706 = vmatpush1.bf16.msra.mxu1 %v7176_v6  ;;  %v2934_v6 = vpop.f32.mrf.mxu0 }
 0x22c   :  { %4707 = vmatprep.subr.bf16.mxu1 %v7181_v7 }
 0x22e   :  { %6588 = vmatpush3.bf16.msra.mxu0 %v7157_v3  ;;  %v7248_v3 = vld [vmem:[%s9254_s6 + $0x3e8] ss:$20 sps:$4 sm:$0xff]  }
 0x22f   :  { %4708 = vmatpush1.bf16.msra.mxu1 %v7179_v9  ;;  %4746 = vmatprep.subr.bf16.mxu0 %v7208_v10  ;;  %v7253_v9 = vld [vmem:[%s9254_s6 + $0x3c4] ss:$20 sps:$4 sm:$0xff]   ;;  %v8610_v10 = vunpack.c.l.bf16 %v8601_v2 }
 0x230   :  { %4709 = vmatprep.subr.bf16.mxu1 %v7184_v11  ;;  %v7251_v11 = vld [vmem:[%s9254_s6 + $0x3c0] ss:$20 sps:$4 sm:$0xff]  }
 0x231   :  { %6590 = vmatmul.mubr.bf16.vlgmr.msra.gmra.mxu0 %v8121_v8  ;;  %v7190_v8 = vld [vmem:[%s9254_s6 + $0x20c] ss:$20 sps:$4 sm:$0xff]  }
 0x232   :  { %4747 = vmatpush1.bf16.msra.mxu0 %v7206_v12  ;;  %v2936_v12 = vpop.f32.mrf.mxu0 }
 0x233   :  { %4710 = vmatpush2.bf16.msra.mxu1 %v7182_v13  ;;  %4748 = vmatprep.subr.bf16.mxu0 %v7211_v16  ;;  %v7256_v16 = vld [vmem:[%s9254_s6 + $0x124] ss:$20 sps:$4 sm:$0xff]  }
 0x234   :  { %4711 = vmatprep.subr.bf16.mxu1 %v7187_v53  ;;  %v1810_v53 = vrot.slane %v8610_v10, %v7933_v54 }
 0x236   :  { %4749 = vmatpush1.bf16.msra.mxu0 %v7209_v17  ;;  %v1806_v17 = vrot.slane %v8610_v10, %v7936_v55 }
 0x237   :  { %4712 = vmatpush2.bf16.msra.mxu1 %v7185_v18  ;;  %4750 = vmatprep.subr.bf16.mxu0 %v7214_v19  ;;  %v2938_v18 = vpop.f32.mrf.mxu0 }
 0x238   :  { %4713 = vmatprep.subr.bf16.mxu1 %v7190_v8  ;;  %v1835_v8 = vrot.slane %v1810_v53, %v7936_v55  ;;  %v7316_v53 = vld [vmem:[%s9254_s6 + $0x52c] ss:$20 sps:$4 sm:$0xff]  }
 0x23a   :  { %4751 = vmatpush1.bf16.msra.mxu0 %v7212_v22  ;;  %v1831_v22 = vrot.slane %v1806_v17, %v7936_v55 }
 0x23b   :  { %4714 = vmatpush2.bf16.msra.mxu1 %v7188_v23  ;;  %4752 = vmatprep.subr.bf16.mxu0 %v7217_v24 }
 0x23c   :  { %4715 = vmatprep.subr.bf16.mxu1 %v7193_v25  ;;  %v2927_v24 = vadd.f32 %v2926_v27, %v1831_v22  ;;  %v7284_v27 = vld [vmem:[%s9254_s6 + $0x5f0] ss:$20 sps:$4 sm:$0xff]  }
 0x23e   :  { %4753 = vmatpush1.bf16.msra.mxu0 %v7215_v28 }
 0x23f   :  { %4716 = vmatpush2.bf16.msra.mxu1 %v7191_v29  ;;  %4754 = vmatprep.subr.bf16.mxu0 %v7220_v30  ;;  %v2925_v29 = vadd.f32 %v2924_v39, %v1835_v8  ;;  %v2929_v30 = vadd.f32 %v2928_v43, %v1835_v8  ;;  %v7292_v43 = vld [vmem:[%s9254_s6 + $0x5cc] ss:$20 sps:$4 sm:$0xff]  }
 0x240   :  { %4717 = vmatprep.subr.bf16.mxu1 %v7196_v31  ;;  %v2923_v31 = vadd.f32 %v2922_v57, %v1831_v22  ;;  %v2935_v57 = vadd.f32 %v2934_v6, %v1835_v8 }
 0x242   :  { %4755 = vmatpush1.bf16.msra.mxu0 %v7218_v32 }
 0x243   :  { %4718 = vmatpush2.bf16.msra.mxu1 %v7194_v33  ;;  %4756 = vmatprep.subr.bf16.mxu0 %v7223_v34 }
 0x244   :  { %4719 = vmatprep.subr.bf16.mxu1 %v7199_v35 }
 0x246   :  { %4757 = vmatpush1.bf16.msra.mxu0 %v7221_v14 }
 0x247   :  { %4720 = vmatpush2.bf16.msra.mxu1 %v7197_v36  ;;  %4758 = vmatprep.subr.bf16.mxu0 %v7226_v37 }
 0x248   :  { %4721 = vmatprep.subr.bf16.mxu1 %v7202_v38 }
 0x24a   :  { %4759 = vmatpush1.bf16.msra.mxu0 %v7224_v40 }
 0x24b   :  { %4722 = vmatpush2.bf16.msra.mxu1 %v7200_v41  ;;  %4760 = vmatprep.subr.bf16.mxu0 %v7229_v42 }
 0x24c   :  { %4723 = vmatprep.subr.bf16.mxu1 %v7205_v48 }
 0x24e   :  { %4761 = vmatpush1.bf16.msra.mxu0 %v7227_v50 }
 0x24f   :  { %4724 = vmatpush2.bf16.msra.mxu1 %v7203_v44  ;;  %4762 = vmatprep.subr.bf16.mxu0 %v7232_v46  ;;  %v7278_v44 = vld [vmem:[%s9254_s6 + $0x618] ss:$20 sps:$4 sm:$0xff]   ;;  %v2937_v46 = vadd.f32 %v2936_v12, %v1831_v22 }
 0x250   :  { %4799 = vmatprep.subr.bf16.mxu1 %v7280_v45  ;;  %v2975_v26 = vpop.f32.mrf.mxu1  ;;  %v7302_v12 = vld [vmem:[%s9254_s6 + $0x578] ss:$20 sps:$4 sm:$0xff]  }
 0x251   :  { %v2976_v14 = vadd.f32 %v2975_v26, %v2923_v31  ;;  %v1818_v31 = vrot.slane %v8610_v10, %v8006_v58 }
 0x252   :  { %4763 = vmatpush2.bf16.msra.mxu0 %v7230_v47  ;;  %v2977_v52 = vpop.f32.mrf.mxu1 }
 0x253   :  { %4764 = vmatprep.subr.bf16.mxu0 %v7235_v49  ;;  %v2978_v34 = vadd.f32 %v2977_v52, %v2925_v29 }
 0x254   :  { %v2979_v7 = vpop.f32.mrf.mxu1 }
 0x255   :  { %v2980_v32 = vadd.f32 %v2979_v7, %v2927_v24  ;;  %v7298_v7 = vld [vmem:[%s9254_s6 + $0x5a4] ss:$20 sps:$4 sm:$0xff]  }
 0x256   :  { %4765 = vmatpush2.bf16.msra.mxu0 %v7233_v5  ;;  %v2981_v13 = vpop.f32.mrf.mxu1 }
 0x257   :  { %4766 = vmatprep.subr.bf16.mxu0 %v7238_v20  ;;  %v2982_v35 = vadd.f32 %v2981_v13, %v2929_v30  ;;  %v7286_v20 = vld [vmem:[%s9254_s6 + $0x5f4] ss:$20 sps:$4 sm:$0xff]  }
 0x258   :  { %v2985_v19 = vpop.f32.mrf.mxu1  ;;  %v7310_v13 = vld [vmem:[%s9254_s6 + $0x554] ss:$20 sps:$4 sm:$0xff]  }
 0x25a   :  { %4767 = vmatpush2.bf16.msra.mxu0 %v7236_v61  ;;  %v2987_v25 = vpop.f32.mrf.mxu1  ;;  %v2939_v61 = vadd.f32 %v2938_v18, %v1835_v8  ;;  %v7314_v18 = vld [vmem:[%s9254_s6 + $0x528] ss:$20 sps:$4 sm:$0xff]  }
 0x25b   :  { %4768 = vmatprep.subr.bf16.mxu0 %v7241_v21  ;;  %v2933_v21 = vadd.f32 %v2932_v0, %v1831_v22  ;;  %v2988_v45 = vadd.f32 %v2987_v25, %v2935_v57  ;;  %v7320_v22 = vld [vmem:[%s9254_s6 + $0x500] ss:$20 sps:$4 sm:$0xff]  }
 0x25c   :  { %v2989_v36 = vpop.f32.mrf.mxu1 }
 0x25d   :  { %v2990_v39 = vadd.f32 %v2989_v36, %v2937_v46 }
 0x25e   :  { %4769 = vmatpush2.bf16.msra.mxu0 %v7239_v15  ;;  %v2991_v47 = vpop.f32.mrf.mxu1 }
 0x25f   :  { %4770 = vmatprep.subr.bf16.mxu0 %v7244_v60  ;;  %v2992_v60 = vadd.f32 %v2991_v47, %v2939_v61 }
 0x262   :  { %4771 = vmatpush2.bf16.msra.mxu0 %v7242_v62  ;;  %v2986_v62 = vadd.f32 %v2985_v19, %v2933_v21  ;;  %v7322_v19 = vld [vmem:[%s9254_s6 + $0x504] ss:$20 sps:$4 sm:$0xff]  }
 0x263   :  { %4772 = vmatprep.subr.bf16.mxu0 %v7247_v63 }
 0x266   :  { %4773 = vmatpush2.bf16.msra.mxu0 %v7245_v4 }
 0x267   :  { %4774 = vmatprep.subr.bf16.mxu0 %v7250_v1 }
 0x26a   :  { %4775 = vmatpush2.bf16.msra.mxu0 %v7248_v3  ;;  %v7290_v3 = vld [vmem:[%s9254_s6 + $0x5c8] ss:$20 sps:$4 sm:$0xff]  }
 0x26b   :  { %4776 = vmatprep.subr.bf16.mxu0 %v7253_v9  ;;  %v7296_v9 = vld [vmem:[%s9254_s6 + $0x5a0] ss:$20 sps:$4 sm:$0xff]  }
 0x26e   :  { %4777 = vmatpush2.bf16.msra.mxu0 %v7251_v11  ;;  %v7304_v11 = vld [vmem:[%s9254_s6 + $0x57c] ss:$20 sps:$4 sm:$0xff]  }
 0x26f   :  { %4852 = vmatprep.subr.bf16.mxu0 %v7256_v16  ;;  %v7308_v16 = vld [vmem:[%s9254_s6 + $0x550] ss:$20 sps:$4 sm:$0xff]  }
 0x271   :  { %v3028_v23 = vpop.f32.mrf.mxu0 }
 0x272   :  { %v3029_v42 = vadd.f32 %v3028_v23, %v2976_v14  ;;  %v7328_v23 = vld [vmem:[%s9254_s6 + $0x3a4] ss:$20 sps:$4 sm:$0xff]  }
 0x273   :  { %v3030_v28 = vpop.f32.mrf.mxu0 }
 0x274   :  { %v3031_v40 = vadd.f32 %v3030_v28, %v2978_v34  ;;  %v1843_v34 = vrot.slane %v1818_v31, %v7936_v55 }
 0x275   :  { %v3032_v33 = vpop.f32.mrf.mxu0 }
 0x276   :  { %v3033_v37 = vadd.f32 %v3032_v33, %v2980_v32  ;;  %v1814_v32 = vrot.slane %v8610_v10, %v8009_v59 }
 0x277   :  { %v3034_v38 = vpop.f32.mrf.mxu0 }
 0x278   :  { %v3035_v41 = vadd.f32 %v3034_v38, %v2982_v35  ;;  %v8629_v49 = vpack.c.bf16 %v3033_v37, %v3029_v42  ;;  %v1839_v14 = vrot.slane %v1814_v32, %v7936_v55  ;;  %v7265_v32 = vld [vmem:[%s9254_s6 + $0xac] ss:$20 sps:$4 sm:$0xff]  }
 0x279   :  { %v3038_v48 = vpop.f32.mrf.mxu0 }
 0x27a   :  { %v8624_v50 = vpack.c.bf16 %v3035_v41, %v3031_v40  ;;  %v3039_v52 = vadd.f32 %v3038_v48, %v2986_v62 }
 0x27b   :  { %v3040_v5 = vpop.f32.mrf.mxu0 }
 0x27c   :  { %4725 = vmatprep.mubr.bf16.mxu1 %v8624_v50  ;;  %v3041_v4 = vadd.f32 %v3040_v5, %v2988_v45 }
 0x27d   :  { %v3042_v15 = vpop.f32.mrf.mxu0  ;;  %4726 = vmatmul.mubr.bf16.vlgmr.msra.gmra.mxu1 %v8629_v49 }
 0x27e   :  { %4800 = vmatpush1.bf16.msra.mxu1 %v7278_v44  ;;  %v3043_v26 = vadd.f32 %v3042_v15, %v2990_v39 }
 0x27f   :  { %v3044_v63 = vpop.f32.mrf.mxu0  ;;  %4801 = vmatprep.subr.bf16.mxu1 %v7286_v20 }
 0x280   :  { %v3045_v0 = vadd.f32 %v3044_v63, %v2992_v60  ;;  %v8647_v6 = vpack.c.bf16 %v3043_v26, %v3039_v52 }
 0x282   :  { %v8642_v1 = vpack.c.bf16 %v3045_v0, %v3041_v4  ;;  %4802 = vmatpush1.bf16.msra.mxu1 %v7284_v27  ;;  %v7254_v0 = vld [vmem:[%s9254_s6 + $0x120] ss:$20 sps:$4 sm:$0xff]  }
 0x283   :  { %4803 = vmatprep.subr.bf16.mxu1 %v7292_v43 }
 0x284   :  { %4735 = vmatprep.mubr.bf16.mxu1 %v8642_v1 }
 0x285   :  { %4736 = vmatmul.mubr.bf16.gmra.mxu1 %v8647_v6 }
 0x286   :  { %4804 = vmatpush1.bf16.msra.mxu1 %v7290_v3  ;;  %4831 = vmatprep.mubr.bf16.mxu1 %v7591_v56 }
 0x287   :  { %4805 = vmatprep.subr.bf16.mxu1 %v7298_v7 }
 0x28a   :  { %4806 = vmatpush1.bf16.msra.mxu1 %v7296_v9 }
 0x28b   :  { %4807 = vmatprep.subr.bf16.mxu1 %v7304_v11  ;;  %v7259_v11 = vld [vmem:[%s9254_s6 + $0xfc] ss:$20 sps:$4 sm:$0xff]  }
 0x28e   :  { %4808 = vmatpush1.bf16.msra.mxu1 %v7302_v12 }
 0x28f   :  { %4809 = vmatprep.subr.bf16.mxu1 %v7310_v13 }
 0x290   :  { %v3081_v17 = vpop.f32.mrf.mxu1 }
 0x291   :  { %v3082_v48 = vadd.f32 %v3081_v17, %v1839_v14 }
 0x292   :  { %4810 = vmatpush1.bf16.msra.mxu1 %v7308_v16  ;;  %v3083_v8 = vpop.f32.mrf.mxu1 }
 0x293   :  { %4811 = vmatprep.subr.bf16.mxu1 %v7316_v53  ;;  %v3084_v40 = vadd.f32 %v3083_v8, %v1843_v34 }
 0x294   :  { %v3085_v24 = vpop.f32.mrf.mxu1 }
 0x295   :  { %v3086_v41 = vadd.f32 %v3085_v24, %v1839_v14 }
 0x296   :  { %4812 = vmatpush1.bf16.msra.mxu1 %v7314_v18  ;;  %v3087_v25 = vpop.f32.mrf.mxu1 }
 0x297   :  { %4813 = vmatprep.subr.bf16.mxu1 %v7322_v19  ;;  %v3088_v46 = vadd.f32 %v3087_v25, %v1843_v34  ;;  %v7257_v19 = vld [vmem:[%s9254_s6 + $0xf8] ss:$20 sps:$4 sm:$0xff]  }
 0x298   :  { %v3091_v28 = vpop.f32.mrf.mxu1 }
 0x299   :  { %v3092_v52 = vadd.f32 %v3091_v28, %v1839_v14 }
 0x29a   :  { %4814 = vmatpush1.bf16.msra.mxu1 %v7320_v22  ;;  %v3093_v29 = vpop.f32.mrf.mxu1 }
 0x29b   :  { %4905 = vmatprep.subr.bf16.mxu1 %v7328_v23  ;;  %v3094_v63 = vadd.f32 %v3093_v29, %v1843_v34  ;;  %v7262_v23 = vld [vmem:[%s9254_s6 + $0xd4] ss:$20 sps:$4 sm:$0xff]  }
 0x29c   :  { %v3095_v30 = vpop.f32.mrf.mxu1 }
 0x29d   :  { %v3096_v43 = vadd.f32 %v3095_v30, %v1839_v14  ;;  %v7260_v30 = vld [vmem:[%s9254_s6 + $0xd0] ss:$20 sps:$4 sm:$0xff]  }
 0x29e   :  { %v3097_v33 = vpop.f32.mrf.mxu1  ;;  %v7271_v14 = vld [vmem:[%s9254_s6 + $0x5c] ss:$20 sps:$4 sm:$0xff]  }
 0x29f   :  { %v3098_v12 = vadd.f32 %v3097_v33, %v1843_v34  ;;  %v7263_v33 = vld [vmem:[%s9254_s6 + $0xa8] ss:$20 sps:$4 sm:$0xff]   ;;  %v7268_v34 = vld [vmem:[%s9254_s6 + $0x84] ss:$20 sps:$4 sm:$0xff]  }
 0x2b0   :  { %v3187_v35 = vpop.f32.mrf.mxu1 }
 0x2b1   :  { %v3134_v36 = vpop.f32.mrf.mxu0 }
 0x2b2   :  { %v3189_v37 = vpop.f32.mrf.mxu1  ;;  %v3135_v57 = vadd.f32 %v3134_v36, %v3082_v48  ;;  %v7269_v36 = vld [vmem:[%s9254_s6 + $0x58] ss:$20 sps:$4 sm:$0xff]   ;;  %v7275_v48 = vld [vmem:[%s9254_s6 + $0x8] ss:$20 sps:$4 sm:$0xff]  }
 0x2b3   :  { %v3136_v38 = vpop.f32.mrf.mxu0 }
 0x2b4   :  { %v3191_v42 = vpop.f32.mrf.mxu1  ;;  %v3137_v47 = vadd.f32 %v3136_v38, %v3084_v40  ;;  %v3188_v62 = vadd.f32 %v3187_v35, %v3135_v57  ;;  %v7266_v35 = vld [vmem:[%s9254_s6 + $0x80] ss:$20 sps:$4 sm:$0xff]   ;;  %v7272_v40 = vld [vmem:[%s9254_s6 + $0x30] ss:$20 sps:$4 sm:$0xff]  }
 0x2b5   :  { %v3138_v44 = vpop.f32.mrf.mxu0 }
 0x2b6   :  { %v3139_v5 = vadd.f32 %v3138_v44, %v3086_v41  ;;  %v3193_v20 = vpop.f32.mrf.mxu1  ;;  %v3190_v45 = vadd.f32 %v3189_v37, %v3137_v47  ;;  %v7274_v37 = vld [vmem:[%s9254_s6 + $0x34] ss:$20 sps:$4 sm:$0xff]   ;;  %v7277_v41 = vld [vmem:[%s9254_s6 + $0xc] ss:$20 sps:$4 sm:$0xff]   ;;  %v7283_v44 = vld [vmem:[%s9254_s6 + $0x264] ss:$20 sps:$4 sm:$0xff]  }
 0x2b7   :  { %v3140_v10 = vpop.f32.mrf.mxu0 }
 0x2b8   :  { %v3141_v61 = vadd.f32 %v3140_v10, %v3088_v46  ;;  %v3197_v21 = vpop.f32.mrf.mxu1  ;;  %v3192_v39 = vadd.f32 %v3191_v42, %v3139_v5  ;;  %v7281_v5 = vld [vmem:[%s9254_s6 + $0x260] ss:$20 sps:$4 sm:$0xff]  }
 0x2b9   :  { %v3144_v15 = vpop.f32.mrf.mxu0 }
 0x2ba   :  { %v3194_v60 = vadd.f32 %v3193_v20, %v3141_v61  ;;  %v3199_v27 = vpop.f32.mrf.mxu1  ;;  %v8696_v3 = vpack.c.bf16 %v3192_v39, %v3188_v62  ;;  %v3145_v53 = vadd.f32 %v3144_v15, %v3092_v52  ;;  %v7289_v20 = vld [vmem:[%s9254_s6 + $0x23c] ss:$20 sps:$4 sm:$0xff]   ;;  %v7287_v61 = vld [vmem:[%s9254_s6 + $0x238] ss:$20 sps:$4 sm:$0xff]  }
 0x2bb   :  { %v3146_v26 = vpop.f32.mrf.mxu0 }
 0x2bc   :  { %v8691_v4 = vpack.c.bf16 %v3194_v60, %v3190_v45  ;;  %v3201_v7 = vpop.f32.mrf.mxu1  ;;  %v3147_v13 = vadd.f32 %v3146_v26, %v3094_v63  ;;  %v3198_v28 = vadd.f32 %v3197_v21, %v3145_v53  ;;  %v7295_v21 = vld [vmem:[%s9254_s6 + $0x214] ss:$20 sps:$4 sm:$0xff]   ;;  %v7293_v45 = vld [vmem:[%s9254_s6 + $0x210] ss:$20 sps:$4 sm:$0xff]   ;;  %v7301_v60 = vld [vmem:[%s9254_s6 + $0x1ec] ss:$20 sps:$4 sm:$0xff]  }
 0x2bd   :  { %v3148_v9 = vpop.f32.mrf.mxu0  ;;  %v7299_v63 = vld [vmem:[%s9254_s6 + $0x1e8] ss:$20 sps:$4 sm:$0xff]  }
 0x2be   :  { %v3149_v16 = vadd.f32 %v3148_v9, %v3096_v43  ;;  %4778 = vmatprep.mubr.bf16.mxu0 %v8691_v4  ;;  %v3203_v22 = vpop.f32.mrf.mxu1  ;;  %v3200_v24 = vadd.f32 %v3199_v27, %v3147_v13  ;;  %v1800_v27 = vunpack.c.h.bf16 %v8601_v2  ;;  %v7307_v43 = vld [vmem:[%s9254_s6 + $0x1c4] ss:$20 sps:$4 sm:$0xff]   ;;  %v7305_v2 = vld [vmem:[%s9254_s6 + $0x1c0] ss:$20 sps:$4 sm:$0xff]   ;;  %v7313_v9 = vld [vmem:[%s9254_s6 + $0x19c] ss:$20 sps:$4 sm:$0xff]  }
 0x2bf   :  { %v3150_v17 = vpop.f32.mrf.mxu0  ;;  %4779 = vmatmul.mubr.bf16.vlgmr.msra.gmra.mxu0 %v8696_v3 }
 0x2c0   :  { %v3151_v18 = vadd.f32 %v3150_v17, %v3098_v12  ;;  %4853 = vmatpush1.bf16.msra.mxu0 %v7254_v0  ;;  %v3202_v8 = vadd.f32 %v3201_v7, %v3149_v16  ;;  %v1822_v0 = vrot.slane %v1800_v27, %v7936_v55  ;;  %v7311_v17 = vld [vmem:[%s9254_s6 + $0x198] ss:$20 sps:$4 sm:$0xff]   ;;  %v7340_v27 = vld [vmem:[%s9254_s6 + $0x354] ss:$20 sps:$4 sm:$0xff]  }
 0x2c1   :  { %4854 = vmatprep.subr.bf16.mxu0 %v7259_v11 }
 0x2c2   :  { %v3204_v25 = vadd.f32 %v3203_v22, %v3151_v18  ;;  %v8714_v31 = vpack.c.bf16 %v3202_v8, %v3198_v28  ;;  %v1847_v11 = vrot.slane %v1822_v0, %v7936_v55  ;;  %v7343_v0 = vld [vmem:[%s9254_s6 + $0x5d4] ss:$20 sps:$4 sm:$0xff]  }
 0x2c4   :  { %4855 = vmatpush1.bf16.msra.mxu0 %v7257_v19  ;;  %v8709_v29 = vpack.c.bf16 %v3204_v25, %v3200_v24  ;;  %v7319_v19 = vld [vmem:[%s9254_s6 + $0x174] ss:$20 sps:$4 sm:$0xff]  }
 0x2c5   :  { %4856 = vmatprep.subr.bf16.mxu0 %v7262_v23 }
 0x2c6   :  { %4788 = vmatprep.mubr.bf16.mxu0 %v8709_v29 }
 0x2c7   :  { %4789 = vmatmul.mubr.bf16.gmra.mxu0 %v8714_v31 }
 0x2c8   :  { %4857 = vmatpush1.bf16.msra.mxu0 %v7260_v30  ;;  %4884 = vmatprep.mubr.bf16.mxu0 %v8624_v50 }
 0x2c9   :  { %4858 = vmatprep.subr.bf16.mxu0 %v7265_v32  ;;  %v7317_v32 = vld [vmem:[%s9254_s6 + $0x170] ss:$20 sps:$4 sm:$0xff]  }
 0x2cc   :  { %4859 = vmatpush1.bf16.msra.mxu0 %v7263_v33 }
 0x2cd   :  { %4860 = vmatprep.subr.bf16.mxu0 %v7268_v34  ;;  %v7325_v34 = vld [vmem:[%s9254_s6 + $0x14c] ss:$20 sps:$4 sm:$0xff]  }
 0x2d0   :  { %4861 = vmatpush1.bf16.msra.mxu0 %v7266_v35  ;;  %v6419_v46 = vpop.f32.mrf.mxu1 }
 0x2d1   :  { %4862 = vmatprep.subr.bf16.mxu0 %v7271_v14  ;;  %v6391_v38 = vpop.f32.mrf.mxu0 }
 0x2d2   :  { %v6420_v57 = vpop.f32.mrf.mxu1 }
 0x2d3   :  { %v6392_v42 = vpop.f32.mrf.mxu0  ;;  %v6421_v25 = vadd.f32 %v6420_v57, %v6419_v46  ;;  %v7331_v46 = vld [vmem:[%s9254_s6 + $0x624] ss:$20 sps:$4 sm:$0xff]   ;;  %v7334_v57 = vld [vmem:[%s9254_s6 + $0x37c] ss:$20 sps:$4 sm:$0xff]  }
 0x2d4   :  { %4863 = vmatpush1.bf16.msra.mxu0 %v7269_v36  ;;  %v6422_v39 = vpop.f32.mrf.mxu1  ;;  %v6393_v12 = vadd.f32 %v6392_v42, %v6391_v38 }
 0x2d5   :  { %4864 = vmatprep.subr.bf16.mxu0 %v7274_v37  ;;  %v6394_v47 = vpop.f32.mrf.mxu0 }
 0x2d6   :  { %v6423_v62 = vpop.f32.mrf.mxu1  ;;  %v3241_v8 = vadd.f32 %v6393_v12, %v1847_v11  ;;  %v7347_v12 = vld [vmem:[%s9254_s6 + $0x5a8] ss:$20 sps:$4 sm:$0xff]  }
 0x2d7   :  { %v6395_v10 = vpop.f32.mrf.mxu0  ;;  %v6424_v28 = vadd.f32 %v6423_v62, %v6422_v39  ;;  %v7332_v39 = vld [vmem:[%s9254_s6 + $0x378] ss:$20 sps:$4 sm:$0xff]  }
 0x2d8   :  { %4865 = vmatpush1.bf16.msra.mxu0 %v7272_v40  ;;  %v6425_v52 = vpop.f32.mrf.mxu1  ;;  %v6396_v13 = vadd.f32 %v6395_v10, %v6394_v47  ;;  %v3290_v14 = vadd.f32 %v6421_v25, %v3241_v8  ;;  %v7364_v8 = vld [vmem:[%s9254_s6 + $0x2b4] ss:$20 sps:$4 sm:$0xff]   ;;  %v7370_v25 = vld [vmem:[%s9254_s6 + $0x28c] ss:$20 sps:$4 sm:$0xff]  }
 0x2d9   :  { %4866 = vmatprep.subr.bf16.mxu0 %v7277_v41  ;;  %v6397_v15 = vpop.f32.mrf.mxu0 }
 0x2da   :  { %v6426_v16 = vpop.f32.mrf.mxu1  ;;  %v3244_v22 = vadd.f32 %v6396_v13, %v1847_v11  ;;  %v7350_v13 = vld [vmem:[%s9254_s6 + $0x300] ss:$20 sps:$4 sm:$0xff]  }
 0x2db   :  { %v6398_v26 = vpop.f32.mrf.mxu0  ;;  %v6427_v10 = vadd.f32 %v6426_v16, %v6425_v52  ;;  %v7346_v52 = vld [vmem:[%s9254_s6 + $0x32c] ss:$20 sps:$4 sm:$0xff]   ;;  %v7355_v16 = vld [vmem:[%s9254_s6 + $0x584] ss:$20 sps:$4 sm:$0xff]  }
 0x2dc   :  { %4867 = vmatpush1.bf16.msra.mxu0 %v7275_v48  ;;  %v6428_v23 = vpop.f32.mrf.mxu1  ;;  %v6399_v35 = vadd.f32 %v6398_v26, %v6397_v15  ;;  %v3293_v36 = vadd.f32 %v6424_v28, %v3244_v22  ;;  %v7323_v48 = vld [vmem:[%s9254_s6 + $0x148] ss:$20 sps:$4 sm:$0xff]   ;;  %v7335_v26 = vld [vmem:[%s9254_s6 + $0x5f8] ss:$20 sps:$4 sm:$0xff]   ;;  %v7365_v28 = vld [vmem:[%s9254_s6 + $0x530] ss:$20 sps:$4 sm:$0xff]  }
 0x2dd   :  { %4868 = vmatprep.subr.bf16.mxu0 %v7283_v44  ;;  %v6400_v7 = vpop.f32.mrf.mxu0  ;;  %v7326_v44 = vld [vmem:[%s9254_s6 + $0x3a0] ss:$20 sps:$4 sm:$0xff]   ;;  %v7337_v15 = vld [vmem:[%s9254_s6 + $0x5fc] ss:$20 sps:$4 sm:$0xff]   ;;  %v7359_v22 = vld [vmem:[%s9254_s6 + $0x558] ss:$20 sps:$4 sm:$0xff]  }
 0x2de   :  { %v6429_v37 = vpop.f32.mrf.mxu1  ;;  %v3249_v47 = vadd.f32 %v6399_v35, %v1847_v11  ;;  %v7374_v35 = vld [vmem:[%s9254_s6 + $0x4e0] ss:$20 sps:$4 sm:$0xff]  }
 0x2df   :  { %v6401_v53 = vpop.f32.mrf.mxu0 }
 0x2e0   :  { %4869 = vmatpush2.bf16.msra.mxu0 %v7281_v5  ;;  %v6402_v30 = vadd.f32 %v6401_v53, %v6400_v7  ;;  %v6430_v5 = vadd.f32 %v6429_v37, %v6428_v23  ;;  %v7341_v7 = vld [vmem:[%s9254_s6 + $0x5d0] ss:$20 sps:$4 sm:$0xff]   ;;  %v7381_v37 = vld [vmem:[%s9254_s6 + $0x3a8] ss:$20 sps:$4 sm:$0xff]  }
 0x2e1   :  { %4870 = vmatprep.subr.bf16.mxu0 %v7289_v20  ;;  %v7358_v53 = vld [vmem:[%s9254_s6 + $0x2dc] ss:$20 sps:$4 sm:$0xff]  }
 0x2e2   :  { %v3252_v40 = vadd.f32 %v6402_v30, %v1847_v11  ;;  %v7352_v11 = vld [vmem:[%s9254_s6 + $0x304] ss:$20 sps:$4 sm:$0xff]   ;;  %v7368_v30 = vld [vmem:[%s9254_s6 + $0x288] ss:$20 sps:$4 sm:$0xff]  }
 0x2e3   :  { %v7362_v23 = vld [vmem:[%s9254_s6 + $0x2b0] ss:$20 sps:$4 sm:$0xff]  }
 0x2e4   :  { %4871 = vmatpush2.bf16.msra.mxu0 %v7287_v61  ;;  %v3301_v61 = vadd.f32 %v6430_v5, %v3252_v40  ;;  %v7382_v40 = vld [vmem:[%s9254_s6 + $0x4c0] ss:$20 sps:$4 sm:$0xff]   ;;  %v7392_v5 = vld [vmem:[%s9254_s6 + $0x470] ss:$20 sps:$4 sm:$0xff]  }
 0x2e5   :  { %4872 = vmatprep.subr.bf16.mxu0 %v7295_v21  ;;  %v7329_v21 = vld [vmem:[%s9254_s6 + $0x620] ss:$20 sps:$4 sm:$0xff]  }
 0x2e8   :  { %4873 = vmatpush2.bf16.msra.mxu0 %v7293_v45  ;;  %v3298_v45 = vadd.f32 %v6427_v10, %v3249_v47  ;;  %v7388_v47 = vld [vmem:[%s9254_s6 + $0x468] ss:$20 sps:$4 sm:$0xff]   ;;  %v7396_v10 = vld [vmem:[%s9254_s6 + $0x330] ss:$20 sps:$4 sm:$0xff]  }
 0x2e9   :  { %4874 = vmatprep.subr.bf16.mxu0 %v7301_v60 }
 0x2ec   :  { %4875 = vmatpush2.bf16.msra.mxu0 %v7299_v63  ;;  %v7338_v63 = vld [vmem:[%s9254_s6 + $0x350] ss:$20 sps:$4 sm:$0xff]  }
 0x2ed   :  { %4876 = vmatprep.subr.bf16.mxu0 %v7307_v43 }
 0x2f0   :  { %4877 = vmatpush2.bf16.msra.mxu0 %v7305_v2  ;;  %v7344_v2 = vld [vmem:[%s9254_s6 + $0x328] ss:$20 sps:$4 sm:$0xff]  }
 0x2f1   :  { %v6591_v18 = vpop.f32.mrf.mxu0  ;;  %4878 = vmatprep.subr.bf16.mxu0 %v7313_v9  ;;  %v7349_v9 = vld [vmem:[%s9254_s6 + $0x5ac] ss:$20 sps:$4 sm:$0xff]  }
 0x2f2   :  { %v3347_v62 = vadd.f32 %v6591_v18, %v3298_v45  ;;  %v7356_v18 = vld [vmem:[%s9254_s6 + $0x2d8] ss:$20 sps:$4 sm:$0xff]   ;;  %v7402_v45 = vld [vmem:[%s9254_s6 + $0x420] ss:$20 sps:$4 sm:$0xff]  }
 0x2f3   :  { %v3338_v24 = vpop.f32.mrf.mxu0 }
 0x2f4   :  { %4879 = vmatpush2.bf16.msra.mxu0 %v7311_v17  ;;  %v3339_v41 = vadd.f32 %v3338_v24, %v3290_v14  ;;  %v7353_v17 = vld [vmem:[%s9254_s6 + $0x580] ss:$20 sps:$4 sm:$0xff]   ;;  %v7377_v14 = vld [vmem:[%s9254_s6 + $0x4e8] ss:$20 sps:$4 sm:$0xff]  }
 0x2f5   :  { %v6592_v33 = vpop.f32.mrf.mxu0  ;;  %4880 = vmatprep.subr.bf16.mxu0 %v7319_v19  ;;  %v7361_v19 = vld [vmem:[%s9254_s6 + $0x55c] ss:$20 sps:$4 sm:$0xff]   ;;  %v7367_v24 = vld [vmem:[%s9254_s6 + $0x534] ss:$20 sps:$4 sm:$0xff]  }
 0x2f6   :  { %v3350_v60 = vadd.f32 %v6592_v33, %v3301_v61  ;;  %v7376_v33 = vld [vmem:[%s9254_s6 + $0x4e4] ss:$20 sps:$4 sm:$0xff]   ;;  %v7393_v61 = vld [vmem:[%s9254_s6 + $0x440] ss:$20 sps:$4 sm:$0xff]  }
 0x2f7   :  { %v3341_v38 = vpop.f32.mrf.mxu0 }
 0x2f8   :  { %v3342_v42 = vadd.f32 %v3341_v38, %v3293_v36  ;;  %4881 = vmatpush2.bf16.msra.mxu0 %v7317_v32  ;;  %v8833_v43 = vpack.c.bf16 %v3350_v60, %v3347_v62  ;;  %v7373_v32 = vld [vmem:[%s9254_s6 + $0x50c] ss:$20 sps:$4 sm:$0xff]   ;;  %v7380_v36 = vld [vmem:[%s9254_s6 + $0x4bc] ss:$20 sps:$4 sm:$0xff]   ;;  %v7405_v60 = vld [vmem:[%s9254_s6 + $0x3f4] ss:$20 sps:$4 sm:$0xff]  }
 0x2f9   :  { %4882 = vmatprep.subr.bf16.mxu0 %v7325_v34  ;;  %v7371_v34 = vld [vmem:[%s9254_s6 + $0x508] ss:$20 sps:$4 sm:$0xff]   ;;  %v7378_v38 = vld [vmem:[%s9254_s6 + $0x4b8] ss:$20 sps:$4 sm:$0xff]   ;;  %v7403_v62 = vld [vmem:[%s9254_s6 + $0x3f0] ss:$20 sps:$4 sm:$0xff]  }
 0x2fa   :  { %v8806_v20 = vpack.c.bf16 %v3342_v42, %v3339_v41  ;;  %v7385_v41 = vld [vmem:[%s9254_s6 + $0x494] ss:$20 sps:$4 sm:$0xff]  }
 0x2fb   :  { %v7386_v42 = vld [vmem:[%s9254_s6 + $0x380] ss:$20 sps:$4 sm:$0xff]  }
 0x2fc   :  { %4883 = vmatpush2.bf16.msra.mxu0 %v7323_v48  ;;  %4832 = vmatmul.mubr.bf16.vlgmr.msra.gmra.mxu1 %v8806_v20  ;;  %v7383_v48 = vld [vmem:[%s9254_s6 + $0x490] ss:$20 sps:$4 sm:$0xff]  }
 0x2fd   :  { %4906 = vmatpush1.bf16.msra.mxu1 %v7326_v44  ;;  %4958 = vmatprep.subr.bf16.mxu0 %v7331_v46  ;;  %v7387_v44 = vld [vmem:[%s9254_s6 + $0x498] ss:$20 sps:$4 sm:$0xff]  }
 0x2fe   :  { %4907 = vmatprep.subr.bf16.mxu1 %v7334_v57  ;;  %4841 = vmatprep.mubr.bf16.mxu1 %v7591_v56  ;;  %v7390_v46 = vld [vmem:[%s9254_s6 + $0x46c] ss:$20 sps:$4 sm:$0xff]   ;;  %v7395_v57 = vld [vmem:[%s9254_s6 + $0x444] ss:$20 sps:$4 sm:$0xff]  }
 0x2ff   :  { %4885 = vmatmul.mubr.bf16.vlgmr.msra.gmra.mxu0 %v8629_v49 }
 0x300   :  { %4894 = vmatprep.mubr.bf16.mxu0 %v8642_v1  ;;  %4959 = vmatpush1.bf16.msra.mxu0 %v7329_v21  ;;  %v7397_v21 = vld [vmem:[%s9254_s6 + $0x448] ss:$20 sps:$4 sm:$0xff]  }
 0x301   :  { %4908 = vmatpush1.bf16.msra.mxu1 %v7332_v39  ;;  %4960 = vmatprep.subr.bf16.mxu0 %v7337_v15  ;;  %v7400_v39 = vld [vmem:[%s9254_s6 + $0x41c] ss:$20 sps:$4 sm:$0xff]   ;;  %v7398_v15 = vld [vmem:[%s9254_s6 + $0x418] ss:$20 sps:$4 sm:$0xff]  }
 0x302   :  { %4909 = vmatprep.subr.bf16.mxu1 %v7340_v27  ;;  %v7406_v27 = vld [vmem:[%s9254_s6 + $0x2e0] ss:$20 sps:$4 sm:$0xff]  }
 0x304   :  { %4961 = vmatpush1.bf16.msra.mxu0 %v7335_v26  ;;  %4842 = vmatmul.mubr.bf16.gmra.mxu1 %v8833_v43  ;;  %v7407_v26 = vld [vmem:[%s9254_s6 + $0x3f8] ss:$20 sps:$4 sm:$0xff]  }
 0x305   :  { %4910 = vmatpush1.bf16.msra.mxu1 %v7338_v63  ;;  %4937 = vmatprep.mubr.bf16.mxu1 %v8691_v4  ;;  %v7410_v63 = vld [vmem:[%s9254_s6 + $0x3cc] ss:$20 sps:$4 sm:$0xff]  }
 0x306   :  { %4962 = vmatprep.subr.bf16.mxu0 %v7343_v0  ;;  %4911 = vmatprep.subr.bf16.mxu1 %v7346_v52  ;;  %v7411_v0 = vld [vmem:[%s9254_s6 + $0x2b8] ss:$20 sps:$4 sm:$0xff]   ;;  %v7408_v52 = vld [vmem:[%s9254_s6 + $0x3c8] ss:$20 sps:$4 sm:$0xff]  }
 0x307   :  { %4895 = vmatmul.mubr.bf16.gmra.mxu0 %v8647_v6 }
 0x308   :  { %4963 = vmatpush1.bf16.msra.mxu0 %v7341_v7  ;;  %4990 = vmatprep.mubr.bf16.mxu0 %v7591_v56  ;;  %v7412_v7 = vld [vmem:[%s9254_s6 + $0x3d0] ss:$20 sps:$4 sm:$0xff]  }
 0x309   :  { %4912 = vmatpush1.bf16.msra.mxu1 %v7344_v2  ;;  %4964 = vmatprep.subr.bf16.mxu0 %v7349_v9  ;;  %v7413_v2 = vld [vmem:[%s9254_s6 + $0x268] ss:$20 sps:$4 sm:$0xff]   ;;  %v7414_v9 = vld [vmem:[%s9254_s6 + $0x290] ss:$20 sps:$4 sm:$0xff]  }
 0x30a   :  { %4913 = vmatprep.subr.bf16.mxu1 %v7352_v11  ;;  %v7415_v11 = vld [vmem:[%s9254_s6 + $0x128] ss:$20 sps:$4 sm:$0xff]  }
 0x30c   :  { %4965 = vmatpush1.bf16.msra.mxu0 %v7347_v12  ;;  %v7416_v12 = vld [vmem:[%s9254_s6 + $0x240] ss:$20 sps:$4 sm:$0xff]  }
 0x30d   :  { %4914 = vmatpush1.bf16.msra.mxu1 %v7350_v13  ;;  %4966 = vmatprep.subr.bf16.mxu0 %v7355_v16  ;;  %v7438_v13 = vld [vmem:[%s9256_s8 + $0x78] sm:$0xff]  }
 0x30e   :  { %4915 = vmatprep.subr.bf16.mxu1 %v7358_v53  ;;  %v7439_v16 = vld [vmem:[%s9256_s8 + $0x38] sm:$0xff]   ;;  %v7417_v53 = vld [vmem:[%s9254_s6 + $0x100] ss:$20 sps:$4 sm:$0xff]  }
 0x310   :  { %4967 = vmatpush1.bf16.msra.mxu0 %v7353_v17  ;;  %v7440_v17 = vld [vmem:[%s9256_s8 + $0x70] sm:$0xff]  }
 0x311   :  { %4916 = vmatpush1.bf16.msra.mxu1 %v7356_v18  ;;  %4968 = vmatprep.subr.bf16.mxu0 %v7361_v19  ;;  %v7418_v18 = vld [vmem:[%s9254_s6 + $0x218] ss:$20 sps:$4 sm:$0xff]   ;;  %v7441_v19 = vld [vmem:[%s9256_s8 + $0x30] sm:$0xff]  }
 0x312   :  { %4917 = vmatprep.subr.bf16.mxu1 %v7364_v8  ;;  %v7419_v8 = vld [vmem:[%s9254_s6 + $0xd8] ss:$20 sps:$4 sm:$0xff]  }
 0x314   :  { %4969 = vmatpush1.bf16.msra.mxu0 %v7359_v22  ;;  %v7420_v22 = vld [vmem:[%s9254_s6 + $0x1f0] ss:$20 sps:$4 sm:$0xff]  }
 0x315   :  { %4918 = vmatpush1.bf16.msra.mxu1 %v7362_v23  ;;  %4970 = vmatprep.subr.bf16.mxu0 %v7367_v24  ;;  %v7421_v23 = vld [vmem:[%s9254_s6 + $0xb0] ss:$20 sps:$4 sm:$0xff]  }
 0x316   :  { %4919 = vmatprep.subr.bf16.mxu1 %v7370_v25  ;;  %v7444_v24 = vld [vmem:[%s9256_s8 + $0x60] sm:$0xff]   ;;  %v7422_v25 = vld [vmem:[%s9254_s6 + $0x1c8] ss:$20 sps:$4 sm:$0xff]  }
 0x318   :  { %4971 = vmatpush1.bf16.msra.mxu0 %v7365_v28  ;;  %v7423_v28 = vld [vmem:[%s9254_s6 + $0x88] ss:$20 sps:$4 sm:$0xff]  }
 0x319   :  { %4920 = vmatpush1.bf16.msra.mxu1 %v7368_v30  ;;  %4972 = vmatprep.subr.bf16.mxu0 %v7373_v32  ;;  %v7446_v30 = vld [vmem:[%s9256_s8 + $0x58] sm:$0xff]  }
 0x31a   :  { %4921 = vmatprep.subr.bf16.mxu1 %v7376_v33  ;;  %v7447_v32 = vld [vmem:[%s9256_s8 + $0x18] sm:$0xff]   ;;  %v7425_v33 = vld [vmem:[%s9254_s6 + $0x60] ss:$20 sps:$4 sm:$0xff]  }
 0x31c   :  { %4973 = vmatpush1.bf16.msra.mxu0 %v7371_v34  ;;  %v7448_v34 = vld [vmem:[%s9256_s8 + $0x50] sm:$0xff]  }
 0x31d   :  { %4922 = vmatpush2.bf16.msra.mxu1 %v7374_v35  ;;  %6469 = vmatprep.subr.bf16.mxu0 %v7377_v14  ;;  %v7426_v35 = vld [vmem:[%s9254_s6 + $0x178] ss:$20 sps:$4 sm:$0xff]   ;;  %v7449_v14 = vld [vmem:[%s9256_s8 + $0x10] sm:$0xff]  }
 0x31e   :  { %4923 = vmatprep.subr.bf16.mxu1 %v7380_v36  ;;  %v7427_v36 = vld [vmem:[%s9254_s6 + $0x38] ss:$20 sps:$4 sm:$0xff]  }
 0x31f   :  { %4991 = vmatmul.mubr.bf16.vlgmr.msra.gmra.mxu0 %v8806_v20 }
 0x320   :  { %6470 = vmatpush3.bf16.msra.mxu0 %v7381_v37  ;;  %5000 = vmatprep.mubr.bf16.mxu0 %v7591_v56  ;;  %v7391_v56 = vld [vmem:[%s9254_s6 + $0x358] ss:$20 sps:$4 sm:$0xff]  }
 0x321   :  { %4924 = vmatpush2.bf16.msra.mxu1 %v7378_v38  ;;  %6471 = vmatprep.subr.bf16.mxu0 %v7382_v40  ;;  %v7450_v37 = vld [vmem:[%s9256_s8 + $0x48] sm:$0xff]   ;;  %v7428_v38 = vld [vmem:[%s9254_s6 + $0x150] ss:$20 sps:$4 sm:$0xff]  }
 0x322   :  { %4925 = vmatprep.subr.bf16.mxu1 %v7385_v41  ;;  %v7451_v40 = vld [vmem:[%s9256_s8 + $0x8] sm:$0xff]   ;;  %v7429_v41 = vld [vmem:[%s9254_s6 + $0x10] ss:$20 sps:$4 sm:$0xff]  }
 0x324   :  { %6472 = vmatpush3.bf16.msra.mxu0 %v7386_v42  ;;  %v7452_v42 = vld [vmem:[%s9256_s8 + $0x40] sm:$0xff]  }
 0x325   :  { %4926 = vmatpush2.bf16.msra.mxu1 %v7383_v48  ;;  %6473 = vmatprep.subr.bf16.mxu0 %v7387_v44  ;;  %v7430_v48 = vld [vmem:[%s9254_s6 + $0x628] ss:$20 sps:$4 sm:$0xff]   ;;  %v7453_v44 = vld [vmem:[%s9256_s8] sm:$0xff]  }
 0x326   :  { %4927 = vmatprep.subr.bf16.mxu1 %v7390_v46  ;;  %v7431_v46 = vld [vmem:[%s9254_s6 + $0x600] ss:$20 sps:$4 sm:$0xff]  }
 0x327   :  { %5001 = vmatmul.mubr.bf16.gmra.mxu0 %v8833_v43 }
 0x328   :  { %6474 = vmatpush3.bf16.msra.mxu0 %v7391_v56  ;;  %5092 = vmatprep.mubr.bf16.mxu0 %v8691_v4  ;;  %v7401_v4 = vld [vmem:[%s9254_s6 + $0x308] ss:$20 sps:$4 sm:$0xff]   ;;  %v7432_v56 = vld [vmem:[%s9254_s6 + $0x5d8] ss:$20 sps:$4 sm:$0xff]  }
 0x329   :  { %4928 = vmatpush2.bf16.msra.mxu1 %v7388_v47  ;;  %6475 = vmatprep.subr.bf16.mxu0 %v7392_v5  ;;  %v7433_v47 = vld [vmem:[%s9254_s6 + $0x5b0] ss:$20 sps:$4 sm:$0xff]   ;;  %v7454_v5 = vld [vmem:[%s9256_s8 + $0xf8] sm:$0xff]  }
 0x32a   :  { %4929 = vmatprep.subr.bf16.mxu1 %v7395_v57  ;;  %v7455_v57 = vld [vmem:[%s9256_s8 + $0xb8] sm:$0xff]  }
 0x32c   :  { %6476 = vmatpush3.bf16.msra.mxu0 %v7396_v10  ;;  %v7456_v10 = vld [vmem:[%s9256_s8 + $0xf0] sm:$0xff]  }
 0x32d   :  { %4930 = vmatpush2.bf16.msra.mxu1 %v7393_v61  ;;  %6477 = vmatprep.subr.bf16.mxu0 %v7397_v21  ;;  %v7457_v61 = vld [vmem:[%s9256_s8 + $0xb0] sm:$0xff]   ;;  %v7458_v21 = vld [vmem:[%s9256_s8 + $0xe8] sm:$0xff]  }
 0x32e   :  { %4931 = vmatprep.subr.bf16.mxu1 %v7400_v39  ;;  %v7459_v39 = vld [vmem:[%s9256_s8 + $0xa8] sm:$0xff]  }
 0x330   :  { %6478 = vmatpush3.bf16.msra.mxu0 %v7401_v4  ;;  %v7461_v4 = vld [vmem:[%s9256_s8 + $0xa0] sm:$0xff]  }
 0x331   :  { %4932 = vmatpush2.bf16.msra.mxu1 %v7398_v15  ;;  %6479 = vmatprep.subr.bf16.mxu0 %v7402_v45  ;;  %v7462_v15 = vld [vmem:[%s9256_s8 + $0xd8] sm:$0xff]  }
 0x332   :  { %4933 = vmatprep.subr.bf16.mxu1 %v7405_v60  ;;  %v7463_v45 = vld [vmem:[%s9256_s8 + $0x98] sm:$0xff]   ;;  %v7464_v60 = vld [vmem:[%s9256_s8 + $0xd0] sm:$0xff]  }
 0x334   :  { %6480 = vmatpush3.bf16.msra.mxu0 %v7406_v27  ;;  %v7465_v27 = vld [vmem:[%s9256_s8 + $0x90] sm:$0xff]  }
 0x335   :  { %4934 = vmatpush2.bf16.msra.mxu1 %v7403_v62  ;;  %6481 = vmatprep.subr.bf16.mxu0 %v7407_v26  ;;  %v7466_v62 = vld [vmem:[%s9256_s8 + $0xc8] sm:$0xff]  }
 0x336   :  { %4935 = vmatprep.subr.bf16.mxu1 %v7410_v63  ;;  %v7467_v26 = vld [vmem:[%s9256_s8 + $0x88] sm:$0xff]   ;;  %v7468_v63 = vld [vmem:[%s9256_s8 + $0xc0] sm:$0xff]  }
 0x338   :  { %6482 = vmatpush3.bf16.msra.mxu0 %v7411_v0  ;;  %v7469_v0 = vld [vmem:[%s9256_s8 + $0x80] sm:$0xff]  }
 0x339   :  { %4936 = vmatpush2.bf16.msra.mxu1 %v7408_v52  ;;  %6483 = vmatprep.subr.bf16.mxu0 %v7412_v7 }
 0x33a   :  { %6441 = vmatprep.subr.bf16.mxu1 %v7413_v2 }
 0x33c   :  { %4938 = vmatmul.mubr.bf16.vlgmr.msra.gmra.mxu1 %v8696_v3  ;;  %6484 = vmatpush3.bf16.msra.mxu0 %v7414_v9  ;;  %v7470_v9 = vld [vmem:[%s9256_s8 + $0x138] sm:$0xff]  }
 0x33d   :  { %4947 = vmatprep.mubr.bf16.mxu1 %v8709_v29  ;;  %6442 = vmatpush3.bf16.msra.mxu1 %v7415_v11  ;;  %v4727_v52 = vpop.f32.mrf.mxu1 }
 0x33e   :  { %6443 = vmatprep.subr.bf16.mxu1 %v7416_v12  ;;  %6507 = vmatprep.subr.bf16.mxu0 %v7438_v13 }
 0x33f   :  { %5093 = vmatmul.mubr.bf16.vlgmr.msra.gmra.mxu0 %v8696_v3  ;;  %v7442_v3 = vld [vmem:[%s9256_s8 + $0x68] sm:$0xff]   ;;  %v4729_v7 = vpop.f32.mrf.mxu1 }
 0x340   :  { %5100 = vmatprep.mubr.bf16.mxu0 %v8709_v29  ;;  %6508 = vmatpush3.bf16.msra.mxu0 %v7439_v16  ;;  %v7443_v29 = vld [vmem:[%s9256_s8 + $0x28] sm:$0xff]  }
 0x341   :  { %6444 = vmatpush3.bf16.msra.mxu1 %v7417_v53  ;;  %6509 = vmatprep.subr.bf16.mxu0 %v7440_v17  ;;  %v4731_v2 = vpop.f32.mrf.mxu1  ;;  %v9188_v53 = vld [vmem:[#allocation7] sm:$0x1f] }
 0x342   :  { %6445 = vmatprep.subr.bf16.mxu1 %v7418_v18  ;;  %v9191_v17 = vunpack.c.l.bf16 %v9188_v53 }
 0x343   :  { %v4733_v11 = vpop.f32.mrf.mxu1 }
 0x344   :  { %4948 = vmatmul.mubr.bf16.gmra.mxu1 %v8714_v31  ;;  %6510 = vmatpush3.bf16.msra.mxu0 %v7441_v19 }
 0x345   :  { %6446 = vmatpush3.bf16.msra.mxu1 %v7419_v8  ;;  %5043 = vmatprep.mubr.bf16.mxu1 %v8624_v50  ;;  %v7445_v50 = vld [vmem:[%s9256_s8 + $0x20] sm:$0xff]   ;;  %v4737_v13 = vpop.f32.mrf.mxu1  ;;  %v3615_v8 = vrot.slane %v9191_v17, %v7933_v54 }
 0x346   :  { %6447 = vmatprep.subr.bf16.mxu1 %v7420_v22  ;;  %6511 = vmatprep.subr.bf16.mxu0 %v7442_v3  ;;  %v3611_v22 = vrot.slane %v9191_v17, %v7936_v55 }
 0x347   :  { %5101 = vmatmul.mubr.bf16.gmra.mxu0 %v8714_v31  ;;  %v7424_v31 = vld [vmem:[%s9254_s6 + $0x1a0] ss:$20 sps:$4 sm:$0xff]   ;;  %v4739_v18 = vpop.f32.mrf.mxu1 }
 0x348   :  { %6512 = vmatpush3.bf16.msra.mxu0 %v7443_v29 }
 0x349   :  { %6448 = vmatpush3.bf16.msra.mxu1 %v7421_v23  ;;  %6513 = vmatprep.subr.bf16.mxu0 %v7444_v24  ;;  %v4741_v3 = vpop.f32.mrf.mxu1  ;;  %v3640_v23 = vrot.slane %v3615_v8, %v7936_v55  ;;  %v3636_v24 = vrot.slane %v3611_v22, %v7936_v55  ;;  %v7473_v8 = vld [vmem:[%s9256_s8 + $0x120] sm:$0xff]  }
 0x34a   :  { %6449 = vmatprep.subr.bf16.mxu1 %v7422_v25 }
 0x34b   :  { %v4743_v25 = vpop.f32.mrf.mxu1 }
 0x34c   :  { %6514 = vmatpush3.bf16.msra.mxu0 %v7445_v50 }
 0x34d   :  { %6450 = vmatpush3.bf16.msra.mxu1 %v7423_v28  ;;  %6515 = vmatprep.subr.bf16.mxu0 %v7446_v30  ;;  %v4730_v30 = vadd.f32 %v4729_v7, %v3640_v23 }
 0x34e   :  { %6451 = vmatprep.subr.bf16.mxu1 %v7424_v31  ;;  %v4732_v31 = vadd.f32 %v4731_v2, %v3636_v24 }
 0x350   :  { %6516 = vmatpush3.bf16.msra.mxu0 %v7447_v32  ;;  %v4728_v32 = vadd.f32 %v4727_v52, %v3636_v24 }
 0x351   :  { %6452 = vmatpush3.bf16.msra.mxu1 %v7425_v33  ;;  %6517 = vmatprep.subr.bf16.mxu0 %v7448_v34 }
 0x352   :  { %6453 = vmatprep.subr.bf16.mxu1 %v7426_v35  ;;  %v4734_v35 = vadd.f32 %v4733_v11, %v3640_v23  ;;  %v7472_v11 = vld [vmem:[%s9256_s8 + $0x128] sm:$0xff]  }
 0x354   :  { %6518 = vmatpush3.bf16.msra.mxu0 %v7449_v14 }
 0x355   :  { %6454 = vmatpush3.bf16.msra.mxu1 %v7427_v36  ;;  %6519 = vmatprep.subr.bf16.mxu0 %v7450_v37 }
 0x356   :  { %6455 = vmatprep.subr.bf16.mxu1 %v7428_v38 }
 0x358   :  { %6520 = vmatpush3.bf16.msra.mxu0 %v7451_v40 }
 0x359   :  { %6456 = vmatpush3.bf16.msra.mxu1 %v7429_v41  ;;  %6521 = vmatprep.subr.bf16.mxu0 %v7452_v42 }
 0x35a   :  { %6593 = vmatprep.subr.bf16.mxu1 %v7430_v48 }
 0x35c   :  { %5044 = vmatmul.mubr.bf16.vlgmr.msra.gmra.mxu1 %v8629_v49  ;;  %6522 = vmatpush3.bf16.msra.mxu0 %v7453_v44  ;;  %v7434_v49 = vld [vmem:[%s9254_s6 + $0x588] ss:$20 sps:$4 sm:$0xff]  }
 0x35d   :  { %5051 = vmatprep.mubr.bf16.mxu1 %v8642_v1  ;;  %6594 = vmatpush3.bf16.msra.mxu1 %v7430_v48  ;;  %v7435_v1 = vld [vmem:[%s9254_s6 + $0x560] ss:$20 sps:$4 sm:$0xff]  }
 0x35e   :  { %6595 = vmatprep.subr.bf16.mxu1 %v7431_v46  ;;  %6613 = vmatprep.subr.bf16.mxu0 %v7470_v9 }
 0x361   :  { %6596 = vmatpush3.bf16.msra.mxu1 %v7431_v46 }
 0x362   :  { %6597 = vmatprep.subr.bf16.mxu1 %v7432_v56 }
 0x364   :  { %5052 = vmatmul.mubr.bf16.gmra.mxu1 %v8647_v6  ;;  %v7436_v6 = vld [vmem:[%s9254_s6 + $0x538] ss:$20 sps:$4 sm:$0xff]  }
 0x365   :  { %6598 = vmatpush3.bf16.msra.mxu1 %v7432_v56  ;;  %6609 = vmatprep.mubr.bf16.mxu1 %v8806_v20  ;;  %v7437_v20 = vld [vmem:[%s9254_s6 + $0x510] ss:$20 sps:$4 sm:$0xff]  }
 0x366   :  { %6599 = vmatprep.subr.bf16.mxu1 %v7433_v47 }
 0x369   :  { %6600 = vmatpush3.bf16.msra.mxu1 %v7433_v47 }
 0x36a   :  { %6601 = vmatprep.subr.bf16.mxu1 %v7434_v49 }
 0x36d   :  { %6602 = vmatpush3.bf16.msra.mxu1 %v7434_v49  ;;  %v4740_v49 = vadd.f32 %v4739_v18, %v3640_v23 }
 0x36e   :  { %6603 = vmatprep.subr.bf16.mxu1 %v7435_v1 }
 0x371   :  { %6604 = vmatpush3.bf16.msra.mxu1 %v7435_v1  ;;  %v4742_v1 = vadd.f32 %v4741_v3, %v3636_v24 }
 0x372   :  { %6605 = vmatprep.subr.bf16.mxu1 %v7436_v6 }
 0x375   :  { %6606 = vmatpush3.bf16.msra.mxu1 %v7436_v6 }
 0x376   :  { %6607 = vmatprep.subr.bf16.mxu1 %v7437_v20 }
 0x379   :  { %6608 = vmatpush3.bf16.msra.mxu1 %v7437_v20 }
 0x37a   :  { %6535 = vmatprep.subr.bf16.mxu1 %v7454_v5  ;;  %v4738_v5 = vadd.f32 %v4737_v13, %v3636_v24  ;;  %v7476_v24 = vld [vmem:[%s9256_s8 + $0x108] sm:$0xff]  }
 0x37c   :  { %6610 = vmatmul.mubr.bf16.vlgmr.msra.gmra.mxu1 %v8833_v43  ;;  %v7460_v43 = vld [vmem:[%s9256_s8 + $0xe0] sm:$0xff]  }
 0x37d   :  { %6536 = vmatpush3.bf16.msra.mxu1 %v7455_v57 }
 0x37e   :  { %6537 = vmatprep.subr.bf16.mxu1 %v7456_v10 }
 0x37f   :  { %v4780_v12 = vpop.f32.mrf.mxu0 }
 0x380   :  { %v4781_v36 = vadd.f32 %v4780_v12, %v4728_v32 }
 0x381   :  { %6538 = vmatpush3.bf16.msra.mxu1 %v7457_v61  ;;  %v4782_v16 = vpop.f32.mrf.mxu0 }
 0x382   :  { %6539 = vmatprep.subr.bf16.mxu1 %v7458_v21  ;;  %v4783_v14 = vadd.f32 %v4782_v16, %v4730_v30  ;;  %v4744_v21 = vadd.f32 %v4743_v25, %v3640_v23 }
 0x383   :  { %v4784_v19 = vpop.f32.mrf.mxu0 }
 0x384   :  { %v4785_v54 = vadd.f32 %v4784_v19, %v4732_v31 }
 0x385   :  { %6540 = vmatpush3.bf16.msra.mxu1 %v7459_v39  ;;  %v4786_v29 = vpop.f32.mrf.mxu0 }
 0x386   :  { %6541 = vmatprep.subr.bf16.mxu1 %v7460_v43  ;;  %v4787_v38 = vadd.f32 %v4786_v29, %v4734_v35  ;;  %v7475_v29 = vld [vmem:[%s9256_s8 + $0x110] sm:$0xff]   ;;  %v3623_v35 = vrot.slane %v9191_v17, %v8006_v58 }
 0x387   :  { %v4790_v50 = vpop.f32.mrf.mxu0 }
 0x389   :  { %6542 = vmatpush3.bf16.msra.mxu1 %v7461_v4  ;;  %v4792_v33 = vpop.f32.mrf.mxu0 }
 0x38a   :  { %6543 = vmatprep.subr.bf16.mxu1 %v7462_v15  ;;  %v4793_v39 = vadd.f32 %v4792_v33, %v4740_v49  ;;  %v4791_v15 = vadd.f32 %v4790_v50, %v4738_v5  ;;  %v7477_v50 = vld [vmem:[%s9256_s8 + $0x100] sm:$0xff]  }
 0x38b   :  { %v4794_v42 = vpop.f32.mrf.mxu0 }
 0x38c   :  { %v4795_v43 = vadd.f32 %v4794_v42, %v4742_v1 }
 0x38d   :  { %6544 = vmatpush3.bf16.msra.mxu1 %v7463_v45  ;;  %v4796_v57 = vpop.f32.mrf.mxu0 }
 0x38e   :  { %6545 = vmatprep.subr.bf16.mxu1 %v7464_v60 }
 0x391   :  { %6546 = vmatpush3.bf16.msra.mxu1 %v7465_v27  ;;  %v7471_v27 = vld [vmem:[%s9256_s8 + $0x130] sm:$0xff]  }
 0x392   :  { %6547 = vmatprep.subr.bf16.mxu1 %v7466_v62  ;;  %v4797_v62 = vadd.f32 %v4796_v57, %v4744_v21 }
 0x395   :  { %6548 = vmatpush3.bf16.msra.mxu1 %v7467_v26 }
 0x396   :  { %6549 = vmatprep.subr.bf16.mxu1 %v7468_v63 }
 0x399   :  { %6550 = vmatpush3.bf16.msra.mxu1 %v7469_v0 }
 0x3bc   :  { %v4833_v28 = vpop.f32.mrf.mxu1 }
 0x3bd   :  { %v4834_v48 = vadd.f32 %v4833_v28, %v4781_v36  ;;  %v3648_v36 = vrot.slane %v3623_v35, %v7936_v55 }
 0x3be   :  { %v4835_v34 = vpop.f32.mrf.mxu1 }
 0x3bf   :  { %v4836_v40 = vadd.f32 %v4835_v34, %v4783_v14  ;;  %v5158_v10 = vmax.f32 %v4834_v48, 0.0  ;;  %v4886_v22 = vpop.f32.mrf.mxu0  ;;  %v3619_v14 = vrot.slane %v9191_v17, %v8009_v59 }
 0x3c0   :  { %v4837_v37 = vpop.f32.mrf.mxu1 }
 0x3c1   :  { %v4838_v41 = vadd.f32 %v4837_v37, %v4785_v54  ;;  %v5159_v6 = vmax.f32 %v4836_v40, 0.0  ;;  %v4888_v3 = vpop.f32.mrf.mxu0  ;;  %v3644_v37 = vrot.slane %v3619_v14, %v7936_v55 }
 0x3c2   :  { %v4839_v44 = vpop.f32.mrf.mxu1 }
 0x3c3   :  { %v4840_v46 = vadd.f32 %v4839_v44, %v4787_v38  ;;  %v5163_v56 = vmax.f32 %v4838_v41, 0.0  ;;  %v4890_v23 = vpop.f32.mrf.mxu0  ;;  %v4889_v41 = vadd.f32 %v4888_v3, %v3648_v36  ;;  %v4887_v42 = vadd.f32 %v4886_v22, %v3644_v37 }
 0x3c4   :  { %v4843_v47 = vpop.f32.mrf.mxu1  ;;  %v4891_v44 = vadd.f32 %v4890_v23, %v3644_v37 }
 0x3c5   :  { %v5164_v20 = vmax.f32 %v4840_v46, 0.0  ;;  %v5178_v45 = vpack.c.bf16 %v5163_v56, %v5158_v10  ;;  %v4844_v0 = vadd.f32 %v4843_v47, %v4791_v15  ;;  %v4892_v25 = vpop.f32.mrf.mxu0 }
 0x3c6   :  { %v4845_v61 = vpop.f32.mrf.mxu1  ;;  %v4893_v1 = vadd.f32 %v4892_v25, %v3648_v36 }
 0x3c7   :  { %v5179_v4 = vpack.c.bf16 %v5164_v20, %v5159_v6  ;;  %v4846_v26 = vadd.f32 %v4845_v61, %v4793_v39  ;;  %v5168_v16 = vmax.f32 %v4844_v0, 0.0  ;;  %v4896_v28 = vpop.f32.mrf.mxu0 }
 0x3c8   :  { %v4847_v60 = vpop.f32.mrf.mxu1  ;;  %v4897_v39 = vadd.f32 %v4896_v28, %v3644_v37 }
 0x3c9   :  { %v4848_v63 = vadd.f32 %v4847_v60, %v4795_v43  ;;  %5546 = vmatprep.mubr.bf16.mxu0 %v5179_v4  ;;  %v5169_v12 = vmax.f32 %v4846_v26, 0.0  ;;  %v4898_v30 = vpop.f32.mrf.mxu0 }
 0x3ca   :  { %v4849_v52 = vpop.f32.mrf.mxu1  ;;  %5547 = vmatmul.mubr.bf16.vlgmr.msra.gmra.mxu0 %v5178_v45  ;;  %v4899_v61 = vadd.f32 %v4898_v30, %v3648_v36 }
 0x3cb   :  { %v4850_v7 = vadd.f32 %v4849_v52, %v4797_v62  ;;  %6614 = vmatpush3.bf16.msra.mxu0 %v7470_v9  ;;  %v5173_v2 = vmax.f32 %v4848_v63, 0.0  ;;  %v7474_v9 = vld [vmem:[%s9256_s8 + $0x118] sm:$0xff]   ;;  %v4900_v31 = vpop.f32.mrf.mxu0 }
 0x3cc   :  { %6615 = vmatprep.subr.bf16.mxu0 %v7471_v27  ;;  %v4901_v15 = vadd.f32 %v4900_v31, %v3644_v37  ;;  %v3605_v37 = vunpack.c.h.bf16 %v9188_v53 }
 0x3cd   :  { %v5174_v13 = vmax.f32 %v4850_v7, 0.0  ;;  %v5183_v19 = vpack.c.bf16 %v5173_v2, %v5168_v16  ;;  %v4902_v32 = vpop.f32.mrf.mxu0 }
 0x3ce   :  { %v4903_v52 = vadd.f32 %v4902_v32, %v3648_v36 }
 0x3cf   :  { %v5184_v18 = vpack.c.bf16 %v5174_v13, %v5169_v12  ;;  %6616 = vmatpush3.bf16.msra.mxu0 %v7471_v27 }
 0x3d0   :  { %6617 = vmatprep.subr.bf16.mxu0 %v7472_v11 }
 0x3d1   :  { %5554 = vmatprep.mubr.bf16.mxu0 %v5184_v18 }
 0x3d2   :  { %5555 = vmatmul.mubr.bf16.gmra.mxu0 %v5183_v19 }
 0x3d3   :  { %6618 = vmatpush3.bf16.msra.mxu0 %v7472_v11 }
 0x3d4   :  { %6619 = vmatprep.subr.bf16.mxu0 %v7473_v8 }
 0x3d7   :  { %6620 = vmatpush3.bf16.msra.mxu0 %v7473_v8 }
 0x3d8   :  { %6621 = vmatprep.subr.bf16.mxu0 %v7474_v9 }
 0x3db   :  { %6622 = vmatpush3.bf16.msra.mxu0 %v7474_v9 }
 0x3dc   :  { %6623 = vmatprep.subr.bf16.mxu0 %v7475_v29 }
 0x3df   :  { %6624 = vmatpush3.bf16.msra.mxu0 %v7475_v29  ;;  %v4992_v33 = vpop.f32.mrf.mxu0 }
 0x3e0   :  { %6625 = vmatprep.subr.bf16.mxu0 %v7476_v24 }
 0x3e1   :  { %v4994_v34 = vpop.f32.mrf.mxu0 }
 0x3e3   :  { %6626 = vmatpush3.bf16.msra.mxu0 %v7476_v24  ;;  %v4996_v54 = vpop.f32.mrf.mxu0 }
 0x3e4   :  { %6627 = vmatprep.subr.bf16.mxu0 %v7477_v50 }
 0x3e5   :  { %v4998_v38 = vpop.f32.mrf.mxu0 }
 0x3e7   :  { %6628 = vmatpush3.bf16.msra.mxu0 %v7477_v50  ;;  %v5002_v56 = vpop.f32.mrf.mxu0 }
 0x3e9   :  { %v5004_v5 = vpop.f32.mrf.mxu0 }
 0x3eb   :  { %v5006_v62 = vpop.f32.mrf.mxu0 }
 0x3ed   :  { %v5008_v19 = vpop.f32.mrf.mxu0 }
 0x3fc   :  { %v4939_v40 = vpop.f32.mrf.mxu1 }
 0x3fd   :  { %v4940_v47 = vadd.f32 %v4939_v40, %v4887_v42 }
 0x3fe   :  { %v4941_v48 = vpop.f32.mrf.mxu1 }
 0x3ff   :  { %v4942_v46 = vadd.f32 %v4941_v48, %v4889_v41  ;;  %v4993_v57 = vadd.f32 %v4992_v33, %v4940_v47  ;;  %v6485_v28 = vpop.f32.mrf.mxu0  ;;  %v3627_v41 = vrot.slane %v3605_v37, %v7936_v55 }
 0x400   :  { %v4943_v49 = vpop.f32.mrf.mxu1 }
 0x401   :  { %v4944_v58 = vadd.f32 %v4943_v49, %v4891_v44  ;;  %v4995_v20 = vadd.f32 %v4994_v34, %v4942_v46  ;;  %v5160_v26 = vmax.f32 %v4993_v57, 0.0  ;;  %v6486_v32 = vpop.f32.mrf.mxu0  ;;  %v3652_v44 = vrot.slane %v3627_v41, %v7936_v55 }
 0x402   :  { %v4945_v6 = vpop.f32.mrf.mxu1 }
 0x403   :  { %v4997_v59 = vadd.f32 %v4996_v54, %v4944_v58  ;;  %v4946_v17 = vadd.f32 %v4945_v6, %v4893_v1  ;;  %v5161_v45 = vmax.f32 %v4995_v20, 0.0  ;;  %v6488_v34 = vpop.f32.mrf.mxu0 }
 0x404   :  { %v4949_v10 = vpop.f32.mrf.mxu1 }
 0x405   :  { %v4999_v21 = vadd.f32 %v4998_v38, %v4946_v17  ;;  %v5165_v43 = vmax.f32 %v4997_v59, 0.0  ;;  %v4950_v63 = vadd.f32 %v4949_v10, %v4897_v39  ;;  %v6489_v14 = vpop.f32.mrf.mxu0  ;;  %v6487_v17 = vadd.f32 %v6486_v32, %v6485_v28  ;;  %v6318_v28 = vld.sshfl [vmem:[%s9249_s1] sm:$0x11 pattern:$0x75316420] }
 0x406   :  { %v4951_v4 = vpop.f32.mrf.mxu1 }
 0x407   :  { %v5166_v60 = vmax.f32 %v4999_v21, 0.0  ;;  %v4952_v27 = vadd.f32 %v4951_v4, %v4899_v61  ;;  %v5180_v11 = vpack.c.bf16 %v5165_v43, %v5160_v26  ;;  %v5003_v8 = vadd.f32 %v5002_v56, %v4950_v63  ;;  %v6491_v36 = vpop.f32.mrf.mxu0 }
 0x408   :  { %v4953_v0 = vpop.f32.mrf.mxu1  ;;  %v6490_v61 = vadd.f32 %v6489_v14, %v6488_v34 }
 0x409   :  { %v4954_v7 = vadd.f32 %v4953_v0, %v4901_v15  ;;  %v5181_v2 = vpack.c.bf16 %v5166_v60, %v5161_v45  ;;  %v5005_v13 = vadd.f32 %v5004_v5, %v4952_v27  ;;  %v5170_v23 = vmax.f32 %v5003_v8, 0.0  ;;  %v6492_v40 = vpop.f32.mrf.mxu0 }
 0x40a   :  { %v4955_v12 = vpop.f32.mrf.mxu1  ;;  %v6493_v57 = vadd.f32 %v6492_v40, %v6491_v36 }
 0x40b   :  { %v5007_v16 = vadd.f32 %v5006_v62, %v4954_v7  ;;  %v4956_v18 = vadd.f32 %v4955_v12, %v4903_v52  ;;  %5595 = vmatprep.mubr.bf16.mxu1 %v5181_v2  ;;  %v5171_v3 = vmax.f32 %v5005_v13, 0.0  ;;  %v6494_v48 = vpop.f32.mrf.mxu0 }
 0x40c   :  { %5596 = vmatmul.mubr.bf16.vlgmr.msra.gmra.mxu1 %v5180_v11 }
 0x40d   :  { %v5009_v22 = vadd.f32 %v5008_v19, %v4956_v18  ;;  %v5175_v9 = vmax.f32 %v5007_v16, 0.0  ;;  %v6495_v1 = vpop.f32.mrf.mxu0 }
 0x40e   :  { %v6496_v5 = vadd.f32 %v6495_v1, %v6494_v48 }
 0x40f   :  { %v5176_v29 = vmax.f32 %v5009_v22, 0.0  ;;  %v5185_v25 = vpack.c.bf16 %v5175_v9, %v5170_v23 }
 0x411   :  { %v5186_v24 = vpack.c.bf16 %v5176_v29, %v5171_v3  ;;  %v7592_v29 = vmov 1966171168  }
 0x412   :  { %v5672_v23 = vunpack.c.l.s4 %v7592_v29 }
 0x413   :  { %5603 = vmatprep.mubr.bf16.mxu1 %v5186_v24 }
 0x414   :  { %5604 = vmatmul.mubr.bf16.gmra.mxu1 %v5185_v25 }
 0x41c   :  { %v6457_v50 = vpop.f32.mrf.mxu1 }
 0x41e   :  { %v6458_v30 = vpop.f32.mrf.mxu1 }
 0x41f   :  { %v6459_v46 = vadd.f32 %v6458_v30, %v6457_v50  ;;  %v5673_v50 = vunpack.c.0.s8 %v5672_v23  ;;  %v5268_v30 = vld [vmem:[#allocation9] sm:$0x1] }
 0x420   :  { %v6460_v31 = vpop.f32.mrf.mxu1 }
 0x421   :  { %v5046_v58 = vadd.f32 %v6459_v46, %v3652_v44  ;;  %v5676_v34 = vsub.s32 %v5673_v50, %v7925_v51 }
 0x422   :  { %v6461_v33 = vpop.f32.mrf.mxu1 }
 0x423   :  { %v6462_v49 = vadd.f32 %v6461_v33, %v6460_v31  ;;  %v5095_v21 = vadd.f32 %v6487_v17, %v5046_v58  ;;  %v5670_v33 = vcombine.high %v6318_v28, %v6318_v28  ;;  %v5677_v48 = vrot.slane %v6318_v28, %v5676_v34 }
 0x424   :  { %v6463_v35 = vpop.f32.mrf.mxu1 }
 0x425   :  { %v5049_v53 = vadd.f32 %v6462_v49, %v3652_v44  ;;  %v5684_v37 = vrot.slane %v5670_v33, %v5676_v34 }
 0x426   :  { %v6464_v54 = vpop.f32.mrf.mxu1 }
 0x427   :  { %v6465_v47 = vadd.f32 %v6464_v54, %v6463_v35  ;;  %v5098_v60 = vadd.f32 %v6490_v61, %v5049_v53  ;;  %v5269_v35 = vunpack.c.l.bf16 %v5268_v30 }
 0x428   :  { %v6466_v38 = vpop.f32.mrf.mxu1 }
 0x429   :  { %v5054_v20 = vadd.f32 %v6465_v47, %v3652_v44  ;;  %v5692_v47 = vrot.slane %v5684_v37, %v7936_v55 }
 0x42a   :  { %v6467_v42 = vpop.f32.mrf.mxu1 }
 0x42b   :  { %v6468_v56 = vadd.f32 %v6467_v42, %v6466_v38  ;;  %v5103_v43 = vadd.f32 %v6493_v57, %v5054_v20  ;;  %v5273_v38 = vrot.slane %v5269_v35, %v7936_v55  ;;  %v5688_v20 = vrot.slane %v5677_v48, %v7936_v55 }
 0x42d   :  { %v5057_v6 = vadd.f32 %v6468_v56, %v3652_v44 }
 0x42f   :  { %v5106_v39 = vadd.f32 %v6496_v5, %v5057_v6 }
 0x43c   :  { %v6611_v59 = vpop.f32.mrf.mxu1 }
 0x43d   :  { %v5152_v27 = vadd.f32 %v6611_v59, %v5103_v43 }
 0x43e   :  { %v5143_v10 = vpop.f32.mrf.mxu1 }
 0x43f   :  { %v5144_v15 = vadd.f32 %v5143_v10, %v5095_v21  ;;  %v5172_v7 = vmax.f32 %v5152_v27, 0.0 }
 0x440   :  { %v6612_v4 = vpop.f32.mrf.mxu1 }
 0x441   :  { %v5155_v45 = vadd.f32 %v6612_v4, %v5106_v39  ;;  %v5162_v0 = vmax.f32 %v5144_v15, 0.0 }
 0x442   :  { %v5146_v62 = vpop.f32.mrf.mxu1 }
 0x443   :  { %v5147_v26 = vadd.f32 %v5146_v62, %v5098_v60  ;;  %v5177_v63 = vmax.f32 %v5155_v45, 0.0 }
 0x445   :  { %v5167_v52 = vmax.f32 %v5147_v26, 0.0  ;;  %v5187_v11 = vpack.c.bf16 %v5177_v63, %v5172_v7 }
 0x447   :  { %v5182_v2 = vpack.c.bf16 %v5167_v52, %v5162_v0 }
 0x449   :  { %6629 = vmatprep.mubr.bf16.mxu0 %v5182_v2 }
 0x44a   :  { %6630 = vmatmul.mubr.bf16.vlgmr.msra.gmra.mxu0 %v5187_v11 }
 0x48a   :  { %v6523_v12 = vpop.f32.mrf.mxu0 }
 0x48c   :  { %v6524_v16 = vpop.f32.mrf.mxu0 }
 0x48d   :  { %v6525_v40 = vadd.f32 %v6524_v16, %v6523_v12 }
 0x48e   :  { %v6526_v19 = vpop.f32.mrf.mxu0 }
 0x48f   :  { %v5549_v49 = vadd.f32 %v6525_v40, %v5273_v38 }
 0x490   :  { %v6527_v22 = vpop.f32.mrf.mxu0 }
 0x491   :  { %v6528_v1 = vadd.f32 %v6527_v22, %v6526_v19 }
 0x492   :  { %v6529_v3 = vpop.f32.mrf.mxu0 }
 0x493   :  { %v5552_v10 = vadd.f32 %v6528_v1, %v5273_v38 }
 0x494   :  { %v6530_v25 = vpop.f32.mrf.mxu0 }
 0x495   :  { %v6531_v54 = vadd.f32 %v6530_v25, %v6529_v3 }
 0x496   :  { %v6532_v32 = vpop.f32.mrf.mxu0 }
 0x497   :  { %v5557_v44 = vadd.f32 %v6531_v54, %v5273_v38 }
 0x498   :  { %v6533_v36 = vpop.f32.mrf.mxu0 }
 0x499   :  { %v6534_v46 = vadd.f32 %v6533_v36, %v6532_v32 }
 0x49b   :  { %v5560_v59 = vadd.f32 %v6534_v46, %v5273_v38 }
 0x4cc   :  { %v6551_v13 = vpop.f32.mrf.mxu1 }
 0x4ce   :  { %v6552_v18 = vpop.f32.mrf.mxu1 }
 0x4cf   :  { %v6553_v56 = vadd.f32 %v6552_v18, %v6551_v13 }
 0x4d0   :  { %v6554_v8 = vpop.f32.mrf.mxu1 }
 0x4d1   :  { %v5598_v53 = vadd.f32 %v6553_v56, %v5549_v49 }
 0x4d2   :  { %v6555_v9 = vpop.f32.mrf.mxu1 }
 0x4d3   :  { %v6556_v17 = vadd.f32 %v6555_v9, %v6554_v8 }
 0x4d4   :  { %v6557_v24 = vpop.f32.mrf.mxu1 }
 0x4d5   :  { %v5601_v45 = vadd.f32 %v6556_v17, %v5552_v10 }
 0x4d6   :  { %v6558_v31 = vpop.f32.mrf.mxu1 }
 0x4d7   :  { %v6559_v41 = vadd.f32 %v6558_v31, %v6557_v24 }
 0x4d8   :  { %v6560_v14 = vpop.f32.mrf.mxu1 }
 0x4d9   :  { %v5606_v51 = vadd.f32 %v6559_v41, %v5557_v44 }
 0x4da   :  { %v6561_v42 = vpop.f32.mrf.mxu1 }
 0x4db   :  { %v6562_v58 = vadd.f32 %v6561_v42, %v6560_v14 }
 0x4dd   :  { %v5609_v39 = vadd.f32 %v6562_v58, %v5560_v59 }
 0x50a   :  { %v6631_v6 = vpop.f32.mrf.mxu0 }
 0x50b   :  { %v5655_v5 = vadd.f32 %v6631_v6, %v5606_v51 }
 0x50c   :  { %v5646_v57 = vpop.f32.mrf.mxu0 }
 0x50d   :  { %v5697_v61 = vadd.f32 %v5692_v47, %v5655_v5  ;;  %v5647_v21 = vadd.f32 %v5646_v57, %v5598_v53 }
 0x50e   :  { %v6632_v43 = vpop.f32.mrf.mxu0 }
 0x50f   :  { %5701 = vst [vmem:[%s9258_s10 + $0x10] sm:$0xff] %v5697_v61  ;;  %v5695_v4 = vadd.f32 %v5688_v20, %v5647_v21  ;;  %v5658_v15 = vadd.f32 %v6632_v43, %v5609_v39 }
 0x510   :  { %v5649_v60 = vpop.f32.mrf.mxu0 }
 0x511   :  { %5699 = vst [vmem:[%s9258_s10] sm:$0xff] %v5695_v4  ;;  %v5698_v55 = vadd.f32 %v5692_v47, %v5658_v15  ;;  %v5650_v27 = vadd.f32 %v5649_v60, %v5601_v45 }
 0x513   :  { %5702 = vst [vmem:[%s9258_s10 + $0x18] sm:$0xff] %v5698_v55  ;;  %v5696_v62 = vadd.f32 %v5688_v20, %v5650_v27 }
 0x515   :  { %5700 = vst [vmem:[%s9258_s10 + $0x8] sm:$0xff] %v5696_v62 }
 0x516   :  { %5707 = vsyncpa [#allocation3], 1 }
 0x517   :  { %5708 = vsyncpa [#allocation5], 1 }
 0x518   :  { %5709 = vsyncpa [#allocation8], 1 }

// kernel: neg.10
= control target key start
LH: loop header
LB: loop body
LE: loop exit
PB: predicated region body
PF: predicated region fallthrough
CT: control target
= control target key end

     0   :  { %s520_s0 = inlined_call_operand.vmem [shape: f32[2,256,64], index: 0, kind: input, shape index: {}]   ;;  %s521_s1 = inlined_call_operand.vmem [shape: f32[2,256,64], index: 1, kind: output, shape index: {}]  }
   0x1   :  { %v2_v0 = vld [vmem:[%s520_s0] sm:$0xff]  ;;  %v258_v2 = vld [vmem:[%s520_s0 + $0x10] sm:$0xff]  ;;  %v286_v31 = vld [vmem:[%s520_s0 + $0x8] sm:$0xff] }
   0x2   :  { %v256_v1 = vld [vmem:[%s520_s0 + $0x80] sm:$0xff]  ;;  %v5_v3 = vxor.u32 2147483648, %v2_v0  ;;  %v20_v5 = vxor.u32 2147483648, %v258_v2  ;;  %v260_v6 = vld [vmem:[%s520_s0 + $0x90] sm:$0xff]  ;;  %v288_v32 = vld [vmem:[%s520_s0 + $0x88] sm:$0xff]  ;;  %v132_v34 = vxor.u32 2147483648, %v286_v31 }
   0x3   :  { %v12_v4 = vxor.u32 2147483648, %v256_v1  ;;  %v262_v7 = vld [vmem:[%s520_s0 + $0x20] sm:$0xff]  ;;  %v28_v9 = vxor.u32 2147483648, %v260_v6  ;;  %v266_v12 = vld [vmem:[%s520_s0 + $0x30] sm:$0xff]  ;;  %v140_v35 = vxor.u32 2147483648, %v288_v32  ;;  %v290_v36 = vld [vmem:[%s520_s0 + $0x18] sm:$0xff] }
   0x4   :  { %v264_v8 = vld [vmem:[%s520_s0 + $0xa0] sm:$0xff]  ;;  %v36_v10 = vxor.u32 2147483648, %v262_v7  ;;  %v268_v13 = vld [vmem:[%s520_s0 + $0xb0] sm:$0xff]  ;;  %7 = vst [vmem:[%s521_s1] sm:$0xff] %v5_v3  ;;  %259 = vst [vmem:[%s521_s1 + $0x10] sm:$0xff] %v20_v5  ;;  %v52_v15 = vxor.u32 2147483648, %v266_v12  ;;  %v148_v39 = vxor.u32 2147483648, %v290_v36 }
   0x5   :  { %v44_v11 = vxor.u32 2147483648, %v264_v8  ;;  %v270_v14 = vld [vmem:[%s520_s0 + $0x40] sm:$0xff]  ;;  %257 = vst [vmem:[%s521_s1 + $0x80] sm:$0xff] %v12_v4  ;;  %v60_v16 = vxor.u32 2147483648, %v268_v13  ;;  %v274_v19 = vld [vmem:[%s520_s0 + $0x50] sm:$0xff]  ;;  %261 = vst [vmem:[%s521_s1 + $0x90] sm:$0xff] %v28_v9 }
   0x6   :  { %v68_v17 = vxor.u32 2147483648, %v270_v14  ;;  %v272_v18 = vld [vmem:[%s520_s0 + $0xc0] sm:$0xff]  ;;  %v276_v20 = vld [vmem:[%s520_s0 + $0xd0] sm:$0xff]  ;;  %263 = vst [vmem:[%s521_s1 + $0x20] sm:$0xff] %v36_v10  ;;  %v84_v22 = vxor.u32 2147483648, %v274_v19  ;;  %267 = vst [vmem:[%s521_s1 + $0x30] sm:$0xff] %v52_v15 }
   0x7   :  { %265 = vst [vmem:[%s521_s1 + $0xa0] sm:$0xff] %v44_v11  ;;  %v76_v21 = vxor.u32 2147483648, %v272_v18  ;;  %v92_v23 = vxor.u32 2147483648, %v276_v20  ;;  %v278_v24 = vld [vmem:[%s520_s0 + $0x60] sm:$0xff]  ;;  %v282_v26 = vld [vmem:[%s520_s0 + $0x70] sm:$0xff]  ;;  %269 = vst [vmem:[%s521_s1 + $0xb0] sm:$0xff] %v60_v16 }
   0x8   :  { %v280_v25 = vld [vmem:[%s520_s0 + $0xe0] sm:$0xff]  ;;  %271 = vst [vmem:[%s521_s1 + $0x40] sm:$0xff] %v68_v17  ;;  %v100_v27 = vxor.u32 2147483648, %v278_v24  ;;  %v116_v29 = vxor.u32 2147483648, %v282_v26  ;;  %v284_v30 = vld [vmem:[%s520_s0 + $0xf0] sm:$0xff]  ;;  %275 = vst [vmem:[%s521_s1 + $0x50] sm:$0xff] %v84_v22 }
   0x9   :  { %v108_v28 = vxor.u32 2147483648, %v280_v25  ;;  %273 = vst [vmem:[%s521_s1 + $0xc0] sm:$0xff] %v76_v21  ;;  %277 = vst [vmem:[%s521_s1 + $0xd0] sm:$0xff] %v92_v23  ;;  %v124_v33 = vxor.u32 2147483648, %v284_v30  ;;  %v292_v37 = vld [vmem:[%s520_s0 + $0x98] sm:$0xff]  ;;  %v294_v38 = vld [vmem:[%s520_s0 + $0x28] sm:$0xff] }
   0xa   :  { %279 = vst [vmem:[%s521_s1 + $0x60] sm:$0xff] %v100_v27  ;;  %283 = vst [vmem:[%s521_s1 + $0x70] sm:$0xff] %v116_v29  ;;  %v156_v40 = vxor.u32 2147483648, %v292_v37  ;;  %v164_v41 = vxor.u32 2147483648, %v294_v38  ;;  %v296_v42 = vld [vmem:[%s520_s0 + $0xa8] sm:$0xff]  ;;  %v298_v43 = vld [vmem:[%s520_s0 + $0x38] sm:$0xff] }
   0xb   :  { %281 = vst [vmem:[%s521_s1 + $0xe0] sm:$0xff] %v108_v28  ;;  %v300_v44 = vld [vmem:[%s520_s0 + $0xb8] sm:$0xff]  ;;  %285 = vst [vmem:[%s521_s1 + $0xf0] sm:$0xff] %v124_v33  ;;  %v172_v45 = vxor.u32 2147483648, %v296_v42  ;;  %v180_v46 = vxor.u32 2147483648, %v298_v43  ;;  %v302_v48 = vld [vmem:[%s520_s0 + $0x48] sm:$0xff] }
   0xc   :  { %287 = vst [vmem:[%s521_s1 + $0x8] sm:$0xff] %v132_v34  ;;  %289 = vst [vmem:[%s521_s1 + $0x88] sm:$0xff] %v140_v35  ;;  %v188_v47 = vxor.u32 2147483648, %v300_v44  ;;  %v304_v49 = vld [vmem:[%s520_s0 + $0xc8] sm:$0xff]  ;;  %v306_v50 = vld [vmem:[%s520_s0 + $0x58] sm:$0xff]  ;;  %v196_v51 = vxor.u32 2147483648, %v302_v48 }
   0xd   :  { %291 = vst [vmem:[%s521_s1 + $0x18] sm:$0xff] %v148_v39  ;;  %293 = vst [vmem:[%s521_s1 + $0x98] sm:$0xff] %v156_v40  ;;  %v204_v52 = vxor.u32 2147483648, %v304_v49  ;;  %v212_v53 = vxor.u32 2147483648, %v306_v50  ;;  %v308_v54 = vld [vmem:[%s520_s0 + $0xd8] sm:$0xff]  ;;  %v310_v55 = vld [vmem:[%s520_s0 + $0x68] sm:$0xff] }
   0xe   :  { %295 = vst [vmem:[%s521_s1 + $0x28] sm:$0xff] %v164_v41  ;;  %v312_v56 = vld [vmem:[%s520_s0 + $0xe8] sm:$0xff]  ;;  %297 = vst [vmem:[%s521_s1 + $0xa8] sm:$0xff] %v172_v45  ;;  %v220_v57 = vxor.u32 2147483648, %v308_v54  ;;  %v228_v58 = vxor.u32 2147483648, %v310_v55  ;;  %v314_v60 = vld [vmem:[%s520_s0 + $0x78] sm:$0xff] }
   0xf   :  { %299 = vst [vmem:[%s521_s1 + $0x38] sm:$0xff] %v180_v46  ;;  %301 = vst [vmem:[%s521_s1 + $0xb8] sm:$0xff] %v188_v47  ;;  %v236_v59 = vxor.u32 2147483648, %v312_v56  ;;  %v316_v61 = vld [vmem:[%s520_s0 + $0xf8] sm:$0xff]  ;;  %v244_v62 = vxor.u32 2147483648, %v314_v60 }
  0x10   :  { %303 = vst [vmem:[%s521_s1 + $0x48] sm:$0xff] %v196_v51  ;;  %305 = vst [vmem:[%s521_s1 + $0xc8] sm:$0xff] %v204_v52  ;;  %v252_v63 = vxor.u32 2147483648, %v316_v61 }
  0x11   :  { %307 = vst [vmem:[%s521_s1 + $0x58] sm:$0xff] %v212_v53  ;;  %309 = vst [vmem:[%s521_s1 + $0xd8] sm:$0xff] %v220_v57 }
  0x12   :  { %311 = vst [vmem:[%s521_s1 + $0x68] sm:$0xff] %v228_v58  ;;  %313 = vst [vmem:[%s521_s1 + $0xe8] sm:$0xff] %v236_v59 }
  0x13   :  { %315 = vst [vmem:[%s521_s1 + $0x78] sm:$0xff] %v244_v62  ;;  %317 = vst [vmem:[%s521_s1 + $0xf8] sm:$0xff] %v252_v63 }

// kernel: _forward_core.7
= control target key start
LH: loop header
LB: loop body
LE: loop exit
PB: predicated region body
PF: predicated region fallthrough
CT: control target
= control target key end

     0   :  { %v56_v0 = vlaneseq  ;;  %v5270_v2 = vmov 1966171168   ;;  %s7317_s0 = inlined_call_operand.vmem [shape: f32[2,128], index: 0, kind: input, shape index: {}]   ;;  %s7318_s1 = inlined_call_operand.vmem [shape: f32[2,64,128], index: 1, kind: input, shape index: {}]   ;;  %s7319_s2 = inlined_call_operand.vmem [shape: bf16[128,128], index: 2, kind: input, shape index: {}]   ;;  %s7320_s3 = inlined_call_operand.vmem [shape: bf16[1,128], index: 3, kind: input, shape index: {}]   ;;  %s7321_s4 = inlined_call_operand.vmem [shape: f32[2,256,128], index: 4, kind: input, shape index: {}]   ;;  %s7322_s5 = inlined_call_operand.vmem [shape: f32[2,256], index: 5, kind: input, shape index: {}]   ;;  %s7323_s6 = inlined_call_operand.hbm [shape: f32[2,128], index: 6, kind: output, shape index: {0}]   ;;  %s7324_s7 = inlined_call_operand.vmem [shape: f32[2,256], index: 7, kind: output, shape index: {1}]  }
   0x1   :  { %v4828_v1 = vld.sshfl [vmem:[%s7317_s0] sm:$0x11 pattern:$0x75316420]  ;;  %v54_v3 = vunpack.c.l.s4 %v5270_v2  ;;  %v5345_v15 = vld [vmem:[%s7318_s1 + $0x8] sm:$0xff] }
   0x2   :  { %v5320_v4 = vshrl.u32 %v56_v0, 7  ;;  %v52_v6 = vcombine.high %v4828_v1, %v4828_v1  ;;  %v5331_v9 = vld [vmem:[%s7318_s1] sm:$0xff]  ;;  %v5350_v16 = vld [vmem:[%s7318_s1 + $0x48] sm:$0xff] }
   0x3   :  { %v55_v5 = vunpack.c.0.s8 %v54_v3  ;;  %v5336_v10 = vld [vmem:[%s7318_s1 + $0x40] sm:$0xff] }
   0x4   :  { %7374 = vst [vmem:[#allocation5_spill] sm:$0xff] %v5320_v4  ;;  %v5323_v7 = vsub.s32 0, %v5320_v4 }
   0x5   :  { %v5326_v8 = vsub.s32 %v55_v5, %v5320_v4 }
   0x7   :  { %7375 = vst [vmem:[#allocation6_spill] sm:$0xff] %v5326_v8  ;;  %v59_v11 = vrot.slane %v4828_v1, %v5326_v8  ;;  %v66_v12 = vrot.slane %v52_v6, %v5326_v8 }
   0x9   :  { %v70_v13 = vrot.slane %v59_v11, %v5323_v7  ;;  %v74_v14 = vrot.slane %v66_v12, %v5323_v7 }
   0xa   :  { %13 = vsyncpa [#allocation3], 0  ;;  %v5359_v21 = vld [vmem:[%s7318_s1 + $0x10] sm:$0xff]  ;;  %v5371_v25 = vld [vmem:[%s7318_s1 + $0x18] sm:$0xff]  ;;  %v5429_v51 = vand.u32 127, %v56_v0  ;;  %vm168_vm0 = vcmask 130112  }
   0xb   :  { %v77_v17 = vmul.f32 %v70_v13, %v5331_v9  ;;  %v85_v18 = vmul.f32 %v74_v14, %v5336_v10  ;;  %v78_v19 = vmul.f32 %v70_v13, %v5345_v15  ;;  %v86_v20 = vmul.f32 %v74_v14, %v5350_v16  ;;  %v5364_v22 = vld [vmem:[%s7318_s1 + $0x50] sm:$0xff]  ;;  %v5376_v26 = vld [vmem:[%s7318_s1 + $0x58] sm:$0xff]  ;;  %v5383_v29 = vld [vmem:[%s7318_s1 + $0x20] sm:$0xff] }
   0xc   :  { %v79_v23 = vmul.f32 %v70_v13, %v5359_v21  ;;  %v87_v24 = vmul.f32 %v74_v14, %v5364_v22  ;;  %v80_v27 = vmul.f32 %v70_v13, %v5371_v25  ;;  %v88_v28 = vmul.f32 %v74_v14, %v5376_v26  ;;  %v5388_v30 = vld [vmem:[%s7318_s1 + $0x60] sm:$0xff]  ;;  %v5395_v33 = vld [vmem:[%s7318_s1 + $0x28] sm:$0xff]  ;;  %v5407_v37 = vld [vmem:[%s7318_s1 + $0x30] sm:$0xff]  ;;  %7379 = vst [vmem:[#allocation10_spill] sm:$0xff] %v5429_v51 }
   0xd   :  { %93 = vadd.xlane.f32.xlu0 %v77_v17  ;;  %109 = vadd.xlane.f32.xlu1 %v85_v18  ;;  %v81_v31 = vmul.f32 %v70_v13, %v5383_v29  ;;  %v89_v32 = vmul.f32 %v74_v14, %v5388_v30  ;;  %v5400_v34 = vld [vmem:[%s7318_s1 + $0x68] sm:$0xff]  ;;  %v82_v35 = vmul.f32 %v70_v13, %v5395_v33  ;;  %v5412_v38 = vld [vmem:[%s7318_s1 + $0x70] sm:$0xff]  ;;  %v5419_v41 = vld [vmem:[%s7318_s1 + $0x38] sm:$0xff]  ;;  %v163_v54 = vadd.s32 4294967288, %v5429_v51 }
   0xe   :  { %7376 = vst [vmem:[#allocation7_spill] sm:$0xff] %v5400_v34  ;;  %v90_v36 = vmul.f32 %v74_v14, %v5400_v34  ;;  %7377 = vst [vmem:[#allocation8_spill] sm:$0xff] %v5412_v38  ;;  %v83_v39 = vmul.f32 %v70_v13, %v5407_v37  ;;  %v91_v40 = vmul.f32 %v74_v14, %v5412_v38  ;;  %v5424_v42 = vld [vmem:[%s7318_s1 + $0x78] sm:$0xff]  ;;  %v170_v55 = vadd.s32 4294967280, %v5429_v51 }
   0xf   :  { %7378 = vst [vmem:[#allocation9_spill] sm:$0xff] %v5424_v42  ;;  %v84_v43 = vmul.f32 %v70_v13, %v5419_v41  ;;  %v92_v44 = vmul.f32 %v74_v14, %v5424_v42  ;;  %v177_v56 = vadd.s32 4294967272, %v5429_v51  ;;  %v184_v57 = vadd.s32 4294967264, %v5429_v51 }
  0x10   :  { %v5437_v60 = vsub.s32 %v5429_v51, %v5320_v4  ;;  %v5440_v61 = vsub.s32 %v163_v54, %v5320_v4  ;;  %v191_v62 = vadd.s32 4294967256, %v5429_v51  ;;  %v5444_v63 = vsub.s32 %v170_v55, %v5320_v4 }
  0x11   :  { %95 = vadd.xlane.f32.xlu0 %v78_v19  ;;  %111 = vadd.xlane.f32.xlu1 %v86_v20  ;;  %vm175_vm1 = vcmask 195712   ;;  %vm182_vm2 = vcmask 261312   ;;  %v198_v0 = vadd.s32 4294967248, %v5429_v51  ;;  %v5454_v5 = vsub.s32 %v177_v56, %v5320_v4 }
  0x12   :  { %7380 = vst [vmem:[#allocation11_spill] sm:$0xff] %v5437_v60  ;;  %7381 = vst [vmem:[#allocation12_spill] sm:$0xff] %v5440_v61  ;;  %vm189_vm3 = vcmask 326912   ;;  %v5463_v13 = vsub.s32 %v184_v57, %v5320_v4  ;;  %v5470_v20 = vsub.s32 %v191_v62, %v5320_v4  ;;  %vm196_vm4 = vcmask 392512  }
  0x13   :  { %7382 = vst [vmem:[#allocation13_spill] sm:$0xff] %v5444_v63  ;;  %7383 = vst [vmem:[#allocation14_spill] sm:$0xff] %v5454_v5  ;;  %vm203_vm5 = vcmask 458112   ;;  %vm210_vm6 = vcmask 523712   ;;  %vm251_vm7 = vcmask 1041409   ;;  %vm254_vm8 = vcmask 517120  }
  0x14   :  { %7384 = vst [vmem:[#allocation15_spill] sm:$0xff] %v5463_v13  ;;  %7385 = vst [vmem:[#allocation16_spill] sm:$0xff] %v5470_v20  ;;  %vm5273_vm9 = vmmov 0   ;;  %vm4510_vm14 = vcmask 589312   ;;  %vm4517_vm15 = vcmask 654912  }
  0x15   :  { %97 = vadd.xlane.f32.xlu0 %v79_v23  ;;  %113 = vadd.xlane.f32.xlu1 %v87_v24 }
  0x19   :  { %99 = vadd.xlane.f32.xlu0 %v80_v27  ;;  %115 = vadd.xlane.f32.xlu1 %v88_v28  ;;  %v5477_v27 = vsub.s32 %v198_v0, %v5320_v4  ;;  %v205_v28 = vadd.s32 4294967240, %v5429_v51 }
  0x1b   :  { %7386 = vst [vmem:[#allocation17_spill] sm:$0xff] %v5477_v27  ;;  %v5507_v54 = vsub.s32 %v205_v28, %v5320_v4 }
  0x1d   :  { %101 = vadd.xlane.f32.xlu0 %v81_v31  ;;  %117 = vadd.xlane.f32.xlu1 %v89_v32  ;;  %7387 = vst [vmem:[#allocation18_spill] sm:$0xff] %v5507_v54 }
  0x21   :  { %103 = vadd.xlane.f32.xlu0 %v82_v35  ;;  %119 = vadd.xlane.f32.xlu1 %v90_v36 }
  0x25   :  { %105 = vadd.xlane.f32.xlu0 %v83_v39  ;;  %121 = vadd.xlane.f32.xlu1 %v91_v40 }
  0x29   :  { %107 = vadd.xlane.f32.xlu0 %v84_v43  ;;  %123 = vadd.xlane.f32.xlu1 %v92_v44 }
  0x96   :  { %v94_v45 = vpop.xlane.xlu0 %93  ;;  %v110_v46 = vpop.xlane.xlu1 %109 }
  0x97   :  { %v5447_v1 = vmul.f32 0.088388346, %v94_v45  ;;  %v5456_v6 = vmul.f32 0.088388346, %v110_v46 }
  0x99   :  { %v162_v39 = vrot.slane %v5447_v1, %v5437_v60  ;;  %v215_v40 = vrot.slane %v5456_v6, %v5437_v60 }
  0x9a   :  { %v96_v47 = vpop.xlane.xlu0 %95  ;;  %v112_v48 = vpop.xlane.xlu1 %111 }
  0x9b   :  { %v5449_v2 = vmul.f32 0.088388346, %v96_v47  ;;  %v5451_v3 = vmul.f32 0.088388346, %v112_v48 }
  0x9d   :  { %v167_v31 = vrot.slane %v5449_v2, %v5440_v61  ;;  %v219_v32 = vrot.slane %v5451_v3, %v5440_v61 }
  0x9e   :  { %v98_v49 = vpop.xlane.xlu0 %97  ;;  %v114_v50 = vpop.xlane.xlu1 %113 }
  0x9f   :  { %v5458_v11 = vmul.f32 0.088388346, %v98_v49  ;;  %v5460_v12 = vmul.f32 0.088388346, %v114_v50  ;;  %v169_v55 = vsel %vm168_vm0, %v167_v31, %v162_v39  ;;  %v220_v56 = vsel %vm168_vm0, %v219_v32, %v215_v40 }
  0xa1   :  { %v174_v43 = vrot.slane %v5458_v11, %v5444_v63  ;;  %v224_v44 = vrot.slane %v5460_v12, %v5444_v63 }
  0xa2   :  { %v100_v52 = vpop.xlane.xlu0 %99  ;;  %v116_v53 = vpop.xlane.xlu1 %115 }
  0xa3   :  { %v5465_v18 = vmul.f32 0.088388346, %v100_v52  ;;  %v5467_v19 = vmul.f32 0.088388346, %v116_v53  ;;  %v225_v62 = vsel %vm175_vm1, %v224_v44, %v220_v56 }
  0xa5   :  { %v181_v47 = vrot.slane %v5465_v18, %v5454_v5  ;;  %v229_v48 = vrot.slane %v5467_v19, %v5454_v5 }
  0xa6   :  { %v102_v58 = vpop.xlane.xlu0 %101  ;;  %v118_v59 = vpop.xlane.xlu1 %117 }
  0xa7   :  { %v5472_v23 = vmul.f32 0.088388346, %v102_v58  ;;  %v5474_v24 = vmul.f32 0.088388346, %v118_v59  ;;  %v176_v59 = vsel %vm175_vm1, %v174_v43, %v169_v55  ;;  %v230_v32 = vsel %vm182_vm2, %v229_v48, %v225_v62 }
  0xa8   :  { %v183_v31 = vsel %vm182_vm2, %v181_v47, %v176_v59 }
  0xa9   :  { %v188_v52 = vrot.slane %v5472_v23, %v5463_v13  ;;  %v234_v53 = vrot.slane %v5474_v24, %v5463_v13 }
  0xaa   :  { %v104_v14 = vpop.xlane.xlu0 %103  ;;  %v120_v17 = vpop.xlane.xlu1 %119 }
  0xab   :  { %v5484_v35 = vmul.f32 0.088388346, %v104_v14  ;;  %v5486_v36 = vmul.f32 0.088388346, %v120_v17  ;;  %v235_v43 = vsel %vm189_vm3, %v234_v53, %v230_v32 }
  0xad   :  { %v195_v57 = vrot.slane %v5484_v35, %v5470_v20  ;;  %v239_v58 = vrot.slane %v5486_v36, %v5470_v20 }
  0xae   :  { %v106_v45 = vpop.xlane.xlu0 %105  ;;  %v122_v46 = vpop.xlane.xlu1 %121 }
  0xaf   :  { %v5500_v49 = vmul.f32 0.088388346, %v106_v45  ;;  %v139_v50 = vmul.f32 0.088388346, %v122_v46  ;;  %v190_v45 = vsel %vm189_vm3, %v188_v52, %v183_v31  ;;  %v240_v48 = vsel %vm196_vm4, %v239_v58, %v235_v43 }
  0xb0   :  { %v197_v47 = vsel %vm196_vm4, %v195_v57, %v190_v45  ;;  %v5541_v57 = vsub.s32 1, %v5320_v4 }
  0xb1   :  { %v202_v0 = vrot.slane %v5500_v49, %v5477_v27  ;;  %v244_v14 = vrot.slane %v139_v50, %v5477_v27 }
  0xb2   :  { %v108_v17 = vpop.xlane.xlu0 %107  ;;  %v124_v28 = vpop.xlane.xlu1 %123 }
  0xb3   :  { %v5522_v39 = vmul.f32 0.088388346, %v108_v17  ;;  %v5524_v40 = vmul.f32 0.088388346, %v124_v28  ;;  %v204_v55 = vsel %vm203_vm5, %v202_v0, %v197_v47  ;;  %v245_v56 = vsel %vm203_vm5, %v244_v14, %v240_v48 }
  0xb4   :  { %v5271_v17 = vmov 0  }
  0xb5   :  { %v209_v44 = vrot.slane %v5522_v39, %v5507_v54  ;;  %v249_v46 = vrot.slane %v5524_v40, %v5507_v54  ;;  %4939 = vset.pattern.permute.xlu0 %v5271_v17  ;;  %4938 = vset.pattern.permute.xlu1 %v5271_v17 }
  0xb7   :  { %v211_v52 = vsel %vm210_vm6, %v209_v44, %v204_v55  ;;  %v250_v53 = vsel %vm210_vm6, %v249_v46, %v245_v56 }
  0xb8   :  { %v252_v59 = vsel %vm251_vm7, %v250_v53, %v211_v52 }
  0xb9   :  { %v255_v62 = vsel %vm254_vm8, %v252_v59, -inf }
  0xba   :  { %256 = vmax.xlane.f32.xlu0 %v255_v62 }
 0x143   :  { %v257_v58 = vpop.xlane.xlu0 %256 }
 0x144   :  { %v262_v0 = vrot.slane %v257_v58, %v5323_v7  ;;  %v5545_v14 = vrot.slane %v257_v58, %v5541_v57 }
 0x146   :  { %v270_v28 = vsub.f32 %v5449_v2, %v262_v0  ;;  %v269_v31 = vsub.f32 %v5447_v1, %v262_v0  ;;  %v279_v32 = vsub.f32 %v5460_v12, %v5545_v14  ;;  %v271_v45 = vsub.f32 %v5458_v11, %v262_v0 }
 0x147   :  { %v281_v47 = vsub.f32 %v5474_v24, %v5545_v14  ;;  %v272_v55 = vsub.f32 %v5465_v18, %v262_v0  ;;  %v283_v1 = vsub.f32 %v139_v50, %v5545_v14  ;;  %v273_v12 = vsub.f32 %v5472_v23, %v262_v0 }
 0x148   :  { %v287_v43 = vmul.f32 1.442695, %v270_v28  ;;  %v285_v44 = vmul.f32 1.442695, %v269_v31  ;;  %v305_v46 = vmul.f32 1.442695, %v279_v32  ;;  %v274_v53 = vsub.f32 %v5484_v35, %v262_v0 }
 0x149   :  { %v289_v48 = vmul.f32 1.442695, %v271_v45  ;;  %v309_v2 = vmul.f32 1.442695, %v281_v47  ;;  %v291_v56 = vmul.f32 1.442695, %v272_v55  ;;  %v275_v18 = vsub.f32 %v5500_v49, %v262_v0 }
 0x14a   :  { %4948 = vpow2.f32 %v287_v43  ;;  %v313_v11 = vmul.f32 1.442695, %v283_v1  ;;  %v293_v52 = vmul.f32 1.442695, %v273_v12  ;;  %v295_v59 = vmul.f32 1.442695, %v274_v53 }
 0x14b   :  { %4950 = vpow2.f32 %v285_v44  ;;  %v297_v50 = vmul.f32 1.442695, %v275_v18  ;;  %v276_v17 = vsub.f32 %v5522_v39, %v262_v0  ;;  %v277_v28 = vsub.f32 %v5456_v6, %v5545_v14 }
 0x14c   :  { %4952 = vpow2.f32 %v305_v46  ;;  %v278_v32 = vsub.f32 %v5451_v3, %v5545_v14  ;;  %v280_v43 = vsub.f32 %v5467_v19, %v5545_v14  ;;  %v282_v3 = vsub.f32 %v5486_v36, %v5545_v14 }
 0x14d   :  { %4954 = vpow2.f32 %v289_v48  ;;  %v299_v49 = vmul.f32 1.442695, %v276_v17  ;;  %v301_v0 = vmul.f32 1.442695, %v277_v28  ;;  %v284_v55 = vsub.f32 %v5524_v40, %v5545_v14 }
 0x14e   :  { %4956 = vpow2.f32 %v309_v2  ;;  %v303_v6 = vmul.f32 1.442695, %v278_v32  ;;  %v307_v46 = vmul.f32 1.442695, %v280_v43  ;;  %v311_v48 = vmul.f32 1.442695, %v282_v3 }
 0x14f   :  { %4958 = vpow2.f32 %v291_v56  ;;  %v315_v19 = vmul.f32 1.442695, %v284_v55  ;;  %v5618_v14 = vld.sshfl [vmem:[%s7322_s5] sm:$0x33 pattern:$0x76325410] }
 0x150   :  { %4960 = vpow2.f32 %v313_v11  ;;  %v5624_v11 = vrot.slane %v5618_v14, %v5323_v7 }
 0x151   :  { %4962 = vpow2.f32 %v293_v52 }
 0x152   :  { %4964 = vpow2.f32 %v295_v59 }
 0x153   :  { %4966 = vpow2.f32 %v297_v50 }
 0x154   :  { %4968 = vpow2.f32 %v299_v49 }
 0x155   :  { %4970 = vpow2.f32 %v301_v0 }
 0x156   :  { %4972 = vpow2.f32 %v303_v6 }
 0x157   :  { %v5558_v24 = vpop.eup %4948  ;;  %4974 = vpow2.f32 %v307_v46 }
 0x158   :  { %v5561_v62 = vpop.eup %4950  ;;  %337 = vperm.xlu0 %4939, %v5558_v24   ;;  %4976 = vpow2.f32 %v311_v48 }
 0x159   :  { %334 = vperm.xlu1 %4938, %v5561_v62   ;;  %v5565_v23 = vpop.eup %4952  ;;  %4978 = vpow2.f32 %v315_v19 }
 0x15a   :  { %v5568_v35 = vpop.eup %4954 }
 0x15b   :  { %v5572_v58 = vpop.eup %4956 }
 0x15c   :  { %364 = vperm.xlu0 %4939, %v5565_v23   ;;  %v5576_v31 = vpop.eup %4958 }
 0x15d   :  { %340 = vperm.xlu1 %4938, %v5568_v35   ;;  %v5580_v39 = vpop.eup %4960 }
 0x15e   :  { %v5584_v45 = vpop.eup %4962 }
 0x15f   :  { %v5590_v44 = vpop.eup %4964 }
 0x160   :  { %370 = vperm.xlu0 %4939, %v5572_v58   ;;  %v5595_v47 = vpop.eup %4966 }
 0x161   :  { %343 = vperm.xlu1 %4938, %v5576_v31   ;;  %v5600_v2 = vpop.eup %4968 }
 0x162   :  { %v5603_v1 = vpop.eup %4970 }
 0x163   :  { %v5606_v36 = vpop.eup %4972 }
 0x164   :  { %376 = vperm.xlu0 %4939, %v5580_v39   ;;  %v5609_v56 = vpop.eup %4974 }
 0x165   :  { %346 = vperm.xlu1 %4938, %v5584_v45   ;;  %v5612_v40 = vpop.eup %4976 }
 0x166   :  { %v5620_v12 = vpop.eup %4978 }
 0x169   :  { %349 = vperm.xlu1 %4938, %v5590_v44  }
 0x16d   :  { %352 = vperm.xlu1 %4938, %v5595_v47  }
 0x171   :  { %355 = vperm.xlu1 %4938, %v5600_v2  }
 0x175   :  { %358 = vperm.xlu1 %4938, %v5603_v1  }
 0x179   :  { %361 = vperm.xlu1 %4938, %v5606_v36  }
 0x17d   :  { %367 = vperm.xlu1 %4938, %v5609_v56  }
 0x181   :  { %373 = vperm.xlu1 %4938, %v5612_v40  }
 0x185   :  { %379 = vperm.xlu1 %4938, %v5620_v12  }
 0x189   :  { %1643 = vbcast.lane.b32.xlu1 %v5624_v11, 256 }
 0x1d3   :  { %v338_v49 = vpop.permute.xlu0 %337 }
 0x1d4   :  { %v335_v52 = vpop.permute.xlu1 %334  ;;  %v388_v51 = vrot.slane %v338_v49, %v5440_v61 }
 0x1d5   :  { %v384_v4 = vrot.slane %v335_v52, %v5437_v60 }
 0x1d7   :  { %v365_v32 = vpop.permute.xlu0 %364 }
 0x1d8   :  { %v341_v53 = vpop.permute.xlu1 %340  ;;  %v432_v55 = vrot.slane %v365_v32, %v5444_v63 }
 0x1d9   :  { %v393_v42 = vrot.slane %v341_v53, %v5444_v63  ;;  %v6123_v63 = vld [vmem:[%s7321_s4 + $0x1b8] sm:$0xff] }
 0x1da   :  { %7411 = vst [vmem:[#allocation36_spill] sm:$0xff] %v6123_v63 }
 0x1db   :  { %v371_v3 = vpop.permute.xlu0 %370 }
 0x1dc   :  { %v344_v59 = vpop.permute.xlu1 %343  ;;  %v442_v34 = vrot.slane %v371_v3, %v5463_v13 }
 0x1df   :  { %v377_v49 = vpop.permute.xlu0 %376 }
 0x1e0   :  { %v347_v18 = vpop.permute.xlu1 %346  ;;  %v452_v3 = vrot.slane %v377_v49, %v5477_v27 }
 0x1e4   :  { %v350_v50 = vpop.permute.xlu1 %349 }
 0x1e5   :  { %v408_v52 = vrot.slane %v350_v50, %v5470_v20 }
 0x1e8   :  { %v353_v17 = vpop.permute.xlu1 %352 }
 0x1ec   :  { %v356_v28 = vpop.permute.xlu1 %355 }
 0x1f0   :  { %v359_v0 = vpop.permute.xlu1 %358 }
 0x1f1   :  { %v423_v43 = vrot.slane %v359_v0, %v5437_v60  ;;  %v398_v0 = vrot.slane %v344_v59, %v5454_v5  ;;  %v6137_v60 = vld [vmem:[%s7321_s4 + $0x1c0] sm:$0xff] }
 0x1f2   :  { %7412 = vst [vmem:[#allocation37_spill] sm:$0xff] %v6137_v60 }
 0x1f4   :  { %v362_v6 = vpop.permute.xlu1 %361 }
 0x1f5   :  { %v427_v46 = vrot.slane %v362_v6, %v5440_v61 }
 0x1f7   :  { %v428_v48 = vsel %vm168_vm0, %v427_v46, %v423_v43  ;;  %v403_v43 = vrot.slane %v347_v18, %v5463_v13  ;;  %v389_v46 = vsel %vm168_vm0, %v388_v51, %v384_v4 }
 0x1f8   :  { %v368_v19 = vpop.permute.xlu1 %367  ;;  %v433_v38 = vsel %vm175_vm1, %v432_v55, %v428_v48  ;;  %v394_v53 = vsel %vm175_vm1, %v393_v42, %v389_v46  ;;  %v413_v48 = vrot.slane %v353_v17, %v5477_v27 }
 0x1f9   :  { %v437_v8 = vrot.slane %v368_v19, %v5454_v5  ;;  %v6109_v5 = vld [vmem:[%s7321_s4 + $0x1b0] sm:$0xff] }
 0x1fa   :  { %7410 = vst [vmem:[#allocation35_spill] sm:$0xff] %v6109_v5 }
 0x1fb   :  { %v438_v6 = vsel %vm182_vm2, %v437_v8, %v433_v38  ;;  %v399_v8 = vsel %vm182_vm2, %v398_v0, %v394_v53  ;;  %v418_v38 = vrot.slane %v356_v28, %v5507_v54 }
 0x1fc   :  { %v374_v32 = vpop.permute.xlu1 %373  ;;  %v443_v59 = vsel %vm189_vm3, %v442_v34, %v438_v6  ;;  %v404_v4 = vsel %vm189_vm3, %v403_v43, %v399_v8 }
 0x1fd   :  { %v447_v19 = vrot.slane %v374_v32, %v5470_v20  ;;  %v409_v50 = vsel %vm196_vm4, %v408_v52, %v404_v4  ;;  %v4944_v4 = vld [vmem:[%s7319_s2 + $0x18] sm:$0xff]   ;;  %v6095_v20 = vld [vmem:[%s7321_s4 + $0x1a8] sm:$0xff] }
 0x1fe   :  { %v414_v42 = vsel %vm203_vm5, %v413_v48, %v409_v50  ;;  %v4947_v50 = vld [vmem:[%s7319_s2] sm:$0xff]   ;;  %7409 = vst [vmem:[#allocation34_spill] sm:$0xff] %v6095_v20 }
 0x1ff   :  { %v448_v18 = vsel %vm196_vm4, %v447_v19, %v443_v59  ;;  %v419_v34 = vsel %vm210_vm6, %v418_v38, %v414_v42 }
 0x200   :  { %v380_v51 = vpop.permute.xlu1 %379  ;;  %v453_v17 = vsel %vm203_vm5, %v452_v3, %v448_v18  ;;  %v4940_v18 = vld [vmem:[%s7319_s2 + $0x38] sm:$0xff]   ;;  %v1775_v3 = vrot.slane %v5618_v14, %v5541_v57 }
 0x201   :  { %v457_v55 = vrot.slane %v380_v51, %v5507_v54  ;;  %v4945_v51 = vld [vmem:[%s7319_s2 + $0x10] sm:$0xff]  }
 0x203   :  { %v458_v0 = vsel %vm210_vm6, %v457_v55, %v453_v17 }
 0x204   :  { %v459_v28 = vsel %vm251_vm7, %v458_v0, %v419_v34 }
 0x205   :  { %v461_v6 = vsel %vm254_vm8, %v459_v28, 0.0  ;;  %vm4524_vm8 = vcmask 720512  }
 0x206   :  { %462 = vadd.xlane.f32.xlu0 %v461_v6 }
 0x28f   :  { %v463_v32 = vpop.xlane.xlu0 %462 }
 0x290   :  { %v468_v43 = vrot.slane %v463_v32, %v5323_v7  ;;  %v472_v46 = vrot.slane %v463_v32, %v5541_v57 }
 0x292   :  { %4980 = vrcp.f32 %v468_v43 }
 0x293   :  { %4982 = vrcp.f32 %v472_v46 }
 0x29f   :  { %v4981_v49 = vpop.eup %4980 }
 0x2a0   :  { %v4983_v52 = vpop.eup %4982  ;;  %v476_v19 = vmul.f32 %v4981_v49, %v5561_v62  ;;  %v477_v48 = vmul.f32 %v4981_v49, %v5558_v24  ;;  %v478_v59 = vmul.f32 %v4981_v49, %v5568_v35  ;;  %v479_v38 = vmul.f32 %v4981_v49, %v5576_v31 }
 0x2a1   :  { %v485_v53 = vmul.f32 %v4983_v52, %v5603_v1  ;;  %v491_v8 = vmul.f32 %v4983_v52, %v5580_v39  ;;  %v480_v62 = vmul.f32 %v4981_v49, %v5584_v45  ;;  %v481_v24 = vmul.f32 %v4981_v49, %v5590_v44 }
 0x2a2   :  { %495 = vperm.xlu1 %4938, %v476_v19   ;;  %v482_v35 = vmul.f32 %v4981_v49, %v5595_v47  ;;  %v483_v31 = vmul.f32 %v4981_v49, %v5600_v2  ;;  %v5680_v39 = vcombine.high %v5618_v14, %v5618_v14  ;;  %v486_v45 = vmul.f32 %v4983_v52, %v5606_v36  ;;  %v4946_v14 = vld [vmem:[%s7319_s2 + $0x8] sm:$0xff]  }
 0x2a3   :  { %535 = vperm.xlu0 %4939, %v485_v53   ;;  %v487_v47 = vmul.f32 %v4983_v52, %v5565_v23  ;;  %v488_v2 = vmul.f32 %v4983_v52, %v5609_v56  ;;  %v5272_v1 = vmov 0.0   ;;  %v489_v36 = vmul.f32 %v4983_v52, %v5572_v58  ;;  %v4941_v56 = vld [vmem:[%s7319_s2 + $0x30] sm:$0xff]  }
 0x2a4   :  { %v5687_v44 = vrot.slane %v5680_v39, %v5323_v7  ;;  %4912 = vmatprep.subr.bf16.mxu0 %v5272_v1  ;;  %v490_v23 = vmul.f32 %v4983_v52, %v5612_v40  ;;  %v492_v58 = vmul.f32 %v4983_v52, %v5620_v12  ;;  %v4942_v40 = vld [vmem:[%s7319_s2 + $0x28] sm:$0xff]   ;;  %4928 = vmatprep.mubr.msk.bf16.mxu0 %vm5273_vm9, %v5272_v1  ;;  %v4943_v12 = vld [vmem:[%s7319_s2 + $0x20] sm:$0xff]   ;;  %vm4531_vm9 = vcmask 786112  }
 0x2a5   :  { %4913 = vmatpush3.bf16.msra.mxu0 %v4940_v18  ;;  %v5740_v55 = vrot.slane %v5680_v39, %v5541_v57  ;;  %v5752_v57 = vpop.permute.xlu1 %1643 }
 0x2a6   :  { %500 = vperm.xlu1 %4938, %v477_v48   ;;  %4914 = vmatprep.subr.bf16.mxu0 %v5272_v1  ;;  %7388 = vst [vmem:[#allocation19_spill] sm:$0xff] %v5752_v57 }
 0x2a7   :  { %1647 = vbcast.lane.b32.xlu0 %v5624_v11, 264 }
 0x2a9   :  { %4915 = vmatpush3.bf16.msra.mxu0 %v4941_v56 }
 0x2aa   :  { %505 = vperm.xlu1 %4938, %v478_v59   ;;  %4916 = vmatprep.subr.bf16.mxu0 %v5272_v1 }
 0x2ab   :  { %565 = vperm.xlu0 %4939, %v491_v8  }
 0x2ad   :  { %4917 = vmatpush3.bf16.msra.mxu0 %v4942_v40 }
 0x2ae   :  { %510 = vperm.xlu1 %4938, %v479_v38   ;;  %4918 = vmatprep.subr.bf16.mxu0 %v5272_v1 }
 0x2af   :  { %1659 = vbcast.lane.b32.xlu0 %v5624_v11, 288 }
 0x2b1   :  { %4919 = vmatpush3.bf16.msra.mxu0 %v4943_v12 }
 0x2b2   :  { %515 = vperm.xlu1 %4938, %v480_v62   ;;  %4920 = vmatprep.subr.bf16.mxu0 %v5272_v1 }
 0x2b3   :  { %1667 = vbcast.lane.b32.xlu0 %v5624_v11, 304 }
 0x2b5   :  { %4921 = vmatpush3.bf16.msra.mxu0 %v4944_v4 }
 0x2b6   :  { %520 = vperm.xlu1 %4938, %v481_v24   ;;  %4922 = vmatprep.subr.bf16.mxu0 %v5272_v1 }
 0x2b7   :  { %1675 = vbcast.lane.b32.xlu0 %v5624_v11, 320 }
 0x2b9   :  { %4923 = vmatpush3.bf16.msra.mxu0 %v4945_v51 }
 0x2ba   :  { %525 = vperm.xlu1 %4938, %v482_v35   ;;  %4924 = vmatprep.subr.bf16.mxu0 %v5272_v1 }
 0x2bb   :  { %1683 = vbcast.lane.b32.xlu0 %v5624_v11, 336 }
 0x2bd   :  { %4925 = vmatpush3.bf16.msra.mxu0 %v4946_v14 }
 0x2be   :  { %530 = vperm.xlu1 %4938, %v483_v31   ;;  %4926 = vmatprep.subr.bf16.mxu0 %v5272_v1 }
 0x2bf   :  { %1691 = vbcast.lane.b32.xlu0 %v5624_v11, 352 }
 0x2c1   :  { %4927 = vmatpush3.bf16.msra.mxu0 %v4947_v50 }
 0x2c2   :  { %1651 = vbcast.lane.b32.xlu1 %v5624_v11, 272 }
 0x2c3   :  { %1699 = vbcast.lane.b32.xlu0 %v5624_v11, 368 }
 0x2c6   :  { %540 = vperm.xlu1 %4938, %v486_v45  }
 0x2c7   :  { %1710 = vbcast.lane.b32.xlu0 %v5687_v44, 256 }
 0x2ca   :  { %545 = vperm.xlu1 %4938, %v487_v47  }
 0x2cb   :  { %1718 = vbcast.lane.b32.xlu0 %v5687_v44, 272 }
 0x2ce   :  { %550 = vperm.xlu1 %4938, %v488_v2  }
 0x2cf   :  { %1726 = vbcast.lane.b32.xlu0 %v5687_v44, 288 }
 0x2d2   :  { %555 = vperm.xlu1 %4938, %v489_v36  }
 0x2d3   :  { %1734 = vbcast.lane.b32.xlu0 %v5687_v44, 304 }
 0x2d6   :  { %560 = vperm.xlu1 %4938, %v490_v23  }
 0x2d7   :  { %1742 = vbcast.lane.b32.xlu0 %v5687_v44, 320 }
 0x2da   :  { %570 = vperm.xlu1 %4938, %v492_v58  }
 0x2db   :  { %1750 = vbcast.lane.b32.xlu0 %v5687_v44, 336 }
 0x2de   :  { %1655 = vbcast.lane.b32.xlu1 %v5624_v11, 280 }
 0x2df   :  { %1758 = vbcast.lane.b32.xlu0 %v5687_v44, 352 }
 0x2e2   :  { %1663 = vbcast.lane.b32.xlu1 %v5624_v11, 296 }
 0x2e3   :  { %1766 = vbcast.lane.b32.xlu0 %v5687_v44, 368 }
 0x2e6   :  { %1671 = vbcast.lane.b32.xlu1 %v5624_v11, 312 }
 0x2e7   :  { %1777 = vbcast.lane.b32.xlu0 %v1775_v3, 256 }
 0x2ea   :  { %1679 = vbcast.lane.b32.xlu1 %v5624_v11, 328 }
 0x2eb   :  { %1785 = vbcast.lane.b32.xlu0 %v1775_v3, 272 }
 0x2ee   :  { %1687 = vbcast.lane.b32.xlu1 %v5624_v11, 344 }
 0x2ef   :  { %1793 = vbcast.lane.b32.xlu0 %v1775_v3, 288 }
 0x2f2   :  { %1695 = vbcast.lane.b32.xlu1 %v5624_v11, 360 }
 0x2f3   :  { %1801 = vbcast.lane.b32.xlu0 %v1775_v3, 304 }
 0x2f6   :  { %1703 = vbcast.lane.b32.xlu1 %v5624_v11, 376 }
 0x2f7   :  { %1809 = vbcast.lane.b32.xlu0 %v1775_v3, 320 }
 0x2fa   :  { %1714 = vbcast.lane.b32.xlu1 %v5687_v44, 264 }
 0x2fb   :  { %1817 = vbcast.lane.b32.xlu0 %v1775_v3, 336 }
 0x2fe   :  { %1722 = vbcast.lane.b32.xlu1 %v5687_v44, 280 }
 0x2ff   :  { %1825 = vbcast.lane.b32.xlu0 %v1775_v3, 352 }
 0x302   :  { %1730 = vbcast.lane.b32.xlu1 %v5687_v44, 296 }
 0x303   :  { %1833 = vbcast.lane.b32.xlu0 %v1775_v3, 368 }
 0x306   :  { %1738 = vbcast.lane.b32.xlu1 %v5687_v44, 312 }
 0x307   :  { %1844 = vbcast.lane.b32.xlu0 %v5740_v55, 256 }
 0x30a   :  { %1746 = vbcast.lane.b32.xlu1 %v5687_v44, 328 }
 0x30b   :  { %1852 = vbcast.lane.b32.xlu0 %v5740_v55, 272 }
 0x30e   :  { %1754 = vbcast.lane.b32.xlu1 %v5687_v44, 344 }
 0x30f   :  { %1860 = vbcast.lane.b32.xlu0 %v5740_v55, 288 }
 0x312   :  { %1762 = vbcast.lane.b32.xlu1 %v5687_v44, 360 }
 0x313   :  { %1868 = vbcast.lane.b32.xlu0 %v5740_v55, 304 }
 0x316   :  { %1770 = vbcast.lane.b32.xlu1 %v5687_v44, 376 }
 0x317   :  { %1876 = vbcast.lane.b32.xlu0 %v5740_v55, 320 }
 0x31a   :  { %1781 = vbcast.lane.b32.xlu1 %v1775_v3, 264 }
 0x31b   :  { %1884 = vbcast.lane.b32.xlu0 %v5740_v55, 336 }
 0x31d   :  { %v496_v11 = vpop.permute.xlu1 %495 }
 0x31e   :  { %1789 = vbcast.lane.b32.xlu1 %v1775_v3, 280  ;;  %v573_v43 = vmul.f32 %v496_v11, %v5331_v9 }
 0x31f   :  { %1892 = vbcast.lane.b32.xlu0 %v5740_v55, 352 }
 0x321   :  { %v501_v42 = vpop.permute.xlu1 %500 }
 0x322   :  { %1797 = vbcast.lane.b32.xlu1 %v1775_v3, 296  ;;  %v574_v32 = vmul.f32 %v501_v42, %v5345_v15  ;;  %v5800_v42 = vld [vmem:[%s7321_s4 + $0x10] sm:$0xff] }
 0x323   :  { %1900 = vbcast.lane.b32.xlu0 %v5740_v55, 368 }
 0x324   :  { %v589_v52 = vadd.f32 %v574_v32, %v573_v43  ;;  %v801_v32 = vmul.f32 %v5800_v42, %v5800_v42 }
 0x325   :  { %v506_v17 = vpop.permute.xlu1 %505 }
 0x326   :  { %1805 = vbcast.lane.b32.xlu1 %v1775_v3, 312  ;;  %v575_v46 = vmul.f32 %v506_v17, %v5359_v21  ;;  %v5805_v17 = vld [vmem:[%s7321_s4 + $0x100] sm:$0xff] }
 0x328   :  { %v590_v53 = vadd.f32 %v589_v52, %v575_v46  ;;  %v5824_v52 = vld [vmem:[%s7321_s4 + $0x110] sm:$0xff] }
 0x329   :  { %v511_v34 = vpop.permute.xlu1 %510 }
 0x32a   :  { %1813 = vbcast.lane.b32.xlu1 %v1775_v3, 328  ;;  %v576_v19 = vmul.f32 %v511_v34, %v5371_v25  ;;  %v536_v25 = vpop.permute.xlu0 %535  ;;  %v5810_v34 = vld [vmem:[%s7321_s4 + $0x108] sm:$0xff] }
 0x32c   :  { %v591_v8 = vadd.f32 %v590_v53, %v576_v19  ;;  %v831_v19 = vmul.f32 %v5805_v17, %v5805_v17 }
 0x32d   :  { %v516_v0 = vpop.permute.xlu1 %515 }
 0x32e   :  { %1821 = vbcast.lane.b32.xlu1 %v1775_v3, 344  ;;  %v577_v48 = vmul.f32 %v516_v0, %v5383_v29 }
 0x330   :  { %v592_v38 = vadd.f32 %v591_v8, %v577_v48 }
 0x331   :  { %v521_v28 = vpop.permute.xlu1 %520 }
 0x332   :  { %1829 = vbcast.lane.b32.xlu1 %v1775_v3, 360  ;;  %v578_v15 = vmul.f32 %v521_v28, %v5395_v33  ;;  %v581_v33 = vmul.f32 %v536_v25, %v5336_v10  ;;  %v7393_v28 = vld [vmem:[#allocation9_spill] sm:$0xff] }
 0x334   :  { %v593_v62 = vadd.f32 %v592_v38, %v578_v15  ;;  %v833_v15 = vmul.f32 %v5824_v52, %v5824_v52  ;;  %v5837_v38 = vld [vmem:[%s7321_s4 + $0x20] sm:$0xff] }
 0x335   :  { %v526_v6 = vpop.permute.xlu1 %525 }
 0x336   :  { %1837 = vbcast.lane.b32.xlu1 %v1775_v3, 376  ;;  %v579_v9 = vmul.f32 %v526_v6, %v5407_v37  ;;  %v5775_v37 = vpop.permute.xlu0 %1647  ;;  %v7392_v3 = vld [vmem:[#allocation8_spill] sm:$0xff] }
 0x337   :  { %7390 = vst [vmem:[#allocation21_spill] sm:$0xff] %v5775_v37  ;;  %v6151_v37 = vld [vmem:[%s7321_s4 + $0x1c8] sm:$0xff] }
 0x338   :  { %v594_v35 = vadd.f32 %v593_v62, %v579_v9  ;;  %v5842_v9 = vld [vmem:[%s7321_s4 + $0x118] sm:$0xff]  ;;  %7413 = vst [vmem:[#allocation38_spill] sm:$0xff] %v6151_v37 }
 0x339   :  { %v531_v49 = vpop.permute.xlu1 %530 }
 0x33a   :  { %1848 = vbcast.lane.b32.xlu1 %v5740_v55, 264  ;;  %v580_v24 = vmul.f32 %v531_v49, %v5419_v41  ;;  %v566_v56 = vpop.permute.xlu0 %565  ;;  %v5819_v49 = vld [vmem:[%s7321_s4 + $0x18] sm:$0xff] }
 0x33b   :  { %v587_v4 = vmul.f32 %v566_v56, %v7392_v3  ;;  %v802_v48 = vmul.f32 %v5819_v49, %v5819_v49 }
 0x33c   :  { %v595_v29 = vadd.f32 %v594_v35, %v580_v24  ;;  %v803_v24 = vmul.f32 %v5837_v38, %v5837_v38  ;;  %v834_v35 = vmul.f32 %v5842_v9, %v5842_v9 }
 0x33d   :  { %v5763_v59 = vpop.permute.xlu1 %1651 }
 0x33e   :  { %7389 = vst [vmem:[#allocation20_spill] sm:$0xff] %v5763_v59  ;;  %1856 = vbcast.lane.b32.xlu1 %v5740_v55, 280  ;;  %v596_v47 = vrot.slane %v595_v29, 4 }
 0x341   :  { %v541_v21 = vpop.permute.xlu1 %540 }
 0x342   :  { %1864 = vbcast.lane.b32.xlu1 %v5740_v55, 296  ;;  %v582_v39 = vmul.f32 %v541_v21, %v5350_v16  ;;  %v597_v16 = vadd.f32 %v596_v47, %v595_v29  ;;  %v5851_v29 = vld [vmem:[%s7321_s4 + $0x28] sm:$0xff] }
 0x344   :  { %v602_v2 = vadd.f32 %v582_v39, %v581_v33  ;;  %v598_v12 = vrot.slane %v597_v16, 2  ;;  %v5856_v39 = vld [vmem:[%s7321_s4 + $0x120] sm:$0xff] }
 0x345   :  { %v546_v31 = vpop.permute.xlu1 %545 }
 0x346   :  { %1872 = vbcast.lane.b32.xlu1 %v5740_v55, 312  ;;  %v583_v44 = vmul.f32 %v546_v31, %v5364_v22  ;;  %v7391_v22 = vld [vmem:[#allocation7_spill] sm:$0xff]  ;;  %v599_v46 = vadd.f32 %v598_v12, %v597_v16 }
 0x348   :  { %v603_v36 = vadd.f32 %v602_v2, %v583_v44  ;;  %v600_v31 = vrot.slane %v599_v46, 1  ;;  %v804_v44 = vmul.f32 %v5851_v29, %v5851_v29  ;;  %v835_v2 = vmul.f32 %v5856_v39, %v5856_v39 }
 0x349   :  { %v551_v45 = vpop.permute.xlu1 %550 }
 0x34a   :  { %1880 = vbcast.lane.b32.xlu1 %v5740_v55, 328  ;;  %v584_v41 = vmul.f32 %v551_v45, %v5376_v26  ;;  %v5785_v26 = vld [vmem:[%s7321_s4] sm:$0xff] }
 0x34b   :  { %v799_v14 = vmul.f32 %v5785_v26, %v5785_v26 }
 0x34c   :  { %v604_v23 = vadd.f32 %v603_v36, %v584_v41  ;;  %v5865_v41 = vld [vmem:[%s7321_s4 + $0x30] sm:$0xff] }
 0x34d   :  { %v556_v1 = vpop.permute.xlu1 %555  ;;  %v805_v16 = vmul.f32 %v5865_v41, %v5865_v41 }
 0x34e   :  { %v585_v18 = vmul.f32 %v556_v1, %v5388_v30  ;;  %1888 = vbcast.lane.b32.xlu1 %v5740_v55, 344  ;;  %v5790_v30 = vld [vmem:[%s7321_s4 + $0x8] sm:$0xff] }
 0x34f   :  { %v800_v50 = vmul.f32 %v5790_v30, %v5790_v30  ;;  %v5870_v1 = vld [vmem:[%s7321_s4 + $0x128] sm:$0xff] }
 0x350   :  { %v605_v58 = vadd.f32 %v604_v23, %v585_v18  ;;  %7394 = vst [vmem:[#allocation7_spill] sm:$0xff] %v5870_v1  ;;  %v836_v56 = vmul.f32 %v5870_v1, %v5870_v1 }
 0x351   :  { %v561_v10 = vpop.permute.xlu1 %560  ;;  %v863_v43 = vadd.f32 %v800_v50, %v799_v14  ;;  %v5893_v14 = vld [vmem:[%s7321_s4 + $0x40] sm:$0xff]  ;;  %v5898_v50 = vld [vmem:[%s7321_s4 + $0x138] sm:$0xff] }
 0x352   :  { %v586_v40 = vmul.f32 %v561_v10, %v7391_v22  ;;  %1896 = vbcast.lane.b32.xlu1 %v5740_v55, 360  ;;  %v601_v10 = vadd.f32 %v600_v31, %v599_v46  ;;  %v5884_v22 = vld [vmem:[%s7321_s4 + $0x130] sm:$0xff]  ;;  %7395 = vst [vmem:[#allocation8_spill] sm:$0xff] %v5898_v50  ;;  %v5907_v46 = vld [vmem:[%s7321_s4 + $0x48] sm:$0xff] }
 0x353   :  { %v864_v8 = vadd.f32 %v863_v43, %v801_v32  ;;  %v838_v32 = vmul.f32 %v5898_v50, %v5898_v50 }
 0x354   :  { %v606_v51 = vadd.f32 %v605_v58, %v586_v40  ;;  %v5879_v58 = vld [vmem:[%s7321_s4 + $0x38] sm:$0xff]  ;;  %v615_v43 = vpack.c.bf16 %v601_v10, %v601_v10 }
 0x355   :  { %v571_v11 = vpop.permute.xlu1 %570  ;;  %v865_v25 = vadd.f32 %v864_v8, %v802_v48  ;;  %v806_v3 = vmul.f32 %v5879_v58, %v5879_v58  ;;  %v808_v48 = vmul.f32 %v5907_v46, %v5907_v46  ;;  %v5954_v10 = vld [vmem:[%s7321_s4 + $0x158] sm:$0xff] }
 0x356   :  { %v607_v0 = vadd.f32 %v606_v51, %v587_v4  ;;  %v588_v6 = vmul.f32 %v571_v11, %v7393_v28  ;;  %1904 = vbcast.lane.b32.xlu1 %v5740_v55, 376  ;;  %v832_v55 = vmul.f32 %v5810_v34, %v5810_v34  ;;  %v837_v51 = vmul.f32 %v5884_v22, %v5884_v22 }
 0x357   :  { %v866_v47 = vadd.f32 %v865_v25, %v803_v24  ;;  %v807_v28 = vmul.f32 %v5893_v14, %v5893_v14  ;;  %7399 = vst [vmem:[#allocation24_spill] sm:$0xff] %v5954_v10 }
 0x358   :  { %v608_v53 = vadd.f32 %v607_v0, %v588_v6  ;;  %v900_v21 = vadd.f32 %v832_v55, %v831_v19  ;;  %v5912_v19 = vld [vmem:[%s7321_s4 + $0x140] sm:$0xff] }
 0x359   :  { %v867_v23 = vadd.f32 %v866_v47, %v804_v44  ;;  %7396 = vst [vmem:[#allocation9_spill] sm:$0xff] %v5912_v19  ;;  %v5935_v44 = vld [vmem:[%s7321_s4 + $0x58] sm:$0xff]  ;;  %v5940_v47 = vld [vmem:[%s7321_s4 + $0x150] sm:$0xff] }
 0x35a   :  { %v609_v62 = vrot.slane %v608_v53, 4  ;;  %v901_v45 = vadd.f32 %v900_v21, %v833_v15  ;;  %v839_v15 = vmul.f32 %v5912_v19, %v5912_v19  ;;  %v5921_v21 = vld [vmem:[%s7321_s4 + $0x50] sm:$0xff]  ;;  %7398 = vst [vmem:[#allocation23_spill] sm:$0xff] %v5940_v47 }
 0x35b   :  { %v868_v4 = vadd.f32 %v867_v23, %v805_v16  ;;  %v841_v23 = vmul.f32 %v5940_v47, %v5940_v47 }
 0x35c   :  { %v610_v33 = vadd.f32 %v609_v62, %v608_v53  ;;  %v902_v36 = vadd.f32 %v901_v45, %v834_v35  ;;  %v5926_v62 = vld [vmem:[%s7321_s4 + $0x148] sm:$0xff]  ;;  %v809_v35 = vmul.f32 %v5921_v21, %v5921_v21 }
 0x35d   :  { %v869_v6 = vadd.f32 %v868_v4, %v806_v3  ;;  %7397 = vst [vmem:[#allocation22_spill] sm:$0xff] %v5926_v62  ;;  %v840_v45 = vmul.f32 %v5926_v62, %v5926_v62 }
 0x35e   :  { %v611_v18 = vrot.slane %v610_v33, 2  ;;  %v903_v40 = vadd.f32 %v902_v36, %v835_v2 }
 0x35f   :  { %v870_v8 = vadd.f32 %v869_v6, %v807_v28  ;;  %v5969_v28 = vld [vmem:[%s7321_s4 + $0x160] sm:$0xff] }
 0x360   :  { %v612_v12 = vadd.f32 %v611_v18, %v610_v33  ;;  %v904_v11 = vadd.f32 %v903_v40, %v836_v56  ;;  %v641_v33 = vunpack.c.l.b16 %v615_v43  ;;  %v810_v18 = vmul.f32 %v5935_v44, %v5935_v44  ;;  %v5949_v56 = vld [vmem:[%s7321_s4 + $0x60] sm:$0xff]  ;;  %7400 = vst [vmem:[#allocation25_spill] sm:$0xff] %v5969_v28 }
 0x361   :  { %v871_v31 = vadd.f32 %v870_v8, %v808_v48  ;;  %v811_v3 = vmul.f32 %v5949_v56, %v5949_v56  ;;  %v5983_v48 = vld [vmem:[%s7321_s4 + $0x168] sm:$0xff] }
 0x362   :  { %v613_v0 = vrot.slane %v612_v12, 1  ;;  %v905_v55 = vadd.f32 %v904_v11, %v837_v51  ;;  %v842_v51 = vmul.f32 %v5954_v10, %v5954_v10  ;;  %7401 = vst [vmem:[#allocation26_spill] sm:$0xff] %v5983_v48 }
 0x363   :  { %v872_v16 = vadd.f32 %v871_v31, %v809_v35  ;;  %v5992_v35 = vld [vmem:[%s7321_s4 + $0x78] sm:$0xff]  ;;  %v5997_v31 = vld [vmem:[%s7321_s4 + $0x170] sm:$0xff] }
 0x364   :  { %v614_v53 = vadd.f32 %v613_v0, %v612_v12  ;;  %v906_v24 = vadd.f32 %v905_v55, %v838_v32  ;;  %v5964_v0 = vld [vmem:[%s7321_s4 + $0x68] sm:$0xff]  ;;  %v843_v55 = vmul.f32 %v5969_v28, %v5969_v28  ;;  %7402 = vst [vmem:[#allocation27_spill] sm:$0xff] %v5997_v31 }
 0x365   :  { %v873_v4 = vadd.f32 %v872_v16, %v810_v18  ;;  %v812_v32 = vmul.f32 %v5964_v0, %v5964_v0  ;;  %v6006_v18 = vld [vmem:[%s7321_s4 + $0x80] sm:$0xff]  ;;  %v6011_v16 = vld [vmem:[%s7321_s4 + $0x178] sm:$0xff] }
 0x366   :  { %v616_v25 = vpack.c.bf16 %v614_v53, %v614_v53  ;;  %v907_v2 = vadd.f32 %v906_v24, %v839_v15  ;;  %v5978_v53 = vld [vmem:[%s7321_s4 + $0x70] sm:$0xff]  ;;  %7403 = vst [vmem:[#allocation28_spill] sm:$0xff] %v6011_v16 }
 0x367   :  { %v874_v43 = vadd.f32 %v873_v4, %v811_v3  ;;  %v813_v15 = vmul.f32 %v5978_v53, %v5978_v53  ;;  %v846_v3 = vmul.f32 %v6011_v16, %v6011_v16  ;;  %v6020_v4 = vld [vmem:[%s7321_s4 + $0x88] sm:$0xff] }
 0x368   :  { %v642_v36 = vunpack.c.l.b16 %v616_v25  ;;  %v908_v40 = vadd.f32 %v907_v2, %v840_v45  ;;  %v844_v25 = vmul.f32 %v5983_v48, %v5983_v48 }
 0x369   :  { %v875_v24 = vadd.f32 %v874_v43, %v812_v32 }
 0x36a   :  { %v643_v12 = vsel %vm251_vm7, %v642_v36, %v641_v33  ;;  %v909_v6 = vadd.f32 %v908_v40, %v841_v23  ;;  %v814_v33 = vmul.f32 %v5992_v35, %v5992_v35  ;;  %v845_v36 = vmul.f32 %v5997_v31, %v5997_v31 }
 0x36b   :  { %v644_v11 = vpack.c.b16 %v643_v12, %v643_v12  ;;  %v876_v2 = vadd.f32 %v875_v24, %v813_v15  ;;  %v815_v40 = vmul.f32 %v6006_v18, %v6006_v18 }
 0x36c   :  { %v910_v8 = vadd.f32 %v909_v6, %v842_v51  ;;  %v6025_v51 = vld [vmem:[%s7321_s4 + $0x180] sm:$0xff]  ;;  %v816_v6 = vmul.f32 %v6020_v4, %v6020_v4 }
 0x36d   :  { %4929 = vmatmul.mubr.bf16.vlgmr.msra.gmra.mxu0 %v644_v11  ;;  %v877_v12 = vadd.f32 %v876_v2, %v814_v33  ;;  %7404 = vst [vmem:[#allocation29_spill] sm:$0xff] %v6025_v51  ;;  %v847_v43 = vmul.f32 %v6025_v51, %v6025_v51  ;;  %v6048_v33 = vld [vmem:[%s7321_s4 + $0x98] sm:$0xff]  ;;  %v6053_v2 = vld [vmem:[%s7321_s4 + $0x190] sm:$0xff] }
 0x36e   :  { %v911_v45 = vadd.f32 %v910_v8, %v843_v55  ;;  %v6034_v55 = vld [vmem:[%s7321_s4 + $0x90] sm:$0xff]  ;;  %v6039_v8 = vld [vmem:[%s7321_s4 + $0x188] sm:$0xff]  ;;  %7406 = vst [vmem:[#allocation31_spill] sm:$0xff] %v6053_v2 }
 0x36f   :  { %v878_v32 = vadd.f32 %v877_v12, %v815_v40  ;;  %7405 = vst [vmem:[#allocation30_spill] sm:$0xff] %v6039_v8  ;;  %v817_v24 = vmul.f32 %v6034_v55, %v6034_v55  ;;  %v849_v12 = vmul.f32 %v6053_v2, %v6053_v2 }
 0x370   :  { %v912_v23 = vadd.f32 %v911_v45, %v844_v25  ;;  %v848_v45 = vmul.f32 %v6039_v8, %v6039_v8 }
 0x371   :  { %v879_v25 = vadd.f32 %v878_v32, %v816_v6 }
 0x372   :  { %v913_v11 = vadd.f32 %v912_v23, %v845_v36  ;;  %v818_v23 = vmul.f32 %v6048_v33, %v6048_v33 }
 0x373   :  { %v880_v40 = vadd.f32 %v879_v25, %v817_v24  ;;  %v6076_v24 = vld [vmem:[%s7321_s4 + $0xa8] sm:$0xff]  ;;  %v6081_v25 = vld [vmem:[%s7321_s4 + $0x1a0] sm:$0xff] }
 0x374   :  { %v914_v15 = vadd.f32 %v913_v11, %v846_v3  ;;  %v6062_v3 = vld [vmem:[%s7321_s4 + $0xa0] sm:$0xff]  ;;  %v6067_v11 = vld [vmem:[%s7321_s4 + $0x198] sm:$0xff]  ;;  %7408 = vst [vmem:[#allocation33_spill] sm:$0xff] %v6081_v25 }
 0x375   :  { %7407 = vst [vmem:[#allocation32_spill] sm:$0xff] %v6067_v11  ;;  %v819_v32 = vmul.f32 %v6062_v3, %v6062_v3 }
 0x376   :  { %v915_v36 = vadd.f32 %v914_v15, %v847_v43  ;;  %v881_v43 = vadd.f32 %v880_v40, %v818_v23  ;;  %v850_v15 = vmul.f32 %v6067_v11, %v6067_v11  ;;  %v851_v23 = vmul.f32 %v6081_v25, %v6081_v25  ;;  %v6090_v40 = vld [vmem:[%s7321_s4 + $0xb0] sm:$0xff] }
 0x378   :  { %v916_v6 = vadd.f32 %v915_v36, %v848_v45  ;;  %v820_v45 = vmul.f32 %v6076_v24, %v6076_v24  ;;  %v882_v36 = vadd.f32 %v881_v43, %v819_v32  ;;  %v852_v32 = vmul.f32 %v6095_v20, %v6095_v20  ;;  %v6104_v43 = vld [vmem:[%s7321_s4 + $0xb8] sm:$0xff] }
 0x37a   :  { %v917_v54 = vadd.f32 %v916_v6, %v849_v12  ;;  %v821_v12 = vmul.f32 %v6090_v40, %v6090_v40  ;;  %v883_v6 = vadd.f32 %v882_v36, %v820_v45  ;;  %v853_v45 = vmul.f32 %v6109_v5, %v6109_v5  ;;  %v6118_v36 = vld [vmem:[%s7321_s4 + $0xc0] sm:$0xff] }
 0x37c   :  { %v918_v27 = vadd.f32 %v917_v54, %v850_v15  ;;  %v822_v54 = vmul.f32 %v6104_v43, %v6104_v43  ;;  %v884_v15 = vadd.f32 %v883_v6, %v821_v12  ;;  %v854_v12 = vmul.f32 %v6123_v63, %v6123_v63  ;;  %v6132_v6 = vld [vmem:[%s7321_s4 + $0xc8] sm:$0xff]  ;;  %v6165_v63 = vld [vmem:[%s7321_s4 + $0x1d0] sm:$0xff] }
 0x37d   :  { %7414 = vst [vmem:[#allocation39_spill] sm:$0xff] %v6165_v63 }
 0x37e   :  { %v919_v13 = vadd.f32 %v918_v27, %v851_v23  ;;  %v823_v27 = vmul.f32 %v6118_v36, %v6118_v36  ;;  %v885_v23 = vadd.f32 %v884_v15, %v822_v54  ;;  %v855_v54 = vmul.f32 %v6137_v60, %v6137_v60  ;;  %v6146_v15 = vld [vmem:[%s7321_s4 + $0xd0] sm:$0xff] }
 0x380   :  { %v920_v61 = vadd.f32 %v919_v13, %v852_v32  ;;  %v824_v13 = vmul.f32 %v6132_v6, %v6132_v6  ;;  %v886_v32 = vadd.f32 %v885_v23, %v823_v27  ;;  %v856_v27 = vmul.f32 %v6151_v37, %v6151_v37  ;;  %v6160_v23 = vld [vmem:[%s7321_s4 + $0xd8] sm:$0xff] }
 0x381   :  { %v6179_v37 = vld [vmem:[%s7321_s4 + $0x1d8] sm:$0xff] }
 0x382   :  { %v921_v59 = vadd.f32 %v920_v61, %v853_v45  ;;  %v825_v61 = vmul.f32 %v6146_v15, %v6146_v15  ;;  %v887_v45 = vadd.f32 %v886_v32, %v824_v13  ;;  %v857_v13 = vmul.f32 %v6165_v63, %v6165_v63  ;;  %v6174_v32 = vld [vmem:[%s7321_s4 + $0xe0] sm:$0xff]  ;;  %7415 = vst [vmem:[#allocation40_spill] sm:$0xff] %v6179_v37 }
 0x383   :  { %v6191_v63 = vld [vmem:[%s7321_s4 + $0x1e0] sm:$0xff] }
 0x384   :  { %v922_v57 = vadd.f32 %v921_v59, %v854_v12  ;;  %v826_v59 = vmul.f32 %v6160_v23, %v6160_v23  ;;  %v888_v12 = vadd.f32 %v887_v45, %v825_v61  ;;  %v858_v61 = vmul.f32 %v6179_v37, %v6179_v37  ;;  %v764_v45 = vld [vmem:[%s7321_s4 + $0xe8] sm:$0xff]  ;;  %7416 = vst [vmem:[#allocation41_spill] sm:$0xff] %v6191_v63 }
 0x385   :  { %v828_v11 = vmul.f32 %v764_v45, %v764_v45 }
 0x386   :  { %v923_v60 = vadd.f32 %v922_v57, %v855_v54  ;;  %v827_v57 = vmul.f32 %v6174_v32, %v6174_v32  ;;  %v889_v54 = vadd.f32 %v888_v12, %v826_v59  ;;  %v6201_v59 = vld [vmem:[%s7321_s4 + $0x1e8] sm:$0xff] }
 0x388   :  { %v924_v20 = vadd.f32 %v923_v60, %v856_v27  ;;  %v890_v25 = vadd.f32 %v889_v54, %v827_v57  ;;  %v859_v60 = vmul.f32 %v6191_v63, %v6191_v63  ;;  %v765_v27 = vld [vmem:[%s7321_s4 + $0xf0] sm:$0xff] }
 0x389   :  { %v829_v37 = vmul.f32 %v765_v27, %v765_v27  ;;  %v6211_v57 = vld [vmem:[%s7321_s4 + $0x1f0] sm:$0xff] }
 0x38a   :  { %v925_v5 = vadd.f32 %v924_v20, %v857_v13  ;;  %v891_v8 = vadd.f32 %v890_v25, %v828_v11  ;;  %v860_v20 = vmul.f32 %v6201_v59, %v6201_v59  ;;  %v766_v13 = vld [vmem:[%s7321_s4 + $0xf8] sm:$0xff]  ;;  %7417 = vst [vmem:[#allocation42_spill] sm:$0xff] %v6211_v57 }
 0x38b   :  { %v830_v63 = vmul.f32 %v766_v13, %v766_v13  ;;  %v798_v11 = vld [vmem:[%s7321_s4 + $0x1f8] sm:$0xff] }
 0x38c   :  { %v926_v12 = vadd.f32 %v925_v5, %v858_v61  ;;  %v892_v2 = vadd.f32 %v891_v8, %v829_v37  ;;  %v861_v5 = vmul.f32 %v6211_v57, %v6211_v57  ;;  %v862_v16 = vmul.f32 %v798_v11, %v798_v11 }
 0x38e   :  { %v927_v54 = vadd.f32 %v926_v12, %v859_v60  ;;  %v893_v61 = vadd.f32 %v892_v2, %v830_v63 }
 0x390   :  { %v928_v25 = vadd.f32 %v927_v54, %v860_v20  ;;  %v894_v48 = vrot.slane %v893_v61, 4 }
 0x392   :  { %v929_v51 = vadd.f32 %v928_v25, %v861_v5  ;;  %v895_v10 = vadd.f32 %v894_v48, %v893_v61  ;;  %v6236_v61 = vpop.permute.xlu1 %1655 }
 0x394   :  { %v930_v31 = vadd.f32 %v929_v51, %v862_v16  ;;  %v896_v62 = vrot.slane %v895_v10, 2 }
 0x396   :  { %v931_v28 = vrot.slane %v930_v31, 4  ;;  %v897_v60 = vadd.f32 %v896_v62, %v895_v10 }
 0x398   :  { %v932_v47 = vadd.f32 %v931_v28, %v930_v31  ;;  %v898_v37 = vrot.slane %v897_v60, 1 }
 0x39a   :  { %v933_v12 = vrot.slane %v932_v47, 2  ;;  %v899_v50 = vadd.f32 %v898_v37, %v897_v60  ;;  %v6238_v60 = vpop.permute.xlu0 %1659 }
 0x39c   :  { %v934_v8 = vadd.f32 %v933_v12, %v932_v47  ;;  %4984 = vrsqrt.f32 %v899_v50  ;;  %vm939_vm10 = vcmp.eq.f32.partialorder %v899_v50, inf  ;;  %v942_v63 = vand.u32 2147483648, %v899_v50  ;;  %v6240_v12 = vpop.permute.xlu1 %1663 }
 0x39d   :  { %vm941_vm11 = vcmp.eq.f32.partialorder %v899_v50, 0.0 }
 0x39e   :  { %v935_v57 = vrot.slane %v934_v8, 1 }
 0x3a0   :  { %v936_v19 = vadd.f32 %v935_v57, %v934_v8 }
 0x3a2   :  { %4986 = vrsqrt.f32 %v936_v19  ;;  %vm946_vm12 = vcmp.eq.f32.partialorder %v936_v19, inf  ;;  %v949_v62 = vand.u32 2147483648, %v936_v19  ;;  %vm948_vm13 = vcmp.eq.f32.partialorder %v936_v19, 0.0 }
 0x3a9   :  { %v4985_v1 = vpop.eup %4984 }
 0x3aa   :  { %v938_v20 = vmul.f32 %v4985_v1, %v899_v50 }
 0x3ac   :  { %v940_v54 = vsel %vm939_vm10, %v899_v50, %v938_v20  ;;  %vm4538_vm10 = vcmask 851712  }
 0x3ad   :  { %v943_v48 = vsel %vm941_vm11, %v942_v63, %v940_v54  ;;  %vm4545_vm11 = vcmask 917312  }
 0x3ae   :  { %v951_v51 = vmax.f32 %v943_v48, 1e-12 }
 0x3af   :  { %v4987_v2 = vpop.eup %4986 }
 0x3b0   :  { %v945_v16 = vmul.f32 %v4987_v2, %v936_v19  ;;  %4988 = vrcp.f32 %v951_v51 }
 0x3b2   :  { %v947_v10 = vsel %vm946_vm12, %v936_v19, %v945_v16  ;;  %vm4552_vm12 = vcmask 982912  }
 0x3b3   :  { %v950_v47 = vsel %vm948_vm13, %v949_v62, %v947_v10  ;;  %vm4559_vm13 = vcmask 1048512  }
 0x3b4   :  { %v952_v28 = vmax.f32 %v950_v47, 1e-12  ;;  %v7423_v47 = vld [vmem:[#allocation6_spill] sm:$0xff] }
 0x3b6   :  { %4990 = vrcp.f32 %v952_v28 }
 0x3bd   :  { %v6218_v31 = vpop.eup %4988 }
 0x3be   :  { %v6222_v1 = vmul.f32 %v6218_v31, %v6174_v32  ;;  %v6225_v57 = vmul.f32 %v6218_v31, %v765_v27  ;;  %v6228_v50 = vmul.f32 %v6218_v31, %v764_v45  ;;  %v985_v5 = vmul.f32 %v6218_v31, %v766_v13  ;;  %v6242_v32 = vpop.permute.xlu0 %1667  ;;  %v6244_v27 = vpop.permute.xlu1 %1671 }
 0x3c2   :  { %v6246_v37 = vpop.permute.xlu0 %1675  ;;  %v6248_v45 = vpop.permute.xlu1 %1679 }
 0x3c3   :  { %v6231_v25 = vpop.eup %4990  ;;  %7418 = vst [vmem:[#allocation43_spill] sm:$0xff] %v6248_v45 }
 0x3c4   :  { %v6234_v19 = vmul.f32 %v6231_v25, %v798_v11  ;;  %v633_v11 = vld [vmem:[%s7320_s3] sm:$0x1]  ;;  %s5275_s3 = smov [#allocation2]  }
 0x3c5   :  { %v634_v63 = vunpack.c.l.bf16 %v633_v11  ;;  %v955_v11 = vmul.f32 %v6218_v31, %v5790_v30  ;;  %s4816_s20 = sshll.u32 %s5275_s3, 4  ;;  %s4817_s20 = int_to_ptr.vmem [resolvable:$true] %s4816_s20 }
 0x3c6   :  { %v6250_v13 = vpop.permute.xlu0 %1683  ;;  %v6252_v8 = vpop.permute.xlu1 %1687  ;;  %s5248_s21 = scalar_lea.vmem %s4817_s20, 32  ;;  %p5253_p1 = scmp.lt.s32.totalorder %s4817_s20, %s4817_s20 }
 0x3c7   :  { %7419 = vst [vmem:[#allocation44_spill] sm:$0xff] %v6250_v13  ;;  %7420 = vst [vmem:[#allocation45_spill] sm:$0xff] %v6252_v8  ;;  %v638_v54 = vrot.slane %v634_v63, %v5323_v7  ;;  %v954_v63 = vmul.f32 %v6218_v31, %v5785_v26  ;;  %p5249_p0 = scmp.ne.s32.totalorder %s4817_s20, %s5248_s21  ;;  %p5254_p2 = scmp.lt.s32.totalorder %s5248_s21, %s5248_s21 }
 0x3c9   :  { %p5255_p3 = por %p5254_p2, %p5253_p1 }
 0x3ca   :  { %v6257_v20 = vpop.permute.xlu0 %1691  ;;  %v6259_v2 = vpop.permute.xlu1 %1695 }
 0x3cb   :  { %7421 = vst [vmem:[#allocation46_spill] sm:$0xff] %v6259_v2  ;;  %p5256_p4 = pnand %p5255_p3, %p5249_p0 }
 0x3ce   :  { %v6262_v48 = vpop.permute.xlu0 %1699  ;;  %v6264_v51 = vpop.permute.xlu1 %1703 }
 0x3cf   :  { %7422 = vst [vmem:[#allocation47_spill] sm:$0xff] %v6262_v48 }
 0x3d2   :  { %v6268_v45 = vpop.permute.xlu0 %1710  ;;  %v6274_v48 = vpop.permute.xlu1 %1714 }
 0x3d6   :  { %v6285_v30 = vpop.permute.xlu0 %1718  ;;  %v6287_v26 = vpop.permute.xlu1 %1722 }
 0x42d   :  { %v728_v16 = vpop.f32.mrf.mxu0 }
 0x42e   :  { %v729_v62 = vadd.f32 %v728_v16, %v638_v54 }
 0x42f   :  { %v4930_v10 = vpop.f32.mrf.mxu0 }
 0x430   :  { %v1026_v28 = vrot.slane %v729_v62, %v7423_v47  ;;  %734 = vst [vmem:[#allocation2] sm:$0x3] %v729_v62  ;;  %v958_v62 = vmul.f32 %v6218_v31, %v5837_v38  ;;  %v956_v10 = vmul.f32 %v6218_v31, %v5800_v42  ;;  %v957_v38 = vmul.f32 %v6218_v31, %v5819_v49  ;;  %v6307_v49 = vpop.permute.xlu1 %1730 }
 0x431   :  { %v731_v8 = vpop.f32.mrf.mxu0  ;;  %v962_v42 = vmul.f32 %v6218_v31, %v5893_v14  ;;  %v964_v14 = vmul.f32 %v6218_v31, %v5921_v21  ;;  %v966_v21 = vmul.f32 %v6218_v31, %v5949_v56 }
 0x432   :  { %v1034_v13 = vrot.slane %v1026_v28, %v7423_v47 }
 0x433   :  { %v4931_v2 = vpop.f32.mrf.mxu0 }
 0x434   :  { %v6277_v54 = vrot.slane %v1034_v13, %v5323_v7  ;;  %v960_v13 = vmul.f32 %v6218_v31, %v5865_v41  ;;  %v1027_v2 = vcombine.high %v1026_v28, %v1026_v28 }
 0x436   :  { %v1053_v16 = vmul.f32 %v6277_v54, %v955_v11  ;;  %v1052_v8 = vmul.f32 %v6277_v54, %v954_v63  ;;  %v1056_v11 = vmul.f32 %v6277_v54, %v958_v62  ;;  %v1054_v63 = vmul.f32 %v6277_v54, %v956_v10  ;;  %v6305_v10 = vpop.permute.xlu0 %1726 }
 0x437   :  { %v1058_v41 = vmul.f32 %v6277_v54, %v960_v13  ;;  %v1055_v28 = vmul.f32 %v6277_v54, %v957_v38  ;;  %v6303_v62 = vmul.f32 %v6277_v54, %v985_v5  ;;  %v1060_v13 = vmul.f32 %v6277_v54, %v962_v42 }
 0x438   :  { %1118 = vadd.xlane.f32.xlu1 %v1053_v16  ;;  %1116 = vadd.xlane.f32.xlu0 %v1052_v8  ;;  %v959_v16 = vmul.f32 %v6218_v31, %v5851_v29  ;;  %v1041_v8 = vrot.slane %v1027_v2, %v7423_v47  ;;  %v961_v29 = vmul.f32 %v6218_v31, %v5879_v58 }
 0x439   :  { %v1016_v2 = vmul.f32 %v6231_v25, %v6201_v59  ;;  %v1062_v58 = vmul.f32 %v6277_v54, %v964_v14  ;;  %v963_v38 = vmul.f32 %v6218_v31, %v5907_v46 }
 0x43a   :  { %v6314_v47 = vrot.slane %v1041_v8, %v5323_v7  ;;  %v1057_v5 = vmul.f32 %v6277_v54, %v959_v16  ;;  %v1059_v7 = vmul.f32 %v6277_v54, %v961_v29  ;;  %v1064_v16 = vmul.f32 %v6277_v54, %v966_v21 }
 0x43b   :  { %v1061_v56 = vmul.f32 %v6277_v54, %v963_v38  ;;  %v968_v8 = vmul.f32 %v6218_v31, %v5978_v53  ;;  %v970_v29 = vmul.f32 %v6218_v31, %v6006_v18  ;;  %v972_v21 = vmul.f32 %v6218_v31, %v6034_v55 }
 0x43c   :  { %1124 = vadd.xlane.f32.xlu1 %v1056_v11  ;;  %1120 = vadd.xlane.f32.xlu0 %v1054_v63  ;;  %v6320_v11 = vpop.permute.xlu0 %1734  ;;  %v6322_v63 = vpop.permute.xlu1 %1738  ;;  %v6331_v42 = vmul.f32 %v6314_v47, %v1016_v2  ;;  %v6335_v59 = vmul.f32 %v6314_v47, %v6234_v19  ;;  %v971_v38 = vmul.f32 %v6218_v31, %v6020_v4 }
 0x43d   :  { %v1066_v19 = vmul.f32 %v6277_v54, %v968_v8  ;;  %v976_v8 = vmul.f32 %v6218_v31, %v6090_v40 }
 0x43e   :  { %v1069_v55 = vmul.f32 %v6277_v54, %v971_v38  ;;  %v981_v38 = vmul.f32 %v6218_v31, %v6160_v23 }
 0x440   :  { %1128 = vadd.xlane.f32.xlu1 %v1058_v41  ;;  %1122 = vadd.xlane.f32.xlu0 %v1055_v28  ;;  %v965_v41 = vmul.f32 %v6218_v31, %v5935_v44  ;;  %v6343_v46 = vpop.permute.xlu0 %1742  ;;  %v6345_v28 = vpop.permute.xlu1 %1746 }
 0x442   :  { %v1063_v14 = vmul.f32 %v6277_v54, %v965_v41  ;;  %v973_v41 = vmul.f32 %v6218_v31, %v6048_v33 }
 0x444   :  { %1132 = vadd.xlane.f32.xlu1 %v1060_v13  ;;  %1126 = vadd.xlane.f32.xlu0 %v1057_v5  ;;  %v967_v13 = vmul.f32 %v6218_v31, %v5964_v0  ;;  %v6353_v53 = vpop.permute.xlu0 %1750  ;;  %v6355_v44 = vpop.permute.xlu1 %1754  ;;  %v1068_v5 = vmul.f32 %v6277_v54, %v970_v29  ;;  %v1070_v0 = vmul.f32 %v6277_v54, %v972_v21 }
 0x445   :  { %v978_v29 = vmul.f32 %v6218_v31, %v6118_v36 }
 0x446   :  { %v1065_v2 = vmul.f32 %v6277_v54, %v967_v13  ;;  %v975_v13 = vmul.f32 %v6218_v31, %v6076_v24 }
 0x447   :  { %v1076_v33 = vmul.f32 %v6277_v54, %v978_v29  ;;  %v991_v29 = vmul.f32 %v6231_v25, %v5856_v39 }
 0x448   :  { %1136 = vadd.xlane.f32.xlu1 %v1062_v58  ;;  %1130 = vadd.xlane.f32.xlu0 %v1059_v7  ;;  %v969_v58 = vmul.f32 %v6218_v31, %v5992_v35  ;;  %v974_v7 = vmul.f32 %v6218_v31, %v6062_v3  ;;  %v1073_v40 = vmul.f32 %v6277_v54, %v975_v13 }
 0x449   :  { %v993_v13 = vmul.f32 %v6231_v25, %v5884_v22 }
 0x44a   :  { %v1067_v18 = vmul.f32 %v6277_v54, %v969_v58  ;;  %v1072_v35 = vmul.f32 %v6277_v54, %v974_v7 }
 0x44b   :  { %v1090_v39 = vmul.f32 %v6314_v47, %v993_v13 }
 0x44c   :  { %1140 = vadd.xlane.f32.xlu1 %v1064_v16  ;;  %1134 = vadd.xlane.f32.xlu0 %v1061_v56  ;;  %v6369_v16 = vpop.permute.xlu0 %1758  ;;  %v6371_v56 = vpop.permute.xlu1 %1762 }
 0x450   :  { %1144 = vadd.xlane.f32.xlu1 %v1066_v19  ;;  %1138 = vadd.xlane.f32.xlu0 %v1063_v14  ;;  %v6379_v3 = vpop.permute.xlu0 %1766  ;;  %v6381_v4 = vpop.permute.xlu1 %1770  ;;  %v1074_v19 = vmul.f32 %v6277_v54, %v976_v8  ;;  %v1071_v14 = vmul.f32 %v6277_v54, %v973_v41 }
 0x454   :  { %1148 = vadd.xlane.f32.xlu1 %v1068_v5  ;;  %1142 = vadd.xlane.f32.xlu0 %v1065_v2  ;;  %v980_v5 = vmul.f32 %v6218_v31, %v6146_v15  ;;  %v977_v2 = vmul.f32 %v6218_v31, %v6104_v43  ;;  %v6395_v21 = vpop.permute.xlu0 %1777  ;;  %v6397_v58 = vpop.permute.xlu1 %1781  ;;  %v1080_v43 = vmul.f32 %v6277_v54, %v6222_v1 }
 0x455   :  { %v1081_v1 = vmul.f32 %v6277_v54, %v6228_v50 }
 0x456   :  { %v1078_v24 = vmul.f32 %v6277_v54, %v980_v5  ;;  %v1075_v36 = vmul.f32 %v6277_v54, %v977_v2  ;;  %v7431_v2 = vld [vmem:[#allocation9_spill] sm:$0xff] }
 0x458   :  { %1152 = vadd.xlane.f32.xlu1 %v1070_v0  ;;  %1146 = vadd.xlane.f32.xlu0 %v1067_v18  ;;  %v979_v0 = vmul.f32 %v6218_v31, %v6132_v6  ;;  %v6403_v18 = vpop.permute.xlu0 %1785  ;;  %v6405_v15 = vpop.permute.xlu1 %1789  ;;  %v1079_v6 = vmul.f32 %v6277_v54, %v981_v38  ;;  %v989_v31 = vmul.f32 %v6231_v25, %v5824_v52  ;;  %v7435_v38 = vld [vmem:[#allocation23_spill] sm:$0xff] }
 0x459   :  { %v1088_v52 = vmul.f32 %v6314_v47, %v991_v29 }
 0x45a   :  { %v1077_v7 = vmul.f32 %v6277_v54, %v979_v0 }
 0x45c   :  { %1156 = vadd.xlane.f32.xlu1 %v1072_v35  ;;  %1150 = vadd.xlane.f32.xlu0 %v1069_v55  ;;  %v1082_v35 = vmul.f32 %v6277_v54, %v6225_v57  ;;  %v987_v55 = vmul.f32 %v6231_v25, %v5805_v17  ;;  %v6417_v8 = vpop.permute.xlu0 %1793  ;;  %v6419_v41 = vpop.permute.xlu1 %1797  ;;  %v1086_v17 = vmul.f32 %v6314_v47, %v989_v31  ;;  %v7437_v31 = vld [vmem:[#allocation25_spill] sm:$0xff] }
 0x45d   :  { %7424 = vst [vmem:[#allocation6_spill] sm:$0xff] %v6417_v8  ;;  %7425 = vst [vmem:[#allocation48_spill] sm:$0xff] %v6419_v41  ;;  %v990_v54 = vmul.f32 %v6231_v25, %v5842_v9 }
 0x45e   :  { %v1084_v23 = vmul.f32 %v6314_v47, %v987_v55 }
 0x460   :  { %1160 = vadd.xlane.f32.xlu1 %v1074_v19  ;;  %1154 = vadd.xlane.f32.xlu0 %v1071_v14  ;;  %v6426_v57 = vpop.permute.xlu0 %1801  ;;  %v6428_v19 = vpop.permute.xlu1 %1805  ;;  %v988_v14 = vmul.f32 %v6231_v25, %v5810_v34  ;;  %v1087_v34 = vmul.f32 %v6314_v47, %v990_v54  ;;  %v7440_v54 = vld [vmem:[#allocation24_spill] sm:$0xff] }
 0x461   :  { %7426 = vst [vmem:[#allocation49_spill] sm:$0xff] %v6426_v57  ;;  %7427 = vst [vmem:[#allocation50_spill] sm:$0xff] %v6428_v19  ;;  %v998_v13 = vmul.f32 %v6231_v25, %v7440_v54  ;;  %v7450_v54 = vld [vmem:[#allocation30_spill] sm:$0xff] }
 0x462   :  { %v1085_v50 = vmul.f32 %v6314_v47, %v988_v14 }
 0x464   :  { %1164 = vadd.xlane.f32.xlu1 %v1076_v33  ;;  %1158 = vadd.xlane.f32.xlu0 %v1073_v40  ;;  %v6442_v33 = vpop.permute.xlu0 %1809  ;;  %v6444_v40 = vpop.permute.xlu1 %1813 }
 0x465   :  { %7428 = vst [vmem:[#allocation51_spill] sm:$0xff] %v6442_v33  ;;  %7429 = vst [vmem:[#allocation52_spill] sm:$0xff] %v6444_v40 }
 0x468   :  { %1168 = vadd.xlane.f32.xlu1 %v1078_v24  ;;  %1162 = vadd.xlane.f32.xlu0 %v1075_v36  ;;  %v995_v24 = vmul.f32 %v6231_v25, %v7431_v2  ;;  %v6452_v9 = vpop.permute.xlu0 %1817  ;;  %v6454_v22 = vpop.permute.xlu1 %1821  ;;  %v1095_v2 = vmul.f32 %v6314_v47, %v998_v13  ;;  %v1004_v13 = vmul.f32 %v6231_v25, %v7450_v54 }
 0x469   :  { %7433 = vst [vmem:[#allocation9_spill] sm:$0xff] %v6454_v22 }
 0x46a   :  { %v1092_v0 = vmul.f32 %v6314_v47, %v995_v24 }
 0x46c   :  { %1172 = vadd.xlane.f32.xlu1 %v1080_v43  ;;  %1166 = vadd.xlane.f32.xlu0 %v1077_v7  ;;  %v7434_v43 = vld [vmem:[#allocation8_spill] sm:$0xff]  ;;  %v6468_v14 = vpop.permute.xlu0 %1825  ;;  %v6470_v29 = vpop.permute.xlu1 %1829 }
 0x46d   :  { %v994_v7 = vmul.f32 %v6231_v25, %v7434_v43  ;;  %7438 = vst [vmem:[#allocation8_spill] sm:$0xff] %v6468_v14  ;;  %7439 = vst [vmem:[#allocation23_spill] sm:$0xff] %v6470_v29  ;;  %v7445_v43 = vld [vmem:[#allocation29_spill] sm:$0xff] }
 0x470   :  { %1176 = vadd.xlane.f32.xlu1 %v1082_v35  ;;  %1170 = vadd.xlane.f32.xlu0 %v1079_v6  ;;  %v997_v35 = vmul.f32 %v6231_v25, %v7435_v38  ;;  %v1091_v6 = vmul.f32 %v6314_v47, %v994_v7  ;;  %v1003_v7 = vmul.f32 %v6231_v25, %v7445_v43  ;;  %v7454_v43 = vld [vmem:[#allocation32_spill] sm:$0xff] }
 0x472   :  { %v1094_v55 = vmul.f32 %v6314_v47, %v997_v35  ;;  %v1100_v35 = vmul.f32 %v6314_v47, %v1003_v7  ;;  %v1006_v7 = vmul.f32 %v6231_v25, %v7454_v43  ;;  %v7461_v43 = vld [vmem:[#allocation39_spill] sm:$0xff] }
 0x474   :  { %1174 = vadd.xlane.f32.xlu0 %v1081_v1  ;;  %1180 = vadd.xlane.f32.xlu1 %v1084_v23  ;;  %v7436_v1 = vld [vmem:[#allocation22_spill] sm:$0xff] }
 0x475   :  { %v996_v23 = vmul.f32 %v6231_v25, %v7436_v1  ;;  %v7447_v1 = vld [vmem:[#allocation31_spill] sm:$0xff] }
 0x478   :  { %1178 = vadd.xlane.f32.xlu0 %v6303_v62  ;;  %1184 = vadd.xlane.f32.xlu1 %v1086_v17  ;;  %v7430_v62 = vld [vmem:[#allocation7_spill] sm:$0xff]  ;;  %v999_v17 = vmul.f32 %v6231_v25, %v7437_v31 }
 0x479   :  { %v992_v5 = vmul.f32 %v6231_v25, %v7430_v62  ;;  %7432 = vst [vmem:[#allocation7_spill] sm:$0xff] %v6452_v9  ;;  %v6478_v62 = vpop.permute.xlu0 %1833 }
 0x47a   :  { %7442 = vst [vmem:[#allocation22_spill] sm:$0xff] %v6478_v62 }
 0x47b   :  { %v1089_v36 = vmul.f32 %v6314_v47, %v992_v5  ;;  %v6480_v5 = vpop.permute.xlu1 %1837 }
 0x47c   :  { %1182 = vadd.xlane.f32.xlu0 %v1085_v50  ;;  %1188 = vadd.xlane.f32.xlu1 %v1088_v52  ;;  %v1093_v50 = vmul.f32 %v6314_v47, %v996_v23  ;;  %v1096_v52 = vmul.f32 %v6314_v47, %v999_v17  ;;  %7443 = vst [vmem:[#allocation25_spill] sm:$0xff] %v6480_v5  ;;  %v7467_v5 = vld [vmem:[#allocation42_spill] sm:$0xff] }
 0x47d   :  { %v1005_v23 = vmul.f32 %v6231_v25, %v7447_v1  ;;  %v6494_v31 = vpop.permute.xlu0 %1844  ;;  %v7456_v1 = vld [vmem:[#allocation34_spill] sm:$0xff] }
 0x47e   :  { %7448 = vst [vmem:[#allocation24_spill] sm:$0xff] %v6494_v31 }
 0x47f   :  { %v6496_v17 = vpop.permute.xlu1 %1848 }
 0x480   :  { %1186 = vadd.xlane.f32.xlu0 %v1087_v34  ;;  %1192 = vadd.xlane.f32.xlu1 %v1090_v39  ;;  %v7441_v34 = vld [vmem:[#allocation27_spill] sm:$0xff] }
 0x481   :  { %v1001_v39 = vmul.f32 %v6231_v25, %v7441_v34  ;;  %7449 = vst [vmem:[#allocation27_spill] sm:$0xff] %v6496_v17  ;;  %v7451_v34 = vld [vmem:[#allocation33_spill] sm:$0xff] }
 0x483   :  { %v1098_v24 = vmul.f32 %v6314_v47, %v1001_v39  ;;  %v1007_v39 = vmul.f32 %v6231_v25, %v7451_v34 }
 0x484   :  { %1190 = vadd.xlane.f32.xlu0 %v1089_v36  ;;  %1196 = vadd.xlane.f32.xlu1 %v1092_v0  ;;  %v7444_v36 = vld [vmem:[#allocation26_spill] sm:$0xff] }
 0x485   :  { %v1000_v0 = vmul.f32 %v6231_v25, %v7444_v36  ;;  %v1101_v36 = vmul.f32 %v6314_v47, %v1004_v13 }
 0x487   :  { %v1097_v38 = vmul.f32 %v6314_v47, %v1000_v0  ;;  %v1104_v0 = vmul.f32 %v6314_v47, %v1007_v39 }
 0x488   :  { %1194 = vadd.xlane.f32.xlu0 %v1091_v6  ;;  %1200 = vadd.xlane.f32.xlu1 %v1094_v55  ;;  %v7446_v6 = vld [vmem:[#allocation28_spill] sm:$0xff] }
 0x489   :  { %v1002_v55 = vmul.f32 %v6231_v25, %v7446_v6  ;;  %v1103_v6 = vmul.f32 %v6314_v47, %v1006_v7  ;;  %v1013_v7 = vmul.f32 %v6231_v25, %v7461_v43 }
 0x48c   :  { %1198 = vadd.xlane.f32.xlu0 %v1093_v50  ;;  %1204 = vadd.xlane.f32.xlu1 %v1096_v52  ;;  %v1099_v50 = vmul.f32 %v6314_v47, %v1002_v55  ;;  %v1102_v52 = vmul.f32 %v6314_v47, %v1005_v23  ;;  %v1008_v23 = vmul.f32 %v6231_v25, %v7456_v1 }
 0x48e   :  { %v1105_v34 = vmul.f32 %v6314_v47, %v1008_v23 }
 0x490   :  { %1202 = vadd.xlane.f32.xlu0 %v1095_v2  ;;  %1208 = vadd.xlane.f32.xlu1 %v1098_v24  ;;  %v6504_v2 = vpop.permute.xlu0 %1852  ;;  %v6506_v24 = vpop.permute.xlu1 %1856 }
 0x491   :  { %7452 = vst [vmem:[#allocation26_spill] sm:$0xff] %v6504_v2  ;;  %7453 = vst [vmem:[#allocation29_spill] sm:$0xff] %v6506_v24 }
 0x494   :  { %1206 = vadd.xlane.f32.xlu0 %v1097_v38  ;;  %1212 = vadd.xlane.f32.xlu1 %v1100_v35  ;;  %v7455_v38 = vld [vmem:[#allocation35_spill] sm:$0xff]  ;;  %v6520_v54 = vpop.permute.xlu0 %1860  ;;  %v6522_v13 = vpop.permute.xlu1 %1864 }
 0x495   :  { %v1009_v35 = vmul.f32 %v6231_v25, %v7455_v38  ;;  %7458 = vst [vmem:[#allocation28_spill] sm:$0xff] %v6520_v54  ;;  %7459 = vst [vmem:[#allocation31_spill] sm:$0xff] %v6522_v13 }
 0x497   :  { %v1106_v55 = vmul.f32 %v6314_v47, %v1009_v35 }
 0x498   :  { %1210 = vadd.xlane.f32.xlu0 %v1099_v50  ;;  %1216 = vadd.xlane.f32.xlu1 %v1102_v52  ;;  %v7457_v50 = vld [vmem:[#allocation37_spill] sm:$0xff]  ;;  %v6530_v38 = vpop.permute.xlu0 %1868  ;;  %v6532_v35 = vpop.permute.xlu1 %1872 }
 0x499   :  { %v1011_v52 = vmul.f32 %v6231_v25, %v7457_v50  ;;  %7462 = vst [vmem:[#allocation30_spill] sm:$0xff] %v6530_v38  ;;  %7463 = vst [vmem:[#allocation33_spill] sm:$0xff] %v6532_v35  ;;  %v7465_v50 = vld [vmem:[#allocation41_spill] sm:$0xff]  ;;  %v7479_v38 = vld [vmem:[#allocation20_spill] sm:$0xff] }
 0x49b   :  { %v1108_v39 = vmul.f32 %v6314_v47, %v1011_v52  ;;  %v1015_v52 = vmul.f32 %v6231_v25, %v7465_v50 }
 0x49c   :  { %1214 = vadd.xlane.f32.xlu0 %v1101_v36  ;;  %1220 = vadd.xlane.f32.xlu1 %v1104_v0  ;;  %v7460_v36 = vld [vmem:[#allocation36_spill] sm:$0xff]  ;;  %v6546_v62 = vpop.permute.xlu0 %1876 }
 0x49d   :  { %v1010_v0 = vmul.f32 %v6231_v25, %v7460_v36  ;;  %7468 = vst [vmem:[#allocation32_spill] sm:$0xff] %v6546_v62 }
 0x49f   :  { %v1107_v1 = vmul.f32 %v6314_v47, %v1010_v0  ;;  %v1017_v0 = vmul.f32 %v6231_v25, %v7467_v5 }
 0x4a0   :  { %1218 = vadd.xlane.f32.xlu0 %v1103_v6  ;;  %1224 = vadd.xlane.f32.xlu1 %v1106_v55  ;;  %v1110_v6 = vmul.f32 %v6314_v47, %v1013_v7  ;;  %v7464_v55 = vld [vmem:[#allocation38_spill] sm:$0xff]  ;;  %v6548_v7 = vpop.permute.xlu1 %1880 }
 0x4a1   :  { %v1012_v23 = vmul.f32 %v6231_v25, %v7464_v55  ;;  %7469 = vst [vmem:[#allocation35_spill] sm:$0xff] %v6548_v7 }
 0x4a3   :  { %v1109_v36 = vmul.f32 %v6314_v47, %v1012_v23 }
 0x4a4   :  { %1222 = vadd.xlane.f32.xlu0 %v1105_v34  ;;  %1228 = vadd.xlane.f32.xlu1 %v1108_v39  ;;  %v1112_v34 = vmul.f32 %v6314_v47, %v1015_v52  ;;  %v7466_v39 = vld [vmem:[#allocation40_spill] sm:$0xff]  ;;  %v6554_v23 = vpop.permute.xlu1 %1888 }
 0x4a5   :  { %v1014_v43 = vmul.f32 %v6231_v25, %v7466_v39  ;;  %7471 = vst [vmem:[#allocation37_spill] sm:$0xff] %v6554_v23 }
 0x4a7   :  { %v1111_v55 = vmul.f32 %v6314_v47, %v1014_v43 }
 0x4a8   :  { %1226 = vadd.xlane.f32.xlu0 %v1107_v1  ;;  %1232 = vadd.xlane.f32.xlu1 %v1110_v6  ;;  %v1114_v1 = vmul.f32 %v6314_v47, %v1017_v0  ;;  %v6552_v6 = vpop.permute.xlu0 %1884  ;;  %v6559_v25 = vpop.permute.xlu1 %1896 }
 0x4a9   :  { %7470 = vst [vmem:[#allocation34_spill] sm:$0xff] %v6552_v6  ;;  %7473 = vst [vmem:[#allocation39_spill] sm:$0xff] %v6559_v25 }
 0x4ac   :  { %1230 = vadd.xlane.f32.xlu0 %v1109_v36  ;;  %1236 = vadd.xlane.f32.xlu1 %v1112_v34  ;;  %v6557_v50 = vpop.permute.xlu0 %1892  ;;  %v6564_v52 = vpop.permute.xlu1 %1904 }
 0x4ad   :  { %7472 = vst [vmem:[#allocation36_spill] sm:$0xff] %v6557_v50  ;;  %7475 = vst [vmem:[#allocation41_spill] sm:$0xff] %v6564_v52 }
 0x4b0   :  { %1234 = vadd.xlane.f32.xlu0 %v1111_v55  ;;  %1240 = vadd.xlane.f32.xlu1 %v1114_v1  ;;  %v6562_v5 = vpop.permute.xlu0 %1900 }
 0x4b1   :  { %7474 = vst [vmem:[#allocation38_spill] sm:$0xff] %v6562_v5 }
 0x4b4   :  { %1238 = vadd.xlane.f32.xlu0 %v6331_v42 }
 0x4b8   :  { %1242 = vadd.xlane.f32.xlu0 %v6335_v59 }
 0x4c1   :  { %v1117_v36 = vpop.xlane.xlu0 %1116  ;;  %v1119_v47 = vpop.xlane.xlu1 %1118 }
 0x4c2   :  { %v4837_v34 = vmul.f32 -1.442695, %v1117_v36  ;;  %v4838_v39 = vmul.f32 -1.442695, %v1119_v47 }
 0x4c4   :  { %4992 = vpow2.f32 %v4837_v34 }
 0x4c5   :  { %4994 = vpow2.f32 %v4838_v39  ;;  %v1121_v43 = vpop.xlane.xlu0 %1120  ;;  %v1125_v0 = vpop.xlane.xlu1 %1124 }
 0x4c6   :  { %v4839_v55 = vmul.f32 -1.442695, %v1121_v43  ;;  %v4841_v42 = vmul.f32 -1.442695, %v1125_v0 }
 0x4c8   :  { %4996 = vpow2.f32 %v4839_v55 }
 0x4c9   :  { %4998 = vpow2.f32 %v4841_v42  ;;  %v1123_v1 = vpop.xlane.xlu0 %1122  ;;  %v1129_v25 = vpop.xlane.xlu1 %1128 }
 0x4ca   :  { %v4840_v50 = vmul.f32 -1.442695, %v1123_v1  ;;  %v4843_v59 = vmul.f32 -1.442695, %v1129_v25 }
 0x4cc   :  { %5000 = vpow2.f32 %v4840_v50 }
 0x4cd   :  { %5002 = vpow2.f32 %v4843_v59  ;;  %v1127_v5 = vpop.xlane.xlu0 %1126  ;;  %v1133_v52 = vpop.xlane.xlu1 %1132 }
 0x4ce   :  { %v4842_v29 = vmul.f32 -1.442695, %v1127_v5  ;;  %v4845_v23 = vmul.f32 -1.442695, %v1133_v52 }
 0x4d0   :  { %5004 = vpow2.f32 %v4842_v29 }
 0x4d1   :  { %v4993_v36 = vpop.eup %4992  ;;  %5006 = vpow2.f32 %v4845_v23  ;;  %v1131_v47 = vpop.xlane.xlu0 %1130  ;;  %v5274_v23 = vmov 1983009808  }
 0x4d2   :  { %v1137_v34 = vpop.xlane.xlu1 %1136  ;;  %v4995_v39 = vpop.eup %4994  ;;  %v1436_v43 = vadd.f32 1.0, %v4993_v36  ;;  %v4844_v0 = vmul.f32 -1.442695, %v1131_v47  ;;  %v2100_v7 = vunpack.c.l.s4 %v5274_v23 }
 0x4d3   :  { %v1437_v55 = vadd.f32 1.0, %v4995_v39  ;;  %v4847_v42 = vmul.f32 -1.442695, %v1137_v34 }
 0x4d4   :  { %5008 = vrcp.f32 %v1436_v43 }
 0x4d5   :  { %v4997_v14 = vpop.eup %4996  ;;  %5010 = vrcp.f32 %v1437_v55  ;;  %v1135_v25 = vpop.xlane.xlu0 %1134 }
 0x4d6   :  { %v1141_v50 = vpop.xlane.xlu1 %1140  ;;  %v4999_v1 = vpop.eup %4998  ;;  %v1438_v59 = vadd.f32 1.0, %v4997_v14  ;;  %5012 = vpow2.f32 %v4844_v0  ;;  %v4846_v5 = vmul.f32 -1.442695, %v1135_v25  ;;  %v2101_v14 = vunpack.c.0.s8 %v2100_v7 }
 0x4d7   :  { %v1440_v52 = vadd.f32 1.0, %v4999_v1  ;;  %5014 = vpow2.f32 %v4847_v42  ;;  %v4849_v29 = vmul.f32 -1.442695, %v1141_v50 }
 0x4d8   :  { %5016 = vrcp.f32 %v1438_v59 }
 0x4d9   :  { %v5001_v6 = vpop.eup %5000  ;;  %5018 = vrcp.f32 %v1440_v52  ;;  %v1139_v36 = vpop.xlane.xlu0 %1138 }
 0x4da   :  { %v1145_v47 = vpop.xlane.xlu1 %1144  ;;  %v5003_v34 = vpop.eup %5002  ;;  %v1439_v39 = vadd.f32 1.0, %v5001_v6  ;;  %5020 = vpow2.f32 %v4846_v5  ;;  %v4848_v43 = vmul.f32 -1.442695, %v1139_v36  ;;  %v7476_v6 = vld [vmem:[#allocation5_spill] sm:$0xff] }
 0x4db   :  { %v1442_v55 = vadd.f32 1.0, %v5003_v34  ;;  %5022 = vpow2.f32 %v4849_v29  ;;  %v4851_v35 = vmul.f32 -1.442695, %v1145_v47  ;;  %v6567_v5 = vsub.s32 %v2101_v14, %v7476_v6 }
 0x4dc   :  { %5024 = vrcp.f32 %v1439_v39 }
 0x4dd   :  { %v5005_v0 = vpop.eup %5004  ;;  %5026 = vrcp.f32 %v1442_v55  ;;  %v1143_v42 = vpop.xlane.xlu0 %1142  ;;  %v7477_v55 = vld [vmem:[#allocation19_spill] sm:$0xff] }
 0x4de   :  { %v1149_v25 = vpop.xlane.xlu1 %1148  ;;  %v5007_v50 = vpop.eup %5006  ;;  %v1441_v1 = vadd.f32 1.0, %v5005_v0  ;;  %5028 = vpow2.f32 %v4848_v43  ;;  %v4850_v59 = vmul.f32 -1.442695, %v1143_v42  ;;  %v7478_v43 = vld [vmem:[#allocation21_spill] sm:$0xff] }
 0x4df   :  { %v1444_v52 = vadd.f32 1.0, %v5007_v50  ;;  %5030 = vpow2.f32 %v4851_v35  ;;  %v4853_v23 = vmul.f32 -1.442695, %v1149_v25 }
 0x4e0   :  { %5032 = vrcp.f32 %v1441_v1 }
 0x4e1   :  { %v5009_v36 = vpop.eup %5008  ;;  %5034 = vrcp.f32 %v1444_v52  ;;  %v1147_v29 = vpop.xlane.xlu0 %1146 }
 0x4e2   :  { %v1153_v47 = vpop.xlane.xlu1 %1152  ;;  %v5011_v7 = vpop.eup %5010  ;;  %5036 = vpow2.f32 %v4850_v59  ;;  %v4852_v34 = vmul.f32 -1.442695, %v1147_v29  ;;  %v1970_v62 = vmul.f32 %v5009_v36, %v7477_v55 }
 0x4e3   :  { %v4855_v39 = vmul.f32 -1.442695, %v1153_v47  ;;  %v5013_v0 = vpop.eup %5012  ;;  %5038 = vpow2.f32 %v4853_v23  ;;  %v1971_v42 = vmul.f32 %v5011_v7, %v7478_v43 }
 0x4e4   :  { %v5015_v35 = vpop.eup %5014  ;;  %v1443_v25 = vadd.f32 1.0, %v5013_v0  ;;  %5040 = vpow2.f32 %v4852_v34  ;;  %v2098_v50 = vcombine.high %v1970_v62, %v1970_v62  ;;  %v2105_v14 = vrot.slane %v1970_v62, %v6567_v5 }
 0x4e5   :  { %v5017_v1 = vpop.eup %5016  ;;  %v1446_v52 = vadd.f32 1.0, %v5015_v35  ;;  %5042 = vpow2.f32 %v4855_v39  ;;  %v1151_v6 = vpop.xlane.xlu0 %1150  ;;  %v2115_v59 = vcombine.high %v1971_v42, %v1971_v42  ;;  %v2122_v29 = vrot.slane %v1971_v42, %v6567_v5 }
 0x4e6   :  { %v1157_v13 = vpop.xlane.xlu1 %1156  ;;  %v5019_v47 = vpop.eup %5018  ;;  %5044 = vrcp.f32 %v1443_v25  ;;  %v4854_v36 = vmul.f32 -1.442695, %v1151_v6  ;;  %v2112_v7 = vrot.slane %v2098_v50, %v6567_v5  ;;  %v2113_v34 = vcombine.high %v2105_v14, %v2105_v14 }
 0x4e7   :  { %v4857_v23 = vmul.f32 -1.442695, %v1157_v13  ;;  %v5021_v55 = vpop.eup %5020  ;;  %5046 = vrcp.f32 %v1446_v52  ;;  %v2129_v0 = vrot.slane %v2115_v59, %v6567_v5  ;;  %v2130_v62 = vcombine.high %v2122_v29, %v2122_v29 }
 0x4e8   :  { %v5023_v43 = vpop.eup %5022  ;;  %v1445_v35 = vadd.f32 1.0, %v5021_v55  ;;  %5048 = vpow2.f32 %v4854_v36  ;;  %v2114_v39 = vcombine.high %v2112_v7, %v2112_v7  ;;  %v1972_v24 = vmul.f32 %v5017_v1, %v7479_v38 }
 0x4e9   :  { %v5025_v54 = vpop.eup %5024  ;;  %v1448_v42 = vadd.f32 1.0, %v5023_v43  ;;  %5050 = vpow2.f32 %v4857_v23  ;;  %v1155_v25 = vpop.xlane.xlu0 %1154  ;;  %v3186_v13 = vcombine.low %v2105_v14, %v2113_v34  ;;  %v2131_v17 = vcombine.high %v2129_v0, %v2129_v0 }
 0x4ea   :  { %v1161_v6 = vpop.xlane.xlu1 %1160  ;;  %v6576_v50 = vpop.eup %5026  ;;  %5052 = vrcp.f32 %v1445_v35  ;;  %v4856_v52 = vmul.f32 -1.442695, %v1155_v25  ;;  %v3187_v59 = vcombine.low %v2112_v7, %v2114_v39  ;;  %v3203_v55 = vcombine.low %v2122_v29, %v2130_v62 }
 0x4eb   :  { %v4859_v2 = vmul.f32 -1.442695, %v1161_v6  ;;  %v5029_v31 = vpop.eup %5028  ;;  %5054 = vrcp.f32 %v1448_v42  ;;  %v3194_v36 = vrot.slane %v3186_v13, %v6567_v5  ;;  %v3204_v22 = vcombine.low %v2129_v0, %v2131_v17 }
 0x4ec   :  { %v5031_v38 = vpop.eup %5030  ;;  %v1447_v1 = vadd.f32 1.0, %v5029_v31  ;;  %5056 = vpow2.f32 %v4856_v52  ;;  %v3201_v23 = vrot.slane %v3187_v59, %v6567_v5  ;;  %v2132_v43 = vcombine.high %v1972_v24, %v1972_v24 }
 0x4ed   :  { %v6580_v14 = vpop.eup %5032  ;;  %v1450_v34 = vadd.f32 1.0, %v5031_v38  ;;  %5058 = vpow2.f32 %v4859_v2  ;;  %v1159_v35 = vpop.xlane.xlu0 %1158  ;;  %v3211_v7 = vrot.slane %v3203_v55, %v6567_v5  ;;  %v3218_v39 = vrot.slane %v3204_v22, %v6567_v5 }
 0x4ee   :  { %v1165_v25 = vpop.xlane.xlu1 %1164  ;;  %v6584_v42 = vpop.eup %5034  ;;  %5060 = vrcp.f32 %v1447_v1  ;;  %v4858_v17 = vmul.f32 -1.442695, %v1159_v35  ;;  %v3202_v31 = vcombine.low %v3194_v36, %v3201_v23  ;;  %v2139_v6 = vrot.slane %v1972_v24, %v6567_v5 }
 0x4ef   :  { %v4861_v29 = vmul.f32 -1.442695, %v1165_v25  ;;  %v5037_v0 = vpop.eup %5036  ;;  %5062 = vrcp.f32 %v1450_v34  ;;  %v3219_v62 = vcombine.low %v3211_v7, %v3218_v39  ;;  %v2146_v13 = vrot.slane %v2132_v43, %v6567_v5 }
 0x4f0   :  { %v5039_v2 = vpop.eup %5038  ;;  %v1449_v52 = vadd.f32 1.0, %v5037_v0  ;;  %5064 = vpow2.f32 %v4858_v17  ;;  %4275 = vperm.xlu0 %4939, %v3202_v31   ;;  %v1973_v59 = vmul.f32 %v5025_v54, %v6236_v61  ;;  %v1974_v22 = vmul.f32 %v5019_v47, %v6238_v60 }
 0x4f1   :  { %v5041_v55 = vpop.eup %5040  ;;  %v1452_v38 = vadd.f32 1.0, %v5039_v2  ;;  %5066 = vpow2.f32 %v4861_v29  ;;  %4278 = vperm.xlu1 %4938, %v3219_v62   ;;  %v1163_v36 = vpop.xlane.xlu0 %1162  ;;  %v2147_v23 = vcombine.high %v2139_v6, %v2139_v6  ;;  %v2148_v34 = vcombine.high %v2146_v13, %v2146_v13 }
 0x4f2   :  { %v1169_v1 = vpop.xlane.xlu1 %1168  ;;  %v5043_v35 = vpop.eup %5042  ;;  %5068 = vrcp.f32 %v1449_v52  ;;  %v1451_v24 = vadd.f32 1.0, %v5041_v55  ;;  %v4860_v43 = vmul.f32 -1.442695, %v1163_v36  ;;  %v2149_v47 = vcombine.high %v1973_v59, %v1973_v59 }
 0x4f3   :  { %v4863_v25 = vmul.f32 -1.442695, %v1169_v1  ;;  %v6590_v7 = vpop.eup %5044  ;;  %5070 = vrcp.f32 %v1452_v38  ;;  %v1454_v39 = vadd.f32 1.0, %v5043_v35  ;;  %v3220_v61 = vcombine.low %v2139_v6, %v2147_v23 }
 0x4f4   :  { %v3221_v54 = vcombine.low %v2146_v13, %v2148_v34  ;;  %v6592_v60 = vpop.eup %5046  ;;  %5072 = vrcp.f32 %v1451_v24  ;;  %v2156_v17 = vrot.slane %v1973_v59, %v6567_v5  ;;  %v2166_v29 = vcombine.high %v1974_v22, %v1974_v22 }
 0x4f5   :  { %v5049_v31 = vpop.eup %5048  ;;  %5074 = vrcp.f32 %v1454_v39  ;;  %v3228_v0 = vrot.slane %v3220_v61, %v6567_v5  ;;  %v1167_v2 = vpop.xlane.xlu0 %1166  ;;  %v2173_v55 = vrot.slane %v1974_v22, %v6567_v5  ;;  %v2163_v34 = vrot.slane %v2149_v47, %v6567_v5 }
 0x4f6   :  { %v3235_v62 = vrot.slane %v3221_v54, %v6567_v5  ;;  %v1173_v52 = vpop.xlane.xlu1 %1172  ;;  %v5051_v38 = vpop.eup %5050  ;;  %v1453_v6 = vadd.f32 1.0, %v5049_v31  ;;  %5076 = vpow2.f32 %v4860_v43  ;;  %v4862_v13 = vmul.f32 -1.442695, %v1167_v2 }
 0x4f7   :  { %v4865_v36 = vmul.f32 -1.442695, %v1173_v52  ;;  %v6598_v1 = vpop.eup %5052  ;;  %v1456_v23 = vadd.f32 1.0, %v5051_v38  ;;  %5078 = vpow2.f32 %v4863_v25  ;;  %v2164_v24 = vcombine.high %v2156_v17, %v2156_v17 }
 0x4f8   :  { %v3236_v59 = vcombine.low %v3228_v0, %v3235_v62  ;;  %v6601_v35 = vpop.eup %5054  ;;  %5080 = vrcp.f32 %v1453_v6  ;;  %v2180_v39 = vrot.slane %v2166_v29, %v6567_v5  ;;  %v2181_v61 = vcombine.high %v2173_v55, %v2173_v55 }
 0x4f9   :  { %v5057_v22 = vpop.eup %5056  ;;  %5082 = vrcp.f32 %v1456_v23  ;;  %v2165_v43 = vcombine.high %v2163_v34, %v2163_v34  ;;  %v1171_v54 = vpop.xlane.xlu0 %1170  ;;  %v1975_v2 = vmul.f32 %v6580_v14, %v6240_v12  ;;  %v1976_v25 = vmul.f32 %v6576_v50, %v6242_v32 }
 0x4fa   :  { %4281 = vperm.xlu0 %4939, %v3236_v59   ;;  %v1177_v31 = vpop.xlane.xlu1 %1176  ;;  %v5059_v47 = vpop.eup %5058  ;;  %v1455_v0 = vadd.f32 1.0, %v5057_v22  ;;  %5084 = vpow2.f32 %v4862_v13  ;;  %v3237_v62 = vcombine.low %v2156_v17, %v2164_v24  ;;  %v2182_v52 = vcombine.high %v2180_v39, %v2180_v39 }
 0x4fb   :  { %v6608_v38 = vpop.eup %5060  ;;  %v1458_v29 = vadd.f32 1.0, %v5059_v47  ;;  %5086 = vpow2.f32 %v4865_v36  ;;  %v3238_v6 = vcombine.low %v2163_v34, %v2165_v43  ;;  %v3254_v23 = vcombine.low %v2173_v55, %v2181_v61 }
 0x4fc   :  { %v6610_v59 = vpop.eup %5062  ;;  %5088 = vrcp.f32 %v1455_v0  ;;  %v3245_v9 = vrot.slane %v3237_v62, %v6567_v5  ;;  %v3255_v12 = vcombine.low %v2180_v39, %v2182_v52  ;;  %v4864_v14 = vmul.f32 -1.442695, %v1171_v54 }
 0x4fd   :  { %v5065_v40 = vpop.eup %5064  ;;  %5090 = vrcp.f32 %v1458_v29  ;;  %v3252_v32 = vrot.slane %v3238_v6, %v6567_v5  ;;  %v3262_v50 = vrot.slane %v3254_v23, %v6567_v5  ;;  %v4867_v17 = vmul.f32 -1.442695, %v1177_v31  ;;  %v1175_v34 = vpop.xlane.xlu0 %1174 }
 0x4fe   :  { %v5067_v13 = vpop.eup %5066  ;;  %v1457_v24 = vadd.f32 1.0, %v5065_v40  ;;  %v3269_v36 = vrot.slane %v3255_v12, %v6567_v5  ;;  %5092 = vpow2.f32 %v4864_v14  ;;  %v2183_v55 = vcombine.high %v1975_v2, %v1975_v2  ;;  %v1181_v54 = vpop.xlane.xlu1 %1180 }
 0x4ff   :  { %v6616_v61 = vpop.eup %5068  ;;  %v1460_v22 = vadd.f32 1.0, %v5067_v13  ;;  %v3253_v43 = vcombine.low %v3245_v9, %v3252_v32  ;;  %5094 = vpow2.f32 %v4867_v17  ;;  %v2190_v39 = vrot.slane %v1975_v2, %v6567_v5 }
 0x500   :  { %v6619_v47 = vpop.eup %5070  ;;  %5096 = vrcp.f32 %v1457_v24  ;;  %v3270_v0 = vcombine.low %v3262_v50, %v3269_v36  ;;  %v2197_v31 = vrot.slane %v2183_v55, %v6567_v5  ;;  %v2200_v40 = vcombine.high %v1976_v25, %v1976_v25 }
 0x501   :  { %v6622_v62 = vpop.eup %5072  ;;  %5098 = vrcp.f32 %v1460_v22  ;;  %4284 = vperm.xlu1 %4938, %v3253_v43   ;;  %v2198_v52 = vcombine.high %v2190_v39, %v2190_v39  ;;  %v2207_v29 = vrot.slane %v1976_v25, %v6567_v5  ;;  %v4866_v6 = vmul.f32 -1.442695, %v1175_v34 }
 0x502   :  { %v6625_v9 = vpop.eup %5074  ;;  %4287 = vperm.xlu0 %4939, %v3270_v0   ;;  %v2199_v2 = vcombine.high %v2197_v31, %v2197_v31  ;;  %v2214_v23 = vrot.slane %v2200_v40, %v6567_v5  ;;  %v4869_v12 = vmul.f32 -1.442695, %v1181_v54  ;;  %v1977_v14 = vmul.f32 %v6590_v7, %v6244_v27  ;;  %v1179_v27 = vpop.xlane.xlu0 %1178 }
 0x503   :  { %v5077_v32 = vpop.eup %5076  ;;  %v3271_v50 = vcombine.low %v2190_v39, %v2198_v52  ;;  %v2215_v17 = vcombine.high %v2207_v29, %v2207_v29  ;;  %5100 = vpow2.f32 %v4866_v6  ;;  %v1978_v13 = vmul.f32 %v6584_v42, %v6246_v37 }
 0x504   :  { %v5079_v24 = vpop.eup %5078  ;;  %v1459_v25 = vadd.f32 1.0, %v5077_v32  ;;  %v3272_v36 = vcombine.low %v2197_v31, %v2199_v2  ;;  %v2216_v55 = vcombine.high %v2214_v23, %v2214_v23  ;;  %5102 = vpow2.f32 %v4869_v12 }
 0x505   :  { %v6632_v34 = vpop.eup %5080  ;;  %v1462_v22 = vadd.f32 1.0, %v5079_v24  ;;  %v3279_v43 = vrot.slane %v3271_v50, %v6567_v5  ;;  %v3288_v54 = vcombine.low %v2207_v29, %v2215_v17  ;;  %v2217_v0 = vcombine.high %v1977_v14, %v1977_v14  ;;  %v1185_v17 = vpop.xlane.xlu1 %1184 }
 0x506   :  { %v6635_v7 = vpop.eup %5082  ;;  %5104 = vrcp.f32 %v1459_v25  ;;  %v3286_v39 = vrot.slane %v3272_v36, %v6567_v5  ;;  %v3289_v40 = vcombine.low %v2214_v23, %v2216_v55  ;;  %v2224_v37 = vrot.slane %v1977_v14, %v6567_v5  ;;  %v1183_v33 = vpop.xlane.xlu0 %1182 }
 0x507   :  { %v5085_v42 = vpop.eup %5084  ;;  %5106 = vrcp.f32 %v1462_v22  ;;  %v3296_v31 = vrot.slane %v3288_v54, %v6567_v5  ;;  %v2231_v52 = vrot.slane %v2217_v0, %v6567_v5  ;;  %v2234_v6 = vcombine.high %v1978_v13, %v1978_v13 }
 0x508   :  { %v5087_v2 = vpop.eup %5086  ;;  %v1461_v12 = vadd.f32 1.0, %v5085_v42  ;;  %v3287_v29 = vcombine.low %v3279_v43, %v3286_v39  ;;  %v3303_v32 = vrot.slane %v3289_v40, %v6567_v5  ;;  %v2232_v50 = vcombine.high %v2224_v37, %v2224_v37 }
 0x509   :  { %v6642_v24 = vpop.eup %5088  ;;  %v1464_v25 = vadd.f32 1.0, %v5087_v2  ;;  %v2233_v23 = vcombine.high %v2231_v52, %v2231_v52  ;;  %v2241_v14 = vrot.slane %v1978_v13, %v6567_v5  ;;  %v2248_v36 = vrot.slane %v2234_v6, %v6567_v5 }
 0x50a   :  { %v6646_v55 = vpop.eup %5090  ;;  %5108 = vrcp.f32 %v1461_v12  ;;  %4290 = vperm.xlu1 %4938, %v3287_v29   ;;  %v3304_v22 = vcombine.low %v3296_v31, %v3303_v32  ;;  %v3305_v54 = vcombine.low %v2224_v37, %v2232_v50  ;;  %v4868_v0 = vmul.f32 -1.442695, %v1179_v27  ;;  %v7481_v50 = vld [vmem:[#allocation44_spill] sm:$0xff] }
 0x50b   :  { %v5093_v43 = vpop.eup %5092  ;;  %5110 = vrcp.f32 %v1464_v25  ;;  %v3306_v39 = vcombine.low %v2231_v52, %v2233_v23  ;;  %v2249_v40 = vcombine.high %v2241_v14, %v2241_v14  ;;  %v2250_v42 = vcombine.high %v2248_v36, %v2248_v36  ;;  %v7480_v52 = vld [vmem:[#allocation43_spill] sm:$0xff] }
 0x50c   :  { %v5095_v19 = vpop.eup %5094  ;;  %v1463_v2 = vadd.f32 1.0, %v5093_v43  ;;  %4293 = vperm.xlu0 %4939, %v3304_v22   ;;  %v3313_v13 = vrot.slane %v3305_v54, %v6567_v5  ;;  %5112 = vpow2.f32 %v4868_v0  ;;  %v4871_v6 = vmul.f32 -1.442695, %v1185_v17  ;;  %v1189_v22 = vpop.xlane.xlu1 %1188 }
 0x50d   :  { %v6649_v57 = vpop.eup %5096  ;;  %v1466_v12 = vadd.f32 1.0, %v5095_v19  ;;  %v3320_v31 = vrot.slane %v3306_v39, %v6567_v5  ;;  %v3322_v37 = vcombine.low %v2241_v14, %v2249_v40  ;;  %v3323_v27 = vcombine.low %v2248_v36, %v2250_v42 }
 0x50e   :  { %v6652_v29 = vpop.eup %5098  ;;  %5114 = vrcp.f32 %v1463_v2  ;;  %v1979_v32 = vmul.f32 %v6598_v1, %v7480_v52  ;;  %v1980_v25 = vmul.f32 %v6592_v60, %v7481_v50  ;;  %v4870_v23 = vmul.f32 -1.442695, %v1183_v33 }
 0x50f   :  { %5116 = vrcp.f32 %v1466_v12  ;;  %v3321_v17 = vcombine.low %v3313_v13, %v3320_v31  ;;  %v3330_v54 = vrot.slane %v3322_v37, %v6567_v5  ;;  %v3337_v19 = vrot.slane %v3323_v27, %v6567_v5  ;;  %v7482_v37 = vld [vmem:[#allocation45_spill] sm:$0xff] }
 0x510   :  { %v5101_v0 = vpop.eup %5100  ;;  %5118 = vpow2.f32 %v4871_v6  ;;  %v2251_v14 = vcombine.high %v1979_v32, %v1979_v32  ;;  %v2258_v36 = vrot.slane %v1979_v32, %v6567_v5  ;;  %v2268_v43 = vcombine.high %v1980_v25, %v1980_v25 }
 0x511   :  { %v5103_v39 = vpop.eup %5102  ;;  %v1465_v40 = vadd.f32 1.0, %v5101_v0  ;;  %4296 = vperm.xlu1 %4938, %v3321_v17   ;;  %v3338_v1 = vcombine.low %v3330_v54, %v3337_v19  ;;  %v2275_v60 = vrot.slane %v1980_v25, %v6567_v5  ;;  %5120 = vpow2.f32 %v4870_v23  ;;  %v1187_v23 = vpop.xlane.xlu0 %1186 }
 0x512   :  { %v1468_v33 = vadd.f32 1.0, %v5103_v39  ;;  %v2265_v42 = vrot.slane %v2251_v14, %v6567_v5  ;;  %v2266_v2 = vcombine.high %v2258_v36, %v2258_v36  ;;  %v2282_v13 = vrot.slane %v2268_v43, %v6567_v5  ;;  %v1193_v17 = vpop.xlane.xlu1 %1192 }
 0x513   :  { %v6664_v12 = vpop.eup %5104  ;;  %5122 = vrcp.f32 %v1465_v40  ;;  %4299 = vperm.xlu0 %4939, %v3338_v1   ;;  %v2283_v6 = vcombine.high %v2275_v60, %v2275_v60  ;;  %v4873_v31 = vmul.f32 -1.442695, %v1189_v22  ;;  %v1981_v27 = vmul.f32 %v6608_v38, %v7482_v37 }
 0x514   :  { %v6668_v52 = vpop.eup %5106  ;;  %5124 = vrcp.f32 %v1468_v33  ;;  %v2267_v32 = vcombine.high %v2265_v42, %v2265_v42  ;;  %v3339_v50 = vcombine.low %v2258_v36, %v2266_v2  ;;  %v2284_v25 = vcombine.high %v2282_v13, %v2282_v13 }
 0x515   :  { %v3356_v54 = vcombine.low %v2275_v60, %v2283_v6  ;;  %5126 = vpow2.f32 %v4873_v31  ;;  %v2285_v19 = vcombine.high %v1981_v27, %v1981_v27  ;;  %v2292_v0 = vrot.slane %v1981_v27, %v6567_v5 }
 0x516   :  { %v3340_v14 = vcombine.low %v2265_v42, %v2267_v32  ;;  %v3347_v43 = vrot.slane %v3339_v50, %v6567_v5  ;;  %v3357_v22 = vcombine.low %v2282_v13, %v2284_v25  ;;  %v1982_v38 = vmul.f32 %v6601_v35, %v6257_v20 }
 0x517   :  { %v6674_v39 = vpop.eup %5108  ;;  %v3364_v40 = vrot.slane %v3356_v54, %v6567_v5  ;;  %v2299_v36 = vrot.slane %v2285_v19, %v6567_v5  ;;  %v2300_v1 = vcombine.high %v2292_v0, %v2292_v0  ;;  %v4872_v33 = vmul.f32 -1.442695, %v1187_v23  ;;  %v1191_v23 = vpop.xlane.xlu0 %1190 }
 0x518   :  { %v6678_v60 = vpop.eup %5110  ;;  %v3354_v2 = vrot.slane %v3340_v14, %v6567_v5  ;;  %v3371_v42 = vrot.slane %v3357_v22, %v6567_v5  ;;  %v2302_v6 = vcombine.high %v1982_v38, %v1982_v38  ;;  %v2309_v13 = vrot.slane %v1982_v38, %v6567_v5  ;;  %v1197_v54 = vpop.xlane.xlu1 %1196 }
 0x519   :  { %v5113_v31 = vpop.eup %5112  ;;  %v2301_v37 = vcombine.high %v2299_v36, %v2299_v36  ;;  %v3373_v20 = vcombine.low %v2292_v0, %v2300_v1  ;;  %5128 = vpow2.f32 %v4872_v33  ;;  %v4875_v35 = vmul.f32 -1.442695, %v1193_v17  ;;  %v7483_v0 = vld [vmem:[#allocation46_spill] sm:$0xff] }
 0x51a   :  { %v1467_v27 = vadd.f32 1.0, %v5113_v31  ;;  %v3355_v32 = vcombine.low %v3347_v43, %v3354_v2  ;;  %v3372_v50 = vcombine.low %v3364_v40, %v3371_v42  ;;  %v2316_v25 = vrot.slane %v2302_v6, %v6567_v5  ;;  %v7484_v40 = vld [vmem:[#allocation47_spill] sm:$0xff] }
 0x51b   :  { %v6684_v19 = vpop.eup %5114  ;;  %v3374_v14 = vcombine.low %v2299_v36, %v2301_v37  ;;  %v3381_v22 = vrot.slane %v3373_v20, %v6567_v5  ;;  %v2317_v41 = vcombine.high %v2309_v13, %v2309_v13  ;;  %5130 = vpow2.f32 %v4875_v35 }
 0x51c   :  { %v6687_v38 = vpop.eup %5116  ;;  %5132 = vrcp.f32 %v1467_v27  ;;  %4302 = vperm.xlu1 %4938, %v3355_v32   ;;  %4305 = vperm.xlu0 %4939, %v3372_v50   ;;  %v2318_v17 = vcombine.high %v2316_v25, %v2316_v25  ;;  %v1983_v43 = vmul.f32 %v6616_v61, %v7483_v0  ;;  %v1984_v1 = vmul.f32 %v6610_v59, %v7484_v40 }
 0x51d   :  { %v5119_v33 = vpop.eup %5118  ;;  %v3388_v2 = vrot.slane %v3374_v14, %v6567_v5  ;;  %v3390_v36 = vcombine.low %v2309_v13, %v2317_v41  ;;  %v4874_v42 = vmul.f32 -1.442695, %v1191_v23  ;;  %v4877_v6 = vmul.f32 -1.442695, %v1197_v54 }
 0x51e   :  { %v5121_v31 = vpop.eup %5120  ;;  %v1470_v37 = vadd.f32 1.0, %v5119_v33  ;;  %v3391_v20 = vcombine.low %v2316_v25, %v2318_v17  ;;  %v2319_v35 = vcombine.high %v1983_v43, %v1983_v43  ;;  %v2326_v27 = vrot.slane %v1983_v43, %v6567_v5 }
 0x51f   :  { %v1469_v32 = vadd.f32 1.0, %v5121_v31  ;;  %v3389_v50 = vcombine.low %v3381_v22, %v3388_v2  ;;  %v3398_v8 = vrot.slane %v3390_v36, %v6567_v5  ;;  %v2336_v61 = vcombine.high %v1984_v1, %v1984_v1  ;;  %v1195_v31 = vpop.xlane.xlu0 %1194 }
 0x520   :  { %v6696_v0 = vpop.eup %5122  ;;  %5134 = vrcp.f32 %v1470_v37  ;;  %v3405_v59 = vrot.slane %v3391_v20, %v6567_v5  ;;  %v2333_v41 = vrot.slane %v2319_v35, %v6567_v5  ;;  %v2334_v13 = vcombine.high %v2326_v27, %v2326_v27 }
 0x521   :  { %v6700_v23 = vpop.eup %5124  ;;  %5136 = vrcp.f32 %v1469_v32  ;;  %4308 = vperm.xlu1 %4938, %v3389_v50   ;;  %v2343_v25 = vrot.slane %v1984_v1, %v6567_v5  ;;  %v2350_v54 = vrot.slane %v2336_v61, %v6567_v5  ;;  %v1985_v14 = vmul.f32 %v6622_v62, %v6264_v51 }
 0x522   :  { %v5127_v22 = vpop.eup %5126  ;;  %v3406_v17 = vcombine.low %v3398_v8, %v3405_v59  ;;  %v2335_v43 = vcombine.high %v2333_v41, %v2333_v41  ;;  %v3407_v40 = vcombine.low %v2326_v27, %v2334_v13  ;;  %5138 = vpow2.f32 %v4874_v42 }
 0x523   :  { %v1472_v33 = vadd.f32 1.0, %v5127_v22  ;;  %v2351_v2 = vcombine.high %v2343_v25, %v2343_v25  ;;  %v2352_v36 = vcombine.high %v2350_v54, %v2350_v54  ;;  %5140 = vpow2.f32 %v4877_v6 }
 0x524   :  { %4311 = vperm.xlu0 %4939, %v3406_v17   ;;  %v3408_v37 = vcombine.low %v2333_v41, %v2335_v43  ;;  %v3415_v20 = vrot.slane %v3407_v40, %v6567_v5  ;;  %v2353_v1 = vcombine.high %v1985_v14, %v1985_v14  ;;  %v2360_v35 = vrot.slane %v1985_v14, %v6567_v5  ;;  %v1201_v14 = vpop.xlane.xlu1 %1200 }
 0x525   :  { %5142 = vrcp.f32 %v1472_v33  ;;  %v3424_v32 = vcombine.low %v2343_v25, %v2351_v2  ;;  %v3425_v51 = vcombine.low %v2350_v54, %v2352_v36  ;;  %v1986_v8 = vmul.f32 %v6619_v47, %v6268_v45  ;;  %v1199_v2 = vpop.xlane.xlu0 %1198 }
 0x526   :  { %v5129_v62 = vpop.eup %5128  ;;  %v3422_v42 = vrot.slane %v3408_v37, %v6567_v5  ;;  %v2367_v27 = vrot.slane %v2353_v1, %v6567_v5  ;;  %v2368_v6 = vcombine.high %v2360_v35, %v2360_v35  ;;  %v4876_v50 = vmul.f32 -1.442695, %v1195_v31 }
 0x527   :  { %v1471_v61 = vadd.f32 1.0, %v5129_v62  ;;  %v3432_v59 = vrot.slane %v3424_v32, %v6567_v5  ;;  %v3439_v41 = vrot.slane %v3425_v51, %v6567_v5  ;;  %v2370_v13 = vcombine.high %v1986_v8, %v1986_v8 }
 0x528   :  { %v5131_v22 = vpop.eup %5130  ;;  %v3423_v25 = vcombine.low %v3415_v20, %v3422_v42  ;;  %v2369_v54 = vcombine.high %v2367_v27, %v2367_v27  ;;  %v3441_v17 = vcombine.low %v2360_v35, %v2368_v6  ;;  %v2377_v45 = vrot.slane %v1986_v8, %v6567_v5 }
 0x529   :  { %v6715_v47 = vpop.eup %5132  ;;  %5144 = vrcp.f32 %v1471_v61  ;;  %v1474_v43 = vadd.f32 1.0, %v5131_v22  ;;  %v3440_v40 = vcombine.low %v3432_v59, %v3439_v41  ;;  %v2384_v33 = vrot.slane %v2370_v13, %v6567_v5  ;;  %v1205_v61 = vpop.xlane.xlu1 %1204 }
 0x52a   :  { %4314 = vperm.xlu1 %4938, %v3423_v25   ;;  %v3442_v36 = vcombine.low %v2367_v27, %v2369_v54  ;;  %v3449_v31 = vrot.slane %v3441_v17, %v6567_v5  ;;  %v2385_v37 = vcombine.high %v2377_v45, %v2377_v45  ;;  %5146 = vpow2.f32 %v4876_v50 }
 0x52b   :  { %5148 = vrcp.f32 %v1474_v43  ;;  %4317 = vperm.xlu0 %4939, %v3440_v40   ;;  %v2386_v20 = vcombine.high %v2384_v33, %v2384_v33  ;;  %v4879_v1 = vmul.f32 -1.442695, %v1201_v14  ;;  %v1987_v35 = vmul.f32 %v6632_v34, %v6274_v48 }
 0x52c   :  { %v3456_v32 = vrot.slane %v3442_v36, %v6567_v5  ;;  %v3458_v51 = vcombine.low %v2377_v45, %v2385_v37  ;;  %v1988_v8 = vmul.f32 %v6625_v9, %v6285_v30  ;;  %v4878_v62 = vmul.f32 -1.442695, %v1199_v2 }
 0x52d   :  { %v6724_v42 = vpop.eup %5134  ;;  %v3459_v27 = vcombine.low %v2384_v33, %v2386_v20  ;;  %5150 = vpow2.f32 %v4879_v1  ;;  %v2387_v6 = vcombine.high %v1987_v35, %v1987_v35  ;;  %v2394_v50 = vrot.slane %v1987_v35, %v6567_v5 }
 0x52e   :  { %v6727_v59 = vpop.eup %5136  ;;  %v3457_v41 = vcombine.low %v3449_v31, %v3456_v32  ;;  %v3466_v48 = vrot.slane %v3458_v51, %v6567_v5  ;;  %v2404_v34 = vcombine.high %v1988_v8, %v1988_v8  ;;  %v2411_v13 = vrot.slane %v1988_v8, %v6567_v5  ;;  %v1203_v8 = vpop.xlane.xlu0 %1202 }
 0x52f   :  { %v5139_v14 = vpop.eup %5138  ;;  %v3473_v30 = vrot.slane %v3459_v27, %v6567_v5  ;;  %v2401_v9 = vrot.slane %v2387_v6, %v6567_v5  ;;  %v2402_v22 = vcombine.high %v2394_v50, %v2394_v50  ;;  %5152 = vpow2.f32 %v4878_v62  ;;  %v1209_v62 = vpop.xlane.xlu1 %1208 }
 0x530   :  { %v5141_v25 = vpop.eup %5140  ;;  %v1473_v54 = vadd.f32 1.0, %v5139_v14  ;;  %4320 = vperm.xlu1 %4938, %v3457_v41   ;;  %v2418_v17 = vrot.slane %v2404_v34, %v6567_v5  ;;  %v2419_v45 = vcombine.high %v2411_v13, %v2411_v13  ;;  %v4881_v43 = vmul.f32 -1.442695, %v1205_v61 }
 0x531   :  { %v1476_v40 = vadd.f32 1.0, %v5141_v25  ;;  %v3474_v33 = vcombine.low %v3466_v48, %v3473_v30  ;;  %v2403_v2 = vcombine.high %v2401_v9, %v2401_v9  ;;  %v3475_v36 = vcombine.low %v2394_v50, %v2402_v22 }
 0x532   :  { %v6734_v31 = vpop.eup %5142  ;;  %5154 = vrcp.f32 %v1473_v54  ;;  %v2420_v37 = vcombine.high %v2418_v17, %v2418_v17  ;;  %v3492_v20 = vcombine.low %v2411_v13, %v2419_v45  ;;  %v1989_v1 = vmul.f32 %v6642_v24, %v6287_v26 }
 0x533   :  { %5156 = vrcp.f32 %v1476_v40  ;;  %4323 = vperm.xlu0 %4939, %v3474_v33   ;;  %v3476_v35 = vcombine.low %v2401_v9, %v2403_v2  ;;  %v3483_v32 = vrot.slane %v3475_v36, %v6567_v5  ;;  %v1990_v51 = vmul.f32 %v6635_v7, %v6305_v10 }
 0x534   :  { %v3493_v27 = vcombine.low %v2418_v17, %v2420_v37  ;;  %v3500_v6 = vrot.slane %v3492_v20, %v6567_v5  ;;  %5158 = vpow2.f32 %v4881_v43  ;;  %v2421_v50 = vcombine.high %v1989_v1, %v1989_v1 }
 0x535   :  { %v3490_v61 = vrot.slane %v3476_v35, %v6567_v5  ;;  %v2428_v41 = vrot.slane %v1989_v1, %v6567_v5  ;;  %v2438_v26 = vcombine.high %v1990_v51, %v1990_v51  ;;  %v2445_v24 = vrot.slane %v1990_v51, %v6567_v5 }
 0x536   :  { %v6745_v48 = vpop.eup %5144  ;;  %v3507_v34 = vrot.slane %v3493_v27, %v6567_v5  ;;  %v2435_v10 = vrot.slane %v2421_v50, %v6567_v5  ;;  %v4880_v7 = vmul.f32 -1.442695, %v1203_v8  ;;  %v4883_v13 = vmul.f32 -1.442695, %v1209_v62 }
 0x537   :  { %v5147_v14 = vpop.eup %5146  ;;  %v3491_v30 = vcombine.low %v3483_v32, %v3490_v61  ;;  %v2436_v9 = vcombine.high %v2428_v41, %v2428_v41  ;;  %v2452_v22 = vrot.slane %v2438_v26, %v6567_v5  ;;  %v2453_v25 = vcombine.high %v2445_v24, %v2445_v24 }
 0x538   :  { %v6750_v54 = vpop.eup %5148  ;;  %v1475_v17 = vadd.f32 1.0, %v5147_v14  ;;  %v3508_v45 = vcombine.low %v3500_v6, %v3507_v34  ;;  %v2437_v43 = vcombine.high %v2435_v10, %v2435_v10  ;;  %5160 = vpow2.f32 %v4880_v7 }
 0x539   :  { %4326 = vperm.xlu1 %4938, %v3491_v30   ;;  %v3509_v40 = vcombine.low %v2428_v41, %v2436_v9  ;;  %v2454_v33 = vcombine.high %v2452_v22, %v2452_v22  ;;  %v3526_v2 = vcombine.low %v2445_v24, %v2453_v25  ;;  %5162 = vpow2.f32 %v4883_v13  ;;  %v1207_v41 = vpop.xlane.xlu0 %1206 }
 0x53a   :  { %v5151_v36 = vpop.eup %5150  ;;  %5164 = vrcp.f32 %v1475_v17  ;;  %4329 = vperm.xlu0 %4939, %v3508_v45   ;;  %v3510_v37 = vcombine.low %v2435_v10, %v2437_v43  ;;  %v1991_v20 = vmul.f32 %v6649_v57, %v6307_v49  ;;  %v1992_v1 = vmul.f32 %v6646_v55, %v6320_v11  ;;  %v1213_v57 = vpop.xlane.xlu1 %1212 }
 0x53b   :  { %v1478_v35 = vadd.f32 1.0, %v5151_v36  ;;  %v3517_v32 = vrot.slane %v3509_v40, %v6567_v5  ;;  %v3527_v51 = vcombine.low %v2452_v22, %v2454_v33  ;;  %v3534_v8 = vrot.slane %v3526_v2, %v6567_v5 }
 0x53c   :  { %v5153_v62 = vpop.eup %5152  ;;  %v3524_v27 = vrot.slane %v3510_v37, %v6567_v5  ;;  %v2455_v6 = vcombine.high %v1991_v20, %v1991_v20  ;;  %v2462_v50 = vrot.slane %v1991_v20, %v6567_v5  ;;  %v2472_v61 = vcombine.high %v1992_v1, %v1992_v1 }
 0x53d   :  { %5166 = vrcp.f32 %v1478_v35  ;;  %v1477_v26 = vadd.f32 1.0, %v5153_v62  ;;  %v3541_v49 = vrot.slane %v3527_v51, %v6567_v5  ;;  %v2479_v11 = vrot.slane %v1992_v1, %v6567_v5  ;;  %v1211_v35 = vpop.xlane.xlu0 %1210 }
 0x53e   :  { %v3525_v55 = vcombine.low %v3517_v32, %v3524_v27  ;;  %v2469_v24 = vrot.slane %v2455_v6, %v6567_v5  ;;  %v2470_v34 = vcombine.high %v2462_v50, %v2462_v50  ;;  %v2486_v10 = vrot.slane %v2472_v61, %v6567_v5  ;;  %v1217_v27 = vpop.xlane.xlu1 %1216 }
 0x53f   :  { %v6764_v7 = vpop.eup %5154  ;;  %5168 = vrcp.f32 %v1477_v26  ;;  %v3542_v13 = vcombine.low %v3534_v8, %v3541_v49  ;;  %v2487_v14 = vcombine.high %v2479_v11, %v2479_v11  ;;  %v4882_v30 = vmul.f32 -1.442695, %v1207_v41 }
 0x540   :  { %v6766_v9 = vpop.eup %5156  ;;  %4332 = vperm.xlu1 %4938, %v3525_v55   ;;  %v2471_v22 = vcombine.high %v2469_v24, %v2469_v24  ;;  %v3543_v25 = vcombine.low %v2462_v50, %v2470_v34  ;;  %v2488_v17 = vcombine.high %v2486_v10, %v2486_v10  ;;  %v4885_v45 = vmul.f32 -1.442695, %v1213_v57 }
 0x541   :  { %v5159_v43 = vpop.eup %5158  ;;  %4335 = vperm.xlu0 %4939, %v3542_v13   ;;  %v3560_v40 = vcombine.low %v2479_v11, %v2487_v14  ;;  %5170 = vpow2.f32 %v4882_v30  ;;  %v1993_v33 = vmul.f32 %v6664_v12, %v6322_v63  ;;  %v1994_v2 = vmul.f32 %v6652_v29, %v6343_v46 }
 0x542   :  { %v1480_v36 = vadd.f32 1.0, %v5159_v43  ;;  %v3544_v37 = vcombine.low %v2469_v24, %v2471_v22  ;;  %v3551_v20 = vrot.slane %v3543_v25, %v6567_v5  ;;  %v3561_v1 = vcombine.low %v2486_v10, %v2488_v17  ;;  %v1215_v43 = vpop.xlane.xlu0 %1214 }
 0x543   :  { %v3568_v32 = vrot.slane %v3560_v40, %v6567_v5  ;;  %5172 = vpow2.f32 %v4885_v45  ;;  %v2489_v51 = vcombine.high %v1993_v33, %v1993_v33  ;;  %v2496_v8 = vrot.slane %v1993_v33, %v6567_v5 }
 0x544   :  { %5174 = vrcp.f32 %v1480_v36  ;;  %v3558_v62 = vrot.slane %v3544_v37, %v6567_v5  ;;  %v3575_v63 = vrot.slane %v3561_v1, %v6567_v5  ;;  %v2506_v12 = vcombine.high %v1994_v2, %v1994_v2  ;;  %v1221_v37 = vpop.xlane.xlu1 %1220 }
 0x545   :  { %v5161_v46 = vpop.eup %5160  ;;  %v2503_v29 = vrot.slane %v2489_v51, %v6567_v5  ;;  %v2504_v6 = vcombine.high %v2496_v8, %v2496_v8  ;;  %v2513_v50 = vrot.slane %v1994_v2, %v6567_v5  ;;  %v4884_v61 = vmul.f32 -1.442695, %v1211_v35 }
 0x546   :  { %v5163_v41 = vpop.eup %5162  ;;  %v1479_v26 = vadd.f32 1.0, %v5161_v46  ;;  %v3559_v49 = vcombine.low %v3551_v20, %v3558_v62  ;;  %v3576_v11 = vcombine.low %v3568_v32, %v3575_v63  ;;  %v2520_v57 = vrot.slane %v2506_v12, %v6567_v5 }
 0x547   :  { %v6780_v55 = vpop.eup %5164  ;;  %v1482_v24 = vadd.f32 1.0, %v5163_v41  ;;  %v2505_v34 = vcombine.high %v2503_v29, %v2503_v29  ;;  %v3577_v10 = vcombine.low %v2496_v8, %v2504_v6  ;;  %v2521_v13 = vcombine.high %v2513_v50, %v2513_v50 }
 0x548   :  { %5176 = vrcp.f32 %v1479_v26  ;;  %4338 = vperm.xlu1 %4938, %v3559_v49   ;;  %4341 = vperm.xlu0 %4939, %v3576_v11   ;;  %v2522_v14 = vcombine.high %v2520_v57, %v2520_v57  ;;  %v4887_v30 = vmul.f32 -1.442695, %v1217_v27  ;;  %v1995_v22 = vmul.f32 %v6674_v39, %v6345_v28 }
 0x549   :  { %5178 = vrcp.f32 %v1482_v24  ;;  %v3578_v25 = vcombine.low %v2503_v29, %v2505_v34  ;;  %v3585_v17 = vrot.slane %v3577_v10, %v6567_v5  ;;  %v3594_v45 = vcombine.low %v2513_v50, %v2521_v13 }
 0x54a   :  { %v6785_v40 = vpop.eup %5166  ;;  %v3595_v33 = vcombine.low %v2520_v57, %v2522_v14  ;;  %5180 = vpow2.f32 %v4884_v61  ;;  %v2523_v2 = vcombine.high %v1995_v22, %v1995_v22  ;;  %v2530_v36 = vrot.slane %v1995_v22, %v6567_v5 }
 0x54b   :  { %v3592_v20 = vrot.slane %v3578_v25, %v6567_v5  ;;  %v3602_v1 = vrot.slane %v3594_v45, %v6567_v5  ;;  %5182 = vpow2.f32 %v4887_v30  ;;  %v1996_v28 = vmul.f32 %v6668_v52, %v6353_v53  ;;  %v1225_v45 = vpop.xlane.xlu1 %1224 }
 0x54c   :  { %v6792_v39 = vpop.eup %5168  ;;  %v3609_v35 = vrot.slane %v3595_v33, %v6567_v5  ;;  %v2537_v32 = vrot.slane %v2523_v2, %v6567_v5  ;;  %v2538_v51 = vcombine.high %v2530_v36, %v2530_v36  ;;  %v4886_v8 = vmul.f32 -1.442695, %v1215_v43 }
 0x54d   :  { %v3593_v62 = vcombine.low %v3585_v17, %v3592_v20  ;;  %v2540_v63 = vcombine.high %v1996_v28, %v1996_v28  ;;  %v2547_v12 = vrot.slane %v1996_v28, %v6567_v5  ;;  %v4889_v27 = vmul.f32 -1.442695, %v1221_v37  ;;  %v1219_v17 = vpop.xlane.xlu0 %1218 }
 0x54e   :  { %v5171_v46 = vpop.eup %5170  ;;  %v3610_v29 = vcombine.low %v3602_v1, %v3609_v35  ;;  %v2539_v6 = vcombine.high %v2537_v32, %v2537_v32  ;;  %v3611_v50 = vcombine.low %v2530_v36, %v2538_v51  ;;  %5184 = vpow2.f32 %v4886_v8 }
 0x54f   :  { %v1481_v61 = vadd.f32 1.0, %v5171_v46  ;;  %4344 = vperm.xlu1 %4938, %v3593_v62   ;;  %v2554_v53 = vrot.slane %v2540_v63, %v6567_v5  ;;  %v2555_v52 = vcombine.high %v2547_v12, %v2547_v12  ;;  %5186 = vpow2.f32 %v4889_v27 }
 0x550   :  { %v5173_v41 = vpop.eup %5172  ;;  %4347 = vperm.xlu0 %4939, %v3610_v29   ;;  %v3612_v26 = vcombine.low %v2537_v32, %v2539_v6  ;;  %v3619_v49 = vrot.slane %v3611_v50, %v6567_v5  ;;  %v1997_v11 = vmul.f32 %v6684_v19, %v6355_v44  ;;  %v1998_v57 = vmul.f32 %v6678_v60, %v6369_v16 }
 0x551   :  { %v6803_v24 = vpop.eup %5174  ;;  %5188 = vrcp.f32 %v1481_v61  ;;  %v1484_v34 = vadd.f32 1.0, %v5173_v41  ;;  %v2556_v10 = vcombine.high %v2554_v53, %v2554_v53  ;;  %v3628_v13 = vcombine.low %v2547_v12, %v2555_v52 }
 0x552   :  { %v3626_v14 = vrot.slane %v3612_v26, %v6567_v5  ;;  %v2557_v30 = vcombine.high %v1997_v11, %v1997_v11  ;;  %v2564_v22 = vrot.slane %v1997_v11, %v6567_v5  ;;  %v2574_v25 = vcombine.high %v1998_v57, %v1998_v57 }
 0x553   :  { %5190 = vrcp.f32 %v1484_v34  ;;  %v3629_v43 = vcombine.low %v2554_v53, %v2556_v10  ;;  %v3636_v44 = vrot.slane %v3628_v13, %v6567_v5  ;;  %v2581_v16 = vrot.slane %v1998_v57, %v6567_v5 }
 0x554   :  { %v3627_v60 = vcombine.low %v3619_v49, %v3626_v14  ;;  %v2571_v19 = vrot.slane %v2557_v30, %v6567_v5  ;;  %v2572_v33 = vcombine.high %v2564_v22, %v2564_v22  ;;  %v2588_v2 = vrot.slane %v2574_v25, %v6567_v5 }
 0x555   :  { %v6811_v36 = vpop.eup %5176  ;;  %v3643_v37 = vrot.slane %v3629_v43, %v6567_v5  ;;  %v2589_v20 = vcombine.high %v2581_v16, %v2581_v16  ;;  %v4888_v1 = vmul.f32 -1.442695, %v1219_v17  ;;  %v4891_v28 = vmul.f32 -1.442695, %v1225_v45 }
 0x556   :  { %v6814_v35 = vpop.eup %5178  ;;  %4350 = vperm.xlu1 %4938, %v3627_v60   ;;  %v2573_v32 = vcombine.high %v2571_v19, %v2571_v19  ;;  %v3645_v51 = vcombine.low %v2564_v22, %v2572_v33  ;;  %v2590_v8 = vcombine.high %v2588_v2, %v2588_v2  ;;  %v1999_v62 = vmul.f32 %v6696_v0, %v6371_v56 }
 0x557   :  { %v5181_v63 = vpop.eup %5180  ;;  %v3644_v12 = vcombine.low %v3636_v44, %v3643_v37  ;;  %v3662_v27 = vcombine.low %v2581_v16, %v2589_v20  ;;  %5192 = vpow2.f32 %v4888_v1  ;;  %v2000_v46 = vmul.f32 %v6687_v38, %v6379_v3  ;;  %v1223_v3 = vpop.xlane.xlu0 %1222 }
 0x558   :  { %v5183_v29 = vpop.eup %5182  ;;  %v1483_v6 = vadd.f32 1.0, %v5181_v63  ;;  %v3646_v50 = vcombine.low %v2571_v19, %v2573_v32  ;;  %v3653_v61 = vrot.slane %v3645_v51, %v6567_v5  ;;  %v3663_v53 = vcombine.low %v2588_v2, %v2590_v8  ;;  %v1229_v38 = vpop.xlane.xlu1 %1228 }
 0x559   :  { %v1486_v52 = vadd.f32 1.0, %v5183_v29  ;;  %4353 = vperm.xlu0 %4939, %v3644_v12   ;;  %v3670_v41 = vrot.slane %v3662_v27, %v6567_v5  ;;  %5194 = vpow2.f32 %v4891_v28  ;;  %v2591_v26 = vcombine.high %v1999_v62, %v1999_v62 }
 0x55a   :  { %5196 = vrcp.f32 %v1483_v6  ;;  %v3660_v56 = vrot.slane %v3646_v50, %v6567_v5  ;;  %v3677_v0 = vrot.slane %v3663_v53, %v6567_v5  ;;  %v2598_v49 = vrot.slane %v1999_v62, %v6567_v5 }
 0x55b   :  { %v5185_v11 = vpop.eup %5184  ;;  %5198 = vrcp.f32 %v1486_v52  ;;  %v2605_v57 = vrot.slane %v2591_v26, %v6567_v5  ;;  %v2608_v34 = vcombine.high %v2000_v46, %v2000_v46  ;;  %v2615_v10 = vrot.slane %v2000_v46, %v6567_v5  ;;  %v1227_v8 = vpop.xlane.xlu0 %1226 }
 0x55c   :  { %v5187_v13 = vpop.eup %5186  ;;  %v1485_v14 = vadd.f32 1.0, %v5185_v11  ;;  %v3661_v30 = vcombine.low %v3653_v61, %v3660_v56  ;;  %v3678_v22 = vcombine.low %v3670_v41, %v3677_v0  ;;  %v2606_v25 = vcombine.high %v2598_v49, %v2598_v49  ;;  %v1233_v62 = vpop.xlane.xlu1 %1232 }
 0x55d   :  { %v1488_v17 = vadd.f32 1.0, %v5187_v13  ;;  %v2607_v45 = vcombine.high %v2605_v57, %v2605_v57  ;;  %v2622_v43 = vrot.slane %v2608_v34, %v6567_v5  ;;  %v2623_v44 = vcombine.high %v2615_v10, %v2615_v10 }
 0x55e   :  { %v6828_v16 = vpop.eup %5188  ;;  %5200 = vrcp.f32 %v1485_v14  ;;  %4356 = vperm.xlu1 %4938, %v3661_v30   ;;  %4359 = vperm.xlu0 %4939, %v3678_v22   ;;  %v3679_v60 = vcombine.low %v2598_v49, %v2606_v25  ;;  %v4890_v19 = vmul.f32 -1.442695, %v1223_v3  ;;  %v4893_v33 = vmul.f32 -1.442695, %v1229_v38 }
 0x55f   :  { %5202 = vrcp.f32 %v1488_v17  ;;  %v3680_v2 = vcombine.low %v2605_v57, %v2607_v45  ;;  %v2624_v37 = vcombine.high %v2622_v43, %v2622_v43  ;;  %v3696_v20 = vcombine.low %v2615_v10, %v2623_v44  ;;  %v1231_v22 = vpop.xlane.xlu0 %1230 }
 0x560   :  { %v6830_v1 = vpop.eup %5190  ;;  %v3687_v28 = vrot.slane %v3679_v60, %v6567_v5  ;;  %5204 = vpow2.f32 %v4890_v19  ;;  %v2001_v32 = vmul.f32 %v6715_v47, %v6381_v4  ;;  %v2002_v51 = vmul.f32 %v6700_v23, %v6395_v21  ;;  %v1237_v19 = vpop.xlane.xlu1 %1236 }
 0x561   :  { %v3694_v63 = vrot.slane %v3680_v2, %v6567_v5  ;;  %v3697_v12 = vcombine.low %v2622_v43, %v2624_v37  ;;  %v3704_v27 = vrot.slane %v3696_v20, %v6567_v5  ;;  %5206 = vpow2.f32 %v4893_v33 }
 0x562   :  { %v2625_v46 = vcombine.high %v2001_v32, %v2001_v32  ;;  %v2632_v29 = vrot.slane %v2001_v32, %v6567_v5  ;;  %v2642_v6 = vcombine.high %v2002_v51, %v2002_v51  ;;  %v2649_v50 = vrot.slane %v2002_v51, %v6567_v5 }
 0x563   :  { %v3695_v61 = vcombine.low %v3687_v28, %v3694_v63  ;;  %v3711_v4 = vrot.slane %v3697_v12, %v6567_v5  ;;  %v4892_v47 = vmul.f32 -1.442695, %v1227_v8  ;;  %v4895_v53 = vmul.f32 -1.442695, %v1233_v62 }
 0x564   :  { %v5193_v21 = vpop.eup %5192  ;;  %v2639_v23 = vrot.slane %v2625_v46, %v6567_v5  ;;  %v2640_v52 = vcombine.high %v2632_v29, %v2632_v29  ;;  %v2656_v41 = vrot.slane %v2642_v6, %v6567_v5  ;;  %v2657_v26 = vcombine.high %v2649_v50, %v2649_v50 }
 0x565   :  { %v1487_v56 = vadd.f32 1.0, %v5193_v21  ;;  %4362 = vperm.xlu1 %4938, %v3695_v61   ;;  %v3712_v0 = vcombine.low %v3704_v27, %v3711_v4  ;;  %5208 = vpow2.f32 %v4892_v47  ;;  %v2003_v49 = vmul.f32 %v6727_v59, %v6397_v58  ;;  %v7485_v47 = vld [vmem:[#allocation6_spill] sm:$0xff] }
 0x566   :  { %v5195_v3 = vpop.eup %5194  ;;  %v2641_v38 = vcombine.high %v2639_v23, %v2639_v23  ;;  %v3713_v11 = vcombine.low %v2632_v29, %v2640_v52  ;;  %v2658_v57 = vcombine.high %v2656_v41, %v2656_v41  ;;  %v3730_v34 = vcombine.low %v2649_v50, %v2657_v26 }
 0x567   :  { %v6846_v10 = vpop.eup %5196  ;;  %5210 = vrcp.f32 %v1487_v56  ;;  %v1490_v13 = vadd.f32 1.0, %v5195_v3  ;;  %4365 = vperm.xlu0 %4939, %v3712_v0   ;;  %v2659_v14 = vcombine.high %v2003_v49, %v2003_v49  ;;  %v2666_v30 = vrot.slane %v2003_v49, %v6567_v5  ;;  %v1235_v49 = vpop.xlane.xlu0 %1234 }
 0x568   :  { %v6849_v25 = vpop.eup %5198  ;;  %v3714_v17 = vcombine.low %v2639_v23, %v2641_v38  ;;  %v3721_v45 = vrot.slane %v3713_v11, %v6567_v5  ;;  %v3731_v58 = vcombine.low %v2656_v41, %v2658_v57  ;;  %v3738_v59 = vrot.slane %v3730_v34, %v6567_v5  ;;  %v1241_v3 = vpop.xlane.xlu1 %1240 }
 0x569   :  { %5212 = vrcp.f32 %v1490_v13  ;;  %v2673_v43 = vrot.slane %v2659_v14, %v6567_v5  ;;  %v2674_v44 = vcombine.high %v2666_v30, %v2666_v30  ;;  %v2004_v60 = vmul.f32 %v6724_v42, %v6403_v18 }
 0x56a   :  { %v3728_v33 = vrot.slane %v3714_v17, %v6567_v5  ;;  %v3745_v2 = vrot.slane %v3731_v58, %v6567_v5  ;;  %5214 = vpow2.f32 %v4895_v53  ;;  %v4894_v37 = vmul.f32 -1.442695, %v1231_v22 }
 0x56b   :  { %v6858_v20 = vpop.eup %5200  ;;  %v2675_v28 = vcombine.high %v2673_v43, %v2673_v43  ;;  %v3747_v32 = vcombine.low %v2666_v30, %v2674_v44  ;;  %v2676_v51 = vcombine.high %v2004_v60, %v2004_v60  ;;  %v2683_v8 = vrot.slane %v2004_v60, %v6567_v5 }
 0x56c   :  { %v6861_v62 = vpop.eup %5202  ;;  %v3729_v63 = vcombine.low %v3721_v45, %v3728_v33  ;;  %v3746_v12 = vcombine.low %v3738_v59, %v3745_v2  ;;  %5216 = vpow2.f32 %v4894_v37  ;;  %v4897_v18 = vmul.f32 -1.442695, %v1237_v19  ;;  %v7486_v19 = vld [vmem:[#allocation48_spill] sm:$0xff]  ;;  %v7487_v2 = vld [vmem:[#allocation49_spill] sm:$0xff] }
 0x56d   :  { %v5205_v42 = vpop.eup %5204  ;;  %v3748_v27 = vcombine.low %v2673_v43, %v2675_v28  ;;  %v3755_v46 = vrot.slane %v3747_v32, %v6567_v5  ;;  %v2690_v29 = vrot.slane %v2676_v51, %v6567_v5  ;;  %v2691_v6 = vcombine.high %v2683_v8, %v2683_v8 }
 0x56e   :  { %v5207_v50 = vpop.eup %5206  ;;  %v1489_v61 = vadd.f32 1.0, %v5205_v42  ;;  %4368 = vperm.xlu1 %4938, %v3729_v63   ;;  %4371 = vperm.xlu0 %4939, %v3746_v12   ;;  %5218 = vpow2.f32 %v4897_v18  ;;  %v2005_v4 = vmul.f32 %v6745_v48, %v6405_v15  ;;  %v2006_v53 = vmul.f32 %v6734_v31, %v7485_v47 }
 0x56f   :  { %v1492_v21 = vadd.f32 1.0, %v5207_v50  ;;  %v3762_v23 = vrot.slane %v3748_v27, %v6567_v5  ;;  %v2692_v52 = vcombine.high %v2690_v29, %v2690_v29  ;;  %v3764_v41 = vcombine.low %v2683_v8, %v2691_v6  ;;  %v1239_v6 = vpop.xlane.xlu0 %1238 }
 0x570   :  { %5220 = vrcp.f32 %v1489_v61  ;;  %v2693_v26 = vcombine.high %v2005_v4, %v2005_v4  ;;  %v2700_v56 = vrot.slane %v2005_v4, %v6567_v5  ;;  %v2710_v0 = vcombine.high %v2006_v53, %v2006_v53 }
 0x571   :  { %5222 = vrcp.f32 %v1492_v21  ;;  %v3763_v38 = vcombine.low %v3755_v46, %v3762_v23  ;;  %v3765_v11 = vcombine.low %v2690_v29, %v2692_v52  ;;  %v3772_v15 = vrot.slane %v3764_v41, %v6567_v5 }
 0x572   :  { %v5209_v48 = vpop.eup %5208  ;;  %v2707_v31 = vrot.slane %v2693_v26, %v6567_v5  ;;  %v2708_v57 = vcombine.high %v2700_v56, %v2700_v56  ;;  %v2717_v34 = vrot.slane %v2006_v53, %v6567_v5  ;;  %v2724_v13 = vrot.slane %v2710_v0, %v6567_v5 }
 0x573   :  { %v1491_v14 = vadd.f32 1.0, %v5209_v48  ;;  %4374 = vperm.xlu1 %4938, %v3763_v38   ;;  %v3779_v30 = vrot.slane %v3765_v11, %v6567_v5  ;;  %v4896_v22 = vmul.f32 -1.442695, %v1235_v49  ;;  %v4899_v17 = vmul.f32 -1.442695, %v1241_v3  ;;  %v7488_v38 = vld [vmem:[#allocation50_spill] sm:$0xff] }
 0x574   :  { %v6876_v45 = vpop.eup %5210  ;;  %v2709_v58 = vcombine.high %v2707_v31, %v2707_v31  ;;  %v3781_v59 = vcombine.low %v2700_v56, %v2708_v57  ;;  %v2725_v43 = vcombine.high %v2717_v34, %v2717_v34  ;;  %v2726_v44 = vcombine.high %v2724_v13, %v2724_v13 }
 0x575   :  { %5224 = vrcp.f32 %v1491_v14  ;;  %v3780_v60 = vcombine.low %v3772_v15, %v3779_v30  ;;  %v2007_v33 = vmul.f32 %v6764_v7, %v7486_v19  ;;  %v2008_v37 = vmul.f32 %v6750_v54, %v7487_v2 }
 0x576   :  { %v6882_v28 = vpop.eup %5212  ;;  %v3782_v32 = vcombine.low %v2707_v31, %v2709_v58  ;;  %v3789_v51 = vrot.slane %v3781_v59, %v6567_v5  ;;  %v3798_v8 = vcombine.low %v2717_v34, %v2725_v43  ;;  %v3799_v63 = vcombine.low %v2724_v13, %v2726_v44  ;;  %v1243_v58 = vpop.xlane.xlu0 %1242 }
 0x577   :  { %v5215_v12 = vpop.eup %5214  ;;  %4377 = vperm.xlu0 %4939, %v3780_v60   ;;  %5226 = vpow2.f32 %v4896_v22  ;;  %v2727_v18 = vcombine.high %v2007_v33, %v2007_v33  ;;  %v2734_v42 = vrot.slane %v2007_v33, %v6567_v5  ;;  %v2744_v27 = vcombine.high %v2008_v37, %v2008_v37  ;;  %v7489_v22 = vld [vmem:[#allocation51_spill] sm:$0xff] }
 0x578   :  { %v1494_v46 = vadd.f32 1.0, %v5215_v12  ;;  %v3796_v7 = vrot.slane %v3782_v32, %v6567_v5  ;;  %v3806_v29 = vrot.slane %v3798_v8, %v6567_v5  ;;  %v3813_v54 = vrot.slane %v3799_v63, %v6567_v5 }
 0x579   :  { %v5217_v50 = vpop.eup %5216  ;;  %5228 = vpow2.f32 %v4899_v17  ;;  %v2741_v61 = vrot.slane %v2727_v18, %v6567_v5  ;;  %v2742_v4 = vcombine.high %v2734_v42, %v2734_v42  ;;  %v2751_v47 = vrot.slane %v2008_v37, %v6567_v5 }
 0x57a   :  { %5230 = vrcp.f32 %v1494_v46  ;;  %v1493_v53 = vadd.f32 1.0, %v5217_v50  ;;  %v3797_v21 = vcombine.low %v3789_v51, %v3796_v7  ;;  %v3814_v23 = vcombine.low %v3806_v29, %v3813_v54  ;;  %v7490_v51 = vld [vmem:[#allocation52_spill] sm:$0xff] }
 0x57b   :  { %v5219_v52 = vpop.eup %5218  ;;  %v2743_v41 = vcombine.high %v2741_v61, %v2741_v61  ;;  %v3815_v26 = vcombine.low %v2734_v42, %v2742_v4  ;;  %v2758_v56 = vrot.slane %v2744_v27, %v6567_v5  ;;  %v2759_v0 = vcombine.high %v2751_v47, %v2751_v47 }
 0x57c   :  { %5232 = vrcp.f32 %v1493_v53  ;;  %v1496_v49 = vadd.f32 1.0, %v5219_v52  ;;  %4380 = vperm.xlu1 %4938, %v3797_v21   ;;  %4383 = vperm.xlu0 %4939, %v3814_v23   ;;  %v4898_v3 = vmul.f32 -1.442695, %v1239_v6  ;;  %v2009_v11 = vmul.f32 %v6780_v55, %v7488_v38  ;;  %v7491_v53 = vld [vmem:[#allocation7_spill] sm:$0xff] }
 0x57d   :  { %v6894_v15 = vpop.eup %5220  ;;  %v3816_v48 = vcombine.low %v2741_v61, %v2743_v41  ;;  %v3823_v31 = vrot.slane %v3815_v26, %v6567_v5  ;;  %v2760_v57 = vcombine.high %v2758_v56, %v2758_v56  ;;  %v3832_v34 = vcombine.low %v2751_v47, %v2759_v0 }
 0x57e   :  { %v6897_v13 = vpop.eup %5222  ;;  %5234 = vrcp.f32 %v1496_v49  ;;  %v2761_v14 = vcombine.high %v2009_v11, %v2009_v11  ;;  %v2768_v30 = vrot.slane %v2009_v11, %v6567_v5  ;;  %v2010_v17 = vmul.f32 %v6766_v9, %v7489_v22  ;;  %v6921_v49 = vpop.permute.xlu0 %4275 }
 0x57f   :  { %v3830_v59 = vrot.slane %v3816_v48, %v6567_v5  ;;  %v3833_v55 = vcombine.low %v2758_v56, %v2760_v57  ;;  %v3840_v43 = vrot.slane %v3832_v34, %v6567_v5  ;;  %5236 = vpow2.f32 %v4898_v3  ;;  %v7492_v56 = vld [vmem:[#allocation9_spill] sm:$0xff] }
 0x580   :  { %v2775_v44 = vrot.slane %v2761_v14, %v6567_v5  ;;  %v2776_v60 = vcombine.high %v2768_v30, %v2768_v30  ;;  %v2778_v19 = vcombine.high %v2010_v17, %v2010_v17  ;;  %v2785_v33 = vrot.slane %v2010_v17, %v6567_v5 }
 0x581   :  { %v3831_v2 = vcombine.low %v3823_v31, %v3830_v59  ;;  %v3847_v37 = vrot.slane %v3833_v55, %v6567_v5  ;;  %v4900_v32 = vmul.f32 -1.442695, %v1243_v58  ;;  %v2011_v9 = vmul.f32 %v6792_v39, %v7490_v51 }
 0x582   :  { %v6909_v8 = vpop.eup %5224  ;;  %v2777_v63 = vcombine.high %v2775_v44, %v2775_v44  ;;  %v3849_v12 = vcombine.low %v2768_v30, %v2776_v60  ;;  %v2792_v18 = vrot.slane %v2778_v19, %v6567_v5  ;;  %v2793_v42 = vcombine.high %v2785_v33, %v2785_v33  ;;  %v7493_v19 = vld [vmem:[#allocation24_spill] sm:$0xff] }
 0x583   :  { %4386 = vperm.xlu1 %4938, %v3831_v2   ;;  %v3848_v27 = vcombine.low %v3840_v43, %v3847_v37  ;;  %5238 = vpow2.f32 %v4900_v32  ;;  %v2795_v46 = vcombine.high %v2011_v9, %v2011_v9  ;;  %v2802_v7 = vrot.slane %v2011_v9, %v6567_v5  ;;  %v7494_v2 = vld [vmem:[#allocation26_spill] sm:$0xff] }
 0x584   :  { %v5227_v29 = vpop.eup %5226  ;;  %v3850_v54 = vcombine.low %v2775_v44, %v2777_v63  ;;  %v3857_v6 = vrot.slane %v3849_v12, %v6567_v5  ;;  %v2794_v50 = vcombine.high %v2792_v18, %v2792_v18  ;;  %v3866_v61 = vcombine.low %v2785_v33, %v2793_v42  ;;  %v7495_v12 = vld [vmem:[#allocation27_spill] sm:$0xff]  ;;  %v6942_v42 = vpop.permute.xlu0 %4281 }
 0x585   :  { %v1495_v39 = vadd.f32 1.0, %v5227_v29  ;;  %4389 = vperm.xlu0 %4939, %v3848_v27   ;;  %v2809_v4 = vrot.slane %v2795_v46, %v6567_v5  ;;  %v2810_v47 = vcombine.high %v2802_v7, %v2802_v7  ;;  %v2012_v21 = vmul.f32 %v6785_v40, %v7491_v53 }
 0x586   :  { %v5229_v23 = vpop.eup %5228  ;;  %v3864_v52 = vrot.slane %v3850_v54, %v6567_v5  ;;  %v3867_v41 = vcombine.low %v2792_v18, %v2794_v50  ;;  %v3874_v26 = vrot.slane %v3866_v61, %v6567_v5  ;;  %v2013_v0 = vmul.f32 %v6811_v36, %v7492_v56  ;;  %v6944_v54 = vpop.permute.xlu1 %4278 }
 0x587   :  { %v6923_v3 = vpop.eup %5230  ;;  %5240 = vrcp.f32 %v1495_v39  ;;  %v1498_v38 = vadd.f32 1.0, %v5229_v23  ;;  %v2811_v11 = vcombine.high %v2809_v4, %v2809_v4  ;;  %v3883_v48 = vcombine.low %v2802_v7, %v2810_v47 }
 0x588   :  { %v3865_v31 = vcombine.low %v3857_v6, %v3864_v52  ;;  %v3881_v40 = vrot.slane %v3867_v41, %v6567_v5  ;;  %v2812_v57 = vcombine.high %v2012_v21, %v2012_v21  ;;  %v2819_v34 = vrot.slane %v2012_v21, %v6567_v5 }
 0x589   :  { %v6927_v14 = vpop.eup %5232  ;;  %5242 = vrcp.f32 %v1498_v38  ;;  %v3884_v30 = vcombine.low %v2809_v4, %v2811_v11  ;;  %v3891_v36 = vrot.slane %v3883_v48, %v6567_v5  ;;  %v2829_v22 = vcombine.high %v2013_v0, %v2013_v0 }
 0x58a   :  { %4392 = vperm.xlu1 %4938, %v3865_v31   ;;  %v3882_v17 = vcombine.low %v3874_v26, %v3881_v40  ;;  %v2826_v58 = vrot.slane %v2812_v57, %v6567_v5  ;;  %v2827_v59 = vcombine.high %v2819_v34, %v2819_v34  ;;  %v2836_v55 = vrot.slane %v2013_v0, %v6567_v5  ;;  %v6954_v0 = vpop.permute.xlu1 %4284  ;;  %v6956_v40 = vpop.permute.xlu0 %4287 }
 0x58b   :  { %v6932_v43 = vpop.eup %5234  ;;  %v3898_v44 = vrot.slane %v3884_v30, %v6567_v5  ;;  %v2843_v60 = vrot.slane %v2829_v22, %v6567_v5  ;;  %v2018_v33 = vmul.f32 %v6830_v1, %v7493_v19  ;;  %v2020_v37 = vmul.f32 %v6849_v25, %v7494_v2 }
 0x58c   :  { %v5237_v32 = vpop.eup %5236  ;;  %4395 = vperm.xlu0 %4939, %v3882_v17   ;;  %v2828_v51 = vcombine.high %v2826_v58, %v2826_v58  ;;  %v3900_v9 = vcombine.low %v2819_v34, %v2827_v59  ;;  %v2844_v63 = vcombine.high %v2836_v55, %v2836_v55  ;;  %v2019_v18 = vmul.f32 %v6858_v20, %v7495_v12 }
 0x58d   :  { %v1497_v27 = vadd.f32 1.0, %v5237_v32  ;;  %v3899_v46 = vcombine.low %v3891_v36, %v3898_v44  ;;  %v2845_v7 = vcombine.high %v2843_v60, %v2843_v60  ;;  %v2914_v29 = vcombine.high %v2018_v33, %v2018_v33 }
 0x58e   :  { %v3901_v1 = vcombine.low %v2826_v58, %v2828_v51  ;;  %v3908_v6 = vrot.slane %v3900_v9, %v6567_v5  ;;  %v3917_v25 = vcombine.low %v2836_v55, %v2844_v63  ;;  %v2921_v50 = vrot.slane %v2018_v33, %v6567_v5  ;;  %v7497_v33 = vld [vmem:[#allocation29_spill] sm:$0xff]  ;;  %v7498_v63 = vld [vmem:[#allocation30_spill] sm:$0xff] }
 0x58f   :  { %5244 = vrcp.f32 %v1497_v27  ;;  %4398 = vperm.xlu1 %4938, %v3899_v46   ;;  %v3918_v61 = vcombine.low %v2843_v60, %v2845_v7  ;;  %v2928_v39 = vrot.slane %v2914_v29, %v6567_v5  ;;  %v2948_v20 = vcombine.high %v2020_v37, %v2020_v37  ;;  %v7496_v60 = vld [vmem:[#allocation28_spill] sm:$0xff]  ;;  %v6975_v29 = vpop.permute.xlu1 %4290 }
 0x590   :  { %v5239_v4 = vpop.eup %5238  ;;  %v3915_v47 = vrot.slane %v3901_v1, %v6567_v5  ;;  %v3925_v53 = vrot.slane %v3917_v25, %v6567_v5  ;;  %v2929_v21 = vcombine.high %v2921_v50, %v2921_v50  ;;  %v2955_v23 = vrot.slane %v2020_v37, %v6567_v5  ;;  %v6978_v25 = vpop.permute.xlu0 %4293 }
 0x591   :  { %v1499_v52 = vadd.f32 1.0, %v5239_v4  ;;  %v3932_v41 = vrot.slane %v3918_v61, %v6567_v5  ;;  %v2930_v26 = vcombine.high %v2928_v39, %v2928_v39  ;;  %v2962_v56 = vrot.slane %v2948_v20, %v6567_v5 }
 0x592   :  { %v3916_v38 = vcombine.low %v3908_v6, %v3915_v47  ;;  %v4002_v11 = vcombine.low %v2921_v50, %v2929_v21  ;;  %v2963_v48 = vcombine.high %v2955_v23, %v2955_v23  ;;  %v2931_v31 = vcombine.high %v2019_v18, %v2019_v18 }
 0x593   :  { %5246 = vrcp.f32 %v1499_v52  ;;  %v3933_v57 = vcombine.low %v3925_v53, %v3932_v41  ;;  %v4003_v34 = vcombine.low %v2928_v39, %v2930_v26  ;;  %v2964_v30 = vcombine.high %v2962_v56, %v2962_v56 }
 0x594   :  { %v6958_v36 = vpop.eup %5240  ;;  %4401 = vperm.xlu0 %4939, %v3916_v38   ;;  %v4010_v22 = vrot.slane %v4002_v11, %v6567_v5  ;;  %v4036_v17 = vcombine.low %v2955_v23, %v2963_v48  ;;  %v2938_v58 = vrot.slane %v2019_v18, %v6567_v5  ;;  %v2945_v59 = vrot.slane %v2931_v31, %v6567_v5  ;;  %v7499_v48 = vld [vmem:[#allocation31_spill] sm:$0xff] }
 0x595   :  { %4404 = vperm.xlu1 %4938, %v3933_v57   ;;  %v4017_v55 = vrot.slane %v4003_v34, %v6567_v5  ;;  %v4037_v44 = vcombine.low %v2962_v56, %v2964_v30  ;;  %v2022_v19 = vmul.f32 %v6861_v62, %v7496_v60  ;;  %v2021_v2 = vmul.f32 %v6876_v45, %v7497_v33  ;;  %v6995_v60 = vpop.permute.xlu0 %4299 }
 0x596   :  { %v6968_v37 = vpop.eup %5242  ;;  %v4044_v32 = vrot.slane %v4036_v17, %v6567_v5  ;;  %v2946_v51 = vcombine.high %v2938_v58, %v2938_v58  ;;  %v2947_v9 = vcombine.high %v2945_v59, %v2945_v59  ;;  %v2024_v12 = vmul.f32 %v6882_v28, %v7498_v63  ;;  %v6991_v17 = vpop.permute.xlu1 %4296 }
 0x597   :  { %v4018_v18 = vcombine.low %v4010_v22, %v4017_v55  ;;  %v4051_v27 = vrot.slane %v4037_v44, %v6567_v5  ;;  %v2982_v46 = vcombine.high %v2022_v19, %v2022_v19  ;;  %v2989_v7 = vrot.slane %v2022_v19, %v6567_v5 }
 0x598   :  { %v4019_v62 = vcombine.low %v2938_v58, %v2946_v51  ;;  %v4020_v1 = vcombine.low %v2945_v59, %v2947_v9  ;;  %v2965_v45 = vcombine.high %v2021_v2, %v2021_v2  ;;  %v2972_v6 = vrot.slane %v2021_v2, %v6567_v5  ;;  %v7500_v2 = vld [vmem:[#allocation32_spill] sm:$0xff] }
 0x599   :  { %4419 = vperm.xlu0 %4939, %v4018_v18   ;;  %v4052_v50 = vcombine.low %v4044_v32, %v4051_v27  ;;  %v2996_v61 = vrot.slane %v2982_v46, %v6567_v5  ;;  %v2997_v28 = vcombine.high %v2989_v7, %v2989_v7  ;;  %v3016_v39 = vcombine.high %v2024_v12, %v2024_v12  ;;  %v7501_v18 = vld [vmem:[#allocation33_spill] sm:$0xff] }
 0x59a   :  { %v4027_v20 = vrot.slane %v4019_v62, %v6567_v5  ;;  %v4034_v4 = vrot.slane %v4020_v1, %v6567_v5  ;;  %v2979_v47 = vrot.slane %v2965_v45, %v6567_v5  ;;  %v2980_v53 = vcombine.high %v2972_v6, %v2972_v6 }
 0x59b   :  { %v2998_v21 = vcombine.high %v2996_v61, %v2996_v61  ;;  %v4070_v23 = vcombine.low %v2989_v7, %v2997_v28  ;;  %v3023_v52 = vrot.slane %v2024_v12, %v6567_v5  ;;  %v3030_v41 = vrot.slane %v3016_v39, %v6567_v5 }
 0x59c   :  { %v6986_v26 = vpop.eup %5244  ;;  %v4035_v56 = vcombine.low %v4027_v20, %v4034_v4  ;;  %v2981_v38 = vcombine.high %v2979_v47, %v2979_v47  ;;  %v4053_v11 = vcombine.low %v2972_v6, %v2980_v53  ;;  %v2023_v31 = vmul.f32 %v6894_v15, %v7499_v48  ;;  %v7011_v4 = vpop.permute.xlu1 %4302 }
 0x59d   :  { %4425 = vperm.xlu0 %4939, %v4052_v50   ;;  %v4071_v57 = vcombine.low %v2996_v61, %v2998_v21  ;;  %v4078_v34 = vrot.slane %v4070_v23, %v6567_v5  ;;  %v3031_v30 = vcombine.high %v3023_v52, %v3023_v52  ;;  %v3032_v22 = vcombine.high %v3030_v41, %v3030_v41  ;;  %v7502_v21 = vld [vmem:[#allocation34_spill] sm:$0xff] }
 0x59e   :  { %4422 = vperm.xlu1 %4938, %v4035_v56   ;;  %v4054_v58 = vcombine.low %v2979_v47, %v2981_v38  ;;  %v4061_v59 = vrot.slane %v4053_v11, %v6567_v5  ;;  %v2999_v55 = vcombine.high %v2023_v31, %v2023_v31  ;;  %v3006_v44 = vrot.slane %v2023_v31, %v6567_v5  ;;  %v7503_v11 = vld [vmem:[#allocation35_spill] sm:$0xff] }
 0x59f   :  { %v4085_v19 = vrot.slane %v4071_v57, %v6567_v5  ;;  %v4104_v15 = vcombine.low %v3023_v52, %v3031_v30  ;;  %v4105_v33 = vcombine.low %v3030_v41, %v3032_v22  ;;  %v2026_v32 = vmul.f32 %v6897_v13, %v7500_v2  ;;  %v7016_v52 = vpop.permute.xlu0 %4305 }
 0x5a0   :  { %v7000_v51 = vpop.eup %5246  ;;  %v4068_v9 = vrot.slane %v4054_v58, %v6567_v5  ;;  %v3013_v63 = vrot.slane %v2999_v55, %v6567_v5  ;;  %v3014_v12 = vcombine.high %v3006_v44, %v3006_v44  ;;  %v2025_v27 = vmul.f32 %v6909_v8, %v7501_v18 }
 0x5a1   :  { %v4086_v46 = vcombine.low %v4078_v34, %v4085_v19  ;;  %v4112_v7 = vrot.slane %v4104_v15, %v6567_v5  ;;  %v4119_v62 = vrot.slane %v4105_v33, %v6567_v5  ;;  %v3050_v1 = vcombine.high %v2026_v32, %v2026_v32 }
 0x5a2   :  { %v4069_v45 = vcombine.low %v4061_v59, %v4068_v9  ;;  %v3015_v6 = vcombine.high %v3013_v63, %v3013_v63  ;;  %v4087_v50 = vcombine.low %v3006_v44, %v3014_v12  ;;  %v3057_v13 = vrot.slane %v2026_v32, %v6567_v5  ;;  %v7028_v9 = vpop.permute.xlu1 %4308 }
 0x5a3   :  { %4431 = vperm.xlu0 %4939, %v4086_v46   ;;  %v4120_v61 = vcombine.low %v4112_v7, %v4119_v62  ;;  %v3064_v28 = vrot.slane %v3050_v1, %v6567_v5  ;;  %v3033_v39 = vcombine.high %v2025_v27, %v2025_v27  ;;  %v3040_v20 = vrot.slane %v2025_v27, %v6567_v5  ;;  %v7504_v27 = vld [vmem:[#allocation8_spill] sm:$0xff]  ;;  %v7033_v7 = vpop.permute.xlu0 %4311 }
 0x5a4   :  { %4428 = vperm.xlu1 %4938, %v4069_v45   ;;  %v4088_v8 = vcombine.low %v3013_v63, %v3015_v6  ;;  %v4095_v47 = vrot.slane %v4087_v50, %v6567_v5  ;;  %v3065_v53 = vcombine.high %v3057_v13, %v3057_v13  ;;  %v2028_v23 = vmul.f32 %v6923_v3, %v7502_v21  ;;  %v7505_v6 = vld [vmem:[#allocation37_spill] sm:$0xff] }
 0x5a5   :  { %v3066_v41 = vcombine.high %v3064_v28, %v3064_v28  ;;  %v3047_v56 = vrot.slane %v3033_v39, %v6567_v5  ;;  %v3048_v38 = vcombine.high %v3040_v20, %v3040_v20  ;;  %v2027_v48 = vmul.f32 %v6927_v14, %v7503_v11  ;;  %v7506_v11 = vld [vmem:[#allocation23_spill] sm:$0xff] }
 0x5a6   :  { %v4102_v31 = vrot.slane %v4088_v8, %v6567_v5  ;;  %v4138_v57 = vcombine.low %v3057_v13, %v3065_v53  ;;  %v3084_v34 = vcombine.high %v2028_v23, %v2028_v23  ;;  %v3091_v30 = vrot.slane %v2028_v23, %v6567_v5 }
 0x5a7   :  { %4437 = vperm.xlu0 %4939, %v4120_v61   ;;  %v4139_v22 = vcombine.low %v3064_v28, %v3066_v41  ;;  %v3049_v58 = vcombine.high %v3047_v56, %v3047_v56  ;;  %v4121_v59 = vcombine.low %v3040_v20, %v3048_v38  ;;  %v3067_v3 = vcombine.high %v2027_v48, %v2027_v48 }
 0x5a8   :  { %v4103_v55 = vcombine.low %v4095_v47, %v4102_v31  ;;  %v4146_v44 = vrot.slane %v4138_v57, %v6567_v5  ;;  %v3098_v19 = vrot.slane %v3084_v34, %v6567_v5  ;;  %v3099_v15 = vcombine.high %v3091_v30, %v3091_v30  ;;  %v7047_v31 = vpop.permute.xlu1 %4314 }
 0x5a9   :  { %v4153_v33 = vrot.slane %v4139_v22, %v6567_v5  ;;  %v4122_v14 = vcombine.low %v3047_v56, %v3049_v58  ;;  %v4129_v2 = vrot.slane %v4121_v59, %v6567_v5  ;;  %v3074_v32 = vrot.slane %v2027_v48, %v6567_v5  ;;  %v7050_v58 = vpop.permute.xlu0 %4317 }
 0x5aa   :  { %4434 = vperm.xlu1 %4938, %v4103_v55   ;;  %v3100_v63 = vcombine.high %v3098_v19, %v3098_v19  ;;  %v4172_v12 = vcombine.low %v3091_v30, %v3099_v15  ;;  %v3081_v18 = vrot.slane %v3067_v3, %v6567_v5  ;;  %v2014_v46 = vmul.f32 %v6803_v24, %v7504_v27 }
 0x5ab   :  { %v4154_v62 = vcombine.low %v4146_v44, %v4153_v33  ;;  %v4136_v1 = vrot.slane %v4122_v14, %v6567_v5  ;;  %v3082_v45 = vcombine.high %v3074_v32, %v3074_v32  ;;  %v2029_v50 = vmul.f32 %v6958_v36, %v7505_v6  ;;  %v7507_v14 = vld [vmem:[#allocation11_spill] sm:$0xff] }
 0x5ac   :  { %v4173_v13 = vcombine.low %v3098_v19, %v3100_v63  ;;  %v4180_v61 = vrot.slane %v4172_v12, %v6567_v5  ;;  %v3083_v28 = vcombine.high %v3081_v18, %v3081_v18  ;;  %v2846_v39 = vcombine.high %v2014_v46, %v2014_v46 }
 0x5ad   :  { %4443 = vperm.xlu0 %4939, %v4154_v62   ;;  %v4137_v20 = vcombine.low %v4129_v2, %v4136_v1  ;;  %v4155_v8 = vcombine.low %v3074_v32, %v3082_v45  ;;  %v2853_v47 = vrot.slane %v2014_v46, %v6567_v5  ;;  %v3101_v24 = vcombine.high %v2029_v50, %v2029_v50  ;;  %v7508_v46 = vld [vmem:[#allocation12_spill] sm:$0xff]  ;;  %v7509_v1 = vld [vmem:[#allocation22_spill] sm:$0xff] }
 0x5ae   :  { %v4187_v53 = vrot.slane %v4173_v13, %v6567_v5  ;;  %v4156_v21 = vcombine.low %v3081_v18, %v3083_v28  ;;  %v2860_v23 = vrot.slane %v2846_v39, %v6567_v5  ;;  %v3108_v41 = vrot.slane %v2029_v50, %v6567_v5  ;;  %v7510_v13 = vld [vmem:[#allocation36_spill] sm:$0xff]  ;;  %v7066_v28 = vpop.permute.xlu1 %4320 }
 0x5af   :  { %4440 = vperm.xlu1 %4938, %v4137_v20   ;;  %v4163_v36 = vrot.slane %v4155_v8, %v6567_v5  ;;  %v2861_v56 = vcombine.high %v2853_v47, %v2853_v47  ;;  %v3115_v38 = vrot.slane %v3101_v24, %v6567_v5  ;;  %v2015_v48 = vmul.f32 %v6828_v16, %v7506_v11  ;;  %v7070_v24 = vpop.permute.xlu0 %4323 }
 0x5b0   :  { %v4188_v57 = vcombine.low %v4180_v61, %v4187_v53  ;;  %v4170_v34 = vrot.slane %v4156_v21, %v6567_v5  ;;  %v2862_v30 = vcombine.high %v2860_v23, %v2860_v23  ;;  %v3116_v22 = vcombine.high %v3108_v41, %v3108_v41 }
 0x5b1   :  { %v3934_v59 = vcombine.low %v2853_v47, %v2861_v56  ;;  %v3117_v3 = vcombine.high %v3115_v38, %v3115_v38  ;;  %v2863_v55 = vcombine.high %v2015_v48, %v2015_v48  ;;  %v2870_v44 = vrot.slane %v2015_v48, %v6567_v5  ;;  %v7512_v48 = vld [vmem:[#allocation25_spill] sm:$0xff] }
 0x5b2   :  { %4449 = vperm.xlu0 %4939, %v4188_v57   ;;  %v4171_v19 = vcombine.low %v4163_v36, %v4170_v34  ;;  %v3935_v15 = vcombine.low %v2860_v23, %v2862_v30  ;;  %v4189_v33 = vcombine.low %v3108_v41, %v3116_v22  ;;  %v4469_v16 = vrot.slane %v6921_v49, %v7507_v14  ;;  %v7511_v36 = vld [vmem:[#allocation13_spill] sm:$0xff]  ;;  %v7513_v34 = vld [vmem:[#allocation39_spill] sm:$0xff] }
 0x5b3   :  { %v3942_v2 = vrot.slane %v3934_v59, %v6567_v5  ;;  %v4190_v32 = vcombine.low %v3115_v38, %v3117_v3  ;;  %v2877_v63 = vrot.slane %v2863_v55, %v6567_v5  ;;  %v2878_v12 = vcombine.high %v2870_v44, %v2870_v44 }
 0x5b4   :  { %4446 = vperm.xlu1 %4938, %v4171_v19   ;;  %v3949_v18 = vrot.slane %v3935_v15, %v6567_v5  ;;  %v4197_v27 = vrot.slane %v4189_v33, %v6567_v5  ;;  %v4473_v62 = vrot.slane %v6944_v54, %v7508_v46  ;;  %v2016_v45 = vmul.f32 %v6814_v35, %v7509_v1  ;;  %v7085_v33 = vpop.permute.xlu1 %4326 }
 0x5b5   :  { %v4204_v6 = vrot.slane %v4190_v32, %v6567_v5  ;;  %v2879_v49 = vcombine.high %v2877_v63, %v2877_v63  ;;  %v3951_v50 = vcombine.low %v2870_v44, %v2878_v12  ;;  %v2030_v61 = vmul.f32 %v6932_v43, %v7510_v13 }
 0x5b6   :  { %v3950_v39 = vcombine.low %v3942_v2, %v3949_v18  ;;  %v4474_v20 = vsel %vm168_vm0, %v4473_v62, %v4469_v16  ;;  %v2880_v8 = vcombine.high %v2016_v45, %v2016_v45  ;;  %v2887_v47 = vrot.slane %v2016_v45, %v6567_v5 }
 0x5b7   :  { %v4205_v54 = vcombine.low %v4197_v27, %v4204_v6  ;;  %v3952_v53 = vcombine.low %v2877_v63, %v2879_v49  ;;  %v3959_v35 = vrot.slane %v3951_v50, %v6567_v5  ;;  %v3118_v21 = vcombine.high %v2030_v61, %v2030_v61  ;;  %v7088_v63 = vpop.permute.xlu0 %4329  ;;  %v7514_v6 = vld [vmem:[#allocation15_spill] sm:$0xff] }
 0x5b8   :  { %4407 = vperm.xlu0 %4939, %v3950_v39   ;;  %v2894_v23 = vrot.slane %v2880_v8, %v6567_v5  ;;  %v2895_v41 = vcombine.high %v2887_v47, %v2887_v47  ;;  %v3125_v43 = vrot.slane %v2030_v61, %v6567_v5  ;;  %v4478_v56 = vrot.slane %v6942_v42, %v7511_v36 }
 0x5b9   :  { %4452 = vperm.xlu1 %4938, %v4205_v54   ;;  %v3966_v38 = vrot.slane %v3952_v53, %v6567_v5  ;;  %v3132_v11 = vrot.slane %v3118_v21, %v6567_v5  ;;  %v2017_v57 = vmul.f32 %v6846_v10, %v7512_v48  ;;  %v2031_v30 = vmul.f32 %v6986_v26, %v7513_v34  ;;  %v7516_v53 = vld [vmem:[#allocation38_spill] sm:$0xff]  ;;  %v7517_v34 = vld [vmem:[#allocation17_spill] sm:$0xff] }
 0x5ba   :  { %v2896_v22 = vcombine.high %v2894_v23, %v2894_v23  ;;  %v3968_v59 = vcombine.low %v2887_v47, %v2895_v41  ;;  %v3133_v3 = vcombine.high %v3125_v43, %v3125_v43  ;;  %v4479_v55 = vsel %vm175_vm1, %v4478_v56, %v4474_v20  ;;  %v7515_v47 = vld [vmem:[#allocation14_spill] sm:$0xff] }
 0x5bb   :  { %v3967_v44 = vcombine.low %v3959_v35, %v3966_v38  ;;  %v3134_v19 = vcombine.high %v3132_v11, %v3132_v11  ;;  %v2897_v15 = vcombine.high %v2017_v57, %v2017_v57  ;;  %v2904_v42 = vrot.slane %v2017_v57, %v6567_v5  ;;  %v7103_v56 = vpop.permute.xlu1 %4332 }
 0x5bc   :  { %v3969_v16 = vcombine.low %v2894_v23, %v2896_v22  ;;  %v3976_v2 = vrot.slane %v3968_v59, %v6567_v5  ;;  %v4206_v32 = vcombine.low %v3125_v43, %v3133_v3  ;;  %v3135_v10 = vcombine.high %v2031_v30, %v2031_v30  ;;  %v7107_v57 = vpop.permute.xlu0 %4335 }
 0x5bd   :  { %4410 = vperm.xlu0 %4939, %v3967_v44   ;;  %v4207_v26 = vcombine.low %v3132_v11, %v3134_v19  ;;  %v2911_v12 = vrot.slane %v2897_v15, %v6567_v5  ;;  %v2912_v18 = vcombine.high %v2904_v42, %v2904_v42  ;;  %v3142_v27 = vrot.slane %v2031_v30, %v6567_v5  ;;  %v7518_v44 = vld [vmem:[#allocation16_spill] sm:$0xff] }
 0x5be   :  { %v3983_v62 = vrot.slane %v3969_v16, %v6567_v5  ;;  %v4214_v1 = vrot.slane %v4206_v32, %v6567_v5  ;;  %v3149_v45 = vrot.slane %v3135_v10, %v6567_v5  ;;  %v4488_v49 = vrot.slane %v6956_v40, %v7514_v6  ;;  %v7521_v10 = vld [vmem:[#allocation18_spill] sm:$0xff] }
 0x5bf   :  { %v4221_v50 = vrot.slane %v4207_v26, %v6567_v5  ;;  %v2913_v13 = vcombine.high %v2911_v12, %v2911_v12  ;;  %v3985_v61 = vcombine.low %v2904_v42, %v2912_v18  ;;  %v3150_v39 = vcombine.high %v3142_v27, %v3142_v27  ;;  %v7519_v42 = vld [vmem:[#allocation41_spill] sm:$0xff] }
 0x5c0   :  { %v3984_v20 = vcombine.low %v3976_v2, %v3983_v62  ;;  %v3151_v8 = vcombine.high %v3149_v45, %v3149_v45  ;;  %v4483_v54 = vrot.slane %v6954_v0, %v7515_v47  ;;  %v2032_v35 = vmul.f32 %v6968_v37, %v7516_v53  ;;  %v7520_v2 = vld [vmem:[#allocation10_spill] sm:$0xff] }
 0x5c1   :  { %v4222_v21 = vcombine.low %v4214_v1, %v4221_v50  ;;  %v3986_v23 = vcombine.low %v2911_v12, %v2913_v13  ;;  %v3993_v41 = vrot.slane %v3985_v61, %v6567_v5  ;;  %v4223_v43 = vcombine.low %v3142_v27, %v3150_v39 }
 0x5c2   :  { %4413 = vperm.xlu0 %4939, %v3984_v20   ;;  %v4224_v40 = vcombine.low %v3149_v45, %v3151_v8  ;;  %v4484_v38 = vsel %vm182_vm2, %v4483_v54, %v4479_v55  ;;  %v3152_v11 = vcombine.high %v2032_v35, %v2032_v35  ;;  %v3159_v48 = vrot.slane %v2032_v35, %v6567_v5  ;;  %v7522_v45 = vld [vmem:[#allocation5_spill] sm:$0xff] }
 0x5c3   :  { %4455 = vperm.xlu1 %4938, %v4222_v21   ;;  %v4000_v0 = vrot.slane %v3986_v23, %v6567_v5  ;;  %v4231_v37 = vrot.slane %v4223_v43, %v6567_v5  ;;  %v4498_v30 = vrot.slane %v6978_v25, %v7517_v34  ;;  %v4489_v22 = vsel %vm189_vm3, %v4488_v49, %v4484_v38  ;;  %v7133_v61 = vpop.permute.xlu0 %4341 }
 0x5c4   :  { %v4238_v59 = vrot.slane %v4224_v40, %v6567_v5  ;;  %v3166_v3 = vrot.slane %v3152_v11, %v6567_v5  ;;  %v3167_v55 = vcombine.high %v3159_v48, %v3159_v48  ;;  %v4493_v19 = vrot.slane %v6975_v29, %v7518_v44 }
 0x5c5   :  { %v4001_v15 = vcombine.low %v3993_v41, %v4000_v0  ;;  %v2033_v16 = vmul.f32 %v7000_v51, %v7519_v42  ;;  %v4505_v32 = vadd.s32 4294967232, %v7520_v2  ;;  %v4503_v26 = vrot.slane %v6991_v17, %v7521_v10  ;;  %v7129_v51 = vpop.permute.xlu1 %4338 }
 0x5c6   :  { %v4239_v25 = vcombine.low %v4231_v37, %v4238_v59  ;;  %v3168_v12 = vcombine.high %v3166_v3, %v3166_v3  ;;  %v4240_v18 = vcombine.low %v3159_v48, %v3167_v55  ;;  %v4494_v27 = vsel %vm196_vm4, %v4493_v19, %v4489_v22 }
 0x5c7   :  { %4416 = vperm.xlu0 %4939, %v4001_v15   ;;  %v3169_v62 = vcombine.high %v2033_v16, %v2033_v16  ;;  %v3176_v1 = vrot.slane %v2033_v16, %v6567_v5  ;;  %v7126_v29 = vsub.s32 %v4505_v32, %v7522_v45  ;;  %v4499_v49 = vsel %vm203_vm5, %v4498_v30, %v4494_v27 }
 0x5c8   :  { %4458 = vperm.xlu1 %4938, %v4239_v25   ;;  %v4241_v50 = vcombine.low %v3166_v3, %v3168_v12  ;;  %v4504_v17 = vsel %vm210_vm6, %v4503_v26, %v4499_v49  ;;  %v4519_v13 = vadd.s32 4294967216, %v7520_v2  ;;  %v4248_v54 = vrot.slane %v4240_v18, %v6567_v5 }
 0x5c9   :  { %v3183_v39 = vrot.slane %v3169_v62, %v6567_v5  ;;  %v3184_v20 = vcombine.high %v3176_v1, %v3176_v1  ;;  %v4509_v8 = vrot.slane %v6995_v60, %v7126_v29  ;;  %v4512_v21 = vadd.s32 4294967224, %v7520_v2 }
 0x5ca   :  { %v4255_v53 = vrot.slane %v4241_v50, %v6567_v5  ;;  %v7141_v35 = vsub.s32 %v4519_v13, %v7522_v45  ;;  %v4533_v40 = vadd.s32 4294967200, %v7520_v2  ;;  %v4526_v37 = vadd.s32 4294967208, %v7520_v2  ;;  %v7155_v30 = vpop.permute.xlu1 %4344 }
 0x5cb   :  { %v3185_v23 = vcombine.high %v3183_v39, %v3183_v39  ;;  %v4257_v41 = vcombine.low %v3176_v1, %v3184_v20  ;;  %v4511_v43 = vsel %vm4510_vm14, %v4509_v8, %v4504_v17  ;;  %v7149_v11 = vsub.s32 %v4512_v21, %v7522_v45  ;;  %v4348_v3 = vpop.permute.xlu0 %4347 }
 0x5cc   :  { %v4256_v38 = vcombine.low %v4248_v54, %v4255_v53  ;;  %v4523_v60 = vrot.slane %v7016_v52, %v7141_v35  ;;  %v7152_v0 = vsub.s32 %v4533_v40, %v7522_v45  ;;  %v4547_v52 = vadd.s32 4294967184, %v7520_v2 }
 0x5cd   :  { %v4258_v48 = vcombine.low %v3183_v39, %v3185_v23  ;;  %v4265_v22 = vrot.slane %v4257_v41, %v6567_v5  ;;  %v4516_v59 = vrot.slane %v7011_v4, %v7149_v11  ;;  %v7163_v19 = vsub.s32 %v4526_v37, %v7522_v45 }
 0x5ce   :  { %4461 = vperm.xlu1 %4938, %v4256_v38   ;;  %v4540_v15 = vadd.s32 4294967192, %v7520_v2  ;;  %v4537_v16 = vrot.slane %v7033_v7, %v7152_v0  ;;  %v7170_v32 = vsub.s32 %v4547_v52, %v7522_v45  ;;  %v4564_v18 = vrot.slane %v7070_v24, %v7507_v14 }
 0x5cf   :  { %v4272_v55 = vrot.slane %v4258_v48, %v6567_v5  ;;  %v4518_v42 = vsel %vm4517_vm15, %v4516_v59, %v4511_v43  ;;  %v4530_v5 = vrot.slane %v7028_v9, %v7163_v19  ;;  %v4554_v7 = vadd.s32 4294967176, %v7520_v2 }
 0x5d0   :  { %v4525_v26 = vsel %vm4524_vm8, %v4523_v60, %v4518_v42  ;;  %v7176_v25 = vsub.s32 %v4540_v15, %v7522_v45  ;;  %v4551_v12 = vrot.slane %v7050_v58, %v7170_v32  ;;  %v4573_v9 = vrot.slane %v7088_v63, %v7511_v36 }
 0x5d1   :  { %v4273_v4 = vcombine.low %v4265_v22, %v4272_v55  ;;  %v4532_v27 = vsel %vm4531_vm9, %v4530_v5, %v4525_v26  ;;  %v4568_v1 = vrot.slane %v7085_v33, %v7508_v46  ;;  %v4351_v49 = vpop.permute.xlu1 %4350  ;;  %v7192_v24 = vsub.s32 %v4554_v7, %v7522_v45 }
 0x5d2   :  { %v4544_v62 = vrot.slane %v7047_v31, %v7176_v25  ;;  %v4539_v58 = vsel %vm4538_vm10, %v4537_v16, %v4532_v27  ;;  %v4583_v2 = vrot.slane %v7107_v57, %v7514_v6  ;;  %v4578_v50 = vrot.slane %v7103_v56, %v7515_v47 }
 0x5d3   :  { %4464 = vperm.xlu1 %4938, %v4273_v4   ;;  %v4569_v63 = vsel %vm168_vm0, %v4568_v1, %v4564_v18  ;;  %v4588_v33 = vrot.slane %v7129_v51, %v7518_v44  ;;  %v4558_v45 = vrot.slane %v7066_v28, %v7192_v24  ;;  %v4593_v57 = vrot.slane %v7133_v61, %v7517_v34 }
 0x5d4   :  { %v4354_v17 = vpop.permute.xlu0 %4353  ;;  %v4546_v31 = vsel %vm4545_vm11, %v4544_v62, %v4539_v58  ;;  %v4574_v39 = vsel %vm175_vm1, %v4573_v9, %v4569_v63  ;;  %v4598_v20 = vrot.slane %v7155_v30, %v7521_v10  ;;  %v4603_v28 = vrot.slane %v4348_v3, %v7126_v29 }
 0x5d5   :  { %v4553_v13 = vsel %vm4552_vm12, %v4551_v12, %v4546_v31  ;;  %v4579_v56 = vsel %vm182_vm2, %v4578_v50, %v4574_v39 }
 0x5d6   :  { %v7212_v51 = vsel %vm4559_vm13, %v4558_v45, %v4553_v13  ;;  %v4584_v8 = vsel %vm189_vm3, %v4583_v2, %v4579_v56 }
 0x5d7   :  { %5259 = shalt.err (!%p5256_p4)
}
 0x5d8   :  { %4819 = dma.vmem_to_hbm [thread:$0]  %s4817_s20, 32, %s7323_s6, [#allocation3]   ;;  %v4589_v61 = vsel %vm196_vm4, %v4588_v33, %v4584_v8  ;;  %v4608_v54 = vrot.slane %v4351_v49, %v7149_v11  ;;  %v4613_v41 = vrot.slane %v4354_v17, %v7141_v35 }
 0x5d9   :  { %v4360_v53 = vpop.permute.xlu0 %4359  ;;  %v4357_v21 = vpop.permute.xlu1 %4356  ;;  %v4594_v23 = vsel %vm203_vm5, %v4593_v57, %v4589_v61 }
 0x5da   :  { %v4599_v43 = vsel %vm210_vm6, %v4598_v20, %v4594_v23  ;;  %v4618_v40 = vrot.slane %v4357_v21, %v7163_v19  ;;  %v4623_v60 = vrot.slane %v4360_v53, %v7152_v0 }
 0x5db   :  { %v4604_v38 = vsel %vm4510_vm14, %v4603_v28, %v4599_v43 }
 0x5dc   :  { %v4609_v48 = vsel %vm4517_vm15, %v4608_v54, %v4604_v38 }
 0x5dd   :  { %v4614_v37 = vsel %vm4524_vm8, %v4613_v41, %v4609_v48 }
 0x5de   :  { %v4619_v30 = vsel %vm4531_vm9, %v4618_v40, %v4614_v37 }
 0x5df   :  { %v4624_v22 = vsel %vm4538_vm10, %v4623_v60, %v4619_v30 }
 0x5e0   :  { %v4363_v59 = vpop.permute.xlu1 %4362 }
 0x5e1   :  { %v4628_v52 = vrot.slane %v4363_v59, %v7176_v25 }
 0x5e2   :  { %v4366_v55 = vpop.permute.xlu0 %4365 }
 0x5e3   :  { %v4629_v3 = vsel %vm4545_vm11, %v4628_v52, %v4624_v22  ;;  %v4633_v15 = vrot.slane %v4366_v55, %v7170_v32 }
 0x5e5   :  { %v4634_v4 = vsel %vm4552_vm12, %v4633_v15, %v4629_v3 }
 0x5e9   :  { %v4369_v42 = vpop.permute.xlu1 %4368  ;;  %v4372_v5 = vpop.permute.xlu0 %4371 }
 0x5ea   :  { %v4638_v16 = vrot.slane %v4369_v42, %v7192_v24  ;;  %v4643_v61 = vrot.slane %v4372_v5, %v7507_v14 }
 0x5ec   :  { %v7237_v26 = vsel %vm4559_vm13, %v4638_v16, %v4634_v4 }
 0x5ee   :  { %v4375_v18 = vpop.permute.xlu1 %4374 }
 0x5ef   :  { %v4647_v28 = vrot.slane %v4375_v18, %v7508_v46 }
 0x5f1   :  { %v4648_v23 = vsel %vm168_vm0, %v4647_v28, %v4643_v61 }
 0x5f2   :  { %v4378_v12 = vpop.permute.xlu0 %4377 }
 0x5f3   :  { %v4652_v53 = vrot.slane %v4378_v12, %v7511_v36 }
 0x5f5   :  { %v4653_v37 = vsel %vm175_vm1, %v4652_v53, %v4648_v23 }
 0x5f7   :  { %v4384_v7 = vpop.permute.xlu0 %4383  ;;  %v4381_v27 = vpop.permute.xlu1 %4380 }
 0x5f8   :  { %v4657_v41 = vrot.slane %v4381_v27, %v7515_v47  ;;  %v4662_v48 = vrot.slane %v4384_v7, %v7514_v6 }
 0x5fa   :  { %v4658_v30 = vsel %vm182_vm2, %v4657_v41, %v4653_v37 }
 0x5fe   :  { %v4387_v9 = vpop.permute.xlu1 %4386 }
 0x5ff   :  { %v4667_v22 = vrot.slane %v4387_v9, %v7518_v44 }
 0x600   :  { %v4390_v62 = vpop.permute.xlu0 %4389 }
 0x601   :  { %v4672_v55 = vrot.slane %v4390_v62, %v7517_v34 }
 0x605   :  { %v4393_v49 = vpop.permute.xlu1 %4392 }
 0x606   :  { %v4677_v16 = vrot.slane %v4393_v49, %v7521_v10 }
 0x607   :  { %v4396_v1 = vpop.permute.xlu0 %4395 }
 0x608   :  { %v4682_v18 = vrot.slane %v4396_v1, %v7126_v29 }
 0x60a   :  { %v4399_v2 = vpop.permute.xlu1 %4398 }
 0x60b   :  { %v4687_v62 = vrot.slane %v4399_v2, %v7149_v11 }
 0x60f   :  { %v7239_v58 = vpop.permute.xlu0 %4401 }
 0x610   :  { %v7241_v17 = vpop.permute.xlu1 %4404 }
 0x614   :  { %v4420_v50 = vpop.permute.xlu0 %4419 }
 0x615   :  { %v4722_v43 = vrot.slane %v4420_v50, %v7507_v14 }
 0x618   :  { %v4426_v31 = vpop.permute.xlu0 %4425 }
 0x619   :  { %v4423_v63 = vpop.permute.xlu1 %4422 }
 0x61a   :  { %v4726_v54 = vrot.slane %v4423_v63, %v7508_v46  ;;  %v4731_v46 = vrot.slane %v4426_v31, %v7511_v36 }
 0x61c   :  { %v4727_v38 = vsel %vm168_vm0, %v4726_v54, %v4722_v43 }
 0x61d   :  { %v4732_v59 = vsel %vm175_vm1, %v4731_v46, %v4727_v38 }
 0x61e   :  { %v4432_v33 = vpop.permute.xlu0 %4431 }
 0x61f   :  { %v4429_v13 = vpop.permute.xlu1 %4428  ;;  %v4741_v15 = vrot.slane %v4432_v33, %v7514_v6  ;;  %v4697_v33 = vrot.slane %v7241_v17, %v7163_v19 }
 0x620   :  { %v4736_v60 = vrot.slane %v4429_v13, %v7515_v47  ;;  %v4663_v47 = vsel %vm189_vm3, %v4662_v48, %v4658_v30 }
 0x621   :  { %v4668_v36 = vsel %vm196_vm4, %v4667_v22, %v4663_v47 }
 0x622   :  { %v4438_v45 = vpop.permute.xlu0 %4437  ;;  %v4737_v14 = vsel %vm182_vm2, %v4736_v60, %v4732_v59 }
 0x623   :  { %v4742_v4 = vsel %vm189_vm3, %v4741_v15, %v4737_v14  ;;  %v4751_v7 = vrot.slane %v4438_v45, %v7517_v34 }
 0x625   :  { %v4435_v39 = vpop.permute.xlu1 %4434 }
 0x626   :  { %v4746_v3 = vrot.slane %v4435_v39, %v7518_v44  ;;  %v4673_v44 = vsel %vm203_vm5, %v4672_v55, %v4668_v36 }
 0x627   :  { %v4678_v6 = vsel %vm210_vm6, %v4677_v16, %v4673_v44 }
 0x628   :  { %v4444_v57 = vpop.permute.xlu0 %4443  ;;  %v4747_v5 = vsel %vm196_vm4, %v4746_v3, %v4742_v4  ;;  %v4683_v1 = vsel %vm4510_vm14, %v4682_v18, %v4678_v6 }
 0x629   :  { %v4752_v49 = vsel %vm203_vm5, %v4751_v7, %v4747_v5  ;;  %v4761_v63 = vrot.slane %v4444_v57, %v7126_v29  ;;  %v4688_v34 = vsel %vm4517_vm15, %v4687_v62, %v4683_v1 }
 0x62a   :  { %v4441_v56 = vpop.permute.xlu1 %4440 }
 0x62b   :  { %v4756_v12 = vrot.slane %v4441_v56, %v7521_v10  ;;  %v4692_v10 = vrot.slane %v7239_v58, %v7141_v35 }
 0x62d   :  { %v7243_v20 = vpop.permute.xlu0 %4449  ;;  %v4757_v50 = vsel %vm210_vm6, %v4756_v12, %v4752_v49 }
 0x62e   :  { %v4762_v13 = vsel %vm4510_vm14, %v4761_v63, %v4757_v50  ;;  %v4771_v29 = vrot.slane %v7243_v20, %v7141_v35 }
 0x62f   :  { %v4447_v8 = vpop.permute.xlu1 %4446 }
 0x630   :  { %v4766_v31 = vrot.slane %v4447_v8, %v7149_v11  ;;  %v4693_v8 = vsel %vm4524_vm8, %v4692_v10, %v4688_v34 }
 0x631   :  { %v4698_v28 = vsel %vm4531_vm9, %v4697_v33, %v4693_v8 }
 0x632   :  { %v4767_v39 = vsel %vm4517_vm15, %v4766_v31, %v4762_v13 }
 0x633   :  { %v4408_v21 = vpop.permute.xlu0 %4407 }
 0x634   :  { %v4453_v40 = vpop.permute.xlu1 %4452  ;;  %v4702_v2 = vrot.slane %v4408_v21, %v7152_v0 }
 0x635   :  { %v4776_v58 = vrot.slane %v4453_v40, %v7163_v19  ;;  %v4772_v19 = vsel %vm4524_vm8, %v4771_v29, %v4767_v39 }
 0x636   :  { %v4703_v53 = vsel %vm4538_vm10, %v4702_v2, %v4698_v28 }
 0x637   :  { %v4777_v35 = vsel %vm4531_vm9, %v4776_v58, %v4772_v19 }
 0x638   :  { %v4411_v52 = vpop.permute.xlu0 %4410 }
 0x639   :  { %v4707_v11 = vrot.slane %v4411_v52, %v7176_v25 }
 0x63b   :  { %v4708_v23 = vsel %vm4545_vm11, %v4707_v11, %v4703_v53 }
 0x63d   :  { %v4414_v27 = vpop.permute.xlu0 %4413 }
 0x63e   :  { %v4456_v42 = vpop.permute.xlu1 %4455  ;;  %v4712_v57 = vrot.slane %v4414_v27, %v7170_v32 }
 0x63f   :  { %v4781_v17 = vrot.slane %v4456_v42, %v7152_v0 }
 0x640   :  { %v4713_v20 = vsel %vm4552_vm12, %v4712_v57, %v4708_v23 }
 0x641   :  { %v4782_v0 = vsel %vm4538_vm10, %v4781_v17, %v4777_v35 }
 0x642   :  { %v4417_v45 = vpop.permute.xlu0 %4416 }
 0x643   :  { %v4459_v9 = vpop.permute.xlu1 %4458  ;;  %v4717_v61 = vrot.slane %v4417_v45, %v7192_v24 }
 0x644   :  { %v4786_v54 = vrot.slane %v4459_v9, %v7176_v25 }
 0x645   :  { %v4718_v43 = vsel %vm4559_vm13, %v4717_v61, %v4713_v20 }
 0x646   :  { %v4787_v40 = vsel %vm4545_vm11, %v4786_v54, %v4782_v0 }
 0x649   :  { %v4462_v56 = vpop.permute.xlu1 %4461 }
 0x64a   :  { %v4791_v21 = vrot.slane %v4462_v56, %v7170_v32  ;;  %v4798_v32 = vsel %vm251_vm7, %v4718_v43, %v7212_v51 }
 0x64c   :  { %v4792_v38 = vsel %vm4552_vm12, %v4791_v21, %v4787_v40 }
 0x64e   :  { %v4465_v41 = vpop.permute.xlu1 %4464 }
 0x64f   :  { %v4796_v25 = vrot.slane %v4465_v41, %v7192_v24 }
 0x651   :  { %v4797_v60 = vsel %vm4559_vm13, %v4796_v25, %v4792_v38 }
 0x652   :  { %v4799_v48 = vsel %vm251_vm7, %v4797_v60, %v7237_v26 }
 0x653   :  { %v4800_v37 = vcombine.low %v4798_v32, %v4799_v48 }
 0x655   :  { %4902 = vst.sshfl [vmem:[%s7324_s7] sm:$0x33 pattern:$0x76325410] %v4800_v37 }
 0x656   :  { %5268 = dma.done.wait [#allocation3], 32  }
 0x657   :  { %5269 = vsyncadd [#allocation3], 4294967264 }
 0x658   :  { %4827 = vsyncpa [#allocation3], 1 }

</bundles_post_ra>
